<compile_context>
chip_gen: v6e
topology: v6e:2x2x1
jax: 0.10.0
libtpu: 0.0.40
codegen_flags: <defaults>
</compile_context>

<pallas_src>
import math

import jax
import jax.numpy as jnp
from jax.experimental import pallas as pl
from jax.experimental.pallas import tpu as pltpu

# ----------------------------- tiny T5 config -------------------------------
D_MODEL = 64
N_HEADS = 4
D_KV = 16                      # d_model // n_heads
INNER = N_HEADS * D_KV         # 64
D_FF = 128
N_LAYERS = 2                   # encoder layers == decoder layers
VOCAB = 100
N_BUCKETS = 32
MAX_DIST = 128
EOS_ID = 1
PAD_ID = 0                     # also decoder_start_token_id
EPS = 1e-6
N_CLASSES = 1
NEG_INF = -1e9


# --------------------------- fused forward kernel ---------------------------

def _fused_forward_kernel(
    enc_h_ref, dec_h_ref, enc_bias_ref, self_bias_ref, cross_bias_ref, sel_ref,
    e_ln1_ref, e_wqkv_ref, e_wo_ref, e_ln2_ref, e_wi_ref, e_wff_ref, e_fln_ref,
    d_ln1_ref, d_swqkv_ref, d_swo_ref, d_ln2_ref,
    d_cwq_ref, d_cwkv_ref, d_cwo_ref, d_ln3_ref, d_wi_ref, d_wff_ref, d_fln_ref,
    h_w1_ref, h_b1_ref, h_w2_ref, h_b2_ref, h_w3_ref, h_b3_ref,
    o_ref,
):
    f32 = jnp.float32

    def rms(x, w):
        # T5LayerNorm: no mean subtraction, no bias (f32 rsqrt on the EUP)
        var = jnp.mean(x * x, axis=-1, keepdims=True)
        return x * jax.lax.rsqrt(var + EPS) * w

    def softmax(s):
        s = s - jnp.max(s, axis=-1, keepdims=True)
        p = jnp.exp(s)
        return p / jnp.sum(p, axis=-1, keepdims=True)

    def mha(q2d, k2d, v2d, wo, bias):
        # q2d: (B*Sq, INNER), k2d/v2d: (B*Sk, INNER), bias: (B, H, Sq, Sk)
        bb, hh, sq, sk = bias.shape
        q = q2d.reshape(bb, sq, INNER)
        k = k2d.reshape(bb, sk, INNER)
        v = v2d.reshape(bb, sk, INNER)
        ctx_heads = []
        for h in range(hh):
            sl = slice(h * D_KV, (h + 1) * D_KV)
            # T5 attention: NO 1/sqrt(d) scaling, additive rel-pos/mask bias
            s = jnp.einsum('bqd,bkd->bqk', q[..., sl], k[..., sl],
                           preferred_element_type=f32) + bias[:, h]
            p = softmax(s)
            ctx_heads.append(jnp.einsum('bqk,bkd->bqd', p, v[..., sl],
                                        preferred_element_type=f32))
        ctx = jnp.concatenate(ctx_heads, axis=-1).reshape(bb * sq, INNER)
        return jnp.dot(ctx, wo, preferred_element_type=f32)

    def self_attention(x, wqkv, wo, bias):
        qkv = jnp.dot(x, wqkv, preferred_element_type=f32)      # fused QKV (lane 192)
        return mha(qkv[:, :INNER], qkv[:, INNER:2 * INNER], qkv[:, 2 * INNER:],
                   wo, bias)

    def cross_attention(x, enc, wq, wkv, wo, bias):
        q = jnp.dot(x, wq, preferred_element_type=f32)
        kv = jnp.dot(enc, wkv, preferred_element_type=f32)       # fused KV (lane 128)
        return mha(q, kv[:, :INNER], kv[:, INNER:], wo, bias)

    def ffn(x, wi, wo):
        h = jnp.maximum(jnp.dot(x, wi, preferred_element_type=f32), 0.0)
        return jnp.dot(h, wo, preferred_element_type=f32)

    enc_bias = enc_bias_ref[...]
    self_bias = self_bias_ref[...]
    cross_bias = cross_bias_ref[...]

    # ------------------------------ encoder ---------------------------------
    hidden = enc_h_ref[...]
    for l in range(N_LAYERS):
        normed = rms(hidden, e_ln1_ref[l])
        hidden = hidden + self_attention(normed, e_wqkv_ref[l], e_wo_ref[l],
                                         enc_bias)
        normed = rms(hidden, e_ln2_ref[l])
        hidden = hidden + ffn(normed, e_wi_ref[l], e_wff_ref[l])
    enc_out = rms(hidden, e_fln_ref[...])

    # ------------------------------ decoder ---------------------------------
    hidden = dec_h_ref[...]
    for l in range(N_LAYERS):
        normed = rms(hidden, d_ln1_ref[l])
        hidden = hidden + self_attention(normed, d_swqkv_ref[l], d_swo_ref[l],
                                         self_bias)
        normed = rms(hidden, d_ln2_ref[l])
        hidden = hidden + cross_attention(normed, enc_out, d_cwq_ref[l],
                                          d_cwkv_ref[l], d_cwo_ref[l],
                                          cross_bias)
        normed = rms(hidden, d_ln3_ref[l])
        hidden = hidden + ffn(normed, d_wi_ref[l], d_wff_ref[l])
    dec_out = rms(hidden, d_fln_ref[...])

    # --------- sentence rep (one-hot gather via MXU) + MLP head --------------
    sent = jnp.dot(sel_ref[...], dec_out, preferred_element_type=f32)   # (B, D)
    h1 = jnp.maximum(jnp.dot(sent, h_w1_ref[...], preferred_element_type=f32)
                     + h_b1_ref[...], 0.0)
    h2 = jnp.maximum(jnp.dot(h1, h_w2_ref[...], preferred_element_type=f32)
                     + h_b2_ref[...], 0.0)
    o_ref[...] = jnp.dot(h2, h_w3_ref[...], preferred_element_type=f32) \
        + h_b3_ref[...]


def _full_spec(arr):
    zeros = (0,) * arr.ndim
    return pl.BlockSpec(arr.shape, lambda i, _z=zeros: _z)


# ------------------------------- JAX glue -----------------------------------

def _relative_position_bucket(relative_position, bidirectional,
                              num_buckets=N_BUCKETS, max_distance=MAX_DIST):
    relative_buckets = jnp.zeros_like(relative_position)
    if bidirectional:
        num_buckets //= 2
        relative_buckets = relative_buckets + \
            (relative_position > 0).astype(jnp.int32) * num_buckets
        relative_position = jnp.abs(relative_position)
    else:
        relative_position = -jnp.minimum(relative_position, 0)
    max_exact = num_buckets // 2
    is_small = relative_position < max_exact
    rel_f = jnp.maximum(relative_position.astype(jnp.float32), 1.0)
    rel_if_large = max_exact + (
        jnp.log(rel_f / max_exact) / math.log(max_distance / max_exact)
        * (num_buckets - max_exact)).astype(jnp.int32)
    rel_if_large = jnp.minimum(rel_if_large, num_buckets - 1)
    return relative_buckets + jnp.where(is_small, relative_position, rel_if_large)


def compute_position_bias(rel_emb, q_len, k_len, bidirectional):
    ctx = jnp.arange(q_len, dtype=jnp.int32)[:, None]
    mem = jnp.arange(k_len, dtype=jnp.int32)[None, :]
    buckets = _relative_position_bucket(mem - ctx, bidirectional)
    values = rel_emb[buckets]                       # (q, k, H)
    return jnp.transpose(values, (2, 0, 1))[None]   # (1, H, q, k)


def shift_right(input_ids):
    B = input_ids.shape[0]
    start = jnp.full((B, 1), PAD_ID, dtype=input_ids.dtype)
    return jnp.concatenate([start, input_ids[:, :-1]], axis=1)


def forward(params, input_ids, attention_mask):
    """== T5MLPRecommender.forward: returns logits (B, n_classes)."""
    B, S = input_ids.shape
    emb = params["embedding"]
    enc_h = emb[input_ids].reshape(B * S, D_MODEL)
    dec_h = emb[shift_right(input_ids)].reshape(B * S, D_MODEL)

    ext = (1.0 - attention_mask[:, None, None, :].astype(jnp.float32)) * NEG_INF
    enc_bias = jnp.broadcast_to(
        compute_position_bias(params["enc_rel_bias"], S, S, True) + ext,
        (B, N_HEADS, S, S))
    causal = jnp.tril(jnp.ones((S, S), jnp.float32))
    self_bias = jnp.broadcast_to(
        compute_position_bias(params["dec_rel_bias"], S, S, False)
        + (1.0 - causal)[None, None] * NEG_INF,
        (B, N_HEADS, S, S))
    cross_bias = jnp.broadcast_to(ext, (B, N_HEADS, S, S))

    # sentence representation index = LAST eos position
    # (fallback: last non-pad position if a row has no eos)
    pos = jnp.arange(S, dtype=jnp.int32)[None, :]
    eos_mask = input_ids == EOS_ID
    has_eos = jnp.any(eos_mask, axis=-1)
    last_eos = jnp.argmax(jnp.where(eos_mask, pos, -1), axis=-1)
    last_nonpad = jnp.argmax(jnp.where(attention_mask > 0, pos, -1), axis=-1)
    sent_idx = jnp.where(has_eos, last_eos, last_nonpad)
    sel = jax.nn.one_hot(jnp.arange(B, dtype=jnp.int32) * S + sent_idx,
                         B * S, dtype=jnp.float32)              # (B, B*S)

    enc, dec, head = params["enc"], params["dec"], params["head"]
    inputs = (
        enc_h, dec_h, enc_bias, self_bias, cross_bias, sel,
        enc["ln1"], enc["wqkv"], enc["wo"], enc["ln2"], enc["wi"], enc["wff"],
        enc["final_ln"],
        dec["ln1"], dec["self_wqkv"], dec["self_wo"], dec["ln2"],
        dec["cross_wq"], dec["cross_wkv"], dec["cross_wo"], dec["ln3"],
        dec["wi"], dec["wff"], dec["final_ln"],
        head["w1"], head["b1"], head["w2"], head["b2"], head["w3"], head["b3"],
    )
    return pl.pallas_call(
        _fused_forward_kernel,
        out_shape=jax.ShapeDtypeStruct((B, N_CLASSES), jnp.float32),
        grid=(1,),
        in_specs=[_full_spec(a) for a in inputs],
        out_specs=pl.BlockSpec((B, N_CLASSES), lambda i: (0, 0)),
        compiler_params=pltpu.CompilerParams(
            dimension_semantics=("arbitrary",)),
    )(*inputs)


# ------------------------- deterministic param init -------------------------

def init_params(key):
    keys = iter(jax.random.split(key, 64))

    def nrm(shape, scale=0.02):
        return jax.random.normal(next(keys), shape, jnp.float32) * scale

    def ln_stack():
        return jnp.ones((N_LAYERS, 1, D_MODEL), jnp.float32)

    enc = {"ln1": ln_stack(),
           "wqkv": nrm((N_LAYERS, D_MODEL, 3 * INNER)),       # fused q|k|v
           "wo": nrm((N_LAYERS, INNER, D_MODEL)),
           "ln2": ln_stack(),
           "wi": nrm((N_LAYERS, D_MODEL, D_FF)),
           "wff": nrm((N_LAYERS, D_FF, D_MODEL)),
           "final_ln": jnp.ones((1, D_MODEL), jnp.float32)}
    dec = {"ln1": ln_stack(),
           "self_wqkv": nrm((N_LAYERS, D_MODEL, 3 * INNER)),
           "self_wo": nrm((N_LAYERS, INNER, D_MODEL)),
           "ln2": ln_stack(),
           "cross_wq": nrm((N_LAYERS, D_MODEL, INNER)),
           "cross_wkv": nrm((N_LAYERS, D_MODEL, 2 * INNER)),  # fused k|v
           "cross_wo": nrm((N_LAYERS, INNER, D_MODEL)),
           "ln3": ln_stack(),
           "wi": nrm((N_LAYERS, D_MODEL, D_FF)),
           "wff": nrm((N_LAYERS, D_FF, D_MODEL)),
           "final_ln": jnp.ones((1, D_MODEL), jnp.float32)}
    head = {"w1": nrm((D_MODEL, 128)), "b1": nrm((1, 128)),
            "w2": nrm((128, 32)),      "b2": nrm((1, 32)),
            "w3": nrm((32, N_CLASSES)), "b3": nrm((1, N_CLASSES))}
    return {"embedding": nrm((VOCAB, D_MODEL), 1.0),
            "enc_rel_bias": nrm((N_BUCKETS, N_HEADS)),
            "dec_rel_bias": nrm((N_BUCKETS, N_HEADS)),
            "enc": enc, "dec": dec, "head": head}


# ----------------------------------- main ------------------------------------

if __name__ == "__main__":
    key = jax.random.PRNGKey(0)
    pkey, dkey = jax.random.split(key)
    params = init_params(pkey)

    B, S = 2, 16
    input_ids = jax.random.randint(dkey, (B, S), 2, VOCAB, dtype=jnp.int32)
    attention_mask = jnp.ones((B, S), jnp.int32)
    # row 0: eos at the last position; row 1: 3 padded positions, eos before them
    input_ids = input_ids.at[0, S - 1].set(EOS_ID)
    input_ids = input_ids.at[1, S - 4].set(EOS_ID)
    input_ids = input_ids.at[1, S - 3:].set(PAD_ID)
    attention_mask = attention_mask.at[1, S - 3:].set(0)

    logits = jax.jit(forward)(params, input_ids, attention_mask)
    logits = jax.block_until_ready(logits)
    assert logits.shape == (B, N_CLASSES)
    assert bool(jnp.all(jnp.isfinite(logits)))
    print("KERNEL_OK")
</pallas_src>

<mosaic_0001>
module attributes {stable_mosaic.version = 11 : i64} {
  func.func @_fused_forward_kernel(%arg0: i32, %arg1: memref<32x64xf32, #tpu.memory_space<vmem>>, %arg2: memref<32x64xf32, #tpu.memory_space<vmem>>, %arg3: memref<2x4x16x16xf32, #tpu.memory_space<vmem>>, %arg4: memref<2x4x16x16xf32, #tpu.memory_space<vmem>>, %arg5: memref<2x4x16x16xf32, #tpu.memory_space<vmem>>, %arg6: memref<2x32xf32, #tpu.memory_space<vmem>>, %arg7: memref<2x1x64xf32, #tpu.memory_space<vmem>>, %arg8: memref<2x64x192xf32, #tpu.memory_space<vmem>>, %arg9: memref<2x64x64xf32, #tpu.memory_space<vmem>>, %arg10: memref<2x1x64xf32, #tpu.memory_space<vmem>>, %arg11: memref<2x64x128xf32, #tpu.memory_space<vmem>>, %arg12: memref<2x128x64xf32, #tpu.memory_space<vmem>>, %arg13: memref<1x64xf32, #tpu.memory_space<vmem>>, %arg14: memref<2x1x64xf32, #tpu.memory_space<vmem>>, %arg15: memref<2x64x192xf32, #tpu.memory_space<vmem>>, %arg16: memref<2x64x64xf32, #tpu.memory_space<vmem>>, %arg17: memref<2x1x64xf32, #tpu.memory_space<vmem>>, %arg18: memref<2x64x64xf32, #tpu.memory_space<vmem>>, %arg19: memref<2x64x128xf32, #tpu.memory_space<vmem>>, %arg20: memref<2x64x64xf32, #tpu.memory_space<vmem>>, %arg21: memref<2x1x64xf32, #tpu.memory_space<vmem>>, %arg22: memref<2x64x128xf32, #tpu.memory_space<vmem>>, %arg23: memref<2x128x64xf32, #tpu.memory_space<vmem>>, %arg24: memref<1x64xf32, #tpu.memory_space<vmem>>, %arg25: memref<64x128xf32, #tpu.memory_space<vmem>>, %arg26: memref<1x128xf32, #tpu.memory_space<vmem>>, %arg27: memref<128x32xf32, #tpu.memory_space<vmem>>, %arg28: memref<1x32xf32, #tpu.memory_space<vmem>>, %arg29: memref<32x1xf32, #tpu.memory_space<vmem>>, %arg30: memref<1x1xf32, #tpu.memory_space<vmem>>, %arg31: memref<2x1xf32, #tpu.memory_space<vmem>>) attributes {dimension_semantics = [#tpu.dimension_semantics<arbitrary>], iteration_bounds = array<i64: 1>, scalar_prefetch = 0 : i64, scratch_operands = 0 : i64, tpu.core_type = #tpu.core_type<tc>, window_params = [{pipeline_mode = #tpu.pipeline_mode<synchronous>, transform_indices = @transform_0, window_bounds = array<i64: 32, 64>}, {pipeline_mode = #tpu.pipeline_mode<synchronous>, transform_indices = @transform_1, window_bounds = array<i64: 32, 64>}, {pipeline_mode = #tpu.pipeline_mode<synchronous>, transform_indices = @transform_2, window_bounds = array<i64: 2, 4, 16, 16>}, {pipeline_mode = #tpu.pipeline_mode<synchronous>, transform_indices = @transform_3, window_bounds = array<i64: 2, 4, 16, 16>}, {pipeline_mode = #tpu.pipeline_mode<synchronous>, transform_indices = @transform_4, window_bounds = array<i64: 2, 4, 16, 16>}, {pipeline_mode = #tpu.pipeline_mode<synchronous>, transform_indices = @transform_5, window_bounds = array<i64: 2, 32>}, {pipeline_mode = #tpu.pipeline_mode<synchronous>, transform_indices = @transform_6, window_bounds = array<i64: 2, 1, 64>}, {pipeline_mode = #tpu.pipeline_mode<synchronous>, transform_indices = @transform_7, window_bounds = array<i64: 2, 64, 192>}, {pipeline_mode = #tpu.pipeline_mode<synchronous>, transform_indices = @transform_8, window_bounds = array<i64: 2, 64, 64>}, {pipeline_mode = #tpu.pipeline_mode<synchronous>, transform_indices = @transform_9, window_bounds = array<i64: 2, 1, 64>}, {pipeline_mode = #tpu.pipeline_mode<synchronous>, transform_indices = @transform_10, window_bounds = array<i64: 2, 64, 128>}, {pipeline_mode = #tpu.pipeline_mode<synchronous>, transform_indices = @transform_11, window_bounds = array<i64: 2, 128, 64>}, {pipeline_mode = #tpu.pipeline_mode<synchronous>, transform_indices = @transform_12, window_bounds = array<i64: 1, 64>}, {pipeline_mode = #tpu.pipeline_mode<synchronous>, transform_indices = @transform_13, window_bounds = array<i64: 2, 1, 64>}, {pipeline_mode = #tpu.pipeline_mode<synchronous>, transform_indices = @transform_14, window_bounds = array<i64: 2, 64, 192>}, {pipeline_mode = #tpu.pipeline_mode<synchronous>, transform_indices = @transform_15, window_bounds = array<i64: 2, 64, 64>}, {pipeline_mode = #tpu.pipeline_mode<synchronous>, transform_indices = @transform_16, window_bounds = array<i64: 2, 1, 64>}, {pipeline_mode = #tpu.pipeline_mode<synchronous>, transform_indices = @transform_17, window_bounds = array<i64: 2, 64, 64>}, {pipeline_mode = #tpu.pipeline_mode<synchronous>, transform_indices = @transform_18, window_bounds = array<i64: 2, 64, 128>}, {pipeline_mode = #tpu.pipeline_mode<synchronous>, transform_indices = @transform_19, window_bounds = array<i64: 2, 64, 64>}, {pipeline_mode = #tpu.pipeline_mode<synchronous>, transform_indices = @transform_20, window_bounds = array<i64: 2, 1, 64>}, {pipeline_mode = #tpu.pipeline_mode<synchronous>, transform_indices = @transform_21, window_bounds = array<i64: 2, 64, 128>}, {pipeline_mode = #tpu.pipeline_mode<synchronous>, transform_indices = @transform_22, window_bounds = array<i64: 2, 128, 64>}, {pipeline_mode = #tpu.pipeline_mode<synchronous>, transform_indices = @transform_23, window_bounds = array<i64: 1, 64>}, {pipeline_mode = #tpu.pipeline_mode<synchronous>, transform_indices = @transform_24, window_bounds = array<i64: 64, 128>}, {pipeline_mode = #tpu.pipeline_mode<synchronous>, transform_indices = @transform_25, window_bounds = array<i64: 1, 128>}, {pipeline_mode = #tpu.pipeline_mode<synchronous>, transform_indices = @transform_26, window_bounds = array<i64: 128, 32>}, {pipeline_mode = #tpu.pipeline_mode<synchronous>, transform_indices = @transform_27, window_bounds = array<i64: 1, 32>}, {pipeline_mode = #tpu.pipeline_mode<synchronous>, transform_indices = @transform_28, window_bounds = array<i64: 32, 1>}, {pipeline_mode = #tpu.pipeline_mode<synchronous>, transform_indices = @transform_29, window_bounds = array<i64: 1, 1>}, {pipeline_mode = #tpu.pipeline_mode<synchronous>, transform_indices = @transform_30, window_bounds = array<i64: 2, 1>}]} {
    %c0 = arith.constant 0 : index
    %c0_0 = arith.constant 0 : index
    %c0_1 = arith.constant 0 : index
    %c0_2 = arith.constant 0 : index
    %0 = vector.load %arg3[%c0, %c0_0, %c0_1, %c0_2] : memref<2x4x16x16xf32, #tpu.memory_space<vmem>>, vector<2x4x16x16xf32>
    %c0_3 = arith.constant 0 : index
    %c0_4 = arith.constant 0 : index
    %c0_5 = arith.constant 0 : index
    %c0_6 = arith.constant 0 : index
    %1 = vector.load %arg4[%c0_3, %c0_4, %c0_5, %c0_6] : memref<2x4x16x16xf32, #tpu.memory_space<vmem>>, vector<2x4x16x16xf32>
    %c0_7 = arith.constant 0 : index
    %c0_8 = arith.constant 0 : index
    %c0_9 = arith.constant 0 : index
    %c0_10 = arith.constant 0 : index
    %2 = vector.load %arg5[%c0_7, %c0_8, %c0_9, %c0_10] : memref<2x4x16x16xf32, #tpu.memory_space<vmem>>, vector<2x4x16x16xf32>
    %c0_11 = arith.constant 0 : index
    %c0_12 = arith.constant 0 : index
    %3 = vector.load %arg1[%c0_11, %c0_12] : memref<32x64xf32, #tpu.memory_space<vmem>>, vector<32x64xf32>
    %c0_13 = arith.constant 0 : index
    %c0_14 = arith.constant 0 : index
    %c0_15 = arith.constant 0 : index
    %4 = vector.load %arg7[%c0_13, %c0_14, %c0_15] : memref<2x1x64xf32, #tpu.memory_space<vmem>>, vector<1x1x64xf32>
    %5 = vector.shape_cast %4 : vector<1x1x64xf32> to vector<1x64xf32>
    %6 = arith.mulf %3, %3 : vector<32x64xf32>
    %cst = arith.constant dense<0.000000e+00> : vector<32xf32>
    %7 = vector.multi_reduction <add>, %6, %cst [1] : vector<32x64xf32> to vector<32xf32>
    %8 = vector.shape_cast %7 : vector<32xf32> to vector<32x1xf32>
    %cst_16 = arith.constant 6.400000e+01 : f32
    %9 = vector.broadcast %cst_16 : f32 to vector<32x1xf32>
    %10 = arith.divf %8, %9 : vector<32x1xf32>
    %cst_17 = arith.constant 9.99999997E-7 : f32
    %11 = vector.broadcast %cst_17 : f32 to vector<32x1xf32>
    %12 = arith.addf %10, %11 : vector<32x1xf32>
    %13 = math.rsqrt %12 : vector<32x1xf32>
    %14 = vector.broadcast %13 : vector<32x1xf32> to vector<32x64xf32>
    %15 = arith.mulf %3, %14 : vector<32x64xf32>
    %16 = vector.broadcast %5 : vector<1x64xf32> to vector<32x64xf32>
    %17 = arith.mulf %15, %16 : vector<32x64xf32>
    %c0_18 = arith.constant 0 : index
    %c0_19 = arith.constant 0 : index
    %c0_20 = arith.constant 0 : index
    %18 = vector.load %arg8[%c0_18, %c0_19, %c0_20] : memref<2x64x192xf32, #tpu.memory_space<vmem>>, vector<1x64x192xf32>
    %19 = vector.shape_cast %18 : vector<1x64x192xf32> to vector<64x192xf32>
    %c0_21 = arith.constant 0 : index
    %c0_22 = arith.constant 0 : index
    %c0_23 = arith.constant 0 : index
    %20 = vector.load %arg9[%c0_21, %c0_22, %c0_23] : memref<2x64x64xf32, #tpu.memory_space<vmem>>, vector<1x64x64xf32>
    %21 = vector.shape_cast %20 : vector<1x64x64xf32> to vector<64x64xf32>
    %cst_24 = arith.constant dense<0.000000e+00> : vector<32x192xf32>
    %22 = tpu.matmul %17, %19, %cst_24 {dimension_numbers = #tpu.dot_dimension_numbers<[1], [0], [0], [1], [0, 0, 1, 1], [], []>} : vector<32x64xf32>, vector<64x192xf32>, vector<32x192xf32> -> vector<32x192xf32>
    %23 = vector.extract_strided_slice %22 {offsets = [0, 0], sizes = [32, 64], strides = [1, 1]} : vector<32x192xf32> to vector<32x64xf32>
    %24 = vector.extract_strided_slice %22 {offsets = [0, 64], sizes = [32, 64], strides = [1, 1]} : vector<32x192xf32> to vector<32x64xf32>
    %25 = vector.extract_strided_slice %22 {offsets = [0, 128], sizes = [32, 64], strides = [1, 1]} : vector<32x192xf32> to vector<32x64xf32>
    %26 = vector.shape_cast %23 : vector<32x64xf32> to vector<2x16x64xf32>
    %27 = vector.shape_cast %24 : vector<32x64xf32> to vector<2x16x64xf32>
    %28 = vector.shape_cast %25 : vector<32x64xf32> to vector<2x16x64xf32>
    %29 = vector.extract_strided_slice %26 {offsets = [0, 0, 0], sizes = [2, 16, 16], strides = [1, 1, 1]} : vector<2x16x64xf32> to vector<2x16x16xf32>
    %30 = vector.extract_strided_slice %27 {offsets = [0, 0, 0], sizes = [2, 16, 16], strides = [1, 1, 1]} : vector<2x16x64xf32> to vector<2x16x16xf32>
    "tpu.trace_start"() <{level = 10 : i32, message = "bqd,bkd->bqk"}> : () -> ()
    %cst_25 = arith.constant dense<0.000000e+00> : vector<2x16x16xf32>
    %31 = tpu.matmul %29, %30, %cst_25 {dimension_numbers = #tpu.dot_dimension_numbers<[2], [2], [1], [1], [0, 0, 0, 1, 1, 1], [0], [0]>} : vector<2x16x16xf32>, vector<2x16x16xf32>, vector<2x16x16xf32> -> vector<2x16x16xf32>
    "tpu.trace_stop"() : () -> ()
    %32 = vector.extract_strided_slice %0 {offsets = [0, 0, 0, 0], sizes = [2, 1, 16, 16], strides = [1, 1, 1, 1]} : vector<2x4x16x16xf32> to vector<2x1x16x16xf32>
    %33 = vector.shape_cast %32 : vector<2x1x16x16xf32> to vector<2x16x16xf32>
    %34 = arith.addf %31, %33 : vector<2x16x16xf32>
    %cst_26 = arith.constant dense<0xFF800000> : vector<2x16xf32>
    %35 = vector.multi_reduction <maximumf>, %34, %cst_26 [2] : vector<2x16x16xf32> to vector<2x16xf32>
    %36 = vector.shape_cast %35 : vector<2x16xf32> to vector<2x16x1xf32>
    %37 = vector.broadcast %36 : vector<2x16x1xf32> to vector<2x16x16xf32>
    %38 = arith.subf %34, %37 : vector<2x16x16xf32>
    %39 = math.exp %38 : vector<2x16x16xf32>
    %cst_27 = arith.constant dense<0.000000e+00> : vector<2x16xf32>
    %40 = vector.multi_reduction <add>, %39, %cst_27 [2] : vector<2x16x16xf32> to vector<2x16xf32>
    %41 = vector.shape_cast %40 : vector<2x16xf32> to vector<2x16x1xf32>
    %42 = vector.broadcast %41 : vector<2x16x1xf32> to vector<2x16x16xf32>
    %43 = arith.divf %39, %42 : vector<2x16x16xf32>
    %44 = vector.extract_strided_slice %28 {offsets = [0, 0, 0], sizes = [2, 16, 16], strides = [1, 1, 1]} : vector<2x16x64xf32> to vector<2x16x16xf32>
    "tpu.trace_start"() <{level = 10 : i32, message = "bqk,bkd->bqd"}> : () -> ()
    %cst_28 = arith.constant dense<0.000000e+00> : vector<2x16x16xf32>
    %45 = tpu.matmul %43, %44, %cst_28 {dimension_numbers = #tpu.dot_dimension_numbers<[2], [1], [1], [2], [0, 0, 0, 1, 1, 2], [0], [0]>} : vector<2x16x16xf32>, vector<2x16x16xf32>, vector<2x16x16xf32> -> vector<2x16x16xf32>
    "tpu.trace_stop"() : () -> ()
    %46 = vector.extract_strided_slice %26 {offsets = [0, 0, 16], sizes = [2, 16, 16], strides = [1, 1, 1]} : vector<2x16x64xf32> to vector<2x16x16xf32>
    %47 = vector.extract_strided_slice %27 {offsets = [0, 0, 16], sizes = [2, 16, 16], strides = [1, 1, 1]} : vector<2x16x64xf32> to vector<2x16x16xf32>
    "tpu.trace_start"() <{level = 10 : i32, message = "bqd,bkd->bqk"}> : () -> ()
    %cst_29 = arith.constant dense<0.000000e+00> : vector<2x16x16xf32>
    %48 = tpu.matmul %46, %47, %cst_29 {dimension_numbers = #tpu.dot_dimension_numbers<[2], [2], [1], [1], [0, 0, 0, 1, 1, 1], [0], [0]>} : vector<2x16x16xf32>, vector<2x16x16xf32>, vector<2x16x16xf32> -> vector<2x16x16xf32>
    "tpu.trace_stop"() : () -> ()
    %49 = vector.extract_strided_slice %0 {offsets = [0, 1, 0, 0], sizes = [2, 1, 16, 16], strides = [1, 1, 1, 1]} : vector<2x4x16x16xf32> to vector<2x1x16x16xf32>
    %50 = vector.shape_cast %49 : vector<2x1x16x16xf32> to vector<2x16x16xf32>
    %51 = arith.addf %48, %50 : vector<2x16x16xf32>
    %cst_30 = arith.constant dense<0xFF800000> : vector<2x16xf32>
    %52 = vector.multi_reduction <maximumf>, %51, %cst_30 [2] : vector<2x16x16xf32> to vector<2x16xf32>
    %53 = vector.shape_cast %52 : vector<2x16xf32> to vector<2x16x1xf32>
    %54 = vector.broadcast %53 : vector<2x16x1xf32> to vector<2x16x16xf32>
    %55 = arith.subf %51, %54 : vector<2x16x16xf32>
    %56 = math.exp %55 : vector<2x16x16xf32>
    %cst_31 = arith.constant dense<0.000000e+00> : vector<2x16xf32>
    %57 = vector.multi_reduction <add>, %56, %cst_31 [2] : vector<2x16x16xf32> to vector<2x16xf32>
    %58 = vector.shape_cast %57 : vector<2x16xf32> to vector<2x16x1xf32>
    %59 = vector.broadcast %58 : vector<2x16x1xf32> to vector<2x16x16xf32>
    %60 = arith.divf %56, %59 : vector<2x16x16xf32>
    %61 = vector.extract_strided_slice %28 {offsets = [0, 0, 16], sizes = [2, 16, 16], strides = [1, 1, 1]} : vector<2x16x64xf32> to vector<2x16x16xf32>
    "tpu.trace_start"() <{level = 10 : i32, message = "bqk,bkd->bqd"}> : () -> ()
    %cst_32 = arith.constant dense<0.000000e+00> : vector<2x16x16xf32>
    %62 = tpu.matmul %60, %61, %cst_32 {dimension_numbers = #tpu.dot_dimension_numbers<[2], [1], [1], [2], [0, 0, 0, 1, 1, 2], [0], [0]>} : vector<2x16x16xf32>, vector<2x16x16xf32>, vector<2x16x16xf32> -> vector<2x16x16xf32>
    "tpu.trace_stop"() : () -> ()
    %63 = vector.extract_strided_slice %26 {offsets = [0, 0, 32], sizes = [2, 16, 16], strides = [1, 1, 1]} : vector<2x16x64xf32> to vector<2x16x16xf32>
    %64 = vector.extract_strided_slice %27 {offsets = [0, 0, 32], sizes = [2, 16, 16], strides = [1, 1, 1]} : vector<2x16x64xf32> to vector<2x16x16xf32>
    "tpu.trace_start"() <{level = 10 : i32, message = "bqd,bkd->bqk"}> : () -> ()
    %cst_33 = arith.constant dense<0.000000e+00> : vector<2x16x16xf32>
    %65 = tpu.matmul %63, %64, %cst_33 {dimension_numbers = #tpu.dot_dimension_numbers<[2], [2], [1], [1], [0, 0, 0, 1, 1, 1], [0], [0]>} : vector<2x16x16xf32>, vector<2x16x16xf32>, vector<2x16x16xf32> -> vector<2x16x16xf32>
    "tpu.trace_stop"() : () -> ()
    %66 = vector.extract_strided_slice %0 {offsets = [0, 2, 0, 0], sizes = [2, 1, 16, 16], strides = [1, 1, 1, 1]} : vector<2x4x16x16xf32> to vector<2x1x16x16xf32>
    %67 = vector.shape_cast %66 : vector<2x1x16x16xf32> to vector<2x16x16xf32>
    %68 = arith.addf %65, %67 : vector<2x16x16xf32>
    %cst_34 = arith.constant dense<0xFF800000> : vector<2x16xf32>
    %69 = vector.multi_reduction <maximumf>, %68, %cst_34 [2] : vector<2x16x16xf32> to vector<2x16xf32>
    %70 = vector.shape_cast %69 : vector<2x16xf32> to vector<2x16x1xf32>
    %71 = vector.broadcast %70 : vector<2x16x1xf32> to vector<2x16x16xf32>
    %72 = arith.subf %68, %71 : vector<2x16x16xf32>
    %73 = math.exp %72 : vector<2x16x16xf32>
    %cst_35 = arith.constant dense<0.000000e+00> : vector<2x16xf32>
    %74 = vector.multi_reduction <add>, %73, %cst_35 [2] : vector<2x16x16xf32> to vector<2x16xf32>
    %75 = vector.shape_cast %74 : vector<2x16xf32> to vector<2x16x1xf32>
    %76 = vector.broadcast %75 : vector<2x16x1xf32> to vector<2x16x16xf32>
    %77 = arith.divf %73, %76 : vector<2x16x16xf32>
    %78 = vector.extract_strided_slice %28 {offsets = [0, 0, 32], sizes = [2, 16, 16], strides = [1, 1, 1]} : vector<2x16x64xf32> to vector<2x16x16xf32>
    "tpu.trace_start"() <{level = 10 : i32, message = "bqk,bkd->bqd"}> : () -> ()
    %cst_36 = arith.constant dense<0.000000e+00> : vector<2x16x16xf32>
    %79 = tpu.matmul %77, %78, %cst_36 {dimension_numbers = #tpu.dot_dimension_numbers<[2], [1], [1], [2], [0, 0, 0, 1, 1, 2], [0], [0]>} : vector<2x16x16xf32>, vector<2x16x16xf32>, vector<2x16x16xf32> -> vector<2x16x16xf32>
    "tpu.trace_stop"() : () -> ()
    %80 = vector.extract_strided_slice %26 {offsets = [0, 0, 48], sizes = [2, 16, 16], strides = [1, 1, 1]} : vector<2x16x64xf32> to vector<2x16x16xf32>
    %81 = vector.extract_strided_slice %27 {offsets = [0, 0, 48], sizes = [2, 16, 16], strides = [1, 1, 1]} : vector<2x16x64xf32> to vector<2x16x16xf32>
    "tpu.trace_start"() <{level = 10 : i32, message = "bqd,bkd->bqk"}> : () -> ()
    %cst_37 = arith.constant dense<0.000000e+00> : vector<2x16x16xf32>
    %82 = tpu.matmul %80, %81, %cst_37 {dimension_numbers = #tpu.dot_dimension_numbers<[2], [2], [1], [1], [0, 0, 0, 1, 1, 1], [0], [0]>} : vector<2x16x16xf32>, vector<2x16x16xf32>, vector<2x16x16xf32> -> vector<2x16x16xf32>
    "tpu.trace_stop"() : () -> ()
    %83 = vector.extract_strided_slice %0 {offsets = [0, 3, 0, 0], sizes = [2, 1, 16, 16], strides = [1, 1, 1, 1]} : vector<2x4x16x16xf32> to vector<2x1x16x16xf32>
    %84 = vector.shape_cast %83 : vector<2x1x16x16xf32> to vector<2x16x16xf32>
    %85 = arith.addf %82, %84 : vector<2x16x16xf32>
    %cst_38 = arith.constant dense<0xFF800000> : vector<2x16xf32>
    %86 = vector.multi_reduction <maximumf>, %85, %cst_38 [2] : vector<2x16x16xf32> to vector<2x16xf32>
    %87 = vector.shape_cast %86 : vector<2x16xf32> to vector<2x16x1xf32>
    %88 = vector.broadcast %87 : vector<2x16x1xf32> to vector<2x16x16xf32>
    %89 = arith.subf %85, %88 : vector<2x16x16xf32>
    %90 = math.exp %89 : vector<2x16x16xf32>
    %cst_39 = arith.constant dense<0.000000e+00> : vector<2x16xf32>
    %91 = vector.multi_reduction <add>, %90, %cst_39 [2] : vector<2x16x16xf32> to vector<2x16xf32>
    %92 = vector.shape_cast %91 : vector<2x16xf32> to vector<2x16x1xf32>
    %93 = vector.broadcast %92 : vector<2x16x1xf32> to vector<2x16x16xf32>
    %94 = arith.divf %90, %93 : vector<2x16x16xf32>
    %95 = vector.extract_strided_slice %28 {offsets = [0, 0, 48], sizes = [2, 16, 16], strides = [1, 1, 1]} : vector<2x16x64xf32> to vector<2x16x16xf32>
    "tpu.trace_start"() <{level = 10 : i32, message = "bqk,bkd->bqd"}> : () -> ()
    %cst_40 = arith.constant dense<0.000000e+00> : vector<2x16x16xf32>
    %96 = tpu.matmul %94, %95, %cst_40 {dimension_numbers = #tpu.dot_dimension_numbers<[2], [1], [1], [2], [0, 0, 0, 1, 1, 2], [0], [0]>} : vector<2x16x16xf32>, vector<2x16x16xf32>, vector<2x16x16xf32> -> vector<2x16x16xf32>
    "tpu.trace_stop"() : () -> ()
    %97 = tpu.concatenate %45, %62, %79, %96 in 2 : vector<2x16x16xf32>, vector<2x16x16xf32>, vector<2x16x16xf32>, vector<2x16x16xf32> -> vector<2x16x64xf32>
    %98 = vector.shape_cast %97 : vector<2x16x64xf32> to vector<32x64xf32>
    %cst_41 = arith.constant dense<0.000000e+00> : vector<32x64xf32>
    %99 = tpu.matmul %98, %21, %cst_41 {dimension_numbers = #tpu.dot_dimension_numbers<[1], [0], [0], [1], [0, 0, 1, 1], [], []>} : vector<32x64xf32>, vector<64x64xf32>, vector<32x64xf32> -> vector<32x64xf32>
    %100 = arith.addf %3, %99 : vector<32x64xf32>
    %c0_42 = arith.constant 0 : index
    %c0_43 = arith.constant 0 : index
    %c0_44 = arith.constant 0 : index
    %101 = vector.load %arg10[%c0_42, %c0_43, %c0_44] : memref<2x1x64xf32, #tpu.memory_space<vmem>>, vector<1x1x64xf32>
    %102 = vector.shape_cast %101 : vector<1x1x64xf32> to vector<1x64xf32>
    %103 = arith.mulf %100, %100 : vector<32x64xf32>
    %cst_45 = arith.constant dense<0.000000e+00> : vector<32xf32>
    %104 = vector.multi_reduction <add>, %103, %cst_45 [1] : vector<32x64xf32> to vector<32xf32>
    %105 = vector.shape_cast %104 : vector<32xf32> to vector<32x1xf32>
    %cst_46 = arith.constant 6.400000e+01 : f32
    %106 = vector.broadcast %cst_46 : f32 to vector<32x1xf32>
    %107 = arith.divf %105, %106 : vector<32x1xf32>
    %cst_47 = arith.constant 9.99999997E-7 : f32
    %108 = vector.broadcast %cst_47 : f32 to vector<32x1xf32>
    %109 = arith.addf %107, %108 : vector<32x1xf32>
    %110 = math.rsqrt %109 : vector<32x1xf32>
    %111 = vector.broadcast %110 : vector<32x1xf32> to vector<32x64xf32>
    %112 = arith.mulf %100, %111 : vector<32x64xf32>
    %113 = vector.broadcast %102 : vector<1x64xf32> to vector<32x64xf32>
    %114 = arith.mulf %112, %113 : vector<32x64xf32>
    %c0_48 = arith.constant 0 : index
    %c0_49 = arith.constant 0 : index
    %c0_50 = arith.constant 0 : index
    %115 = vector.load %arg11[%c0_48, %c0_49, %c0_50] : memref<2x64x128xf32, #tpu.memory_space<vmem>>, vector<1x64x128xf32>
    %116 = vector.shape_cast %115 : vector<1x64x128xf32> to vector<64x128xf32>
    %c0_51 = arith.constant 0 : index
    %c0_52 = arith.constant 0 : index
    %c0_53 = arith.constant 0 : index
    %117 = vector.load %arg12[%c0_51, %c0_52, %c0_53] : memref<2x128x64xf32, #tpu.memory_space<vmem>>, vector<1x128x64xf32>
    %118 = vector.shape_cast %117 : vector<1x128x64xf32> to vector<128x64xf32>
    %cst_54 = arith.constant dense<0.000000e+00> : vector<32x128xf32>
    %119 = tpu.matmul %114, %116, %cst_54 {dimension_numbers = #tpu.dot_dimension_numbers<[1], [0], [0], [1], [0, 0, 1, 1], [], []>} : vector<32x64xf32>, vector<64x128xf32>, vector<32x128xf32> -> vector<32x128xf32>
    %cst_55 = arith.constant 0.000000e+00 : f32
    %120 = vector.broadcast %cst_55 : f32 to vector<32x128xf32>
    %121 = arith.maximumf %119, %120 : vector<32x128xf32>
    %cst_56 = arith.constant dense<0.000000e+00> : vector<32x64xf32>
    %122 = tpu.matmul %121, %118, %cst_56 {dimension_numbers = #tpu.dot_dimension_numbers<[1], [0], [0], [1], [0, 0, 1, 1], [], []>} : vector<32x128xf32>, vector<128x64xf32>, vector<32x64xf32> -> vector<32x64xf32>
    %123 = arith.addf %100, %122 : vector<32x64xf32>
    %c1 = arith.constant 1 : index
    %c0_57 = arith.constant 0 : index
    %c0_58 = arith.constant 0 : index
    %124 = vector.load %arg7[%c1, %c0_57, %c0_58] : memref<2x1x64xf32, #tpu.memory_space<vmem>>, vector<1x1x64xf32>
    %125 = vector.shape_cast %124 : vector<1x1x64xf32> to vector<1x64xf32>
    %126 = arith.mulf %123, %123 : vector<32x64xf32>
    %cst_59 = arith.constant dense<0.000000e+00> : vector<32xf32>
    %127 = vector.multi_reduction <add>, %126, %cst_59 [1] : vector<32x64xf32> to vector<32xf32>
    %128 = vector.shape_cast %127 : vector<32xf32> to vector<32x1xf32>
    %cst_60 = arith.constant 6.400000e+01 : f32
    %129 = vector.broadcast %cst_60 : f32 to vector<32x1xf32>
    %130 = arith.divf %128, %129 : vector<32x1xf32>
    %cst_61 = arith.constant 9.99999997E-7 : f32
    %131 = vector.broadcast %cst_61 : f32 to vector<32x1xf32>
    %132 = arith.addf %130, %131 : vector<32x1xf32>
    %133 = math.rsqrt %132 : vector<32x1xf32>
    %134 = vector.broadcast %133 : vector<32x1xf32> to vector<32x64xf32>
    %135 = arith.mulf %123, %134 : vector<32x64xf32>
    %136 = vector.broadcast %125 : vector<1x64xf32> to vector<32x64xf32>
    %137 = arith.mulf %135, %136 : vector<32x64xf32>
    %c1_62 = arith.constant 1 : index
    %c0_63 = arith.constant 0 : index
    %c0_64 = arith.constant 0 : index
    %138 = vector.load %arg8[%c1_62, %c0_63, %c0_64] : memref<2x64x192xf32, #tpu.memory_space<vmem>>, vector<1x64x192xf32>
    %139 = vector.shape_cast %138 : vector<1x64x192xf32> to vector<64x192xf32>
    %c1_65 = arith.constant 1 : index
    %c0_66 = arith.constant 0 : index
    %c0_67 = arith.constant 0 : index
    %140 = vector.load %arg9[%c1_65, %c0_66, %c0_67] : memref<2x64x64xf32, #tpu.memory_space<vmem>>, vector<1x64x64xf32>
    %141 = vector.shape_cast %140 : vector<1x64x64xf32> to vector<64x64xf32>
    %cst_68 = arith.constant dense<0.000000e+00> : vector<32x192xf32>
    %142 = tpu.matmul %137, %139, %cst_68 {dimension_numbers = #tpu.dot_dimension_numbers<[1], [0], [0], [1], [0, 0, 1, 1], [], []>} : vector<32x64xf32>, vector<64x192xf32>, vector<32x192xf32> -> vector<32x192xf32>
    %143 = vector.extract_strided_slice %142 {offsets = [0, 0], sizes = [32, 64], strides = [1, 1]} : vector<32x192xf32> to vector<32x64xf32>
    %144 = vector.extract_strided_slice %142 {offsets = [0, 64], sizes = [32, 64], strides = [1, 1]} : vector<32x192xf32> to vector<32x64xf32>
    %145 = vector.extract_strided_slice %142 {offsets = [0, 128], sizes = [32, 64], strides = [1, 1]} : vector<32x192xf32> to vector<32x64xf32>
    %146 = vector.shape_cast %143 : vector<32x64xf32> to vector<2x16x64xf32>
    %147 = vector.shape_cast %144 : vector<32x64xf32> to vector<2x16x64xf32>
    %148 = vector.shape_cast %145 : vector<32x64xf32> to vector<2x16x64xf32>
    %149 = vector.extract_strided_slice %146 {offsets = [0, 0, 0], sizes = [2, 16, 16], strides = [1, 1, 1]} : vector<2x16x64xf32> to vector<2x16x16xf32>
    %150 = vector.extract_strided_slice %147 {offsets = [0, 0, 0], sizes = [2, 16, 16], strides = [1, 1, 1]} : vector<2x16x64xf32> to vector<2x16x16xf32>
    "tpu.trace_start"() <{level = 10 : i32, message = "bqd,bkd->bqk"}> : () -> ()
    %cst_69 = arith.constant dense<0.000000e+00> : vector<2x16x16xf32>
    %151 = tpu.matmul %149, %150, %cst_69 {dimension_numbers = #tpu.dot_dimension_numbers<[2], [2], [1], [1], [0, 0, 0, 1, 1, 1], [0], [0]>} : vector<2x16x16xf32>, vector<2x16x16xf32>, vector<2x16x16xf32> -> vector<2x16x16xf32>
    "tpu.trace_stop"() : () -> ()
    %152 = vector.extract_strided_slice %0 {offsets = [0, 0, 0, 0], sizes = [2, 1, 16, 16], strides = [1, 1, 1, 1]} : vector<2x4x16x16xf32> to vector<2x1x16x16xf32>
    %153 = vector.shape_cast %152 : vector<2x1x16x16xf32> to vector<2x16x16xf32>
    %154 = arith.addf %151, %153 : vector<2x16x16xf32>
    %cst_70 = arith.constant dense<0xFF800000> : vector<2x16xf32>
    %155 = vector.multi_reduction <maximumf>, %154, %cst_70 [2] : vector<2x16x16xf32> to vector<2x16xf32>
    %156 = vector.shape_cast %155 : vector<2x16xf32> to vector<2x16x1xf32>
    %157 = vector.broadcast %156 : vector<2x16x1xf32> to vector<2x16x16xf32>
    %158 = arith.subf %154, %157 : vector<2x16x16xf32>
    %159 = math.exp %158 : vector<2x16x16xf32>
    %cst_71 = arith.constant dense<0.000000e+00> : vector<2x16xf32>
    %160 = vector.multi_reduction <add>, %159, %cst_71 [2] : vector<2x16x16xf32> to vector<2x16xf32>
    %161 = vector.shape_cast %160 : vector<2x16xf32> to vector<2x16x1xf32>
    %162 = vector.broadcast %161 : vector<2x16x1xf32> to vector<2x16x16xf32>
    %163 = arith.divf %159, %162 : vector<2x16x16xf32>
    %164 = vector.extract_strided_slice %148 {offsets = [0, 0, 0], sizes = [2, 16, 16], strides = [1, 1, 1]} : vector<2x16x64xf32> to vector<2x16x16xf32>
    "tpu.trace_start"() <{level = 10 : i32, message = "bqk,bkd->bqd"}> : () -> ()
    %cst_72 = arith.constant dense<0.000000e+00> : vector<2x16x16xf32>
    %165 = tpu.matmul %163, %164, %cst_72 {dimension_numbers = #tpu.dot_dimension_numbers<[2], [1], [1], [2], [0, 0, 0, 1, 1, 2], [0], [0]>} : vector<2x16x16xf32>, vector<2x16x16xf32>, vector<2x16x16xf32> -> vector<2x16x16xf32>
    "tpu.trace_stop"() : () -> ()
    %166 = vector.extract_strided_slice %146 {offsets = [0, 0, 16], sizes = [2, 16, 16], strides = [1, 1, 1]} : vector<2x16x64xf32> to vector<2x16x16xf32>
    %167 = vector.extract_strided_slice %147 {offsets = [0, 0, 16], sizes = [2, 16, 16], strides = [1, 1, 1]} : vector<2x16x64xf32> to vector<2x16x16xf32>
    "tpu.trace_start"() <{level = 10 : i32, message = "bqd,bkd->bqk"}> : () -> ()
    %cst_73 = arith.constant dense<0.000000e+00> : vector<2x16x16xf32>
    %168 = tpu.matmul %166, %167, %cst_73 {dimension_numbers = #tpu.dot_dimension_numbers<[2], [2], [1], [1], [0, 0, 0, 1, 1, 1], [0], [0]>} : vector<2x16x16xf32>, vector<2x16x16xf32>, vector<2x16x16xf32> -> vector<2x16x16xf32>
    "tpu.trace_stop"() : () -> ()
    %169 = vector.extract_strided_slice %0 {offsets = [0, 1, 0, 0], sizes = [2, 1, 16, 16], strides = [1, 1, 1, 1]} : vector<2x4x16x16xf32> to vector<2x1x16x16xf32>
    %170 = vector.shape_cast %169 : vector<2x1x16x16xf32> to vector<2x16x16xf32>
    %171 = arith.addf %168, %170 : vector<2x16x16xf32>
    %cst_74 = arith.constant dense<0xFF800000> : vector<2x16xf32>
    %172 = vector.multi_reduction <maximumf>, %171, %cst_74 [2] : vector<2x16x16xf32> to vector<2x16xf32>
    %173 = vector.shape_cast %172 : vector<2x16xf32> to vector<2x16x1xf32>
    %174 = vector.broadcast %173 : vector<2x16x1xf32> to vector<2x16x16xf32>
    %175 = arith.subf %171, %174 : vector<2x16x16xf32>
    %176 = math.exp %175 : vector<2x16x16xf32>
    %cst_75 = arith.constant dense<0.000000e+00> : vector<2x16xf32>
    %177 = vector.multi_reduction <add>, %176, %cst_75 [2] : vector<2x16x16xf32> to vector<2x16xf32>
    %178 = vector.shape_cast %177 : vector<2x16xf32> to vector<2x16x1xf32>
    %179 = vector.broadcast %178 : vector<2x16x1xf32> to vector<2x16x16xf32>
    %180 = arith.divf %176, %179 : vector<2x16x16xf32>
    %181 = vector.extract_strided_slice %148 {offsets = [0, 0, 16], sizes = [2, 16, 16], strides = [1, 1, 1]} : vector<2x16x64xf32> to vector<2x16x16xf32>
    "tpu.trace_start"() <{level = 10 : i32, message = "bqk,bkd->bqd"}> : () -> ()
    %cst_76 = arith.constant dense<0.000000e+00> : vector<2x16x16xf32>
    %182 = tpu.matmul %180, %181, %cst_76 {dimension_numbers = #tpu.dot_dimension_numbers<[2], [1], [1], [2], [0, 0, 0, 1, 1, 2], [0], [0]>} : vector<2x16x16xf32>, vector<2x16x16xf32>, vector<2x16x16xf32> -> vector<2x16x16xf32>
    "tpu.trace_stop"() : () -> ()
    %183 = vector.extract_strided_slice %146 {offsets = [0, 0, 32], sizes = [2, 16, 16], strides = [1, 1, 1]} : vector<2x16x64xf32> to vector<2x16x16xf32>
    %184 = vector.extract_strided_slice %147 {offsets = [0, 0, 32], sizes = [2, 16, 16], strides = [1, 1, 1]} : vector<2x16x64xf32> to vector<2x16x16xf32>
    "tpu.trace_start"() <{level = 10 : i32, message = "bqd,bkd->bqk"}> : () -> ()
    %cst_77 = arith.constant dense<0.000000e+00> : vector<2x16x16xf32>
    %185 = tpu.matmul %183, %184, %cst_77 {dimension_numbers = #tpu.dot_dimension_numbers<[2], [2], [1], [1], [0, 0, 0, 1, 1, 1], [0], [0]>} : vector<2x16x16xf32>, vector<2x16x16xf32>, vector<2x16x16xf32> -> vector<2x16x16xf32>
    "tpu.trace_stop"() : () -> ()
    %186 = vector.extract_strided_slice %0 {offsets = [0, 2, 0, 0], sizes = [2, 1, 16, 16], strides = [1, 1, 1, 1]} : vector<2x4x16x16xf32> to vector<2x1x16x16xf32>
    %187 = vector.shape_cast %186 : vector<2x1x16x16xf32> to vector<2x16x16xf32>
    %188 = arith.addf %185, %187 : vector<2x16x16xf32>
    %cst_78 = arith.constant dense<0xFF800000> : vector<2x16xf32>
    %189 = vector.multi_reduction <maximumf>, %188, %cst_78 [2] : vector<2x16x16xf32> to vector<2x16xf32>
    %190 = vector.shape_cast %189 : vector<2x16xf32> to vector<2x16x1xf32>
    %191 = vector.broadcast %190 : vector<2x16x1xf32> to vector<2x16x16xf32>
    %192 = arith.subf %188, %191 : vector<2x16x16xf32>
    %193 = math.exp %192 : vector<2x16x16xf32>
    %cst_79 = arith.constant dense<0.000000e+00> : vector<2x16xf32>
    %194 = vector.multi_reduction <add>, %193, %cst_79 [2] : vector<2x16x16xf32> to vector<2x16xf32>
    %195 = vector.shape_cast %194 : vector<2x16xf32> to vector<2x16x1xf32>
    %196 = vector.broadcast %195 : vector<2x16x1xf32> to vector<2x16x16xf32>
    %197 = arith.divf %193, %196 : vector<2x16x16xf32>
    %198 = vector.extract_strided_slice %148 {offsets = [0, 0, 32], sizes = [2, 16, 16], strides = [1, 1, 1]} : vector<2x16x64xf32> to vector<2x16x16xf32>
    "tpu.trace_start"() <{level = 10 : i32, message = "bqk,bkd->bqd"}> : () -> ()
    %cst_80 = arith.constant dense<0.000000e+00> : vector<2x16x16xf32>
    %199 = tpu.matmul %197, %198, %cst_80 {dimension_numbers = #tpu.dot_dimension_numbers<[2], [1], [1], [2], [0, 0, 0, 1, 1, 2], [0], [0]>} : vector<2x16x16xf32>, vector<2x16x16xf32>, vector<2x16x16xf32> -> vector<2x16x16xf32>
    "tpu.trace_stop"() : () -> ()
    %200 = vector.extract_strided_slice %146 {offsets = [0, 0, 48], sizes = [2, 16, 16], strides = [1, 1, 1]} : vector<2x16x64xf32> to vector<2x16x16xf32>
    %201 = vector.extract_strided_slice %147 {offsets = [0, 0, 48], sizes = [2, 16, 16], strides = [1, 1, 1]} : vector<2x16x64xf32> to vector<2x16x16xf32>
    "tpu.trace_start"() <{level = 10 : i32, message = "bqd,bkd->bqk"}> : () -> ()
    %cst_81 = arith.constant dense<0.000000e+00> : vector<2x16x16xf32>
    %202 = tpu.matmul %200, %201, %cst_81 {dimension_numbers = #tpu.dot_dimension_numbers<[2], [2], [1], [1], [0, 0, 0, 1, 1, 1], [0], [0]>} : vector<2x16x16xf32>, vector<2x16x16xf32>, vector<2x16x16xf32> -> vector<2x16x16xf32>
    "tpu.trace_stop"() : () -> ()
    %203 = vector.extract_strided_slice %0 {offsets = [0, 3, 0, 0], sizes = [2, 1, 16, 16], strides = [1, 1, 1, 1]} : vector<2x4x16x16xf32> to vector<2x1x16x16xf32>
    %204 = vector.shape_cast %203 : vector<2x1x16x16xf32> to vector<2x16x16xf32>
    %205 = arith.addf %202, %204 : vector<2x16x16xf32>
    %cst_82 = arith.constant dense<0xFF800000> : vector<2x16xf32>
    %206 = vector.multi_reduction <maximumf>, %205, %cst_82 [2] : vector<2x16x16xf32> to vector<2x16xf32>
    %207 = vector.shape_cast %206 : vector<2x16xf32> to vector<2x16x1xf32>
    %208 = vector.broadcast %207 : vector<2x16x1xf32> to vector<2x16x16xf32>
    %209 = arith.subf %205, %208 : vector<2x16x16xf32>
    %210 = math.exp %209 : vector<2x16x16xf32>
    %cst_83 = arith.constant dense<0.000000e+00> : vector<2x16xf32>
    %211 = vector.multi_reduction <add>, %210, %cst_83 [2] : vector<2x16x16xf32> to vector<2x16xf32>
    %212 = vector.shape_cast %211 : vector<2x16xf32> to vector<2x16x1xf32>
    %213 = vector.broadcast %212 : vector<2x16x1xf32> to vector<2x16x16xf32>
    %214 = arith.divf %210, %213 : vector<2x16x16xf32>
    %215 = vector.extract_strided_slice %148 {offsets = [0, 0, 48], sizes = [2, 16, 16], strides = [1, 1, 1]} : vector<2x16x64xf32> to vector<2x16x16xf32>
    "tpu.trace_start"() <{level = 10 : i32, message = "bqk,bkd->bqd"}> : () -> ()
    %cst_84 = arith.constant dense<0.000000e+00> : vector<2x16x16xf32>
    %216 = tpu.matmul %214, %215, %cst_84 {dimension_numbers = #tpu.dot_dimension_numbers<[2], [1], [1], [2], [0, 0, 0, 1, 1, 2], [0], [0]>} : vector<2x16x16xf32>, vector<2x16x16xf32>, vector<2x16x16xf32> -> vector<2x16x16xf32>
    "tpu.trace_stop"() : () -> ()
    %217 = tpu.concatenate %165, %182, %199, %216 in 2 : vector<2x16x16xf32>, vector<2x16x16xf32>, vector<2x16x16xf32>, vector<2x16x16xf32> -> vector<2x16x64xf32>
    %218 = vector.shape_cast %217 : vector<2x16x64xf32> to vector<32x64xf32>
    %cst_85 = arith.constant dense<0.000000e+00> : vector<32x64xf32>
    %219 = tpu.matmul %218, %141, %cst_85 {dimension_numbers = #tpu.dot_dimension_numbers<[1], [0], [0], [1], [0, 0, 1, 1], [], []>} : vector<32x64xf32>, vector<64x64xf32>, vector<32x64xf32> -> vector<32x64xf32>
    %220 = arith.addf %123, %219 : vector<32x64xf32>
    %c1_86 = arith.constant 1 : index
    %c0_87 = arith.constant 0 : index
    %c0_88 = arith.constant 0 : index
    %221 = vector.load %arg10[%c1_86, %c0_87, %c0_88] : memref<2x1x64xf32, #tpu.memory_space<vmem>>, vector<1x1x64xf32>
    %222 = vector.shape_cast %221 : vector<1x1x64xf32> to vector<1x64xf32>
    %223 = arith.mulf %220, %220 : vector<32x64xf32>
    %cst_89 = arith.constant dense<0.000000e+00> : vector<32xf32>
    %224 = vector.multi_reduction <add>, %223, %cst_89 [1] : vector<32x64xf32> to vector<32xf32>
    %225 = vector.shape_cast %224 : vector<32xf32> to vector<32x1xf32>
    %cst_90 = arith.constant 6.400000e+01 : f32
    %226 = vector.broadcast %cst_90 : f32 to vector<32x1xf32>
    %227 = arith.divf %225, %226 : vector<32x1xf32>
    %cst_91 = arith.constant 9.99999997E-7 : f32
    %228 = vector.broadcast %cst_91 : f32 to vector<32x1xf32>
    %229 = arith.addf %227, %228 : vector<32x1xf32>
    %230 = math.rsqrt %229 : vector<32x1xf32>
    %231 = vector.broadcast %230 : vector<32x1xf32> to vector<32x64xf32>
    %232 = arith.mulf %220, %231 : vector<32x64xf32>
    %233 = vector.broadcast %222 : vector<1x64xf32> to vector<32x64xf32>
    %234 = arith.mulf %232, %233 : vector<32x64xf32>
    %c1_92 = arith.constant 1 : index
    %c0_93 = arith.constant 0 : index
    %c0_94 = arith.constant 0 : index
    %235 = vector.load %arg11[%c1_92, %c0_93, %c0_94] : memref<2x64x128xf32, #tpu.memory_space<vmem>>, vector<1x64x128xf32>
    %236 = vector.shape_cast %235 : vector<1x64x128xf32> to vector<64x128xf32>
    %c1_95 = arith.constant 1 : index
    %c0_96 = arith.constant 0 : index
    %c0_97 = arith.constant 0 : index
    %237 = vector.load %arg12[%c1_95, %c0_96, %c0_97] : memref<2x128x64xf32, #tpu.memory_space<vmem>>, vector<1x128x64xf32>
    %238 = vector.shape_cast %237 : vector<1x128x64xf32> to vector<128x64xf32>
    %cst_98 = arith.constant dense<0.000000e+00> : vector<32x128xf32>
    %239 = tpu.matmul %234, %236, %cst_98 {dimension_numbers = #tpu.dot_dimension_numbers<[1], [0], [0], [1], [0, 0, 1, 1], [], []>} : vector<32x64xf32>, vector<64x128xf32>, vector<32x128xf32> -> vector<32x128xf32>
    %cst_99 = arith.constant 0.000000e+00 : f32
    %240 = vector.broadcast %cst_99 : f32 to vector<32x128xf32>
    %241 = arith.maximumf %239, %240 : vector<32x128xf32>
    %cst_100 = arith.constant dense<0.000000e+00> : vector<32x64xf32>
    %242 = tpu.matmul %241, %238, %cst_100 {dimension_numbers = #tpu.dot_dimension_numbers<[1], [0], [0], [1], [0, 0, 1, 1], [], []>} : vector<32x128xf32>, vector<128x64xf32>, vector<32x64xf32> -> vector<32x64xf32>
    %243 = arith.addf %220, %242 : vector<32x64xf32>
    %c0_101 = arith.constant 0 : index
    %c0_102 = arith.constant 0 : index
    %244 = vector.load %arg13[%c0_101, %c0_102] : memref<1x64xf32, #tpu.memory_space<vmem>>, vector<1x64xf32>
    %245 = arith.mulf %243, %243 : vector<32x64xf32>
    %cst_103 = arith.constant dense<0.000000e+00> : vector<32xf32>
    %246 = vector.multi_reduction <add>, %245, %cst_103 [1] : vector<32x64xf32> to vector<32xf32>
    %247 = vector.shape_cast %246 : vector<32xf32> to vector<32x1xf32>
    %cst_104 = arith.constant 6.400000e+01 : f32
    %248 = vector.broadcast %cst_104 : f32 to vector<32x1xf32>
    %249 = arith.divf %247, %248 : vector<32x1xf32>
    %cst_105 = arith.constant 9.99999997E-7 : f32
    %250 = vector.broadcast %cst_105 : f32 to vector<32x1xf32>
    %251 = arith.addf %249, %250 : vector<32x1xf32>
    %252 = math.rsqrt %251 : vector<32x1xf32>
    %253 = vector.broadcast %252 : vector<32x1xf32> to vector<32x64xf32>
    %254 = arith.mulf %243, %253 : vector<32x64xf32>
    %255 = vector.broadcast %244 : vector<1x64xf32> to vector<32x64xf32>
    %256 = arith.mulf %254, %255 : vector<32x64xf32>
    %c0_106 = arith.constant 0 : index
    %c0_107 = arith.constant 0 : index
    %257 = vector.load %arg2[%c0_106, %c0_107] : memref<32x64xf32, #tpu.memory_space<vmem>>, vector<32x64xf32>
    %c0_108 = arith.constant 0 : index
    %c0_109 = arith.constant 0 : index
    %c0_110 = arith.constant 0 : index
    %258 = vector.load %arg14[%c0_108, %c0_109, %c0_110] : memref<2x1x64xf32, #tpu.memory_space<vmem>>, vector<1x1x64xf32>
    %259 = vector.shape_cast %258 : vector<1x1x64xf32> to vector<1x64xf32>
    %260 = arith.mulf %257, %257 : vector<32x64xf32>
    %cst_111 = arith.constant dense<0.000000e+00> : vector<32xf32>
    %261 = vector.multi_reduction <add>, %260, %cst_111 [1] : vector<32x64xf32> to vector<32xf32>
    %262 = vector.shape_cast %261 : vector<32xf32> to vector<32x1xf32>
    %cst_112 = arith.constant 6.400000e+01 : f32
    %263 = vector.broadcast %cst_112 : f32 to vector<32x1xf32>
    %264 = arith.divf %262, %263 : vector<32x1xf32>
    %cst_113 = arith.constant 9.99999997E-7 : f32
    %265 = vector.broadcast %cst_113 : f32 to vector<32x1xf32>
    %266 = arith.addf %264, %265 : vector<32x1xf32>
    %267 = math.rsqrt %266 : vector<32x1xf32>
    %268 = vector.broadcast %267 : vector<32x1xf32> to vector<32x64xf32>
    %269 = arith.mulf %257, %268 : vector<32x64xf32>
    %270 = vector.broadcast %259 : vector<1x64xf32> to vector<32x64xf32>
    %271 = arith.mulf %269, %270 : vector<32x64xf32>
    %c0_114 = arith.constant 0 : index
    %c0_115 = arith.constant 0 : index
    %c0_116 = arith.constant 0 : index
    %272 = vector.load %arg15[%c0_114, %c0_115, %c0_116] : memref<2x64x192xf32, #tpu.memory_space<vmem>>, vector<1x64x192xf32>
    %273 = vector.shape_cast %272 : vector<1x64x192xf32> to vector<64x192xf32>
    %c0_117 = arith.constant 0 : index
    %c0_118 = arith.constant 0 : index
    %c0_119 = arith.constant 0 : index
    %274 = vector.load %arg16[%c0_117, %c0_118, %c0_119] : memref<2x64x64xf32, #tpu.memory_space<vmem>>, vector<1x64x64xf32>
    %275 = vector.shape_cast %274 : vector<1x64x64xf32> to vector<64x64xf32>
    %cst_120 = arith.constant dense<0.000000e+00> : vector<32x192xf32>
    %276 = tpu.matmul %271, %273, %cst_120 {dimension_numbers = #tpu.dot_dimension_numbers<[1], [0], [0], [1], [0, 0, 1, 1], [], []>} : vector<32x64xf32>, vector<64x192xf32>, vector<32x192xf32> -> vector<32x192xf32>
    %277 = vector.extract_strided_slice %276 {offsets = [0, 0], sizes = [32, 64], strides = [1, 1]} : vector<32x192xf32> to vector<32x64xf32>
    %278 = vector.extract_strided_slice %276 {offsets = [0, 64], sizes = [32, 64], strides = [1, 1]} : vector<32x192xf32> to vector<32x64xf32>
    %279 = vector.extract_strided_slice %276 {offsets = [0, 128], sizes = [32, 64], strides = [1, 1]} : vector<32x192xf32> to vector<32x64xf32>
    %280 = vector.shape_cast %277 : vector<32x64xf32> to vector<2x16x64xf32>
    %281 = vector.shape_cast %278 : vector<32x64xf32> to vector<2x16x64xf32>
    %282 = vector.shape_cast %279 : vector<32x64xf32> to vector<2x16x64xf32>
    %283 = vector.extract_strided_slice %280 {offsets = [0, 0, 0], sizes = [2, 16, 16], strides = [1, 1, 1]} : vector<2x16x64xf32> to vector<2x16x16xf32>
    %284 = vector.extract_strided_slice %281 {offsets = [0, 0, 0], sizes = [2, 16, 16], strides = [1, 1, 1]} : vector<2x16x64xf32> to vector<2x16x16xf32>
    "tpu.trace_start"() <{level = 10 : i32, message = "bqd,bkd->bqk"}> : () -> ()
    %cst_121 = arith.constant dense<0.000000e+00> : vector<2x16x16xf32>
    %285 = tpu.matmul %283, %284, %cst_121 {dimension_numbers = #tpu.dot_dimension_numbers<[2], [2], [1], [1], [0, 0, 0, 1, 1, 1], [0], [0]>} : vector<2x16x16xf32>, vector<2x16x16xf32>, vector<2x16x16xf32> -> vector<2x16x16xf32>
    "tpu.trace_stop"() : () -> ()
    %286 = vector.extract_strided_slice %1 {offsets = [0, 0, 0, 0], sizes = [2, 1, 16, 16], strides = [1, 1, 1, 1]} : vector<2x4x16x16xf32> to vector<2x1x16x16xf32>
    %287 = vector.shape_cast %286 : vector<2x1x16x16xf32> to vector<2x16x16xf32>
    %288 = arith.addf %285, %287 : vector<2x16x16xf32>
    %cst_122 = arith.constant dense<0xFF800000> : vector<2x16xf32>
    %289 = vector.multi_reduction <maximumf>, %288, %cst_122 [2] : vector<2x16x16xf32> to vector<2x16xf32>
    %290 = vector.shape_cast %289 : vector<2x16xf32> to vector<2x16x1xf32>
    %291 = vector.broadcast %290 : vector<2x16x1xf32> to vector<2x16x16xf32>
    %292 = arith.subf %288, %291 : vector<2x16x16xf32>
    %293 = math.exp %292 : vector<2x16x16xf32>
    %cst_123 = arith.constant dense<0.000000e+00> : vector<2x16xf32>
    %294 = vector.multi_reduction <add>, %293, %cst_123 [2] : vector<2x16x16xf32> to vector<2x16xf32>
    %295 = vector.shape_cast %294 : vector<2x16xf32> to vector<2x16x1xf32>
    %296 = vector.broadcast %295 : vector<2x16x1xf32> to vector<2x16x16xf32>
    %297 = arith.divf %293, %296 : vector<2x16x16xf32>
    %298 = vector.extract_strided_slice %282 {offsets = [0, 0, 0], sizes = [2, 16, 16], strides = [1, 1, 1]} : vector<2x16x64xf32> to vector<2x16x16xf32>
    "tpu.trace_start"() <{level = 10 : i32, message = "bqk,bkd->bqd"}> : () -> ()
    %cst_124 = arith.constant dense<0.000000e+00> : vector<2x16x16xf32>
    %299 = tpu.matmul %297, %298, %cst_124 {dimension_numbers = #tpu.dot_dimension_numbers<[2], [1], [1], [2], [0, 0, 0, 1, 1, 2], [0], [0]>} : vector<2x16x16xf32>, vector<2x16x16xf32>, vector<2x16x16xf32> -> vector<2x16x16xf32>
    "tpu.trace_stop"() : () -> ()
    %300 = vector.extract_strided_slice %280 {offsets = [0, 0, 16], sizes = [2, 16, 16], strides = [1, 1, 1]} : vector<2x16x64xf32> to vector<2x16x16xf32>
    %301 = vector.extract_strided_slice %281 {offsets = [0, 0, 16], sizes = [2, 16, 16], strides = [1, 1, 1]} : vector<2x16x64xf32> to vector<2x16x16xf32>
    "tpu.trace_start"() <{level = 10 : i32, message = "bqd,bkd->bqk"}> : () -> ()
    %cst_125 = arith.constant dense<0.000000e+00> : vector<2x16x16xf32>
    %302 = tpu.matmul %300, %301, %cst_125 {dimension_numbers = #tpu.dot_dimension_numbers<[2], [2], [1], [1], [0, 0, 0, 1, 1, 1], [0], [0]>} : vector<2x16x16xf32>, vector<2x16x16xf32>, vector<2x16x16xf32> -> vector<2x16x16xf32>
    "tpu.trace_stop"() : () -> ()
    %303 = vector.extract_strided_slice %1 {offsets = [0, 1, 0, 0], sizes = [2, 1, 16, 16], strides = [1, 1, 1, 1]} : vector<2x4x16x16xf32> to vector<2x1x16x16xf32>
    %304 = vector.shape_cast %303 : vector<2x1x16x16xf32> to vector<2x16x16xf32>
    %305 = arith.addf %302, %304 : vector<2x16x16xf32>
    %cst_126 = arith.constant dense<0xFF800000> : vector<2x16xf32>
    %306 = vector.multi_reduction <maximumf>, %305, %cst_126 [2] : vector<2x16x16xf32> to vector<2x16xf32>
    %307 = vector.shape_cast %306 : vector<2x16xf32> to vector<2x16x1xf32>
    %308 = vector.broadcast %307 : vector<2x16x1xf32> to vector<2x16x16xf32>
    %309 = arith.subf %305, %308 : vector<2x16x16xf32>
    %310 = math.exp %309 : vector<2x16x16xf32>
    %cst_127 = arith.constant dense<0.000000e+00> : vector<2x16xf32>
    %311 = vector.multi_reduction <add>, %310, %cst_127 [2] : vector<2x16x16xf32> to vector<2x16xf32>
    %312 = vector.shape_cast %311 : vector<2x16xf32> to vector<2x16x1xf32>
    %313 = vector.broadcast %312 : vector<2x16x1xf32> to vector<2x16x16xf32>
    %314 = arith.divf %310, %313 : vector<2x16x16xf32>
    %315 = vector.extract_strided_slice %282 {offsets = [0, 0, 16], sizes = [2, 16, 16], strides = [1, 1, 1]} : vector<2x16x64xf32> to vector<2x16x16xf32>
    "tpu.trace_start"() <{level = 10 : i32, message = "bqk,bkd->bqd"}> : () -> ()
    %cst_128 = arith.constant dense<0.000000e+00> : vector<2x16x16xf32>
    %316 = tpu.matmul %314, %315, %cst_128 {dimension_numbers = #tpu.dot_dimension_numbers<[2], [1], [1], [2], [0, 0, 0, 1, 1, 2], [0], [0]>} : vector<2x16x16xf32>, vector<2x16x16xf32>, vector<2x16x16xf32> -> vector<2x16x16xf32>
    "tpu.trace_stop"() : () -> ()
    %317 = vector.extract_strided_slice %280 {offsets = [0, 0, 32], sizes = [2, 16, 16], strides = [1, 1, 1]} : vector<2x16x64xf32> to vector<2x16x16xf32>
    %318 = vector.extract_strided_slice %281 {offsets = [0, 0, 32], sizes = [2, 16, 16], strides = [1, 1, 1]} : vector<2x16x64xf32> to vector<2x16x16xf32>
    "tpu.trace_start"() <{level = 10 : i32, message = "bqd,bkd->bqk"}> : () -> ()
    %cst_129 = arith.constant dense<0.000000e+00> : vector<2x16x16xf32>
    %319 = tpu.matmul %317, %318, %cst_129 {dimension_numbers = #tpu.dot_dimension_numbers<[2], [2], [1], [1], [0, 0, 0, 1, 1, 1], [0], [0]>} : vector<2x16x16xf32>, vector<2x16x16xf32>, vector<2x16x16xf32> -> vector<2x16x16xf32>
    "tpu.trace_stop"() : () -> ()
    %320 = vector.extract_strided_slice %1 {offsets = [0, 2, 0, 0], sizes = [2, 1, 16, 16], strides = [1, 1, 1, 1]} : vector<2x4x16x16xf32> to vector<2x1x16x16xf32>
    %321 = vector.shape_cast %320 : vector<2x1x16x16xf32> to vector<2x16x16xf32>
    %322 = arith.addf %319, %321 : vector<2x16x16xf32>
    %cst_130 = arith.constant dense<0xFF800000> : vector<2x16xf32>
    %323 = vector.multi_reduction <maximumf>, %322, %cst_130 [2] : vector<2x16x16xf32> to vector<2x16xf32>
    %324 = vector.shape_cast %323 : vector<2x16xf32> to vector<2x16x1xf32>
    %325 = vector.broadcast %324 : vector<2x16x1xf32> to vector<2x16x16xf32>
    %326 = arith.subf %322, %325 : vector<2x16x16xf32>
    %327 = math.exp %326 : vector<2x16x16xf32>
    %cst_131 = arith.constant dense<0.000000e+00> : vector<2x16xf32>
    %328 = vector.multi_reduction <add>, %327, %cst_131 [2] : vector<2x16x16xf32> to vector<2x16xf32>
    %329 = vector.shape_cast %328 : vector<2x16xf32> to vector<2x16x1xf32>
    %330 = vector.broadcast %329 : vector<2x16x1xf32> to vector<2x16x16xf32>
    %331 = arith.divf %327, %330 : vector<2x16x16xf32>
    %332 = vector.extract_strided_slice %282 {offsets = [0, 0, 32], sizes = [2, 16, 16], strides = [1, 1, 1]} : vector<2x16x64xf32> to vector<2x16x16xf32>
    "tpu.trace_start"() <{level = 10 : i32, message = "bqk,bkd->bqd"}> : () -> ()
    %cst_132 = arith.constant dense<0.000000e+00> : vector<2x16x16xf32>
    %333 = tpu.matmul %331, %332, %cst_132 {dimension_numbers = #tpu.dot_dimension_numbers<[2], [1], [1], [2], [0, 0, 0, 1, 1, 2], [0], [0]>} : vector<2x16x16xf32>, vector<2x16x16xf32>, vector<2x16x16xf32> -> vector<2x16x16xf32>
    "tpu.trace_stop"() : () -> ()
    %334 = vector.extract_strided_slice %280 {offsets = [0, 0, 48], sizes = [2, 16, 16], strides = [1, 1, 1]} : vector<2x16x64xf32> to vector<2x16x16xf32>
    %335 = vector.extract_strided_slice %281 {offsets = [0, 0, 48], sizes = [2, 16, 16], strides = [1, 1, 1]} : vector<2x16x64xf32> to vector<2x16x16xf32>
    "tpu.trace_start"() <{level = 10 : i32, message = "bqd,bkd->bqk"}> : () -> ()
    %cst_133 = arith.constant dense<0.000000e+00> : vector<2x16x16xf32>
    %336 = tpu.matmul %334, %335, %cst_133 {dimension_numbers = #tpu.dot_dimension_numbers<[2], [2], [1], [1], [0, 0, 0, 1, 1, 1], [0], [0]>} : vector<2x16x16xf32>, vector<2x16x16xf32>, vector<2x16x16xf32> -> vector<2x16x16xf32>
    "tpu.trace_stop"() : () -> ()
    %337 = vector.extract_strided_slice %1 {offsets = [0, 3, 0, 0], sizes = [2, 1, 16, 16], strides = [1, 1, 1, 1]} : vector<2x4x16x16xf32> to vector<2x1x16x16xf32>
    %338 = vector.shape_cast %337 : vector<2x1x16x16xf32> to vector<2x16x16xf32>
    %339 = arith.addf %336, %338 : vector<2x16x16xf32>
    %cst_134 = arith.constant dense<0xFF800000> : vector<2x16xf32>
    %340 = vector.multi_reduction <maximumf>, %339, %cst_134 [2] : vector<2x16x16xf32> to vector<2x16xf32>
    %341 = vector.shape_cast %340 : vector<2x16xf32> to vector<2x16x1xf32>
    %342 = vector.broadcast %341 : vector<2x16x1xf32> to vector<2x16x16xf32>
    %343 = arith.subf %339, %342 : vector<2x16x16xf32>
    %344 = math.exp %343 : vector<2x16x16xf32>
    %cst_135 = arith.constant dense<0.000000e+00> : vector<2x16xf32>
    %345 = vector.multi_reduction <add>, %344, %cst_135 [2] : vector<2x16x16xf32> to vector<2x16xf32>
    %346 = vector.shape_cast %345 : vector<2x16xf32> to vector<2x16x1xf32>
    %347 = vector.broadcast %346 : vector<2x16x1xf32> to vector<2x16x16xf32>
    %348 = arith.divf %344, %347 : vector<2x16x16xf32>
    %349 = vector.extract_strided_slice %282 {offsets = [0, 0, 48], sizes = [2, 16, 16], strides = [1, 1, 1]} : vector<2x16x64xf32> to vector<2x16x16xf32>
    "tpu.trace_start"() <{level = 10 : i32, message = "bqk,bkd->bqd"}> : () -> ()
    %cst_136 = arith.constant dense<0.000000e+00> : vector<2x16x16xf32>
    %350 = tpu.matmul %348, %349, %cst_136 {dimension_numbers = #tpu.dot_dimension_numbers<[2], [1], [1], [2], [0, 0, 0, 1, 1, 2], [0], [0]>} : vector<2x16x16xf32>, vector<2x16x16xf32>, vector<2x16x16xf32> -> vector<2x16x16xf32>
    "tpu.trace_stop"() : () -> ()
    %351 = tpu.concatenate %299, %316, %333, %350 in 2 : vector<2x16x16xf32>, vector<2x16x16xf32>, vector<2x16x16xf32>, vector<2x16x16xf32> -> vector<2x16x64xf32>
    %352 = vector.shape_cast %351 : vector<2x16x64xf32> to vector<32x64xf32>
    %cst_137 = arith.constant dense<0.000000e+00> : vector<32x64xf32>
    %353 = tpu.matmul %352, %275, %cst_137 {dimension_numbers = #tpu.dot_dimension_numbers<[1], [0], [0], [1], [0, 0, 1, 1], [], []>} : vector<32x64xf32>, vector<64x64xf32>, vector<32x64xf32> -> vector<32x64xf32>
    %354 = arith.addf %257, %353 : vector<32x64xf32>
    %c0_138 = arith.constant 0 : index
    %c0_139 = arith.constant 0 : index
    %c0_140 = arith.constant 0 : index
    %355 = vector.load %arg17[%c0_138, %c0_139, %c0_140] : memref<2x1x64xf32, #tpu.memory_space<vmem>>, vector<1x1x64xf32>
    %356 = vector.shape_cast %355 : vector<1x1x64xf32> to vector<1x64xf32>
    %357 = arith.mulf %354, %354 : vector<32x64xf32>
    %cst_141 = arith.constant dense<0.000000e+00> : vector<32xf32>
    %358 = vector.multi_reduction <add>, %357, %cst_141 [1] : vector<32x64xf32> to vector<32xf32>
    %359 = vector.shape_cast %358 : vector<32xf32> to vector<32x1xf32>
    %cst_142 = arith.constant 6.400000e+01 : f32
    %360 = vector.broadcast %cst_142 : f32 to vector<32x1xf32>
    %361 = arith.divf %359, %360 : vector<32x1xf32>
    %cst_143 = arith.constant 9.99999997E-7 : f32
    %362 = vector.broadcast %cst_143 : f32 to vector<32x1xf32>
    %363 = arith.addf %361, %362 : vector<32x1xf32>
    %364 = math.rsqrt %363 : vector<32x1xf32>
    %365 = vector.broadcast %364 : vector<32x1xf32> to vector<32x64xf32>
    %366 = arith.mulf %354, %365 : vector<32x64xf32>
    %367 = vector.broadcast %356 : vector<1x64xf32> to vector<32x64xf32>
    %368 = arith.mulf %366, %367 : vector<32x64xf32>
    %c0_144 = arith.constant 0 : index
    %c0_145 = arith.constant 0 : index
    %c0_146 = arith.constant 0 : index
    %369 = vector.load %arg18[%c0_144, %c0_145, %c0_146] : memref<2x64x64xf32, #tpu.memory_space<vmem>>, vector<1x64x64xf32>
    %370 = vector.shape_cast %369 : vector<1x64x64xf32> to vector<64x64xf32>
    %c0_147 = arith.constant 0 : index
    %c0_148 = arith.constant 0 : index
    %c0_149 = arith.constant 0 : index
    %371 = vector.load %arg19[%c0_147, %c0_148, %c0_149] : memref<2x64x128xf32, #tpu.memory_space<vmem>>, vector<1x64x128xf32>
    %372 = vector.shape_cast %371 : vector<1x64x128xf32> to vector<64x128xf32>
    %c0_150 = arith.constant 0 : index
    %c0_151 = arith.constant 0 : index
    %c0_152 = arith.constant 0 : index
    %373 = vector.load %arg20[%c0_150, %c0_151, %c0_152] : memref<2x64x64xf32, #tpu.memory_space<vmem>>, vector<1x64x64xf32>
    %374 = vector.shape_cast %373 : vector<1x64x64xf32> to vector<64x64xf32>
    %cst_153 = arith.constant dense<0.000000e+00> : vector<32x64xf32>
    %375 = tpu.matmul %368, %370, %cst_153 {dimension_numbers = #tpu.dot_dimension_numbers<[1], [0], [0], [1], [0, 0, 1, 1], [], []>} : vector<32x64xf32>, vector<64x64xf32>, vector<32x64xf32> -> vector<32x64xf32>
    %cst_154 = arith.constant dense<0.000000e+00> : vector<32x128xf32>
    %376 = tpu.matmul %256, %372, %cst_154 {dimension_numbers = #tpu.dot_dimension_numbers<[1], [0], [0], [1], [0, 0, 1, 1], [], []>} : vector<32x64xf32>, vector<64x128xf32>, vector<32x128xf32> -> vector<32x128xf32>
    %377 = vector.extract_strided_slice %376 {offsets = [0, 0], sizes = [32, 64], strides = [1, 1]} : vector<32x128xf32> to vector<32x64xf32>
    %378 = vector.extract_strided_slice %376 {offsets = [0, 64], sizes = [32, 64], strides = [1, 1]} : vector<32x128xf32> to vector<32x64xf32>
    %379 = vector.shape_cast %375 : vector<32x64xf32> to vector<2x16x64xf32>
    %380 = vector.shape_cast %377 : vector<32x64xf32> to vector<2x16x64xf32>
    %381 = vector.shape_cast %378 : vector<32x64xf32> to vector<2x16x64xf32>
    %382 = vector.extract_strided_slice %379 {offsets = [0, 0, 0], sizes = [2, 16, 16], strides = [1, 1, 1]} : vector<2x16x64xf32> to vector<2x16x16xf32>
    %383 = vector.extract_strided_slice %380 {offsets = [0, 0, 0], sizes = [2, 16, 16], strides = [1, 1, 1]} : vector<2x16x64xf32> to vector<2x16x16xf32>
    "tpu.trace_start"() <{level = 10 : i32, message = "bqd,bkd->bqk"}> : () -> ()
    %cst_155 = arith.constant dense<0.000000e+00> : vector<2x16x16xf32>
    %384 = tpu.matmul %382, %383, %cst_155 {dimension_numbers = #tpu.dot_dimension_numbers<[2], [2], [1], [1], [0, 0, 0, 1, 1, 1], [0], [0]>} : vector<2x16x16xf32>, vector<2x16x16xf32>, vector<2x16x16xf32> -> vector<2x16x16xf32>
    "tpu.trace_stop"() : () -> ()
    %385 = vector.extract_strided_slice %2 {offsets = [0, 0, 0, 0], sizes = [2, 1, 16, 16], strides = [1, 1, 1, 1]} : vector<2x4x16x16xf32> to vector<2x1x16x16xf32>
    %386 = vector.shape_cast %385 : vector<2x1x16x16xf32> to vector<2x16x16xf32>
    %387 = arith.addf %384, %386 : vector<2x16x16xf32>
    %cst_156 = arith.constant dense<0xFF800000> : vector<2x16xf32>
    %388 = vector.multi_reduction <maximumf>, %387, %cst_156 [2] : vector<2x16x16xf32> to vector<2x16xf32>
    %389 = vector.shape_cast %388 : vector<2x16xf32> to vector<2x16x1xf32>
    %390 = vector.broadcast %389 : vector<2x16x1xf32> to vector<2x16x16xf32>
    %391 = arith.subf %387, %390 : vector<2x16x16xf32>
    %392 = math.exp %391 : vector<2x16x16xf32>
    %cst_157 = arith.constant dense<0.000000e+00> : vector<2x16xf32>
    %393 = vector.multi_reduction <add>, %392, %cst_157 [2] : vector<2x16x16xf32> to vector<2x16xf32>
    %394 = vector.shape_cast %393 : vector<2x16xf32> to vector<2x16x1xf32>
    %395 = vector.broadcast %394 : vector<2x16x1xf32> to vector<2x16x16xf32>
    %396 = arith.divf %392, %395 : vector<2x16x16xf32>
    %397 = vector.extract_strided_slice %381 {offsets = [0, 0, 0], sizes = [2, 16, 16], strides = [1, 1, 1]} : vector<2x16x64xf32> to vector<2x16x16xf32>
    "tpu.trace_start"() <{level = 10 : i32, message = "bqk,bkd->bqd"}> : () -> ()
    %cst_158 = arith.constant dense<0.000000e+00> : vector<2x16x16xf32>
    %398 = tpu.matmul %396, %397, %cst_158 {dimension_numbers = #tpu.dot_dimension_numbers<[2], [1], [1], [2], [0, 0, 0, 1, 1, 2], [0], [0]>} : vector<2x16x16xf32>, vector<2x16x16xf32>, vector<2x16x16xf32> -> vector<2x16x16xf32>
    "tpu.trace_stop"() : () -> ()
    %399 = vector.extract_strided_slice %379 {offsets = [0, 0, 16], sizes = [2, 16, 16], strides = [1, 1, 1]} : vector<2x16x64xf32> to vector<2x16x16xf32>
    %400 = vector.extract_strided_slice %380 {offsets = [0, 0, 16], sizes = [2, 16, 16], strides = [1, 1, 1]} : vector<2x16x64xf32> to vector<2x16x16xf32>
    "tpu.trace_start"() <{level = 10 : i32, message = "bqd,bkd->bqk"}> : () -> ()
    %cst_159 = arith.constant dense<0.000000e+00> : vector<2x16x16xf32>
    %401 = tpu.matmul %399, %400, %cst_159 {dimension_numbers = #tpu.dot_dimension_numbers<[2], [2], [1], [1], [0, 0, 0, 1, 1, 1], [0], [0]>} : vector<2x16x16xf32>, vector<2x16x16xf32>, vector<2x16x16xf32> -> vector<2x16x16xf32>
    "tpu.trace_stop"() : () -> ()
    %402 = vector.extract_strided_slice %2 {offsets = [0, 1, 0, 0], sizes = [2, 1, 16, 16], strides = [1, 1, 1, 1]} : vector<2x4x16x16xf32> to vector<2x1x16x16xf32>
    %403 = vector.shape_cast %402 : vector<2x1x16x16xf32> to vector<2x16x16xf32>
    %404 = arith.addf %401, %403 : vector<2x16x16xf32>
    %cst_160 = arith.constant dense<0xFF800000> : vector<2x16xf32>
    %405 = vector.multi_reduction <maximumf>, %404, %cst_160 [2] : vector<2x16x16xf32> to vector<2x16xf32>
    %406 = vector.shape_cast %405 : vector<2x16xf32> to vector<2x16x1xf32>
    %407 = vector.broadcast %406 : vector<2x16x1xf32> to vector<2x16x16xf32>
    %408 = arith.subf %404, %407 : vector<2x16x16xf32>
    %409 = math.exp %408 : vector<2x16x16xf32>
    %cst_161 = arith.constant dense<0.000000e+00> : vector<2x16xf32>
    %410 = vector.multi_reduction <add>, %409, %cst_161 [2] : vector<2x16x16xf32> to vector<2x16xf32>
    %411 = vector.shape_cast %410 : vector<2x16xf32> to vector<2x16x1xf32>
    %412 = vector.broadcast %411 : vector<2x16x1xf32> to vector<2x16x16xf32>
    %413 = arith.divf %409, %412 : vector<2x16x16xf32>
    %414 = vector.extract_strided_slice %381 {offsets = [0, 0, 16], sizes = [2, 16, 16], strides = [1, 1, 1]} : vector<2x16x64xf32> to vector<2x16x16xf32>
    "tpu.trace_start"() <{level = 10 : i32, message = "bqk,bkd->bqd"}> : () -> ()
    %cst_162 = arith.constant dense<0.000000e+00> : vector<2x16x16xf32>
    %415 = tpu.matmul %413, %414, %cst_162 {dimension_numbers = #tpu.dot_dimension_numbers<[2], [1], [1], [2], [0, 0, 0, 1, 1, 2], [0], [0]>} : vector<2x16x16xf32>, vector<2x16x16xf32>, vector<2x16x16xf32> -> vector<2x16x16xf32>
    "tpu.trace_stop"() : () -> ()
    %416 = vector.extract_strided_slice %379 {offsets = [0, 0, 32], sizes = [2, 16, 16], strides = [1, 1, 1]} : vector<2x16x64xf32> to vector<2x16x16xf32>
    %417 = vector.extract_strided_slice %380 {offsets = [0, 0, 32], sizes = [2, 16, 16], strides = [1, 1, 1]} : vector<2x16x64xf32> to vector<2x16x16xf32>
    "tpu.trace_start"() <{level = 10 : i32, message = "bqd,bkd->bqk"}> : () -> ()
    %cst_163 = arith.constant dense<0.000000e+00> : vector<2x16x16xf32>
    %418 = tpu.matmul %416, %417, %cst_163 {dimension_numbers = #tpu.dot_dimension_numbers<[2], [2], [1], [1], [0, 0, 0, 1, 1, 1], [0], [0]>} : vector<2x16x16xf32>, vector<2x16x16xf32>, vector<2x16x16xf32> -> vector<2x16x16xf32>
    "tpu.trace_stop"() : () -> ()
    %419 = vector.extract_strided_slice %2 {offsets = [0, 2, 0, 0], sizes = [2, 1, 16, 16], strides = [1, 1, 1, 1]} : vector<2x4x16x16xf32> to vector<2x1x16x16xf32>
    %420 = vector.shape_cast %419 : vector<2x1x16x16xf32> to vector<2x16x16xf32>
    %421 = arith.addf %418, %420 : vector<2x16x16xf32>
    %cst_164 = arith.constant dense<0xFF800000> : vector<2x16xf32>
    %422 = vector.multi_reduction <maximumf>, %421, %cst_164 [2] : vector<2x16x16xf32> to vector<2x16xf32>
    %423 = vector.shape_cast %422 : vector<2x16xf32> to vector<2x16x1xf32>
    %424 = vector.broadcast %423 : vector<2x16x1xf32> to vector<2x16x16xf32>
    %425 = arith.subf %421, %424 : vector<2x16x16xf32>
    %426 = math.exp %425 : vector<2x16x16xf32>
    %cst_165 = arith.constant dense<0.000000e+00> : vector<2x16xf32>
    %427 = vector.multi_reduction <add>, %426, %cst_165 [2] : vector<2x16x16xf32> to vector<2x16xf32>
    %428 = vector.shape_cast %427 : vector<2x16xf32> to vector<2x16x1xf32>
    %429 = vector.broadcast %428 : vector<2x16x1xf32> to vector<2x16x16xf32>
    %430 = arith.divf %426, %429 : vector<2x16x16xf32>
    %431 = vector.extract_strided_slice %381 {offsets = [0, 0, 32], sizes = [2, 16, 16], strides = [1, 1, 1]} : vector<2x16x64xf32> to vector<2x16x16xf32>
    "tpu.trace_start"() <{level = 10 : i32, message = "bqk,bkd->bqd"}> : () -> ()
    %cst_166 = arith.constant dense<0.000000e+00> : vector<2x16x16xf32>
    %432 = tpu.matmul %430, %431, %cst_166 {dimension_numbers = #tpu.dot_dimension_numbers<[2], [1], [1], [2], [0, 0, 0, 1, 1, 2], [0], [0]>} : vector<2x16x16xf32>, vector<2x16x16xf32>, vector<2x16x16xf32> -> vector<2x16x16xf32>
    "tpu.trace_stop"() : () -> ()
    %433 = vector.extract_strided_slice %379 {offsets = [0, 0, 48], sizes = [2, 16, 16], strides = [1, 1, 1]} : vector<2x16x64xf32> to vector<2x16x16xf32>
    %434 = vector.extract_strided_slice %380 {offsets = [0, 0, 48], sizes = [2, 16, 16], strides = [1, 1, 1]} : vector<2x16x64xf32> to vector<2x16x16xf32>
    "tpu.trace_start"() <{level = 10 : i32, message = "bqd,bkd->bqk"}> : () -> ()
    %cst_167 = arith.constant dense<0.000000e+00> : vector<2x16x16xf32>
    %435 = tpu.matmul %433, %434, %cst_167 {dimension_numbers = #tpu.dot_dimension_numbers<[2], [2], [1], [1], [0, 0, 0, 1, 1, 1], [0], [0]>} : vector<2x16x16xf32>, vector<2x16x16xf32>, vector<2x16x16xf32> -> vector<2x16x16xf32>
    "tpu.trace_stop"() : () -> ()
    %436 = vector.extract_strided_slice %2 {offsets = [0, 3, 0, 0], sizes = [2, 1, 16, 16], strides = [1, 1, 1, 1]} : vector<2x4x16x16xf32> to vector<2x1x16x16xf32>
    %437 = vector.shape_cast %436 : vector<2x1x16x16xf32> to vector<2x16x16xf32>
    %438 = arith.addf %435, %437 : vector<2x16x16xf32>
    %cst_168 = arith.constant dense<0xFF800000> : vector<2x16xf32>
    %439 = vector.multi_reduction <maximumf>, %438, %cst_168 [2] : vector<2x16x16xf32> to vector<2x16xf32>
    %440 = vector.shape_cast %439 : vector<2x16xf32> to vector<2x16x1xf32>
    %441 = vector.broadcast %440 : vector<2x16x1xf32> to vector<2x16x16xf32>
    %442 = arith.subf %438, %441 : vector<2x16x16xf32>
    %443 = math.exp %442 : vector<2x16x16xf32>
    %cst_169 = arith.constant dense<0.000000e+00> : vector<2x16xf32>
    %444 = vector.multi_reduction <add>, %443, %cst_169 [2] : vector<2x16x16xf32> to vector<2x16xf32>
    %445 = vector.shape_cast %444 : vector<2x16xf32> to vector<2x16x1xf32>
    %446 = vector.broadcast %445 : vector<2x16x1xf32> to vector<2x16x16xf32>
    %447 = arith.divf %443, %446 : vector<2x16x16xf32>
    %448 = vector.extract_strided_slice %381 {offsets = [0, 0, 48], sizes = [2, 16, 16], strides = [1, 1, 1]} : vector<2x16x64xf32> to vector<2x16x16xf32>
    "tpu.trace_start"() <{level = 10 : i32, message = "bqk,bkd->bqd"}> : () -> ()
    %cst_170 = arith.constant dense<0.000000e+00> : vector<2x16x16xf32>
    %449 = tpu.matmul %447, %448, %cst_170 {dimension_numbers = #tpu.dot_dimension_numbers<[2], [1], [1], [2], [0, 0, 0, 1, 1, 2], [0], [0]>} : vector<2x16x16xf32>, vector<2x16x16xf32>, vector<2x16x16xf32> -> vector<2x16x16xf32>
    "tpu.trace_stop"() : () -> ()
    %450 = tpu.concatenate %398, %415, %432, %449 in 2 : vector<2x16x16xf32>, vector<2x16x16xf32>, vector<2x16x16xf32>, vector<2x16x16xf32> -> vector<2x16x64xf32>
    %451 = vector.shape_cast %450 : vector<2x16x64xf32> to vector<32x64xf32>
    %cst_171 = arith.constant dense<0.000000e+00> : vector<32x64xf32>
    %452 = tpu.matmul %451, %374, %cst_171 {dimension_numbers = #tpu.dot_dimension_numbers<[1], [0], [0], [1], [0, 0, 1, 1], [], []>} : vector<32x64xf32>, vector<64x64xf32>, vector<32x64xf32> -> vector<32x64xf32>
    %453 = arith.addf %354, %452 : vector<32x64xf32>
    %c0_172 = arith.constant 0 : index
    %c0_173 = arith.constant 0 : index
    %c0_174 = arith.constant 0 : index
    %454 = vector.load %arg21[%c0_172, %c0_173, %c0_174] : memref<2x1x64xf32, #tpu.memory_space<vmem>>, vector<1x1x64xf32>
    %455 = vector.shape_cast %454 : vector<1x1x64xf32> to vector<1x64xf32>
    %456 = arith.mulf %453, %453 : vector<32x64xf32>
    %cst_175 = arith.constant dense<0.000000e+00> : vector<32xf32>
    %457 = vector.multi_reduction <add>, %456, %cst_175 [1] : vector<32x64xf32> to vector<32xf32>
    %458 = vector.shape_cast %457 : vector<32xf32> to vector<32x1xf32>
    %cst_176 = arith.constant 6.400000e+01 : f32
    %459 = vector.broadcast %cst_176 : f32 to vector<32x1xf32>
    %460 = arith.divf %458, %459 : vector<32x1xf32>
    %cst_177 = arith.constant 9.99999997E-7 : f32
    %461 = vector.broadcast %cst_177 : f32 to vector<32x1xf32>
    %462 = arith.addf %460, %461 : vector<32x1xf32>
    %463 = math.rsqrt %462 : vector<32x1xf32>
    %464 = vector.broadcast %463 : vector<32x1xf32> to vector<32x64xf32>
    %465 = arith.mulf %453, %464 : vector<32x64xf32>
    %466 = vector.broadcast %455 : vector<1x64xf32> to vector<32x64xf32>
    %467 = arith.mulf %465, %466 : vector<32x64xf32>
    %c0_178 = arith.constant 0 : index
    %c0_179 = arith.constant 0 : index
    %c0_180 = arith.constant 0 : index
    %468 = vector.load %arg22[%c0_178, %c0_179, %c0_180] : memref<2x64x128xf32, #tpu.memory_space<vmem>>, vector<1x64x128xf32>
    %469 = vector.shape_cast %468 : vector<1x64x128xf32> to vector<64x128xf32>
    %c0_181 = arith.constant 0 : index
    %c0_182 = arith.constant 0 : index
    %c0_183 = arith.constant 0 : index
    %470 = vector.load %arg23[%c0_181, %c0_182, %c0_183] : memref<2x128x64xf32, #tpu.memory_space<vmem>>, vector<1x128x64xf32>
    %471 = vector.shape_cast %470 : vector<1x128x64xf32> to vector<128x64xf32>
    %cst_184 = arith.constant dense<0.000000e+00> : vector<32x128xf32>
    %472 = tpu.matmul %467, %469, %cst_184 {dimension_numbers = #tpu.dot_dimension_numbers<[1], [0], [0], [1], [0, 0, 1, 1], [], []>} : vector<32x64xf32>, vector<64x128xf32>, vector<32x128xf32> -> vector<32x128xf32>
    %cst_185 = arith.constant 0.000000e+00 : f32
    %473 = vector.broadcast %cst_185 : f32 to vector<32x128xf32>
    %474 = arith.maximumf %472, %473 : vector<32x128xf32>
    %cst_186 = arith.constant dense<0.000000e+00> : vector<32x64xf32>
    %475 = tpu.matmul %474, %471, %cst_186 {dimension_numbers = #tpu.dot_dimension_numbers<[1], [0], [0], [1], [0, 0, 1, 1], [], []>} : vector<32x128xf32>, vector<128x64xf32>, vector<32x64xf32> -> vector<32x64xf32>
    %476 = arith.addf %453, %475 : vector<32x64xf32>
    %c1_187 = arith.constant 1 : index
    %c0_188 = arith.constant 0 : index
    %c0_189 = arith.constant 0 : index
    %477 = vector.load %arg14[%c1_187, %c0_188, %c0_189] : memref<2x1x64xf32, #tpu.memory_space<vmem>>, vector<1x1x64xf32>
    %478 = vector.shape_cast %477 : vector<1x1x64xf32> to vector<1x64xf32>
    %479 = arith.mulf %476, %476 : vector<32x64xf32>
    %cst_190 = arith.constant dense<0.000000e+00> : vector<32xf32>
    %480 = vector.multi_reduction <add>, %479, %cst_190 [1] : vector<32x64xf32> to vector<32xf32>
    %481 = vector.shape_cast %480 : vector<32xf32> to vector<32x1xf32>
    %cst_191 = arith.constant 6.400000e+01 : f32
    %482 = vector.broadcast %cst_191 : f32 to vector<32x1xf32>
    %483 = arith.divf %481, %482 : vector<32x1xf32>
    %cst_192 = arith.constant 9.99999997E-7 : f32
    %484 = vector.broadcast %cst_192 : f32 to vector<32x1xf32>
    %485 = arith.addf %483, %484 : vector<32x1xf32>
    %486 = math.rsqrt %485 : vector<32x1xf32>
    %487 = vector.broadcast %486 : vector<32x1xf32> to vector<32x64xf32>
    %488 = arith.mulf %476, %487 : vector<32x64xf32>
    %489 = vector.broadcast %478 : vector<1x64xf32> to vector<32x64xf32>
    %490 = arith.mulf %488, %489 : vector<32x64xf32>
    %c1_193 = arith.constant 1 : index
    %c0_194 = arith.constant 0 : index
    %c0_195 = arith.constant 0 : index
    %491 = vector.load %arg15[%c1_193, %c0_194, %c0_195] : memref<2x64x192xf32, #tpu.memory_space<vmem>>, vector<1x64x192xf32>
    %492 = vector.shape_cast %491 : vector<1x64x192xf32> to vector<64x192xf32>
    %c1_196 = arith.constant 1 : index
    %c0_197 = arith.constant 0 : index
    %c0_198 = arith.constant 0 : index
    %493 = vector.load %arg16[%c1_196, %c0_197, %c0_198] : memref<2x64x64xf32, #tpu.memory_space<vmem>>, vector<1x64x64xf32>
    %494 = vector.shape_cast %493 : vector<1x64x64xf32> to vector<64x64xf32>
    %cst_199 = arith.constant dense<0.000000e+00> : vector<32x192xf32>
    %495 = tpu.matmul %490, %492, %cst_199 {dimension_numbers = #tpu.dot_dimension_numbers<[1], [0], [0], [1], [0, 0, 1, 1], [], []>} : vector<32x64xf32>, vector<64x192xf32>, vector<32x192xf32> -> vector<32x192xf32>
    %496 = vector.extract_strided_slice %495 {offsets = [0, 0], sizes = [32, 64], strides = [1, 1]} : vector<32x192xf32> to vector<32x64xf32>
    %497 = vector.extract_strided_slice %495 {offsets = [0, 64], sizes = [32, 64], strides = [1, 1]} : vector<32x192xf32> to vector<32x64xf32>
    %498 = vector.extract_strided_slice %495 {offsets = [0, 128], sizes = [32, 64], strides = [1, 1]} : vector<32x192xf32> to vector<32x64xf32>
    %499 = vector.shape_cast %496 : vector<32x64xf32> to vector<2x16x64xf32>
    %500 = vector.shape_cast %497 : vector<32x64xf32> to vector<2x16x64xf32>
    %501 = vector.shape_cast %498 : vector<32x64xf32> to vector<2x16x64xf32>
    %502 = vector.extract_strided_slice %499 {offsets = [0, 0, 0], sizes = [2, 16, 16], strides = [1, 1, 1]} : vector<2x16x64xf32> to vector<2x16x16xf32>
    %503 = vector.extract_strided_slice %500 {offsets = [0, 0, 0], sizes = [2, 16, 16], strides = [1, 1, 1]} : vector<2x16x64xf32> to vector<2x16x16xf32>
    "tpu.trace_start"() <{level = 10 : i32, message = "bqd,bkd->bqk"}> : () -> ()
    %cst_200 = arith.constant dense<0.000000e+00> : vector<2x16x16xf32>
    %504 = tpu.matmul %502, %503, %cst_200 {dimension_numbers = #tpu.dot_dimension_numbers<[2], [2], [1], [1], [0, 0, 0, 1, 1, 1], [0], [0]>} : vector<2x16x16xf32>, vector<2x16x16xf32>, vector<2x16x16xf32> -> vector<2x16x16xf32>
    "tpu.trace_stop"() : () -> ()
    %505 = vector.extract_strided_slice %1 {offsets = [0, 0, 0, 0], sizes = [2, 1, 16, 16], strides = [1, 1, 1, 1]} : vector<2x4x16x16xf32> to vector<2x1x16x16xf32>
    %506 = vector.shape_cast %505 : vector<2x1x16x16xf32> to vector<2x16x16xf32>
    %507 = arith.addf %504, %506 : vector<2x16x16xf32>
    %cst_201 = arith.constant dense<0xFF800000> : vector<2x16xf32>
    %508 = vector.multi_reduction <maximumf>, %507, %cst_201 [2] : vector<2x16x16xf32> to vector<2x16xf32>
    %509 = vector.shape_cast %508 : vector<2x16xf32> to vector<2x16x1xf32>
    %510 = vector.broadcast %509 : vector<2x16x1xf32> to vector<2x16x16xf32>
    %511 = arith.subf %507, %510 : vector<2x16x16xf32>
    %512 = math.exp %511 : vector<2x16x16xf32>
    %cst_202 = arith.constant dense<0.000000e+00> : vector<2x16xf32>
    %513 = vector.multi_reduction <add>, %512, %cst_202 [2] : vector<2x16x16xf32> to vector<2x16xf32>
    %514 = vector.shape_cast %513 : vector<2x16xf32> to vector<2x16x1xf32>
    %515 = vector.broadcast %514 : vector<2x16x1xf32> to vector<2x16x16xf32>
    %516 = arith.divf %512, %515 : vector<2x16x16xf32>
    %517 = vector.extract_strided_slice %501 {offsets = [0, 0, 0], sizes = [2, 16, 16], strides = [1, 1, 1]} : vector<2x16x64xf32> to vector<2x16x16xf32>
    "tpu.trace_start"() <{level = 10 : i32, message = "bqk,bkd->bqd"}> : () -> ()
    %cst_203 = arith.constant dense<0.000000e+00> : vector<2x16x16xf32>
    %518 = tpu.matmul %516, %517, %cst_203 {dimension_numbers = #tpu.dot_dimension_numbers<[2], [1], [1], [2], [0, 0, 0, 1, 1, 2], [0], [0]>} : vector<2x16x16xf32>, vector<2x16x16xf32>, vector<2x16x16xf32> -> vector<2x16x16xf32>
    "tpu.trace_stop"() : () -> ()
    %519 = vector.extract_strided_slice %499 {offsets = [0, 0, 16], sizes = [2, 16, 16], strides = [1, 1, 1]} : vector<2x16x64xf32> to vector<2x16x16xf32>
    %520 = vector.extract_strided_slice %500 {offsets = [0, 0, 16], sizes = [2, 16, 16], strides = [1, 1, 1]} : vector<2x16x64xf32> to vector<2x16x16xf32>
    "tpu.trace_start"() <{level = 10 : i32, message = "bqd,bkd->bqk"}> : () -> ()
    %cst_204 = arith.constant dense<0.000000e+00> : vector<2x16x16xf32>
    %521 = tpu.matmul %519, %520, %cst_204 {dimension_numbers = #tpu.dot_dimension_numbers<[2], [2], [1], [1], [0, 0, 0, 1, 1, 1], [0], [0]>} : vector<2x16x16xf32>, vector<2x16x16xf32>, vector<2x16x16xf32> -> vector<2x16x16xf32>
    "tpu.trace_stop"() : () -> ()
    %522 = vector.extract_strided_slice %1 {offsets = [0, 1, 0, 0], sizes = [2, 1, 16, 16], strides = [1, 1, 1, 1]} : vector<2x4x16x16xf32> to vector<2x1x16x16xf32>
    %523 = vector.shape_cast %522 : vector<2x1x16x16xf32> to vector<2x16x16xf32>
    %524 = arith.addf %521, %523 : vector<2x16x16xf32>
    %cst_205 = arith.constant dense<0xFF800000> : vector<2x16xf32>
    %525 = vector.multi_reduction <maximumf>, %524, %cst_205 [2] : vector<2x16x16xf32> to vector<2x16xf32>
    %526 = vector.shape_cast %525 : vector<2x16xf32> to vector<2x16x1xf32>
    %527 = vector.broadcast %526 : vector<2x16x1xf32> to vector<2x16x16xf32>
    %528 = arith.subf %524, %527 : vector<2x16x16xf32>
    %529 = math.exp %528 : vector<2x16x16xf32>
    %cst_206 = arith.constant dense<0.000000e+00> : vector<2x16xf32>
    %530 = vector.multi_reduction <add>, %529, %cst_206 [2] : vector<2x16x16xf32> to vector<2x16xf32>
    %531 = vector.shape_cast %530 : vector<2x16xf32> to vector<2x16x1xf32>
    %532 = vector.broadcast %531 : vector<2x16x1xf32> to vector<2x16x16xf32>
    %533 = arith.divf %529, %532 : vector<2x16x16xf32>
    %534 = vector.extract_strided_slice %501 {offsets = [0, 0, 16], sizes = [2, 16, 16], strides = [1, 1, 1]} : vector<2x16x64xf32> to vector<2x16x16xf32>
    "tpu.trace_start"() <{level = 10 : i32, message = "bqk,bkd->bqd"}> : () -> ()
    %cst_207 = arith.constant dense<0.000000e+00> : vector<2x16x16xf32>
    %535 = tpu.matmul %533, %534, %cst_207 {dimension_numbers = #tpu.dot_dimension_numbers<[2], [1], [1], [2], [0, 0, 0, 1, 1, 2], [0], [0]>} : vector<2x16x16xf32>, vector<2x16x16xf32>, vector<2x16x16xf32> -> vector<2x16x16xf32>
    "tpu.trace_stop"() : () -> ()
    %536 = vector.extract_strided_slice %499 {offsets = [0, 0, 32], sizes = [2, 16, 16], strides = [1, 1, 1]} : vector<2x16x64xf32> to vector<2x16x16xf32>
    %537 = vector.extract_strided_slice %500 {offsets = [0, 0, 32], sizes = [2, 16, 16], strides = [1, 1, 1]} : vector<2x16x64xf32> to vector<2x16x16xf32>
    "tpu.trace_start"() <{level = 10 : i32, message = "bqd,bkd->bqk"}> : () -> ()
    %cst_208 = arith.constant dense<0.000000e+00> : vector<2x16x16xf32>
    %538 = tpu.matmul %536, %537, %cst_208 {dimension_numbers = #tpu.dot_dimension_numbers<[2], [2], [1], [1], [0, 0, 0, 1, 1, 1], [0], [0]>} : vector<2x16x16xf32>, vector<2x16x16xf32>, vector<2x16x16xf32> -> vector<2x16x16xf32>
    "tpu.trace_stop"() : () -> ()
    %539 = vector.extract_strided_slice %1 {offsets = [0, 2, 0, 0], sizes = [2, 1, 16, 16], strides = [1, 1, 1, 1]} : vector<2x4x16x16xf32> to vector<2x1x16x16xf32>
    %540 = vector.shape_cast %539 : vector<2x1x16x16xf32> to vector<2x16x16xf32>
    %541 = arith.addf %538, %540 : vector<2x16x16xf32>
    %cst_209 = arith.constant dense<0xFF800000> : vector<2x16xf32>
    %542 = vector.multi_reduction <maximumf>, %541, %cst_209 [2] : vector<2x16x16xf32> to vector<2x16xf32>
    %543 = vector.shape_cast %542 : vector<2x16xf32> to vector<2x16x1xf32>
    %544 = vector.broadcast %543 : vector<2x16x1xf32> to vector<2x16x16xf32>
    %545 = arith.subf %541, %544 : vector<2x16x16xf32>
    %546 = math.exp %545 : vector<2x16x16xf32>
    %cst_210 = arith.constant dense<0.000000e+00> : vector<2x16xf32>
    %547 = vector.multi_reduction <add>, %546, %cst_210 [2] : vector<2x16x16xf32> to vector<2x16xf32>
    %548 = vector.shape_cast %547 : vector<2x16xf32> to vector<2x16x1xf32>
    %549 = vector.broadcast %548 : vector<2x16x1xf32> to vector<2x16x16xf32>
    %550 = arith.divf %546, %549 : vector<2x16x16xf32>
    %551 = vector.extract_strided_slice %501 {offsets = [0, 0, 32], sizes = [2, 16, 16], strides = [1, 1, 1]} : vector<2x16x64xf32> to vector<2x16x16xf32>
    "tpu.trace_start"() <{level = 10 : i32, message = "bqk,bkd->bqd"}> : () -> ()
    %cst_211 = arith.constant dense<0.000000e+00> : vector<2x16x16xf32>
    %552 = tpu.matmul %550, %551, %cst_211 {dimension_numbers = #tpu.dot_dimension_numbers<[2], [1], [1], [2], [0, 0, 0, 1, 1, 2], [0], [0]>} : vector<2x16x16xf32>, vector<2x16x16xf32>, vector<2x16x16xf32> -> vector<2x16x16xf32>
    "tpu.trace_stop"() : () -> ()
    %553 = vector.extract_strided_slice %499 {offsets = [0, 0, 48], sizes = [2, 16, 16], strides = [1, 1, 1]} : vector<2x16x64xf32> to vector<2x16x16xf32>
    %554 = vector.extract_strided_slice %500 {offsets = [0, 0, 48], sizes = [2, 16, 16], strides = [1, 1, 1]} : vector<2x16x64xf32> to vector<2x16x16xf32>
    "tpu.trace_start"() <{level = 10 : i32, message = "bqd,bkd->bqk"}> : () -> ()
    %cst_212 = arith.constant dense<0.000000e+00> : vector<2x16x16xf32>
    %555 = tpu.matmul %553, %554, %cst_212 {dimension_numbers = #tpu.dot_dimension_numbers<[2], [2], [1], [1], [0, 0, 0, 1, 1, 1], [0], [0]>} : vector<2x16x16xf32>, vector<2x16x16xf32>, vector<2x16x16xf32> -> vector<2x16x16xf32>
    "tpu.trace_stop"() : () -> ()
    %556 = vector.extract_strided_slice %1 {offsets = [0, 3, 0, 0], sizes = [2, 1, 16, 16], strides = [1, 1, 1, 1]} : vector<2x4x16x16xf32> to vector<2x1x16x16xf32>
    %557 = vector.shape_cast %556 : vector<2x1x16x16xf32> to vector<2x16x16xf32>
    %558 = arith.addf %555, %557 : vector<2x16x16xf32>
    %cst_213 = arith.constant dense<0xFF800000> : vector<2x16xf32>
    %559 = vector.multi_reduction <maximumf>, %558, %cst_213 [2] : vector<2x16x16xf32> to vector<2x16xf32>
    %560 = vector.shape_cast %559 : vector<2x16xf32> to vector<2x16x1xf32>
    %561 = vector.broadcast %560 : vector<2x16x1xf32> to vector<2x16x16xf32>
    %562 = arith.subf %558, %561 : vector<2x16x16xf32>
    %563 = math.exp %562 : vector<2x16x16xf32>
    %cst_214 = arith.constant dense<0.000000e+00> : vector<2x16xf32>
    %564 = vector.multi_reduction <add>, %563, %cst_214 [2] : vector<2x16x16xf32> to vector<2x16xf32>
    %565 = vector.shape_cast %564 : vector<2x16xf32> to vector<2x16x1xf32>
    %566 = vector.broadcast %565 : vector<2x16x1xf32> to vector<2x16x16xf32>
    %567 = arith.divf %563, %566 : vector<2x16x16xf32>
    %568 = vector.extract_strided_slice %501 {offsets = [0, 0, 48], sizes = [2, 16, 16], strides = [1, 1, 1]} : vector<2x16x64xf32> to vector<2x16x16xf32>
    "tpu.trace_start"() <{level = 10 : i32, message = "bqk,bkd->bqd"}> : () -> ()
    %cst_215 = arith.constant dense<0.000000e+00> : vector<2x16x16xf32>
    %569 = tpu.matmul %567, %568, %cst_215 {dimension_numbers = #tpu.dot_dimension_numbers<[2], [1], [1], [2], [0, 0, 0, 1, 1, 2], [0], [0]>} : vector<2x16x16xf32>, vector<2x16x16xf32>, vector<2x16x16xf32> -> vector<2x16x16xf32>
    "tpu.trace_stop"() : () -> ()
    %570 = tpu.concatenate %518, %535, %552, %569 in 2 : vector<2x16x16xf32>, vector<2x16x16xf32>, vector<2x16x16xf32>, vector<2x16x16xf32> -> vector<2x16x64xf32>
    %571 = vector.shape_cast %570 : vector<2x16x64xf32> to vector<32x64xf32>
    %cst_216 = arith.constant dense<0.000000e+00> : vector<32x64xf32>
    %572 = tpu.matmul %571, %494, %cst_216 {dimension_numbers = #tpu.dot_dimension_numbers<[1], [0], [0], [1], [0, 0, 1, 1], [], []>} : vector<32x64xf32>, vector<64x64xf32>, vector<32x64xf32> -> vector<32x64xf32>
    %573 = arith.addf %476, %572 : vector<32x64xf32>
    %c1_217 = arith.constant 1 : index
    %c0_218 = arith.constant 0 : index
    %c0_219 = arith.constant 0 : index
    %574 = vector.load %arg17[%c1_217, %c0_218, %c0_219] : memref<2x1x64xf32, #tpu.memory_space<vmem>>, vector<1x1x64xf32>
    %575 = vector.shape_cast %574 : vector<1x1x64xf32> to vector<1x64xf32>
    %576 = arith.mulf %573, %573 : vector<32x64xf32>
    %cst_220 = arith.constant dense<0.000000e+00> : vector<32xf32>
    %577 = vector.multi_reduction <add>, %576, %cst_220 [1] : vector<32x64xf32> to vector<32xf32>
    %578 = vector.shape_cast %577 : vector<32xf32> to vector<32x1xf32>
    %cst_221 = arith.constant 6.400000e+01 : f32
    %579 = vector.broadcast %cst_221 : f32 to vector<32x1xf32>
    %580 = arith.divf %578, %579 : vector<32x1xf32>
    %cst_222 = arith.constant 9.99999997E-7 : f32
    %581 = vector.broadcast %cst_222 : f32 to vector<32x1xf32>
    %582 = arith.addf %580, %581 : vector<32x1xf32>
    %583 = math.rsqrt %582 : vector<32x1xf32>
    %584 = vector.broadcast %583 : vector<32x1xf32> to vector<32x64xf32>
    %585 = arith.mulf %573, %584 : vector<32x64xf32>
    %586 = vector.broadcast %575 : vector<1x64xf32> to vector<32x64xf32>
    %587 = arith.mulf %585, %586 : vector<32x64xf32>
    %c1_223 = arith.constant 1 : index
    %c0_224 = arith.constant 0 : index
    %c0_225 = arith.constant 0 : index
    %588 = vector.load %arg18[%c1_223, %c0_224, %c0_225] : memref<2x64x64xf32, #tpu.memory_space<vmem>>, vector<1x64x64xf32>
    %589 = vector.shape_cast %588 : vector<1x64x64xf32> to vector<64x64xf32>
    %c1_226 = arith.constant 1 : index
    %c0_227 = arith.constant 0 : index
    %c0_228 = arith.constant 0 : index
    %590 = vector.load %arg19[%c1_226, %c0_227, %c0_228] : memref<2x64x128xf32, #tpu.memory_space<vmem>>, vector<1x64x128xf32>
    %591 = vector.shape_cast %590 : vector<1x64x128xf32> to vector<64x128xf32>
    %c1_229 = arith.constant 1 : index
    %c0_230 = arith.constant 0 : index
    %c0_231 = arith.constant 0 : index
    %592 = vector.load %arg20[%c1_229, %c0_230, %c0_231] : memref<2x64x64xf32, #tpu.memory_space<vmem>>, vector<1x64x64xf32>
    %593 = vector.shape_cast %592 : vector<1x64x64xf32> to vector<64x64xf32>
    %cst_232 = arith.constant dense<0.000000e+00> : vector<32x64xf32>
    %594 = tpu.matmul %587, %589, %cst_232 {dimension_numbers = #tpu.dot_dimension_numbers<[1], [0], [0], [1], [0, 0, 1, 1], [], []>} : vector<32x64xf32>, vector<64x64xf32>, vector<32x64xf32> -> vector<32x64xf32>
    %cst_233 = arith.constant dense<0.000000e+00> : vector<32x128xf32>
    %595 = tpu.matmul %256, %591, %cst_233 {dimension_numbers = #tpu.dot_dimension_numbers<[1], [0], [0], [1], [0, 0, 1, 1], [], []>} : vector<32x64xf32>, vector<64x128xf32>, vector<32x128xf32> -> vector<32x128xf32>
    %596 = vector.extract_strided_slice %595 {offsets = [0, 0], sizes = [32, 64], strides = [1, 1]} : vector<32x128xf32> to vector<32x64xf32>
    %597 = vector.extract_strided_slice %595 {offsets = [0, 64], sizes = [32, 64], strides = [1, 1]} : vector<32x128xf32> to vector<32x64xf32>
    %598 = vector.shape_cast %594 : vector<32x64xf32> to vector<2x16x64xf32>
    %599 = vector.shape_cast %596 : vector<32x64xf32> to vector<2x16x64xf32>
    %600 = vector.shape_cast %597 : vector<32x64xf32> to vector<2x16x64xf32>
    %601 = vector.extract_strided_slice %598 {offsets = [0, 0, 0], sizes = [2, 16, 16], strides = [1, 1, 1]} : vector<2x16x64xf32> to vector<2x16x16xf32>
    %602 = vector.extract_strided_slice %599 {offsets = [0, 0, 0], sizes = [2, 16, 16], strides = [1, 1, 1]} : vector<2x16x64xf32> to vector<2x16x16xf32>
    "tpu.trace_start"() <{level = 10 : i32, message = "bqd,bkd->bqk"}> : () -> ()
    %cst_234 = arith.constant dense<0.000000e+00> : vector<2x16x16xf32>
    %603 = tpu.matmul %601, %602, %cst_234 {dimension_numbers = #tpu.dot_dimension_numbers<[2], [2], [1], [1], [0, 0, 0, 1, 1, 1], [0], [0]>} : vector<2x16x16xf32>, vector<2x16x16xf32>, vector<2x16x16xf32> -> vector<2x16x16xf32>
    "tpu.trace_stop"() : () -> ()
    %604 = vector.extract_strided_slice %2 {offsets = [0, 0, 0, 0], sizes = [2, 1, 16, 16], strides = [1, 1, 1, 1]} : vector<2x4x16x16xf32> to vector<2x1x16x16xf32>
    %605 = vector.shape_cast %604 : vector<2x1x16x16xf32> to vector<2x16x16xf32>
    %606 = arith.addf %603, %605 : vector<2x16x16xf32>
    %cst_235 = arith.constant dense<0xFF800000> : vector<2x16xf32>
    %607 = vector.multi_reduction <maximumf>, %606, %cst_235 [2] : vector<2x16x16xf32> to vector<2x16xf32>
    %608 = vector.shape_cast %607 : vector<2x16xf32> to vector<2x16x1xf32>
    %609 = vector.broadcast %608 : vector<2x16x1xf32> to vector<2x16x16xf32>
    %610 = arith.subf %606, %609 : vector<2x16x16xf32>
    %611 = math.exp %610 : vector<2x16x16xf32>
    %cst_236 = arith.constant dense<0.000000e+00> : vector<2x16xf32>
    %612 = vector.multi_reduction <add>, %611, %cst_236 [2] : vector<2x16x16xf32> to vector<2x16xf32>
    %613 = vector.shape_cast %612 : vector<2x16xf32> to vector<2x16x1xf32>
    %614 = vector.broadcast %613 : vector<2x16x1xf32> to vector<2x16x16xf32>
    %615 = arith.divf %611, %614 : vector<2x16x16xf32>
    %616 = vector.extract_strided_slice %600 {offsets = [0, 0, 0], sizes = [2, 16, 16], strides = [1, 1, 1]} : vector<2x16x64xf32> to vector<2x16x16xf32>
    "tpu.trace_start"() <{level = 10 : i32, message = "bqk,bkd->bqd"}> : () -> ()
    %cst_237 = arith.constant dense<0.000000e+00> : vector<2x16x16xf32>
    %617 = tpu.matmul %615, %616, %cst_237 {dimension_numbers = #tpu.dot_dimension_numbers<[2], [1], [1], [2], [0, 0, 0, 1, 1, 2], [0], [0]>} : vector<2x16x16xf32>, vector<2x16x16xf32>, vector<2x16x16xf32> -> vector<2x16x16xf32>
    "tpu.trace_stop"() : () -> ()
    %618 = vector.extract_strided_slice %598 {offsets = [0, 0, 16], sizes = [2, 16, 16], strides = [1, 1, 1]} : vector<2x16x64xf32> to vector<2x16x16xf32>
    %619 = vector.extract_strided_slice %599 {offsets = [0, 0, 16], sizes = [2, 16, 16], strides = [1, 1, 1]} : vector<2x16x64xf32> to vector<2x16x16xf32>
    "tpu.trace_start"() <{level = 10 : i32, message = "bqd,bkd->bqk"}> : () -> ()
    %cst_238 = arith.constant dense<0.000000e+00> : vector<2x16x16xf32>
    %620 = tpu.matmul %618, %619, %cst_238 {dimension_numbers = #tpu.dot_dimension_numbers<[2], [2], [1], [1], [0, 0, 0, 1, 1, 1], [0], [0]>} : vector<2x16x16xf32>, vector<2x16x16xf32>, vector<2x16x16xf32> -> vector<2x16x16xf32>
    "tpu.trace_stop"() : () -> ()
    %621 = vector.extract_strided_slice %2 {offsets = [0, 1, 0, 0], sizes = [2, 1, 16, 16], strides = [1, 1, 1, 1]} : vector<2x4x16x16xf32> to vector<2x1x16x16xf32>
    %622 = vector.shape_cast %621 : vector<2x1x16x16xf32> to vector<2x16x16xf32>
    %623 = arith.addf %620, %622 : vector<2x16x16xf32>
    %cst_239 = arith.constant dense<0xFF800000> : vector<2x16xf32>
    %624 = vector.multi_reduction <maximumf>, %623, %cst_239 [2] : vector<2x16x16xf32> to vector<2x16xf32>
    %625 = vector.shape_cast %624 : vector<2x16xf32> to vector<2x16x1xf32>
    %626 = vector.broadcast %625 : vector<2x16x1xf32> to vector<2x16x16xf32>
    %627 = arith.subf %623, %626 : vector<2x16x16xf32>
    %628 = math.exp %627 : vector<2x16x16xf32>
    %cst_240 = arith.constant dense<0.000000e+00> : vector<2x16xf32>
    %629 = vector.multi_reduction <add>, %628, %cst_240 [2] : vector<2x16x16xf32> to vector<2x16xf32>
    %630 = vector.shape_cast %629 : vector<2x16xf32> to vector<2x16x1xf32>
    %631 = vector.broadcast %630 : vector<2x16x1xf32> to vector<2x16x16xf32>
    %632 = arith.divf %628, %631 : vector<2x16x16xf32>
    %633 = vector.extract_strided_slice %600 {offsets = [0, 0, 16], sizes = [2, 16, 16], strides = [1, 1, 1]} : vector<2x16x64xf32> to vector<2x16x16xf32>
    "tpu.trace_start"() <{level = 10 : i32, message = "bqk,bkd->bqd"}> : () -> ()
    %cst_241 = arith.constant dense<0.000000e+00> : vector<2x16x16xf32>
    %634 = tpu.matmul %632, %633, %cst_241 {dimension_numbers = #tpu.dot_dimension_numbers<[2], [1], [1], [2], [0, 0, 0, 1, 1, 2], [0], [0]>} : vector<2x16x16xf32>, vector<2x16x16xf32>, vector<2x16x16xf32> -> vector<2x16x16xf32>
    "tpu.trace_stop"() : () -> ()
    %635 = vector.extract_strided_slice %598 {offsets = [0, 0, 32], sizes = [2, 16, 16], strides = [1, 1, 1]} : vector<2x16x64xf32> to vector<2x16x16xf32>
    %636 = vector.extract_strided_slice %599 {offsets = [0, 0, 32], sizes = [2, 16, 16], strides = [1, 1, 1]} : vector<2x16x64xf32> to vector<2x16x16xf32>
    "tpu.trace_start"() <{level = 10 : i32, message = "bqd,bkd->bqk"}> : () -> ()
    %cst_242 = arith.constant dense<0.000000e+00> : vector<2x16x16xf32>
    %637 = tpu.matmul %635, %636, %cst_242 {dimension_numbers = #tpu.dot_dimension_numbers<[2], [2], [1], [1], [0, 0, 0, 1, 1, 1], [0], [0]>} : vector<2x16x16xf32>, vector<2x16x16xf32>, vector<2x16x16xf32> -> vector<2x16x16xf32>
    "tpu.trace_stop"() : () -> ()
    %638 = vector.extract_strided_slice %2 {offsets = [0, 2, 0, 0], sizes = [2, 1, 16, 16], strides = [1, 1, 1, 1]} : vector<2x4x16x16xf32> to vector<2x1x16x16xf32>
    %639 = vector.shape_cast %638 : vector<2x1x16x16xf32> to vector<2x16x16xf32>
    %640 = arith.addf %637, %639 : vector<2x16x16xf32>
    %cst_243 = arith.constant dense<0xFF800000> : vector<2x16xf32>
    %641 = vector.multi_reduction <maximumf>, %640, %cst_243 [2] : vector<2x16x16xf32> to vector<2x16xf32>
    %642 = vector.shape_cast %641 : vector<2x16xf32> to vector<2x16x1xf32>
    %643 = vector.broadcast %642 : vector<2x16x1xf32> to vector<2x16x16xf32>
    %644 = arith.subf %640, %643 : vector<2x16x16xf32>
    %645 = math.exp %644 : vector<2x16x16xf32>
    %cst_244 = arith.constant dense<0.000000e+00> : vector<2x16xf32>
    %646 = vector.multi_reduction <add>, %645, %cst_244 [2] : vector<2x16x16xf32> to vector<2x16xf32>
    %647 = vector.shape_cast %646 : vector<2x16xf32> to vector<2x16x1xf32>
    %648 = vector.broadcast %647 : vector<2x16x1xf32> to vector<2x16x16xf32>
    %649 = arith.divf %645, %648 : vector<2x16x16xf32>
    %650 = vector.extract_strided_slice %600 {offsets = [0, 0, 32], sizes = [2, 16, 16], strides = [1, 1, 1]} : vector<2x16x64xf32> to vector<2x16x16xf32>
    "tpu.trace_start"() <{level = 10 : i32, message = "bqk,bkd->bqd"}> : () -> ()
    %cst_245 = arith.constant dense<0.000000e+00> : vector<2x16x16xf32>
    %651 = tpu.matmul %649, %650, %cst_245 {dimension_numbers = #tpu.dot_dimension_numbers<[2], [1], [1], [2], [0, 0, 0, 1, 1, 2], [0], [0]>} : vector<2x16x16xf32>, vector<2x16x16xf32>, vector<2x16x16xf32> -> vector<2x16x16xf32>
    "tpu.trace_stop"() : () -> ()
    %652 = vector.extract_strided_slice %598 {offsets = [0, 0, 48], sizes = [2, 16, 16], strides = [1, 1, 1]} : vector<2x16x64xf32> to vector<2x16x16xf32>
    %653 = vector.extract_strided_slice %599 {offsets = [0, 0, 48], sizes = [2, 16, 16], strides = [1, 1, 1]} : vector<2x16x64xf32> to vector<2x16x16xf32>
    "tpu.trace_start"() <{level = 10 : i32, message = "bqd,bkd->bqk"}> : () -> ()
    %cst_246 = arith.constant dense<0.000000e+00> : vector<2x16x16xf32>
    %654 = tpu.matmul %652, %653, %cst_246 {dimension_numbers = #tpu.dot_dimension_numbers<[2], [2], [1], [1], [0, 0, 0, 1, 1, 1], [0], [0]>} : vector<2x16x16xf32>, vector<2x16x16xf32>, vector<2x16x16xf32> -> vector<2x16x16xf32>
    "tpu.trace_stop"() : () -> ()
    %655 = vector.extract_strided_slice %2 {offsets = [0, 3, 0, 0], sizes = [2, 1, 16, 16], strides = [1, 1, 1, 1]} : vector<2x4x16x16xf32> to vector<2x1x16x16xf32>
    %656 = vector.shape_cast %655 : vector<2x1x16x16xf32> to vector<2x16x16xf32>
    %657 = arith.addf %654, %656 : vector<2x16x16xf32>
    %cst_247 = arith.constant dense<0xFF800000> : vector<2x16xf32>
    %658 = vector.multi_reduction <maximumf>, %657, %cst_247 [2] : vector<2x16x16xf32> to vector<2x16xf32>
    %659 = vector.shape_cast %658 : vector<2x16xf32> to vector<2x16x1xf32>
    %660 = vector.broadcast %659 : vector<2x16x1xf32> to vector<2x16x16xf32>
    %661 = arith.subf %657, %660 : vector<2x16x16xf32>
    %662 = math.exp %661 : vector<2x16x16xf32>
    %cst_248 = arith.constant dense<0.000000e+00> : vector<2x16xf32>
    %663 = vector.multi_reduction <add>, %662, %cst_248 [2] : vector<2x16x16xf32> to vector<2x16xf32>
    %664 = vector.shape_cast %663 : vector<2x16xf32> to vector<2x16x1xf32>
    %665 = vector.broadcast %664 : vector<2x16x1xf32> to vector<2x16x16xf32>
    %666 = arith.divf %662, %665 : vector<2x16x16xf32>
    %667 = vector.extract_strided_slice %600 {offsets = [0, 0, 48], sizes = [2, 16, 16], strides = [1, 1, 1]} : vector<2x16x64xf32> to vector<2x16x16xf32>
    "tpu.trace_start"() <{level = 10 : i32, message = "bqk,bkd->bqd"}> : () -> ()
    %cst_249 = arith.constant dense<0.000000e+00> : vector<2x16x16xf32>
    %668 = tpu.matmul %666, %667, %cst_249 {dimension_numbers = #tpu.dot_dimension_numbers<[2], [1], [1], [2], [0, 0, 0, 1, 1, 2], [0], [0]>} : vector<2x16x16xf32>, vector<2x16x16xf32>, vector<2x16x16xf32> -> vector<2x16x16xf32>
    "tpu.trace_stop"() : () -> ()
    %669 = tpu.concatenate %617, %634, %651, %668 in 2 : vector<2x16x16xf32>, vector<2x16x16xf32>, vector<2x16x16xf32>, vector<2x16x16xf32> -> vector<2x16x64xf32>
    %670 = vector.shape_cast %669 : vector<2x16x64xf32> to vector<32x64xf32>
    %cst_250 = arith.constant dense<0.000000e+00> : vector<32x64xf32>
    %671 = tpu.matmul %670, %593, %cst_250 {dimension_numbers = #tpu.dot_dimension_numbers<[1], [0], [0], [1], [0, 0, 1, 1], [], []>} : vector<32x64xf32>, vector<64x64xf32>, vector<32x64xf32> -> vector<32x64xf32>
    %672 = arith.addf %573, %671 : vector<32x64xf32>
    %c1_251 = arith.constant 1 : index
    %c0_252 = arith.constant 0 : index
    %c0_253 = arith.constant 0 : index
    %673 = vector.load %arg21[%c1_251, %c0_252, %c0_253] : memref<2x1x64xf32, #tpu.memory_space<vmem>>, vector<1x1x64xf32>
    %674 = vector.shape_cast %673 : vector<1x1x64xf32> to vector<1x64xf32>
    %675 = arith.mulf %672, %672 : vector<32x64xf32>
    %cst_254 = arith.constant dense<0.000000e+00> : vector<32xf32>
    %676 = vector.multi_reduction <add>, %675, %cst_254 [1] : vector<32x64xf32> to vector<32xf32>
    %677 = vector.shape_cast %676 : vector<32xf32> to vector<32x1xf32>
    %cst_255 = arith.constant 6.400000e+01 : f32
    %678 = vector.broadcast %cst_255 : f32 to vector<32x1xf32>
    %679 = arith.divf %677, %678 : vector<32x1xf32>
    %cst_256 = arith.constant 9.99999997E-7 : f32
    %680 = vector.broadcast %cst_256 : f32 to vector<32x1xf32>
    %681 = arith.addf %679, %680 : vector<32x1xf32>
    %682 = math.rsqrt %681 : vector<32x1xf32>
    %683 = vector.broadcast %682 : vector<32x1xf32> to vector<32x64xf32>
    %684 = arith.mulf %672, %683 : vector<32x64xf32>
    %685 = vector.broadcast %674 : vector<1x64xf32> to vector<32x64xf32>
    %686 = arith.mulf %684, %685 : vector<32x64xf32>
    %c1_257 = arith.constant 1 : index
    %c0_258 = arith.constant 0 : index
    %c0_259 = arith.constant 0 : index
    %687 = vector.load %arg22[%c1_257, %c0_258, %c0_259] : memref<2x64x128xf32, #tpu.memory_space<vmem>>, vector<1x64x128xf32>
    %688 = vector.shape_cast %687 : vector<1x64x128xf32> to vector<64x128xf32>
    %c1_260 = arith.constant 1 : index
    %c0_261 = arith.constant 0 : index
    %c0_262 = arith.constant 0 : index
    %689 = vector.load %arg23[%c1_260, %c0_261, %c0_262] : memref<2x128x64xf32, #tpu.memory_space<vmem>>, vector<1x128x64xf32>
    %690 = vector.shape_cast %689 : vector<1x128x64xf32> to vector<128x64xf32>
    %cst_263 = arith.constant dense<0.000000e+00> : vector<32x128xf32>
    %691 = tpu.matmul %686, %688, %cst_263 {dimension_numbers = #tpu.dot_dimension_numbers<[1], [0], [0], [1], [0, 0, 1, 1], [], []>} : vector<32x64xf32>, vector<64x128xf32>, vector<32x128xf32> -> vector<32x128xf32>
    %cst_264 = arith.constant 0.000000e+00 : f32
    %692 = vector.broadcast %cst_264 : f32 to vector<32x128xf32>
    %693 = arith.maximumf %691, %692 : vector<32x128xf32>
    %cst_265 = arith.constant dense<0.000000e+00> : vector<32x64xf32>
    %694 = tpu.matmul %693, %690, %cst_265 {dimension_numbers = #tpu.dot_dimension_numbers<[1], [0], [0], [1], [0, 0, 1, 1], [], []>} : vector<32x128xf32>, vector<128x64xf32>, vector<32x64xf32> -> vector<32x64xf32>
    %695 = arith.addf %672, %694 : vector<32x64xf32>
    %c0_266 = arith.constant 0 : index
    %c0_267 = arith.constant 0 : index
    %696 = vector.load %arg24[%c0_266, %c0_267] : memref<1x64xf32, #tpu.memory_space<vmem>>, vector<1x64xf32>
    %697 = arith.mulf %695, %695 : vector<32x64xf32>
    %cst_268 = arith.constant dense<0.000000e+00> : vector<32xf32>
    %698 = vector.multi_reduction <add>, %697, %cst_268 [1] : vector<32x64xf32> to vector<32xf32>
    %699 = vector.shape_cast %698 : vector<32xf32> to vector<32x1xf32>
    %cst_269 = arith.constant 6.400000e+01 : f32
    %700 = vector.broadcast %cst_269 : f32 to vector<32x1xf32>
    %701 = arith.divf %699, %700 : vector<32x1xf32>
    %cst_270 = arith.constant 9.99999997E-7 : f32
    %702 = vector.broadcast %cst_270 : f32 to vector<32x1xf32>
    %703 = arith.addf %701, %702 : vector<32x1xf32>
    %704 = math.rsqrt %703 : vector<32x1xf32>
    %705 = vector.broadcast %704 : vector<32x1xf32> to vector<32x64xf32>
    %706 = arith.mulf %695, %705 : vector<32x64xf32>
    %707 = vector.broadcast %696 : vector<1x64xf32> to vector<32x64xf32>
    %708 = arith.mulf %706, %707 : vector<32x64xf32>
    %c0_271 = arith.constant 0 : index
    %c0_272 = arith.constant 0 : index
    %709 = vector.load %arg6[%c0_271, %c0_272] : memref<2x32xf32, #tpu.memory_space<vmem>>, vector<2x32xf32>
    %cst_273 = arith.constant dense<0.000000e+00> : vector<2x64xf32>
    %710 = tpu.matmul %709, %708, %cst_273 {dimension_numbers = #tpu.dot_dimension_numbers<[1], [0], [0], [1], [0, 0, 1, 1], [], []>} : vector<2x32xf32>, vector<32x64xf32>, vector<2x64xf32> -> vector<2x64xf32>
    %c0_274 = arith.constant 0 : index
    %c0_275 = arith.constant 0 : index
    %711 = vector.load %arg25[%c0_274, %c0_275] : memref<64x128xf32, #tpu.memory_space<vmem>>, vector<64x128xf32>
    %cst_276 = arith.constant dense<0.000000e+00> : vector<2x128xf32>
    %712 = tpu.matmul %710, %711, %cst_276 {dimension_numbers = #tpu.dot_dimension_numbers<[1], [0], [0], [1], [0, 0, 1, 1], [], []>} : vector<2x64xf32>, vector<64x128xf32>, vector<2x128xf32> -> vector<2x128xf32>
    %c0_277 = arith.constant 0 : index
    %c0_278 = arith.constant 0 : index
    %713 = vector.load %arg26[%c0_277, %c0_278] : memref<1x128xf32, #tpu.memory_space<vmem>>, vector<1x128xf32>
    %714 = vector.broadcast %713 : vector<1x128xf32> to vector<2x128xf32>
    %715 = arith.addf %712, %714 : vector<2x128xf32>
    %cst_279 = arith.constant 0.000000e+00 : f32
    %716 = vector.broadcast %cst_279 : f32 to vector<2x128xf32>
    %717 = arith.maximumf %715, %716 : vector<2x128xf32>
    %c0_280 = arith.constant 0 : index
    %c0_281 = arith.constant 0 : index
    %718 = vector.load %arg27[%c0_280, %c0_281] : memref<128x32xf32, #tpu.memory_space<vmem>>, vector<128x32xf32>
    %cst_282 = arith.constant dense<0.000000e+00> : vector<2x32xf32>
    %719 = tpu.matmul %717, %718, %cst_282 {dimension_numbers = #tpu.dot_dimension_numbers<[1], [0], [0], [1], [0, 0, 1, 1], [], []>} : vector<2x128xf32>, vector<128x32xf32>, vector<2x32xf32> -> vector<2x32xf32>
    %c0_283 = arith.constant 0 : index
    %c0_284 = arith.constant 0 : index
    %720 = vector.load %arg28[%c0_283, %c0_284] : memref<1x32xf32, #tpu.memory_space<vmem>>, vector<1x32xf32>
    %721 = vector.broadcast %720 : vector<1x32xf32> to vector<2x32xf32>
    %722 = arith.addf %719, %721 : vector<2x32xf32>
    %cst_285 = arith.constant 0.000000e+00 : f32
    %723 = vector.broadcast %cst_285 : f32 to vector<2x32xf32>
    %724 = arith.maximumf %722, %723 : vector<2x32xf32>
    %c0_286 = arith.constant 0 : index
    %c0_287 = arith.constant 0 : index
    %725 = vector.load %arg29[%c0_286, %c0_287] : memref<32x1xf32, #tpu.memory_space<vmem>>, vector<32x1xf32>
    %cst_288 = arith.constant dense<0.000000e+00> : vector<2x1xf32>
    %726 = tpu.matmul %724, %725, %cst_288 {dimension_numbers = #tpu.dot_dimension_numbers<[1], [0], [0], [1], [0, 0, 1, 1], [], []>} : vector<2x32xf32>, vector<32x1xf32>, vector<2x1xf32> -> vector<2x1xf32>
    %c0_289 = arith.constant 0 : index
    %c0_290 = arith.constant 0 : index
    %727 = vector.load %arg30[%c0_289, %c0_290] : memref<1x1xf32, #tpu.memory_space<vmem>>, vector<1x1xf32>
    %728 = vector.broadcast %727 : vector<1x1xf32> to vector<2x1xf32>
    %729 = arith.addf %726, %728 : vector<2x1xf32>
    %c0_291 = arith.constant 0 : index
    %c0_292 = arith.constant 0 : index
    %730 = vector.load %arg31[%c0_291, %c0_292] : memref<2x1xf32, #tpu.memory_space<vmem>>, vector<2x1xf32>
    tpu.vector_store %arg31[%c0_291, %c0_292], %729 {strides = array<i32>} : memref<2x1xf32, #tpu.memory_space<vmem>>, vector<2x1xf32>,
    return
  }
  func.func @transform_0(%arg0: i32) -> (i32, i32) {
    %c0_i32 = arith.constant 0 : i32
    %c0_i32_0 = arith.constant 0 : i32
    %c0_i32_1 = arith.constant 0 : i32
    return %c0_i32, %c0_i32_0 : i32, i32
  }
  func.func @transform_1(%arg0: i32) -> (i32, i32) {
    %c0_i32 = arith.constant 0 : i32
    %c0_i32_0 = arith.constant 0 : i32
    %c0_i32_1 = arith.constant 0 : i32
    return %c0_i32, %c0_i32_0 : i32, i32
  }
  func.func @transform_2(%arg0: i32) -> (i32, i32, i32, i32) {
    %c0_i32 = arith.constant 0 : i32
    %c0_i32_0 = arith.constant 0 : i32
    %c0_i32_1 = arith.constant 0 : i32
    %c0_i32_2 = arith.constant 0 : i32
    %c0_i32_3 = arith.constant 0 : i32
    return %c0_i32, %c0_i32_0, %c0_i32_1, %c0_i32_2 : i32, i32, i32, i32
  }
  func.func @transform_3(%arg0: i32) -> (i32, i32, i32, i32) {
    %c0_i32 = arith.constant 0 : i32
    %c0_i32_0 = arith.constant 0 : i32
    %c0_i32_1 = arith.constant 0 : i32
    %c0_i32_2 = arith.constant 0 : i32
    %c0_i32_3 = arith.constant 0 : i32
    return %c0_i32, %c0_i32_0, %c0_i32_1, %c0_i32_2 : i32, i32, i32, i32
  }
  func.func @transform_4(%arg0: i32) -> (i32, i32, i32, i32) {
    %c0_i32 = arith.constant 0 : i32
    %c0_i32_0 = arith.constant 0 : i32
    %c0_i32_1 = arith.constant 0 : i32
    %c0_i32_2 = arith.constant 0 : i32
    %c0_i32_3 = arith.constant 0 : i32
    return %c0_i32, %c0_i32_0, %c0_i32_1, %c0_i32_2 : i32, i32, i32, i32
  }
  func.func @transform_5(%arg0: i32) -> (i32, i32) {
    %c0_i32 = arith.constant 0 : i32
    %c0_i32_0 = arith.constant 0 : i32
    %c0_i32_1 = arith.constant 0 : i32
    return %c0_i32, %c0_i32_0 : i32, i32
  }
  func.func @transform_6(%arg0: i32) -> (i32, i32, i32) {
    %c0_i32 = arith.constant 0 : i32
    %c0_i32_0 = arith.constant 0 : i32
    %c0_i32_1 = arith.constant 0 : i32
    %c0_i32_2 = arith.constant 0 : i32
    return %c0_i32, %c0_i32_0, %c0_i32_1 : i32, i32, i32
  }
  func.func @transform_7(%arg0: i32) -> (i32, i32, i32) {
    %c0_i32 = arith.constant 0 : i32
    %c0_i32_0 = arith.constant 0 : i32
    %c0_i32_1 = arith.constant 0 : i32
    %c0_i32_2 = arith.constant 0 : i32
    return %c0_i32, %c0_i32_0, %c0_i32_1 : i32, i32, i32
  }
  func.func @transform_8(%arg0: i32) -> (i32, i32, i32) {
    %c0_i32 = arith.constant 0 : i32
    %c0_i32_0 = arith.constant 0 : i32
    %c0_i32_1 = arith.constant 0 : i32
    %c0_i32_2 = arith.constant 0 : i32
    return %c0_i32, %c0_i32_0, %c0_i32_1 : i32, i32, i32
  }
  func.func @transform_9(%arg0: i32) -> (i32, i32, i32) {
    %c0_i32 = arith.constant 0 : i32
    %c0_i32_0 = arith.constant 0 : i32
    %c0_i32_1 = arith.constant 0 : i32
    %c0_i32_2 = arith.constant 0 : i32
    return %c0_i32, %c0_i32_0, %c0_i32_1 : i32, i32, i32
  }
  func.func @transform_10(%arg0: i32) -> (i32, i32, i32) {
    %c0_i32 = arith.constant 0 : i32
    %c0_i32_0 = arith.constant 0 : i32
    %c0_i32_1 = arith.constant 0 : i32
    %c0_i32_2 = arith.constant 0 : i32
    return %c0_i32, %c0_i32_0, %c0_i32_1 : i32, i32, i32
  }
  func.func @transform_11(%arg0: i32) -> (i32, i32, i32) {
    %c0_i32 = arith.constant 0 : i32
    %c0_i32_0 = arith.constant 0 : i32
    %c0_i32_1 = arith.constant 0 : i32
    %c0_i32_2 = arith.constant 0 : i32
    return %c0_i32, %c0_i32_0, %c0_i32_1 : i32, i32, i32
  }
  func.func @transform_12(%arg0: i32) -> (i32, i32) {
    %c0_i32 = arith.constant 0 : i32
    %c0_i32_0 = arith.constant 0 : i32
    %c0_i32_1 = arith.constant 0 : i32
    return %c0_i32, %c0_i32_0 : i32, i32
  }
  func.func @transform_13(%arg0: i32) -> (i32, i32, i32) {
    %c0_i32 = arith.constant 0 : i32
    %c0_i32_0 = arith.constant 0 : i32
    %c0_i32_1 = arith.constant 0 : i32
    %c0_i32_2 = arith.constant 0 : i32
    return %c0_i32, %c0_i32_0, %c0_i32_1 : i32, i32, i32
  }
  func.func @transform_14(%arg0: i32) -> (i32, i32, i32) {
    %c0_i32 = arith.constant 0 : i32
    %c0_i32_0 = arith.constant 0 : i32
    %c0_i32_1 = arith.constant 0 : i32
    %c0_i32_2 = arith.constant 0 : i32
    return %c0_i32, %c0_i32_0, %c0_i32_1 : i32, i32, i32
  }
  func.func @transform_15(%arg0: i32) -> (i32, i32, i32) {
    %c0_i32 = arith.constant 0 : i32
    %c0_i32_0 = arith.constant 0 : i32
    %c0_i32_1 = arith.constant 0 : i32
    %c0_i32_2 = arith.constant 0 : i32
    return %c0_i32, %c0_i32_0, %c0_i32_1 : i32, i32, i32
  }
  func.func @transform_16(%arg0: i32) -> (i32, i32, i32) {
    %c0_i32 = arith.constant 0 : i32
    %c0_i32_0 = arith.constant 0 : i32
    %c0_i32_1 = arith.constant 0 : i32
    %c0_i32_2 = arith.constant 0 : i32
    return %c0_i32, %c0_i32_0, %c0_i32_1 : i32, i32, i32
  }
  func.func @transform_17(%arg0: i32) -> (i32, i32, i32) {
    %c0_i32 = arith.constant 0 : i32
    %c0_i32_0 = arith.constant 0 : i32
    %c0_i32_1 = arith.constant 0 : i32
    %c0_i32_2 = arith.constant 0 : i32
    return %c0_i32, %c0_i32_0, %c0_i32_1 : i32, i32, i32
  }
  func.func @transform_18(%arg0: i32) -> (i32, i32, i32) {
    %c0_i32 = arith.constant 0 : i32
    %c0_i32_0 = arith.constant 0 : i32
    %c0_i32_1 = arith.constant 0 : i32
    %c0_i32_2 = arith.constant 0 : i32
    return %c0_i32, %c0_i32_0, %c0_i32_1 : i32, i32, i32
  }
  func.func @transform_19(%arg0: i32) -> (i32, i32, i32) {
    %c0_i32 = arith.constant 0 : i32
    %c0_i32_0 = arith.constant 0 : i32
    %c0_i32_1 = arith.constant 0 : i32
    %c0_i32_2 = arith.constant 0 : i32
    return %c0_i32, %c0_i32_0, %c0_i32_1 : i32, i32, i32
  }
  func.func @transform_20(%arg0: i32) -> (i32, i32, i32) {
    %c0_i32 = arith.constant 0 : i32
    %c0_i32_0 = arith.constant 0 : i32
    %c0_i32_1 = arith.constant 0 : i32
    %c0_i32_2 = arith.constant 0 : i32
    return %c0_i32, %c0_i32_0, %c0_i32_1 : i32, i32, i32
  }
  func.func @transform_21(%arg0: i32) -> (i32, i32, i32) {
    %c0_i32 = arith.constant 0 : i32
    %c0_i32_0 = arith.constant 0 : i32
    %c0_i32_1 = arith.constant 0 : i32
    %c0_i32_2 = arith.constant 0 : i32
    return %c0_i32, %c0_i32_0, %c0_i32_1 : i32, i32, i32
  }
  func.func @transform_22(%arg0: i32) -> (i32, i32, i32) {
    %c0_i32 = arith.constant 0 : i32
    %c0_i32_0 = arith.constant 0 : i32
    %c0_i32_1 = arith.constant 0 : i32
    %c0_i32_2 = arith.constant 0 : i32
    return %c0_i32, %c0_i32_0, %c0_i32_1 : i32, i32, i32
  }
  func.func @transform_23(%arg0: i32) -> (i32, i32) {
    %c0_i32 = arith.constant 0 : i32
    %c0_i32_0 = arith.constant 0 : i32
    %c0_i32_1 = arith.constant 0 : i32
    return %c0_i32, %c0_i32_0 : i32, i32
  }
  func.func @transform_24(%arg0: i32) -> (i32, i32) {
    %c0_i32 = arith.constant 0 : i32
    %c0_i32_0 = arith.constant 0 : i32
    %c0_i32_1 = arith.constant 0 : i32
    return %c0_i32, %c0_i32_0 : i32, i32
  }
  func.func @transform_25(%arg0: i32) -> (i32, i32) {
    %c0_i32 = arith.constant 0 : i32
    %c0_i32_0 = arith.constant 0 : i32
    %c0_i32_1 = arith.constant 0 : i32
    return %c0_i32, %c0_i32_0 : i32, i32
  }
  func.func @transform_26(%arg0: i32) -> (i32, i32) {
    %c0_i32 = arith.constant 0 : i32
    %c0_i32_0 = arith.constant 0 : i32
    %c0_i32_1 = arith.constant 0 : i32
    return %c0_i32, %c0_i32_0 : i32, i32
  }
  func.func @transform_27(%arg0: i32) -> (i32, i32) {
    %c0_i32 = arith.constant 0 : i32
    %c0_i32_0 = arith.constant 0 : i32
    %c0_i32_1 = arith.constant 0 : i32
    return %c0_i32, %c0_i32_0 : i32, i32
  }
  func.func @transform_28(%arg0: i32) -> (i32, i32) {
    %c0_i32 = arith.constant 0 : i32
    %c0_i32_0 = arith.constant 0 : i32
    %c0_i32_1 = arith.constant 0 : i32
    return %c0_i32, %c0_i32_0 : i32, i32
  }
  func.func @transform_29(%arg0: i32) -> (i32, i32) {
    %c0_i32 = arith.constant 0 : i32
    %c0_i32_0 = arith.constant 0 : i32
    %c0_i32_1 = arith.constant 0 : i32
    return %c0_i32, %c0_i32_0 : i32, i32
  }
  func.func @transform_30(%arg0: i32) -> (i32, i32) {
    %c0_i32 = arith.constant 0 : i32
    %c0_i32_0 = arith.constant 0 : i32
    %c0_i32_1 = arith.constant 0 : i32
    return %c0_i32, %c0_i32_0 : i32, i32
  }
}

</mosaic_0001>

<bundles_post_ra>
// kernel: forward.1
= control target key start
LH: loop header
LB: loop body
LE: loop exit
PB: predicated region body
PF: predicated region fallthrough
CT: control target
= control target key end

     0   :  { %vm185_vm0 = vcmask 523264   ;;  %s16333_s6 = smov 7   ;;  %v16334_v20 = vmov 0.0   ;;  %s16335_s10 = smov 6   ;;  %vm356_vm1 = vcmask 130048   ;;  %vm1991_vm2 = vcmask 261120   ;;  %s18918_s0 = inlined_call_operand.smem [shape: u32[31], index: -1, kind: input, shape index: {}] }
   0x1   :  { %s16379_s5 = sld [smem:[%s18918_s0]]   ;;  %325 = vmatprep.mubr.f32.mxu0 %v16334_v20  ;;  %s16336_s14 = smov 64   ;;  %vm1996_vm3 = vcmask 392192   ;;  %vm16361_vm4 = vmmov 0   ;;  %vm13344_vm5 = vcmask 1024  }
   0x2   :  { %s16408_s9 = sld [smem:[%s18918_s0 + %s16333_s6]]   ;;  %s16337_s15 = smov 2  }
   0x3   :  { %s16430_s13 = sld [smem:[%s18918_s0 + %s16335_s10]]   ;;  %s16338_s19 = smov 48  }
   0x4   :  { %s16492_s18 = sld [smem:[%s18918_s0 + %s16337_s15]]   ;;  %s16339_s20 = smov 112  }
   0x5   :  { %s16340_s21 = smov 32   ;;  %s16341_s22 = smov 96  }
   0x6   :  { %s16342_s23 = smov 16   ;;  %s16343_s24 = smov 80  }
   0x7   :  { %v16382_v0 = vld [vmem:[%s16379_s5] sm:$0xff]  ;;  %v16385_v1 = vld [vmem:[%s16379_s5 + $0x8] sm:$0xff]  ;;  %v16388_v2 = vld [vmem:[%s16379_s5 + $0x10] sm:$0xff]  ;;  %s16344_s25 = smov 8   ;;  %s16345_s29 = smov 10  }
   0x8   :  { %v181_v3 = vmul.f32 %v16382_v0, %v16382_v0  ;;  %v182_v4 = vmul.f32 %v16385_v1, %v16385_v1  ;;  %v183_v5 = vmul.f32 %v16388_v2, %v16388_v2  ;;  %v16397_v6 = vld [vmem:[%s16379_s5 + $0x18] sm:$0xff]  ;;  %v239_v13 = vld [vmem:[%s16408_s9 + $0x70] sm:$0xff]  ;;  %v238_v14 = vld [vmem:[%s16408_s9 + $0x68] sm:$0xff]  ;;  %s16705_s28 = sld [smem:[%s18918_s0 + %s16344_s25]]   ;;  %s16346_s3 = smov 11  }
   0x9   :  { %v184_v7 = vmul.f32 %v16397_v6, %v16397_v6  ;;  %v240_v12 = vld [vmem:[%s16408_s9 + $0x78] sm:$0xff]  ;;  %v237_v15 = vld [vmem:[%s16408_s9 + $0x60] sm:$0xff]  ;;  %v235_v17 = vld [vmem:[%s16408_s9 + $0x50] sm:$0xff]  ;;  %s16773_s2 = sld [smem:[%s18918_s0 + %s16345_s29]]   ;;  %s16347_s7 = smov 9  }
   0xa   :  { %v186_v8 = vsel %vm185_vm0, %v181_v3, 0.0  ;;  %v192_v9 = vsel %vm185_vm0, %v183_v5, 0.0  ;;  %v189_v10 = vsel %vm185_vm0, %v182_v4, 0.0  ;;  %277 = vmatprep.subr.mxu0 %v240_v12  ;;  %v236_v16 = vld [vmem:[%s16408_s9 + $0x58] sm:$0xff]  ;;  %v234_v18 = vld [vmem:[%s16408_s9 + $0x48] sm:$0xff]  ;;  %v233_v19 = vld [vmem:[%s16408_s9 + $0x40] sm:$0xff]  ;;  %s16787_s6 = sld [smem:[%s18918_s0 + %s16346_s3]]  }
   0xb   :  { %187 = vadd.xlane.f32.xlu0 %v186_v8  ;;  %193 = vadd.xlane.f32.xlu1 %v192_v9  ;;  %v195_v11 = vsel %vm185_vm0, %v184_v7, 0.0  ;;  %v232_v21 = vld [vmem:[%s16408_s9 + $0x38] sm:$0xff]  ;;  %v231_v22 = vld [vmem:[%s16408_s9 + $0x30] sm:$0xff]  ;;  %v230_v23 = vld [vmem:[%s16408_s9 + $0x28] sm:$0xff]  ;;  %s16805_s11 = sld [smem:[%s18918_s0 + %s16347_s7]]   ;;  %s16349_s16 = smov 14  }
   0xc   :  { %278 = vmatpush1.msra.mxu0 %v239_v13  ;;  %v229_v24 = vld [vmem:[%s16408_s9 + $0x20] sm:$0xff]  ;;  %v228_v25 = vld [vmem:[%s16408_s9 + $0x18] sm:$0xff]  ;;  %v227_v26 = vld [vmem:[%s16408_s9 + $0x10] sm:$0xff]  ;;  %s17221_s25 = sld [smem:[%s18918_s0 + %s16349_s16]]   ;;  %s16350_s26 = smov 13  }
   0xd   :  { %279 = vmatprep.subr.mxu0 %v238_v14  ;;  %v226_v27 = vld [vmem:[%s16408_s9 + $0x8] sm:$0xff]  ;;  %v225_v28 = vld [vmem:[%s16408_s9] sm:$0xff]  ;;  %s17255_s29 = sld [smem:[%s18918_s0 + %s16350_s26]]   ;;  %s16351_s30 = smov 3  }
   0xe   :  { %280 = vmatpush1.msra.mxu0 %v237_v15  ;;  %v13380_v42 = vld [vmem:[%s16430_s13] ss:$0 sm:$0xff]  ;;  %v137_v12 = vld [vmem:[%s16492_s18 + $0x48] sm:$0xff]  ;;  %s17331_s3 = sld [smem:[%s18918_s0 + %s16351_s30]]   ;;  %s16352_s4 = smov 15  }
   0xf   :  { %190 = vadd.xlane.f32.xlu0 %v189_v10  ;;  %196 = vadd.xlane.f32.xlu1 %v195_v11  ;;  %v128_v4 = vld [vmem:[%s16492_s18] sm:$0xff]  ;;  %s17552_s7 = sld [smem:[%s18918_s0 + %s16352_s4]]   ;;  %s16353_s8 = smov 18  }
  0x10   :  { %281 = vmatprep.subr.mxu0 %v236_v16  ;;  %v136_v11 = vld [vmem:[%s16492_s18 + $0x40] sm:$0xff]  ;;  %s16354_s12 = smov 12   ;;  %s17693_s1 = sld [smem:[%s18918_s0 + %s16342_s23]]  }
  0x11   :  { %282 = vmatpush1.msra.mxu0 %v235_v17  ;;  %s13361_s17 = sld [smem:[%s18918_s0 + %s16354_s12]]   ;;  %s16359_s26 = smov 22  }
  0x12   :  { %283 = vmatprep.subr.mxu0 %v234_v18  ;;  %s18047_s30 = sld [smem:[%s18918_s0 + %s16359_s26]]  }
  0x13   :  { %284 = vmatpush1.msra.mxu0 %v233_v19 }
  0x14   :  { %285 = vmatprep.subr.mxu0 %v232_v21 }
  0x15   :  { %286 = vmatpush1.msra.mxu0 %v231_v22 }
  0x16   :  { %287 = vmatprep.subr.mxu0 %v230_v23 }
  0x17   :  { %288 = vmatpush1.msra.mxu0 %v229_v24 }
  0x18   :  { %289 = vmatprep.subr.mxu0 %v228_v25 }
  0x19   :  { %290 = vmatpush1.msra.mxu0 %v227_v26 }
  0x1a   :  { %291 = vmatprep.subr.mxu0 %v226_v27 }
  0x1b   :  { %292 = vmatpush1.msra.mxu0 %v225_v28 }
  0x94   :  { %v188_v29 = vpop.xlane.xlu0 %187  ;;  %v194_v30 = vpop.xlane.xlu1 %193 }
  0x95   :  { %v199_v31 = vmul.f32 0.015625, %v188_v29  ;;  %v201_v32 = vmul.f32 0.015625, %v194_v30 }
  0x97   :  { %v203_v33 = vadd.f32 1e-06, %v199_v31  ;;  %v205_v34 = vadd.f32 1e-06, %v201_v32 }
  0x98   :  { %v191_v35 = vpop.xlane.xlu0 %190  ;;  %v197_v36 = vpop.xlane.xlu1 %196 }
  0x99   :  { %15797 = vrsqrt.f32 %v203_v33  ;;  %v200_v37 = vmul.f32 0.015625, %v191_v35  ;;  %v202_v38 = vmul.f32 0.015625, %v197_v36 }
  0x9a   :  { %15799 = vrsqrt.f32 %v205_v34 }
  0x9b   :  { %v204_v39 = vadd.f32 1e-06, %v200_v37  ;;  %v206_v40 = vadd.f32 1e-06, %v202_v38 }
  0x9d   :  { %15801 = vrsqrt.f32 %v204_v39 }
  0x9e   :  { %15803 = vrsqrt.f32 %v206_v40 }
  0xa6   :  { %v15798_v41 = vpop.eup %15797 }
  0xa7   :  { %v211_v43 = vmul.f32 %v15798_v41, %v16382_v0  ;;  %v15800_v44 = vpop.eup %15799 }
  0xa8   :  { %v213_v48 = vmul.f32 %v15800_v44, %v16388_v2  ;;  %v129_v2 = vld [vmem:[%s16492_s18 + $0x8] sm:$0xff] }
  0xa9   :  { %v221_v45 = vmul.f32 %v13380_v42, %v211_v43 }
  0xaa   :  { %v15802_v46 = vpop.eup %15801  ;;  %v223_v51 = vmul.f32 %v13380_v42, %v213_v48 }
  0xab   :  { %13381 = vmatmul.mubr.msk.f32.vlgmr.msra.gmra.mxu0 %vm185_vm0, %v221_v45  ;;  %v212_v47 = vmul.f32 %v15802_v46, %v16385_v1  ;;  %v15804_v49 = vpop.eup %15803 }
  0xac   :  { %331 = vmatprep.mubr.f32.mxu0 %v16334_v20  ;;  %v214_v52 = vmul.f32 %v15804_v49, %v16397_v6 }
  0xad   :  { %v222_v50 = vmul.f32 %v13380_v42, %v212_v47 }
  0xae   :  { %v224_v53 = vmul.f32 %v13380_v42, %v214_v52 }
  0xaf   :  { %13382 = vmatmul.mubr.msk.f32.gmra.mxu0 %vm185_vm0, %v222_v50 }
  0xb0   :  { %337 = vmatprep.mubr.f32.mxu0 %v16334_v20 }
  0xb3   :  { %13383 = vmatmul.mubr.msk.f32.gmra.mxu0 %vm185_vm0, %v223_v51 }
  0xb4   :  { %343 = vmatprep.mubr.f32.mxu0 %v16334_v20 }
  0xb7   :  { %13384 = vmatmul.mubr.msk.f32.gmra.mxu0 %vm185_vm0, %v224_v53 }
 0x16b   :  { %v16444_v54 = vpop.f32.mrf.mxu0 }
 0x16c   :  { %352 = vrot.lane.b32.xlu1 %v16444_v54, %s16336_s14  ;;  %14555 = vmatprep.mubr.msk.f32.mxu0 %vm356_vm1, %v16444_v54 }
 0x16d   :  { %v16450_v55 = vpop.f32.mrf.mxu0 }
 0x16f   :  { %v16452_v56 = vpop.f32.mrf.mxu0 }
 0x170   :  { %354 = vrot.lane.b32.xlu0 %v16452_v56, %s16336_s14 }
 0x171   :  { %v16456_v57 = vpop.f32.mrf.mxu0 }
 0x173   :  { %v16458_v58 = vpop.f32.mrf.mxu0 }
 0x174   :  { %14562 = vmatprep.mubr.msk.f32.mxu1 %vm356_vm1, %v16458_v58 }
 0x175   :  { %v16462_v59 = vpop.f32.mrf.mxu0 }
 0x177   :  { %v16464_v60 = vpop.f32.mrf.mxu0 }
 0x178   :  { %444 = vrot.lane.b32.xlu1 %v16464_v60, %s16336_s14 }
 0x179   :  { %v16485_v1 = vpop.f32.mrf.mxu0 }
 0x17c   :  { %442 = vrot.lane.b32.xlu1 %v16458_v58, %s16336_s14 }
 0x1de   :  { %v353_v62 = vpop.permute.xlu1 %352 }
 0x1e2   :  { %v355_v61 = vpop.permute.xlu0 %354 }
 0x1e3   :  { %14551 = vmatprep.subr.msk.mxu0 %vm356_vm1, %v355_v61 }
 0x1e4   :  { %14552 = vmatpush3.xpose.msk.msra.mxu0 %vm356_vm1, %v355_v61 }
 0x1e5   :  { %14553 = vmatprep.subr.msk.mxu0 %vm356_vm1, %v353_v62 }
 0x1e8   :  { %14554 = vmatpush3.xpose.msk.msra.mxu0 %vm356_vm1, %v353_v62 }
 0x1ea   :  { %v445_v63 = vpop.permute.xlu1 %444 }
 0x1eb   :  { %14556 = vmatmul.mubr.msk.f32.vlgmr.msra.gmra.mxu0 %vm356_vm1, %v16452_v56  ;;  %14558 = vmatprep.subr.msk.mxu1 %vm356_vm1, %v445_v63 }
 0x1ec   :  { %14559 = vmatpush3.xpose.msk.msra.mxu1 %vm356_vm1, %v445_v63 }
 0x1ee   :  { %v443_v0 = vpop.permute.xlu1 %442 }
 0x1ef   :  { %14560 = vmatprep.subr.msk.mxu1 %vm356_vm1, %v443_v0 }
 0x1f0   :  { %14561 = vmatpush3.xpose.msk.msra.mxu1 %vm356_vm1, %v443_v0 }
 0x1f1   :  { %14565 = vmatprep.subr.mxu1 %v16456_v57 }
 0x1f3   :  { %14563 = vmatmul.mubr.msk.f32.vlgmr.msra.gmra.mxu1 %vm356_vm1, %v16464_v60 }
 0x1f4   :  { %14566 = vmatpush3.msra.mxu1 %v16456_v57 }
 0x1f5   :  { %14567 = vmatprep.subr.mxu1 %v16450_v55 }
 0x1f6   :  { %14568 = vmatpush3.msra.mxu1 %v16450_v55 }
 0x1f7   :  { %14572 = vmatprep.subr.mxu1 %v16485_v1 }
 0x2ab   :  { %v14557_v3 = vpop.f32.mrf.mxu0 }
 0x2ac   :  { %v437_v5 = vadd.f32 %v14557_v3, %v129_v2  ;;  %v131_v3 = vld [vmem:[%s16492_s18 + $0x18] sm:$0xff] }
 0x2ad   :  { %v431_v6 = vpop.f32.mrf.mxu0 }
 0x2ae   :  { %v432_v7 = vadd.f32 %v431_v6, %v128_v4  ;;  %v532_v8 = vsel %vm356_vm1, %v437_v5, -inf }
 0x2af   :  { %533 = vmax.xlane.f32.xlu1 %v532_v8 }
 0x2b0   :  { %v529_v9 = vsel %vm356_vm1, %v432_v7, -inf }
 0x2b1   :  { %530 = vmax.xlane.f32.xlu0 %v529_v9 }
 0x2b3   :  { %v14564_v10 = vpop.f32.mrf.mxu1 }
 0x2b4   :  { %v526_v15 = vadd.f32 %v14564_v10, %v137_v12 }
 0x2b5   :  { %v520_v13 = vpop.f32.mrf.mxu1 }
 0x2b6   :  { %v521_v14 = vadd.f32 %v520_v13, %v136_v11  ;;  %v538_v17 = vsel %vm356_vm1, %v526_v15, -inf }
 0x2b8   :  { %v535_v16 = vsel %vm356_vm1, %v521_v14, -inf }
 0x2b9   :  { %536 = vmax.xlane.f32.xlu0 %v535_v16 }
 0x2bd   :  { %539 = vmax.xlane.f32.xlu0 %v538_v17 }
 0x2c0   :  { %739 = vrot.lane.b32.xlu1 %v16444_v54, %s16338_s19 }
 0x2c4   :  { %735 = vrot.lane.b32.xlu1 %v16444_v54, %s16339_s20 }
 0x2c8   :  { %737 = vrot.lane.b32.xlu1 %v16452_v56, %s16339_s20 }
 0x2d3   :  { %741 = vrot.lane.b32.xlu0 %v16452_v56, %s16338_s19 }
 0x338   :  { %v534_v18 = vpop.xlane.xlu1 %533 }
 0x339   :  { %v542_v19 = vsub.f32 %v437_v5, %v534_v18  ;;  %v130_v5 = vld [vmem:[%s16492_s18 + $0x10] sm:$0xff] }
 0x33a   :  { %v531_v21 = vpop.xlane.xlu0 %530 }
 0x33b   :  { %v547_v22 = vmul.f32 1.442695, %v542_v19  ;;  %v541_v23 = vsub.f32 %v432_v7, %v531_v21 }
 0x33c   :  { %v740_v24 = vpop.permute.xlu1 %739 }
 0x33d   :  { %15805 = vpow2.f32 %v547_v22  ;;  %v545_v25 = vmul.f32 1.442695, %v541_v23 }
 0x33f   :  { %15807 = vpow2.f32 %v545_v25  ;;  %v138_v25 = vld [vmem:[%s16492_s18 + $0x50] sm:$0xff] }
 0x340   :  { %v736_v26 = vpop.permute.xlu1 %735 }
 0x341   :  { %14583 = vmatprep.mubr.msk.f32.mxu0 %vm356_vm1, %v736_v26  ;;  %v139_v26 = vld [vmem:[%s16492_s18 + $0x58] sm:$0xff] }
 0x342   :  { %v537_v27 = vpop.xlane.xlu0 %536 }
 0x343   :  { %v543_v28 = vsub.f32 %v521_v14, %v537_v27 }
 0x344   :  { %v738_v38 = vpop.permute.xlu1 %737 }
 0x345   :  { %v549_v29 = vmul.f32 1.442695, %v543_v28 }
 0x346   :  { %v540_v30 = vpop.xlane.xlu0 %539 }
 0x347   :  { %15809 = vpow2.f32 %v549_v29  ;;  %v544_v31 = vsub.f32 %v526_v15, %v540_v30 }
 0x349   :  { %v551_v32 = vmul.f32 1.442695, %v544_v31 }
 0x34a   :  { %v15806_v33 = vpop.eup %15805  ;;  %v742_v34 = vpop.permute.xlu0 %741 }
 0x34b   :  { %15811 = vpow2.f32 %v551_v32  ;;  %14579 = vmatprep.subr.msk.mxu0 %vm356_vm1, %v742_v34  ;;  %v556_v35 = vsel %vm356_vm1, %v15806_v33, 0.0 }
 0x34c   :  { %v15808_v36 = vpop.eup %15807  ;;  %557 = vadd.xlane.f32.xlu1 %v556_v35  ;;  %14580 = vmatpush3.xpose.msk.msra.mxu0 %vm356_vm1, %v742_v34 }
 0x34d   :  { %14581 = vmatprep.subr.msk.mxu0 %vm356_vm1, %v740_v24  ;;  %v553_v37 = vsel %vm356_vm1, %v15808_v36, 0.0 }
 0x34e   :  { %554 = vadd.xlane.f32.xlu0 %v553_v37 }
 0x350   :  { %14582 = vmatpush3.xpose.msk.msra.mxu0 %vm356_vm1, %v740_v24 }
 0x353   :  { %14584 = vmatmul.mubr.msk.f32.vlgmr.msra.gmra.mxu0 %vm356_vm1, %v738_v38 }
 0x354   :  { %v15810_v39 = vpop.eup %15809 }
 0x355   :  { %v559_v40 = vsel %vm356_vm1, %v15810_v39, 0.0 }
 0x356   :  { %560 = vadd.xlane.f32.xlu0 %v559_v40 }
 0x358   :  { %v15812_v41 = vpop.eup %15811 }
 0x359   :  { %v562_v42 = vsel %vm356_vm1, %v15812_v41, 0.0 }
 0x35a   :  { %563 = vadd.xlane.f32.xlu1 %v562_v42 }
 0x36b   :  { %830 = vrot.lane.b32.xlu1 %v16458_v58, %s16338_s19 }
 0x36c   :  { %832 = vrot.lane.b32.xlu0 %v16464_v60, %s16338_s19 }
 0x36f   :  { %828 = vrot.lane.b32.xlu1 %v16464_v60, %s16339_s20 }
 0x370   :  { %826 = vrot.lane.b32.xlu0 %v16458_v58, %s16339_s20 }
 0x3d5   :  { %v558_v43 = vpop.xlane.xlu1 %557 }
 0x3d6   :  { %15813 = vrcp.f32 %v558_v43 }
 0x3d7   :  { %v555_v44 = vpop.xlane.xlu0 %554 }
 0x3d8   :  { %15815 = vrcp.f32 %v555_v44 }
 0x3df   :  { %v561_v45 = vpop.xlane.xlu0 %560 }
 0x3e0   :  { %15817 = vrcp.f32 %v561_v45 }
 0x3e3   :  { %v564_v46 = vpop.xlane.xlu1 %563  ;;  %v15814_v47 = vpop.eup %15813 }
 0x3e4   :  { %15819 = vrcp.f32 %v564_v46  ;;  %v568_v50 = vmul.f32 %v15814_v47, %v15806_v33  ;;  %v833_v51 = vpop.permute.xlu0 %832 }
 0x3e5   :  { %v15816_v48 = vpop.eup %15815 }
 0x3e6   :  { %v566_v49 = vmul.f32 %v15816_v48, %v15808_v36 }
 0x3e7   :  { %v831_v0 = vpop.permute.xlu1 %830 }
 0x3e8   :  { %14569 = vmatprep.mubr.msk.f32.mxu1 %vm356_vm1, %v566_v49  ;;  %v827_v63 = vpop.permute.xlu0 %826 }
 0x3e9   :  { %14570 = vmatmul.mubr.msk.f32.vlgmr.msra.gmra.mxu1 %vm356_vm1, %v568_v50 }
 0x3ea   :  { %14573 = vmatpush3.msra.mxu1 %v16485_v1 }
 0x3eb   :  { %14574 = vmatprep.subr.mxu1 %v16462_v59  ;;  %v829_v2 = vpop.permute.xlu1 %828 }
 0x3ec   :  { %14575 = vmatpush3.msra.mxu1 %v16462_v59 }
 0x3ed   :  { %v15818_v52 = vpop.eup %15817  ;;  %14586 = vmatprep.subr.msk.mxu1 %vm356_vm1, %v833_v51 }
 0x3ee   :  { %v570_v53 = vmul.f32 %v15818_v52, %v15810_v39 }
 0x3f0   :  { %14576 = vmatprep.mubr.msk.f32.mxu1 %vm356_vm1, %v570_v53 }
 0x3f1   :  { %v15820_v61 = vpop.eup %15819 }
 0x3f2   :  { %v572_v62 = vmul.f32 %v15820_v61, %v15812_v41 }
 0x3f4   :  { %14577 = vmatmul.mubr.msk.f32.vlgmr.msra.gmra.mxu1 %vm356_vm1, %v572_v62 }
 0x3f5   :  { %14587 = vmatpush3.xpose.msk.msra.mxu1 %vm356_vm1, %v833_v51  ;;  %14590 = vmatprep.mubr.msk.f32.mxu1 %vm356_vm1, %v827_v63 }
 0x3f6   :  { %14588 = vmatprep.subr.msk.mxu1 %vm356_vm1, %v831_v0 }
 0x3f9   :  { %14589 = vmatpush3.xpose.msk.msra.mxu1 %vm356_vm1, %v831_v0 }
 0x3fc   :  { %14591 = vmatmul.mubr.msk.f32.vlgmr.msra.gmra.mxu1 %vm356_vm1, %v829_v2 }
 0x413   :  { %v14585_v4 = vpop.f32.mrf.mxu0 }
 0x414   :  { %v823_v6 = vadd.f32 %v14585_v4, %v131_v3 }
 0x415   :  { %v817_v7 = vpop.f32.mrf.mxu0 }
 0x416   :  { %v818_v8 = vadd.f32 %v817_v7, %v130_v5  ;;  %v920_v9 = vsel %vm356_vm1, %v823_v6, -inf }
 0x417   :  { %921 = vmax.xlane.f32.xlu1 %v920_v9 }
 0x418   :  { %v917_v10 = vsel %vm356_vm1, %v818_v8, -inf }
 0x419   :  { %918 = vmax.xlane.f32.xlu0 %v917_v10 }
 0x4a0   :  { %v922_v11 = vpop.xlane.xlu1 %921 }
 0x4a1   :  { %v930_v12 = vsub.f32 %v823_v6, %v922_v11 }
 0x4a2   :  { %v919_v14 = vpop.xlane.xlu0 %918 }
 0x4a3   :  { %v935_v13 = vmul.f32 1.442695, %v930_v12  ;;  %v929_v16 = vsub.f32 %v818_v8, %v919_v14  ;;  %v133_v14 = vld [vmem:[%s16492_s18 + $0x28] sm:$0xff] }
 0x4a5   :  { %15821 = vpow2.f32 %v935_v13  ;;  %v933_v21 = vmul.f32 1.442695, %v929_v16 }
 0x4a7   :  { %15823 = vpow2.f32 %v933_v21 }
 0x4a9   :  { %v16545_v15 = vpop.f32.mrf.mxu1 }
 0x4ab   :  { %v16551_v19 = vpop.f32.mrf.mxu1 }
 0x4b2   :  { %v16547_v17 = vpop.eup %15821 }
 0x4b3   :  { %v944_v18 = vsel %vm356_vm1, %v16547_v17, 0.0 }
 0x4b4   :  { %945 = vadd.xlane.f32.xlu1 %v944_v18  ;;  %v16553_v22 = vpop.f32.mrf.mxu1  ;;  %v15824_v32 = vpop.eup %15823 }
 0x4b5   :  { %v941_v33 = vsel %vm356_vm1, %v15824_v32, 0.0 }
 0x4b6   :  { %v16555_v23 = vpop.f32.mrf.mxu1 }
 0x4bc   :  { %v14592_v24 = vpop.f32.mrf.mxu1 }
 0x4bd   :  { %v914_v29 = vadd.f32 %v14592_v24, %v139_v26 }
 0x4be   :  { %v908_v27 = vpop.f32.mrf.mxu1 }
 0x4bf   :  { %v909_v28 = vadd.f32 %v908_v27, %v138_v25  ;;  %v926_v31 = vsel %vm356_vm1, %v914_v29, -inf }
 0x4c1   :  { %v923_v30 = vsel %vm356_vm1, %v909_v28, -inf }
 0x4c2   :  { %924 = vmax.xlane.f32.xlu0 %v923_v30 }
 0x4c5   :  { %963 = vrot.lane.b32.xlu1 %v16450_v55, %s16339_s20 }
 0x4c6   :  { %927 = vmax.xlane.f32.xlu0 %v926_v31 }
 0x4c9   :  { %1145 = vrot.lane.b32.xlu1 %v16452_v56, %s16340_s21 }
 0x4ca   :  { %942 = vadd.xlane.f32.xlu0 %v941_v33 }
 0x4cd   :  { %1054 = vrot.lane.b32.xlu1 %v16485_v1, %s16339_s20 }
 0x4d1   :  { %1052 = vrot.lane.b32.xlu1 %v16462_v59, %s16339_s20 }
 0x4d5   :  { %1141 = vrot.lane.b32.xlu1 %v16452_v56, %s16341_s22 }
 0x4e0   :  { %965 = vrot.lane.b32.xlu0 %v16456_v57, %s16339_s20 }
 0x4e4   :  { %1143 = vrot.lane.b32.xlu0 %v16444_v54, %s16340_s21 }
 0x4e8   :  { %1139 = vrot.lane.b32.xlu0 %v16444_v54, %s16341_s22 }
 0x53d   :  { %v946_v34 = vpop.xlane.xlu1 %945 }
 0x541   :  { %v964_v35 = vpop.permute.xlu1 %963 }
 0x545   :  { %v1146_v36 = vpop.permute.xlu1 %1145 }
 0x549   :  { %v1055_v37 = vpop.permute.xlu1 %1054 }
 0x54a   :  { %14600 = vmatprep.subr.mxu1 %v1055_v37 }
 0x54b   :  { %v925_v38 = vpop.xlane.xlu0 %924  ;;  %14601 = vmatpush3.msra.mxu1 %v1055_v37  ;;  %v141_v37 = vld [vmem:[%s16492_s18 + $0x68] sm:$0xff] }
 0x54c   :  { %v931_v39 = vsub.f32 %v909_v28, %v925_v38 }
 0x54d   :  { %v1053_v40 = vpop.permute.xlu1 %1052 }
 0x54e   :  { %v937_v41 = vmul.f32 1.442695, %v931_v39  ;;  %14602 = vmatprep.subr.mxu1 %v1053_v40 }
 0x54f   :  { %v928_v42 = vpop.xlane.xlu0 %927  ;;  %14603 = vmatpush3.msra.mxu1 %v1053_v40 }
 0x550   :  { %15825 = vpow2.f32 %v937_v41  ;;  %v932_v43 = vsub.f32 %v914_v29, %v928_v42 }
 0x551   :  { %15827 = vrcp.f32 %v946_v34  ;;  %v1142_v0 = vpop.permute.xlu1 %1141 }
 0x552   :  { %v939_v44 = vmul.f32 1.442695, %v932_v43 }
 0x553   :  { %v943_v45 = vpop.xlane.xlu0 %942 }
 0x554   :  { %15829 = vpow2.f32 %v939_v44 }
 0x555   :  { %15831 = vrcp.f32 %v943_v45 }
 0x557   :  { %v966_v46 = vpop.permute.xlu0 %965 }
 0x558   :  { %14593 = vmatprep.subr.mxu0 %v966_v46 }
 0x559   :  { %14594 = vmatpush3.msra.mxu0 %v966_v46 }
 0x55a   :  { %14595 = vmatprep.subr.mxu0 %v964_v35 }
 0x55b   :  { %14596 = vmatpush3.msra.mxu0 %v964_v35  ;;  %v1144_v50 = vpop.permute.xlu0 %1143 }
 0x55c   :  { %14607 = vmatprep.subr.msk.mxu0 %vm356_vm1, %v1146_v36 }
 0x55d   :  { %v15826_v47 = vpop.eup %15825 }
 0x55e   :  { %v947_v48 = vsel %vm356_vm1, %v15826_v47, 0.0  ;;  %v15828_v49 = vpop.eup %15827 }
 0x55f   :  { %948 = vadd.xlane.f32.xlu0 %v947_v48  ;;  %v956_v62 = vmul.f32 %v15828_v49, %v16547_v17  ;;  %v1140_v63 = vpop.permute.xlu0 %1139  ;;  %v132_v17 = vld [vmem:[%s16492_s18 + $0x20] sm:$0xff] }
 0x561   :  { %v15830_v51 = vpop.eup %15829 }
 0x562   :  { %v15832_v52 = vpop.eup %15831  ;;  %v950_v53 = vsel %vm356_vm1, %v15830_v51, 0.0 }
 0x563   :  { %951 = vadd.xlane.f32.xlu1 %v950_v53  ;;  %v954_v61 = vmul.f32 %v15832_v52, %v15824_v32 }
 0x565   :  { %14597 = vmatprep.mubr.msk.f32.mxu0 %vm356_vm1, %v954_v61 }
 0x566   :  { %14598 = vmatmul.mubr.msk.f32.vlgmr.msra.gmra.mxu0 %vm356_vm1, %v956_v62 }
 0x567   :  { %14608 = vmatpush3.xpose.msk.msra.mxu0 %vm356_vm1, %v1146_v36  ;;  %14611 = vmatprep.mubr.msk.f32.mxu0 %vm356_vm1, %v1140_v63  ;;  %v140_v36 = vld [vmem:[%s16492_s18 + $0x60] sm:$0xff] }
 0x568   :  { %14609 = vmatprep.subr.msk.mxu0 %vm356_vm1, %v1144_v50 }
 0x56b   :  { %14610 = vmatpush3.xpose.msk.msra.mxu0 %vm356_vm1, %v1144_v50 }
 0x56e   :  { %14612 = vmatmul.mubr.msk.f32.vlgmr.msra.gmra.mxu0 %vm356_vm1, %v1142_v0 }
 0x574   :  { %1234 = vrot.lane.b32.xlu1 %v16458_v58, %s16340_s21 }
 0x575   :  { %1236 = vrot.lane.b32.xlu0 %v16464_v60, %s16340_s21 }
 0x578   :  { %1232 = vrot.lane.b32.xlu1 %v16464_v60, %s16341_s22 }
 0x579   :  { %1230 = vrot.lane.b32.xlu0 %v16458_v58, %s16341_s22 }
 0x5e8   :  { %v949_v2 = vpop.xlane.xlu0 %948 }
 0x5e9   :  { %15833 = vrcp.f32 %v949_v2 }
 0x5ec   :  { %v952_v3 = vpop.xlane.xlu1 %951  ;;  %v1237_v4 = vpop.permute.xlu0 %1236 }
 0x5ed   :  { %15835 = vrcp.f32 %v952_v3  ;;  %14614 = vmatprep.subr.msk.mxu1 %vm356_vm1, %v1237_v4 }
 0x5f0   :  { %v1231_v9 = vpop.permute.xlu0 %1230  ;;  %v1235_v10 = vpop.permute.xlu1 %1234 }
 0x5f4   :  { %v1233_v11 = vpop.permute.xlu1 %1232 }
 0x5f6   :  { %v15834_v5 = vpop.eup %15833 }
 0x5f7   :  { %v958_v6 = vmul.f32 %v15834_v5, %v15826_v47 }
 0x5f9   :  { %14604 = vmatprep.mubr.msk.f32.mxu1 %vm356_vm1, %v958_v6 }
 0x5fa   :  { %v15836_v7 = vpop.eup %15835 }
 0x5fb   :  { %v960_v8 = vmul.f32 %v15836_v7, %v15830_v51 }
 0x5fd   :  { %14605 = vmatmul.mubr.msk.f32.vlgmr.msra.gmra.mxu1 %vm356_vm1, %v960_v8 }
 0x5fe   :  { %14615 = vmatpush3.xpose.msk.msra.mxu1 %vm356_vm1, %v1237_v4  ;;  %14618 = vmatprep.mubr.msk.f32.mxu1 %vm356_vm1, %v1231_v9 }
 0x5ff   :  { %14616 = vmatprep.subr.msk.mxu1 %vm356_vm1, %v1235_v10 }
 0x602   :  { %14617 = vmatpush3.xpose.msk.msra.mxu1 %vm356_vm1, %v1235_v10 }
 0x605   :  { %14619 = vmatmul.mubr.msk.f32.vlgmr.msra.gmra.mxu1 %vm356_vm1, %v1233_v11 }
 0x626   :  { %v16605_v12 = vpop.f32.mrf.mxu0 }
 0x628   :  { %v16607_v13 = vpop.f32.mrf.mxu0 }
 0x62e   :  { %v14613_v16 = vpop.f32.mrf.mxu0 }
 0x62f   :  { %v1227_v18 = vadd.f32 %v14613_v16, %v133_v14 }
 0x630   :  { %v1221_v21 = vpop.f32.mrf.mxu0 }
 0x631   :  { %v1222_v24 = vadd.f32 %v1221_v21, %v132_v17  ;;  %v1324_v25 = vsel %vm356_vm1, %v1227_v18, -inf }
 0x632   :  { %1325 = vmax.xlane.f32.xlu1 %v1324_v25 }
 0x633   :  { %v1321_v26 = vsel %vm356_vm1, %v1222_v24, -inf }
 0x634   :  { %1322 = vmax.xlane.f32.xlu0 %v1321_v26 }
 0x6bb   :  { %v1326_v27 = vpop.xlane.xlu1 %1325 }
 0x6bc   :  { %v1334_v28 = vsub.f32 %v1227_v18, %v1326_v27 }
 0x6bd   :  { %v1323_v29 = vpop.xlane.xlu0 %1322  ;;  %v16613_v32 = vpop.f32.mrf.mxu1 }
 0x6be   :  { %v1339_v30 = vmul.f32 1.442695, %v1334_v28  ;;  %v1333_v31 = vsub.f32 %v1222_v24, %v1323_v29 }
 0x6bf   :  { %v16615_v34 = vpop.f32.mrf.mxu1 }
 0x6c0   :  { %15837 = vpow2.f32 %v1339_v30  ;;  %v1337_v33 = vmul.f32 1.442695, %v1333_v31  ;;  %v135_v30 = vld [vmem:[%s16492_s18 + $0x38] sm:$0xff] }
 0x6c2   :  { %15839 = vpow2.f32 %v1337_v33  ;;  %v134_v33 = vld [vmem:[%s16492_s18 + $0x30] sm:$0xff] }
 0x6c5   :  { %v14620_v35 = vpop.f32.mrf.mxu1 }
 0x6c6   :  { %v1318_v40 = vadd.f32 %v14620_v35, %v141_v37 }
 0x6c7   :  { %v1312_v38 = vpop.f32.mrf.mxu1 }
 0x6c8   :  { %v1313_v39 = vadd.f32 %v1312_v38, %v140_v36  ;;  %v1330_v44 = vsel %vm356_vm1, %v1318_v40, -inf }
 0x6ca   :  { %v1327_v41 = vsel %vm356_vm1, %v1313_v39, -inf }
 0x6cb   :  { %1328 = vmax.xlane.f32.xlu0 %v1327_v41 }
 0x6cd   :  { %v15838_v42 = vpop.eup %15837 }
 0x6ce   :  { %v1348_v43 = vsel %vm356_vm1, %v15838_v42, 0.0 }
 0x6cf   :  { %v15840_v45 = vpop.eup %15839  ;;  %1349 = vadd.xlane.f32.xlu1 %v1348_v43  ;;  %1331 = vmax.xlane.f32.xlu0 %v1330_v44 }
 0x6d0   :  { %v1345_v46 = vsel %vm356_vm1, %v15840_v45, 0.0 }
 0x6d3   :  { %1346 = vadd.xlane.f32.xlu0 %v1345_v46 }
 0x6e0   :  { %1365 = vrot.lane.b32.xlu1 %v16450_v55, %s16341_s22 }
 0x6e4   :  { %1545 = vrot.lane.b32.xlu1 %v16452_v56, %s16342_s23 }
 0x6e8   :  { %1454 = vrot.lane.b32.xlu1 %v16485_v1, %s16341_s22 }
 0x6e9   :  { %1367 = vrot.lane.b32.xlu0 %v16456_v57, %s16341_s22 }
 0x6ec   :  { %1452 = vrot.lane.b32.xlu1 %v16462_v59, %s16341_s22 }
 0x6ed   :  { %1543 = vrot.lane.b32.xlu0 %v16444_v54, %s16342_s23 }
 0x6f0   :  { %1541 = vrot.lane.b32.xlu1 %v16452_v56, %s16343_s24 }
 0x6f1   :  { %1539 = vrot.lane.b32.xlu0 %v16444_v54, %s16343_s24 }
 0x754   :  { %v1329_v47 = vpop.xlane.xlu0 %1328 }
 0x755   :  { %v1335_v48 = vsub.f32 %v1313_v39, %v1329_v47 }
 0x757   :  { %v1341_v49 = vmul.f32 1.442695, %v1335_v48 }
 0x758   :  { %v1350_v50 = vpop.xlane.xlu1 %1349  ;;  %v1332_v51 = vpop.xlane.xlu0 %1331 }
 0x759   :  { %15841 = vpow2.f32 %v1341_v49  ;;  %v1336_v52 = vsub.f32 %v1318_v40, %v1332_v51  ;;  %v142_v49 = vld [vmem:[%s16492_s18 + $0x70] sm:$0xff] }
 0x75a   :  { %15843 = vrcp.f32 %v1350_v50  ;;  %v143_v50 = vld [vmem:[%s16492_s18 + $0x78] sm:$0xff] }
 0x75b   :  { %v1343_v53 = vmul.f32 1.442695, %v1336_v52 }
 0x75c   :  { %v1366_v61 = vpop.permute.xlu1 %1365  ;;  %v1347_v62 = vpop.xlane.xlu0 %1346 }
 0x75d   :  { %15845 = vpow2.f32 %v1343_v53 }
 0x75e   :  { %15847 = vrcp.f32 %v1347_v62 }
 0x760   :  { %v1546_v63 = vpop.permute.xlu1 %1545  ;;  %v1368_v0 = vpop.permute.xlu0 %1367 }
 0x761   :  { %14621 = vmatprep.subr.mxu0 %v1368_v0 }
 0x762   :  { %14622 = vmatpush3.msra.mxu0 %v1368_v0 }
 0x763   :  { %14623 = vmatprep.subr.mxu0 %v1366_v61 }
 0x764   :  { %v1455_v56 = vpop.permute.xlu1 %1454  ;;  %14624 = vmatpush3.msra.mxu0 %v1366_v61  ;;  %v1544_v5 = vpop.permute.xlu0 %1543 }
 0x765   :  { %14628 = vmatprep.subr.mxu1 %v1455_v56  ;;  %14635 = vmatprep.subr.msk.mxu0 %vm356_vm1, %v1546_v63 }
 0x766   :  { %v15842_v54 = vpop.eup %15841  ;;  %14629 = vmatpush3.msra.mxu1 %v1455_v56 }
 0x767   :  { %v1351_v2 = vsel %vm356_vm1, %v15842_v54, 0.0  ;;  %v15844_v4 = vpop.eup %15843 }
 0x768   :  { %v1453_v3 = vpop.permute.xlu1 %1452  ;;  %1352 = vadd.xlane.f32.xlu0 %v1351_v2  ;;  %v1360_v10 = vmul.f32 %v15844_v4, %v15838_v42  ;;  %v1540_v11 = vpop.permute.xlu0 %1539 }
 0x769   :  { %14630 = vmatprep.subr.mxu1 %v1453_v3 }
 0x76a   :  { %v15846_v6 = vpop.eup %15845  ;;  %14631 = vmatpush3.msra.mxu1 %v1453_v3 }
 0x76b   :  { %v15848_v7 = vpop.eup %15847  ;;  %v1354_v8 = vsel %vm356_vm1, %v15846_v6, 0.0 }
 0x76c   :  { %1355 = vadd.xlane.f32.xlu1 %v1354_v8  ;;  %v1358_v9 = vmul.f32 %v15848_v7, %v15840_v45  ;;  %v1542_v14 = vpop.permute.xlu1 %1541 }
 0x76e   :  { %14625 = vmatprep.mubr.msk.f32.mxu0 %vm356_vm1, %v1358_v9 }
 0x76f   :  { %14626 = vmatmul.mubr.msk.f32.vlgmr.msra.gmra.mxu0 %vm356_vm1, %v1360_v10 }
 0x770   :  { %14636 = vmatpush3.xpose.msk.msra.mxu0 %vm356_vm1, %v1546_v63  ;;  %14639 = vmatprep.mubr.msk.f32.mxu0 %vm356_vm1, %v1540_v11 }
 0x771   :  { %14637 = vmatprep.subr.msk.mxu0 %vm356_vm1, %v1544_v5 }
 0x774   :  { %14638 = vmatpush3.xpose.msk.msra.mxu0 %vm356_vm1, %v1544_v5 }
 0x777   :  { %14640 = vmatmul.mubr.msk.f32.vlgmr.msra.gmra.mxu0 %vm356_vm1, %v1542_v14 }
 0x77d   :  { %1634 = vrot.lane.b32.xlu1 %v16458_v58, %s16342_s23 }
 0x77e   :  { %1636 = vrot.lane.b32.xlu0 %v16464_v60, %s16342_s23 }
 0x781   :  { %1632 = vrot.lane.b32.xlu1 %v16464_v60, %s16343_s24 }
 0x782   :  { %1630 = vrot.lane.b32.xlu0 %v16458_v58, %s16343_s24 }
 0x7f1   :  { %v1353_v16 = vpop.xlane.xlu0 %1352 }
 0x7f2   :  { %15849 = vrcp.f32 %v1353_v16 }
 0x7f5   :  { %v1356_v17 = vpop.xlane.xlu1 %1355  ;;  %v1637_v18 = vpop.permute.xlu0 %1636 }
 0x7f6   :  { %15851 = vrcp.f32 %v1356_v17  ;;  %14642 = vmatprep.subr.msk.mxu1 %vm356_vm1, %v1637_v18 }
 0x7f9   :  { %v1631_v27 = vpop.permute.xlu0 %1630  ;;  %v1635_v60 = vpop.permute.xlu1 %1634 }
 0x7fd   :  { %v1633_v58 = vpop.permute.xlu1 %1632 }
 0x7ff   :  { %v15850_v21 = vpop.eup %15849 }
 0x800   :  { %v1362_v24 = vmul.f32 %v15850_v21, %v15842_v54 }
 0x802   :  { %14632 = vmatprep.mubr.msk.f32.mxu1 %vm356_vm1, %v1362_v24 }
 0x803   :  { %v15852_v25 = vpop.eup %15851 }
 0x804   :  { %v1364_v26 = vmul.f32 %v15852_v25, %v15846_v6 }
 0x806   :  { %14633 = vmatmul.mubr.msk.f32.vlgmr.msra.gmra.mxu1 %vm356_vm1, %v1364_v26 }
 0x807   :  { %14643 = vmatpush3.xpose.msk.msra.mxu1 %vm356_vm1, %v1637_v18  ;;  %14646 = vmatprep.mubr.msk.f32.mxu1 %vm356_vm1, %v1631_v27 }
 0x808   :  { %14644 = vmatprep.subr.msk.mxu1 %vm356_vm1, %v1635_v60 }
 0x80b   :  { %14645 = vmatpush3.xpose.msk.msra.mxu1 %vm356_vm1, %v1635_v60 }
 0x80e   :  { %14647 = vmatmul.mubr.msk.f32.vlgmr.msra.gmra.mxu1 %vm356_vm1, %v1633_v58  ;;  %v248_v58 = vld [vmem:[%s16705_s28 + $0x38] sm:$0xff] }
 0x82f   :  { %v16665_v28 = vpop.f32.mrf.mxu0 }
 0x831   :  { %v1443_v29 = vpop.f32.mrf.mxu0 }
 0x837   :  { %v14641_v31 = vpop.f32.mrf.mxu0 }
 0x838   :  { %v1627_v35 = vadd.f32 %v14641_v31, %v135_v30  ;;  %v245_v30 = vld [vmem:[%s16705_s28 + $0x20] sm:$0xff]  ;;  %v244_v31 = vld [vmem:[%s16705_s28 + $0x18] sm:$0xff] }
 0x839   :  { %v1621_v36 = vpop.f32.mrf.mxu0 }
 0x83a   :  { %v1622_v37 = vadd.f32 %v1621_v36, %v134_v33  ;;  %v1724_v38 = vsel %vm356_vm1, %v1627_v35, -inf  ;;  %v243_v33 = vld [vmem:[%s16705_s28 + $0x10] sm:$0xff]  ;;  %v241_v36 = vld [vmem:[%s16705_s28] sm:$0xff] }
 0x83b   :  { %1725 = vmax.xlane.f32.xlu1 %v1724_v38 }
 0x83c   :  { %v1721_v39 = vsel %vm356_vm1, %v1622_v37, -inf }
 0x83d   :  { %1722 = vmax.xlane.f32.xlu0 %v1721_v39 }
 0x8c4   :  { %v1726_v40 = vpop.xlane.xlu1 %1725 }
 0x8c5   :  { %v1734_v41 = vsub.f32 %v1627_v35, %v1726_v40  ;;  %v242_v35 = vld [vmem:[%s16705_s28 + $0x8] sm:$0xff] }
 0x8c6   :  { %v1723_v42 = vpop.xlane.xlu0 %1722  ;;  %v16671_v45 = vpop.f32.mrf.mxu1 }
 0x8c7   :  { %v1739_v43 = vmul.f32 1.442695, %v1734_v41  ;;  %v1733_v44 = vsub.f32 %v1622_v37, %v1723_v42 }
 0x8c8   :  { %v16673_v47 = vpop.f32.mrf.mxu1 }
 0x8c9   :  { %15853 = vpow2.f32 %v1739_v43  ;;  %v1737_v46 = vmul.f32 1.442695, %v1733_v44 }
 0x8cb   :  { %15855 = vpow2.f32 %v1737_v46 }
 0x8ce   :  { %v14648_v48 = vpop.f32.mrf.mxu1 }
 0x8cf   :  { %v1718_v53 = vadd.f32 %v14648_v48, %v143_v50 }
 0x8d0   :  { %v1712_v51 = vpop.f32.mrf.mxu1 }
 0x8d1   :  { %v1713_v52 = vadd.f32 %v1712_v51, %v142_v49  ;;  %v1730_v0 = vsel %vm356_vm1, %v1718_v53, -inf }
 0x8d3   :  { %v1727_v61 = vsel %vm356_vm1, %v1713_v52, -inf }
 0x8d4   :  { %1728 = vmax.xlane.f32.xlu0 %v1727_v61 }
 0x8d6   :  { %v15854_v62 = vpop.eup %15853 }
 0x8d7   :  { %v1748_v63 = vsel %vm356_vm1, %v15854_v62, 0.0 }
 0x8d8   :  { %v15856_v56 = vpop.eup %15855  ;;  %1749 = vadd.xlane.f32.xlu1 %v1748_v63  ;;  %1731 = vmax.xlane.f32.xlu0 %v1730_v0 }
 0x8d9   :  { %v1745_v54 = vsel %vm356_vm1, %v15856_v56, 0.0 }
 0x8dc   :  { %1746 = vadd.xlane.f32.xlu0 %v1745_v54 }
 0x95d   :  { %v1729_v2 = vpop.xlane.xlu0 %1728 }
 0x95e   :  { %v1735_v3 = vsub.f32 %v1713_v52, %v1729_v2 }
 0x960   :  { %v1741_v4 = vmul.f32 1.442695, %v1735_v3 }
 0x961   :  { %v1732_v5 = vpop.xlane.xlu0 %1731 }
 0x962   :  { %15857 = vpow2.f32 %v1741_v4  ;;  %v1736_v6 = vsub.f32 %v1718_v53, %v1732_v5  ;;  %v16278_v5 = vld [vmem:[%s16379_s5] sm:$0xff] }
 0x964   :  { %v1743_v7 = vmul.f32 1.442695, %v1736_v6 }
 0x965   :  { %v1747_v8 = vpop.xlane.xlu0 %1746 }
 0x966   :  { %15859 = vpow2.f32 %v1743_v7 }
 0x967   :  { %15861 = vrcp.f32 %v1747_v8 }
 0x96f   :  { %v15858_v9 = vpop.eup %15857 }
 0x970   :  { %v1751_v10 = vsel %vm356_vm1, %v15858_v9, 0.0 }
 0x971   :  { %1752 = vadd.xlane.f32.xlu0 %v1751_v10 }
 0x973   :  { %v15860_v11 = vpop.eup %15859 }
 0x974   :  { %v15862_v14 = vpop.eup %15861  ;;  %v1754_v16 = vsel %vm356_vm1, %v15860_v11, 0.0 }
 0x975   :  { %1755 = vadd.xlane.f32.xlu1 %v1754_v16  ;;  %v1758_v17 = vmul.f32 %v15862_v14, %v15856_v56  ;;  %v16279_v16 = vld [vmem:[%s16379_s5 + $0x18] sm:$0xff] }
 0x977   :  { %14653 = vmatprep.mubr.msk.f32.mxu0 %vm356_vm1, %v1758_v17 }
 0x986   :  { %1765 = vrot.lane.b32.xlu1 %v16450_v55, %s16343_s24  ;;  %v1750_v55 = vpop.xlane.xlu1 %1749 }
 0x987   :  { %1767 = vrot.lane.b32.xlu0 %v16456_v57, %s16343_s24  ;;  %15863 = vrcp.f32 %v1750_v55  ;;  %v16280_v55 = vld [vmem:[%s16379_s5 + $0x10] sm:$0xff] }
 0x98a   :  { %1854 = vrot.lane.b32.xlu1 %v16485_v1, %s16343_s24 }
 0x98b   :  { %1943 = vrot.lane.b32.xlu0 %v16607_v13, %s16342_s23 }
 0x98e   :  { %1852 = vrot.lane.b32.xlu1 %v16462_v59, %s16343_s24 }
 0x98f   :  { %1959 = vrot.lane.b32.xlu0 %v1443_v29, %s16340_s21  ;;  %v246_v29 = vld [vmem:[%s16705_s28 + $0x28] sm:$0xff] }
 0x992   :  { %1945 = vrot.lane.b32.xlu1 %v16605_v12, %s16342_s23 }
 0x994   :  { %v15864_v13 = vpop.eup %15863 }
 0x995   :  { %v1760_v59 = vmul.f32 %v15864_v13, %v15854_v62 }
 0x996   :  { %1961 = vrot.lane.b32.xlu1 %v16665_v28, %s16340_s21  ;;  %v247_v28 = vld [vmem:[%s16705_s28 + $0x30] sm:$0xff] }
 0x9fa   :  { %v1753_v57 = vpop.xlane.xlu0 %1752 }
 0x9fb   :  { %15865 = vrcp.f32 %v1753_v57 }
 0x9fe   :  { %v1756_v18 = vpop.xlane.xlu1 %1755  ;;  %v1768_v1 = vpop.permute.xlu0 %1767 }
 0x9ff   :  { %15867 = vrcp.f32 %v1756_v18  ;;  %14649 = vmatprep.subr.mxu0 %v1768_v1 }
 0xa00   :  { %14650 = vmatpush3.msra.mxu0 %v1768_v1 }
 0xa02   :  { %v1766_v21 = vpop.permute.xlu1 %1765  ;;  %v1944_v42 = vpop.permute.xlu0 %1943 }
 0xa03   :  { %14651 = vmatprep.subr.mxu0 %v1766_v21 }
 0xa04   :  { %14652 = vmatpush3.msra.mxu0 %v1766_v21 }
 0xa05   :  { %14654 = vmatmul.mubr.msk.f32.vlgmr.msra.gmra.mxu0 %vm356_vm1, %v1760_v59  ;;  %14663 = vmatprep.subr.mxu0 %v248_v58  ;;  %v2152_v59 = vld [vmem:[%s16773_s2 + $0x38] sm:$0xff] }
 0xa06   :  { %v1855_v12 = vpop.permute.xlu1 %1854  ;;  %14664 = vmatpush3.msra.mxu0 %v248_v58  ;;  %v1960_v44 = vpop.permute.xlu0 %1959  ;;  %v2145_v58 = vld [vmem:[%s16773_s2] sm:$0xff] }
 0xa07   :  { %14656 = vmatprep.subr.mxu1 %v1855_v12  ;;  %14665 = vmatprep.subr.mxu0 %v247_v28 }
 0xa08   :  { %v15866_v24 = vpop.eup %15865  ;;  %14657 = vmatpush3.msra.mxu1 %v1855_v12  ;;  %14666 = vmatpush3.msra.mxu0 %v247_v28  ;;  %v2151_v12 = vld [vmem:[%s16773_s2 + $0x30] sm:$0xff]  ;;  %v2168_v28 = vld [vmem:[%s16787_s6 + $0x78] sm:$0xff] }
 0xa09   :  { %v1762_v25 = vmul.f32 %v15866_v24, %v15858_v9  ;;  %14667 = vmatprep.subr.mxu0 %v246_v29  ;;  %v2150_v24 = vld [vmem:[%s16773_s2 + $0x28] sm:$0xff] }
 0xa0a   :  { %v1853_v26 = vpop.permute.xlu1 %1852  ;;  %14668 = vmatpush3.msra.mxu0 %v246_v29  ;;  %v2167_v29 = vld [vmem:[%s16787_s6 + $0x70] sm:$0xff] }
 0xa0b   :  { %14658 = vmatprep.subr.mxu1 %v1853_v26  ;;  %14660 = vmatprep.mubr.msk.f32.mxu1 %vm356_vm1, %v1762_v25  ;;  %v2149_v25 = vld [vmem:[%s16773_s2 + $0x20] sm:$0xff] }
 0xa0c   :  { %v15868_v27 = vpop.eup %15867  ;;  %14659 = vmatpush3.msra.mxu1 %v1853_v26  ;;  %14669 = vmatprep.subr.mxu0 %v245_v30  ;;  %v2148_v26 = vld [vmem:[%s16773_s2 + $0x18] sm:$0xff] }
 0xa0d   :  { %v1764_v60 = vmul.f32 %v15868_v27, %v15860_v11  ;;  %14670 = vmatpush3.msra.mxu0 %v245_v30  ;;  %14685 = vmatprep.subr.mxu1 %v2152_v59  ;;  %v2147_v27 = vld [vmem:[%s16773_s2 + $0x10] sm:$0xff]  ;;  %v2166_v30 = vld [vmem:[%s16787_s6 + $0x68] sm:$0xff] }
 0xa0e   :  { %14671 = vmatprep.subr.mxu0 %v244_v31  ;;  %v1946_v41 = vpop.permute.xlu1 %1945 }
 0xa0f   :  { %14661 = vmatmul.mubr.msk.f32.vlgmr.msra.gmra.mxu1 %vm356_vm1, %v1764_v60  ;;  %14672 = vmatpush3.msra.mxu0 %v244_v31  ;;  %v1988_v46 = vsel %vm356_vm1, %v16545_v15, %v1946_v41  ;;  %v2146_v60 = vld [vmem:[%s16773_s2 + $0x8] sm:$0xff]  ;;  %v2165_v31 = vld [vmem:[%s16787_s6 + $0x60] sm:$0xff] }
 0xa10   :  { %14673 = vmatprep.subr.mxu0 %v243_v33  ;;  %14686 = vmatpush3.msra.mxu1 %v2152_v59  ;;  %v2157_v41 = vld [vmem:[%s16787_s6 + $0x20] sm:$0xff] }
 0xa11   :  { %14674 = vmatpush3.msra.mxu0 %v243_v33  ;;  %14687 = vmatprep.subr.mxu1 %v2151_v12  ;;  %v2164_v33 = vld [vmem:[%s16787_s6 + $0x58] sm:$0xff] }
 0xa12   :  { %14675 = vmatprep.subr.mxu0 %v242_v35  ;;  %v1962_v43 = vpop.permute.xlu1 %1961  ;;  %14688 = vmatpush3.msra.mxu1 %v2151_v12 }
 0xa13   :  { %14676 = vmatpush3.msra.mxu0 %v242_v35  ;;  %v1993_v48 = vsel %vm1991_vm2, %v1988_v46, %v1962_v43  ;;  %14689 = vmatprep.subr.mxu1 %v2150_v24  ;;  %v2163_v35 = vld [vmem:[%s16787_s6 + $0x50] sm:$0xff] }
 0xa14   :  { %14677 = vmatprep.subr.mxu0 %v241_v36  ;;  %14690 = vmatpush3.msra.mxu1 %v2150_v24 }
 0xa15   :  { %14678 = vmatpush3.msra.mxu0 %v241_v36  ;;  %14691 = vmatprep.subr.mxu1 %v2149_v25  ;;  %v2162_v36 = vld [vmem:[%s16787_s6 + $0x48] sm:$0xff] }
 0xa16   :  { %14692 = vmatpush3.msra.mxu1 %v2149_v25  ;;  %14707 = vmatprep.subr.mxu0 %v2168_v28 }
 0xa17   :  { %14693 = vmatprep.subr.mxu1 %v2148_v26 }
 0xa18   :  { %14694 = vmatpush3.msra.mxu1 %v2148_v26 }
 0xa19   :  { %14695 = vmatprep.subr.mxu1 %v2147_v27 }
 0xa1a   :  { %14696 = vmatpush3.msra.mxu1 %v2147_v27 }
 0xa1b   :  { %14697 = vmatprep.subr.mxu1 %v2146_v60 }
 0xa1c   :  { %14698 = vmatpush3.msra.mxu1 %v2146_v60 }
 0xa1d   :  { %14699 = vmatprep.subr.mxu1 %v2145_v58 }
 0xa1e   :  { %14700 = vmatpush3.msra.mxu1 %v2145_v58 }
 0xac5   :  { %v14655_v37 = vpop.f32.mrf.mxu0 }
 0xac6   :  { %1977 = vrot.lane.b32.xlu1 %v14655_v37, %s16338_s19  ;;  %v2161_v37 = vld [vmem:[%s16787_s6 + $0x40] sm:$0xff] }
 0xac7   :  { %v1843_v38 = vpop.f32.mrf.mxu0 }
 0xac8   :  { %1975 = vrot.lane.b32.xlu0 %v1843_v38, %s16338_s19  ;;  %v2160_v38 = vld [vmem:[%s16787_s6 + $0x38] sm:$0xff] }
 0xaca   :  { %1949 = vrot.lane.b32.xlu1 %v16613_v32, %s16342_s23 }
 0xacc   :  { %1947 = vrot.lane.b32.xlu0 %v16615_v34, %s16342_s23  ;;  %v1987_v34 = vsel %vm356_vm1, %v16551_v19, %v1944_v42  ;;  %v2156_v42 = vld [vmem:[%s16787_s6 + $0x18] sm:$0xff] }
 0xace   :  { %1965 = vrot.lane.b32.xlu1 %v16671_v45, %s16340_s21  ;;  %v1992_v45 = vsel %vm1991_vm2, %v1987_v34, %v1960_v44 }
 0xacf   :  { %v14662_v39 = vpop.f32.mrf.mxu1 }
 0xad0   :  { %1963 = vrot.lane.b32.xlu0 %v16673_v47, %s16340_s21 }
 0xad1   :  { %v1930_v40 = vpop.f32.mrf.mxu1 }
 0xad2   :  { %1981 = vrot.lane.b32.xlu1 %v14662_v39, %s16338_s19  ;;  %v2159_v39 = vld [vmem:[%s16787_s6 + $0x30] sm:$0xff] }
 0xad4   :  { %1979 = vrot.lane.b32.xlu0 %v1930_v40, %s16338_s19  ;;  %v2158_v40 = vld [vmem:[%s16787_s6 + $0x28] sm:$0xff] }
 0xb38   :  { %v1978_v32 = vpop.permute.xlu1 %1977 }
 0xb39   :  { %v1998_v50 = vsel %vm1996_vm3, %v1993_v48, %v1978_v32 }
 0xb3a   :  { %v1976_v47 = vpop.permute.xlu0 %1975 }
 0xb3b   :  { %v1997_v49 = vsel %vm1996_vm3, %v1992_v45, %v1976_v47 }
 0xb3c   :  { %v1950_v51 = vpop.permute.xlu1 %1949  ;;  %14679 = vmatprep.mubr.msk.f32.mxu0 %vm185_vm0, %v1997_v49 }
 0xb3d   :  { %14680 = vmatmul.mubr.msk.f32.vlgmr.msra.gmra.mxu0 %vm185_vm0, %v1998_v50  ;;  %v1990_v62 = vsel %vm356_vm1, %v16553_v22, %v1950_v51 }
 0xb3e   :  { %v1948_v19 = vpop.permute.xlu0 %1947  ;;  %14708 = vmatpush3.msra.mxu0 %v2168_v28 }
 0xb3f   :  { %v1989_v15 = vsel %vm356_vm1, %v16555_v23, %v1948_v19  ;;  %v16277_v23 = vld [vmem:[%s16379_s5 + $0x8] sm:$0xff]  ;;  %14709 = vmatprep.subr.mxu0 %v2167_v29  ;;  %s16369_s5 = smov 27  }
 0xb40   :  { %v1966_v52 = vpop.permute.xlu1 %1965  ;;  %14710 = vmatpush3.msra.mxu0 %v2167_v29 }
 0xb41   :  { %v1995_v56 = vsel %vm1991_vm2, %v1990_v62, %v1966_v52  ;;  %14711 = vmatprep.subr.mxu0 %v2166_v30 }
 0xb42   :  { %v1964_v53 = vpop.permute.xlu0 %1963  ;;  %14712 = vmatpush3.msra.mxu0 %v2166_v30 }
 0xb43   :  { %v1994_v63 = vsel %vm1991_vm2, %v1989_v15, %v1964_v53  ;;  %14713 = vmatprep.subr.mxu0 %v2165_v31 }
 0xb44   :  { %v1982_v61 = vpop.permute.xlu1 %1981  ;;  %14714 = vmatpush3.msra.mxu0 %v2165_v31 }
 0xb45   :  { %v2000_v2 = vsel %vm1996_vm3, %v1995_v56, %v1982_v61  ;;  %14715 = vmatprep.subr.mxu0 %v2164_v33  ;;  %v13437_v61 = vld [vmem:[%s16805_s11] ss:$0 sm:$0xff] }
 0xb46   :  { %v1980_v0 = vpop.permute.xlu0 %1979  ;;  %14716 = vmatpush3.msra.mxu0 %v2164_v33  ;;  %v13457_v33 = vld [vmem:[%s16408_s9 + $0xe8] sm:$0xff] }
 0xb47   :  { %v1999_v54 = vsel %vm1996_vm3, %v1994_v63, %v1980_v0  ;;  %14717 = vmatprep.subr.mxu0 %v2163_v35 }
 0xb48   :  { %14682 = vmatprep.mubr.msk.f32.mxu0 %vm185_vm0, %v1999_v54  ;;  %14718 = vmatpush3.msra.mxu0 %v2163_v35  ;;  %v13456_v35 = vld [vmem:[%s16408_s9 + $0xe0] sm:$0xff] }
 0xb49   :  { %14683 = vmatmul.mubr.msk.f32.gmra.mxu0 %vm185_vm0, %v2000_v2  ;;  %14719 = vmatprep.subr.mxu0 %v2162_v36 }
 0xb4a   :  { %14720 = vmatpush3.msra.mxu0 %v2162_v36  ;;  %v13455_v36 = vld [vmem:[%s16408_s9 + $0xd8] sm:$0xff] }
 0xb4b   :  { %14721 = vmatprep.subr.mxu0 %v2161_v37 }
 0xb4c   :  { %14722 = vmatpush3.msra.mxu0 %v2161_v37  ;;  %v13454_v37 = vld [vmem:[%s16408_s9 + $0xd0] sm:$0xff] }
 0xb4d   :  { %14723 = vmatprep.subr.mxu0 %v2160_v38 }
 0xb4e   :  { %14724 = vmatpush3.msra.mxu0 %v2160_v38  ;;  %v13453_v38 = vld [vmem:[%s16408_s9 + $0xc8] sm:$0xff] }
 0xb4f   :  { %14725 = vmatprep.subr.mxu0 %v2159_v39 }
 0xb50   :  { %14726 = vmatpush3.msra.mxu0 %v2159_v39  ;;  %v13452_v39 = vld [vmem:[%s16408_s9 + $0xc0] sm:$0xff] }
 0xb51   :  { %14727 = vmatprep.subr.mxu0 %v2158_v40 }
 0xb52   :  { %14728 = vmatpush3.msra.mxu0 %v2158_v40  ;;  %v13451_v40 = vld [vmem:[%s16408_s9 + $0xb8] sm:$0xff] }
 0xb53   :  { %14729 = vmatprep.subr.mxu0 %v2157_v41 }
 0xb54   :  { %14730 = vmatpush3.msra.mxu0 %v2157_v41  ;;  %v13450_v41 = vld [vmem:[%s16408_s9 + $0xb0] sm:$0xff] }
 0xb55   :  { %14731 = vmatprep.subr.mxu0 %v2156_v42 }
 0xb56   :  { %14732 = vmatpush3.msra.mxu0 %v2156_v42  ;;  %v13449_v42 = vld [vmem:[%s16408_s9 + $0xa8] sm:$0xff] }
 0xbfd   :  { %v14681_v3 = vpop.f32.mrf.mxu0 }
 0xbfe   :  { %v16748_v4 = vadd.f32 %v16277_v23, %v14681_v3 }
 0xbff   :  { %v2079_v22 = vpop.f32.mrf.mxu0 }
 0xc00   :  { %v16751_v6 = vadd.f32 %v16278_v5, %v2079_v22  ;;  %v2104_v7 = vmul.f32 %v16748_v4, %v16748_v4  ;;  %v2155_v5 = vld [vmem:[%s16787_s6 + $0x10] sm:$0xff] }
 0xc01   :  { %14733 = vmatprep.subr.mxu0 %v2155_v5 }
 0xc02   :  { %v2110_v8 = vsel %vm185_vm0, %v2104_v7, 0.0  ;;  %v2103_v9 = vmul.f32 %v16751_v6, %v16751_v6  ;;  %14734 = vmatpush3.msra.mxu0 %v2155_v5  ;;  %v2154_v7 = vld [vmem:[%s16787_s6 + $0x8] sm:$0xff] }
 0xc03   :  { %2111 = vadd.xlane.f32.xlu1 %v2110_v8  ;;  %v2153_v8 = vld [vmem:[%s16787_s6] sm:$0xff]  ;;  %14735 = vmatprep.subr.mxu0 %v2154_v7 }
 0xc04   :  { %v2107_v10 = vsel %vm185_vm0, %v2103_v9, 0.0  ;;  %14736 = vmatpush3.msra.mxu0 %v2154_v7 }
 0xc05   :  { %2108 = vadd.xlane.f32.xlu0 %v2107_v10  ;;  %14737 = vmatprep.subr.mxu0 %v2153_v8 }
 0xc06   :  { %14738 = vmatpush3.msra.mxu0 %v2153_v8 }
 0xc09   :  { %v14684_v11 = vpop.f32.mrf.mxu0 }
 0xc0a   :  { %v16760_v17 = vadd.f32 %v16279_v16, %v14684_v11 }
 0xc0b   :  { %v2089_v14 = vpop.f32.mrf.mxu0 }
 0xc0c   :  { %v16763_v57 = vadd.f32 %v16280_v55, %v2089_v14  ;;  %v2106_v13 = vmul.f32 %v16760_v17, %v16760_v17 }
 0xc0e   :  { %v2105_v18 = vmul.f32 %v16763_v57, %v16763_v57  ;;  %v2116_v21 = vsel %vm185_vm0, %v2106_v13, 0.0 }
 0xc10   :  { %v2113_v1 = vsel %vm185_vm0, %v2105_v18, 0.0 }
 0xc11   :  { %2114 = vadd.xlane.f32.xlu0 %v2113_v1 }
 0xc15   :  { %2117 = vadd.xlane.f32.xlu0 %v2116_v21 }
 0xc8c   :  { %v2112_v43 = vpop.xlane.xlu1 %2111 }
 0xc8d   :  { %v2120_v44 = vmul.f32 0.015625, %v2112_v43  ;;  %v13448_v43 = vld [vmem:[%s16408_s9 + $0xa0] sm:$0xff] }
 0xc8e   :  { %v2109_v32 = vpop.xlane.xlu0 %2108 }
 0xc8f   :  { %v2124_v34 = vadd.f32 1e-06, %v2120_v44  ;;  %v2119_v45 = vmul.f32 0.015625, %v2109_v32  ;;  %v13447_v44 = vld [vmem:[%s16408_s9 + $0x98] sm:$0xff]  ;;  %v13446_v32 = vld [vmem:[%s16408_s9 + $0x90] sm:$0xff] }
 0xc91   :  { %15869 = vrsqrt.f32 %v2124_v34  ;;  %v2123_v46 = vadd.f32 1e-06, %v2119_v45  ;;  %v13445_v34 = vld [vmem:[%s16408_s9 + $0x88] sm:$0xff]  ;;  %v13444_v45 = vld [vmem:[%s16408_s9 + $0x80] sm:$0xff] }
 0xc93   :  { %15871 = vrsqrt.f32 %v2123_v46 }
 0xc9a   :  { %v2115_v47 = vpop.xlane.xlu0 %2114 }
 0xc9b   :  { %v2121_v48 = vmul.f32 0.015625, %v2115_v47 }
 0xc9d   :  { %v2125_v49 = vadd.f32 1e-06, %v2121_v48 }
 0xc9e   :  { %v15870_v50 = vpop.eup %15869  ;;  %v2118_v51 = vpop.xlane.xlu0 %2117 }
 0xc9f   :  { %15873 = vrsqrt.f32 %v2125_v49  ;;  %v2122_v19 = vmul.f32 0.015625, %v2118_v51  ;;  %v2132_v53 = vmul.f32 %v15870_v50, %v16748_v4 }
 0xca0   :  { %v15872_v52 = vpop.eup %15871 }
 0xca1   :  { %v2126_v15 = vadd.f32 1e-06, %v2122_v19  ;;  %v2131_v62 = vmul.f32 %v15872_v52, %v16751_v6  ;;  %v2142_v0 = vmul.f32 %v13437_v61, %v2132_v53 }
 0xca3   :  { %15875 = vrsqrt.f32 %v2126_v15  ;;  %v2141_v63 = vmul.f32 %v13437_v61, %v2131_v62 }
 0xca5   :  { %14701 = vmatprep.mubr.msk.f32.mxu1 %vm185_vm0, %v2141_v63 }
 0xca6   :  { %14702 = vmatmul.mubr.msk.f32.vlgmr.msra.gmra.mxu1 %vm185_vm0, %v2142_v0 }
 0xcac   :  { %v15874_v56 = vpop.eup %15873 }
 0xcad   :  { %v2133_v54 = vmul.f32 %v15874_v56, %v16763_v57 }
 0xcaf   :  { %v2143_v2 = vmul.f32 %v13437_v61, %v2133_v54  ;;  %v13443_v54 = vld [vmem:[%s16430_s13 + $0x1] ss:$0 sm:$0xff]  ;;  %s16358_s13 = smov 21  }
 0xcb0   :  { %v15876_v3 = vpop.eup %15875 }
 0xcb1   :  { %14704 = vmatprep.mubr.msk.f32.mxu1 %vm185_vm0, %v2143_v2  ;;  %v2134_v23 = vmul.f32 %v15876_v3, %v16760_v17 }
 0xcb3   :  { %v2144_v22 = vmul.f32 %v13437_v61, %v2134_v23 }
 0xcb5   :  { %14705 = vmatmul.mubr.msk.f32.gmra.mxu1 %vm185_vm0, %v2144_v22 }
 0xcb6   :  { %2505 = vmatprep.mubr.f32.mxu1 %v16334_v20 }
 0xd66   :  { %v14703_v9 = vpop.f32.mrf.mxu1 }
 0xd67   :  { %v2267_v14 = vmax.f32 %v14703_v9, 0.0 }
 0xd68   :  { %v2247_v10 = vpop.f32.mrf.mxu1 }
 0xd69   :  { %v2266_v11 = vmax.f32 %v2247_v10, 0.0 }
 0xd6b   :  { %14739 = vmatprep.mubr.f32.mxu0 %v2266_v11 }
 0xd6c   :  { %14740 = vmatmul.mubr.f32.vlgmr.msra.gmra.mxu0 %v2267_v14 }
 0xd75   :  { %v14706_v16 = vpop.f32.mrf.mxu1 }
 0xd76   :  { %v2269_v1 = vmax.f32 %v14706_v16, 0.0 }
 0xd77   :  { %v2257_v55 = vpop.f32.mrf.mxu1 }
 0xd78   :  { %v2268_v18 = vmax.f32 %v2257_v55, 0.0 }
 0xd7a   :  { %14742 = vmatprep.mubr.f32.mxu0 %v2268_v18 }
 0xd7b   :  { %14743 = vmatmul.mubr.f32.gmra.mxu0 %v2269_v1 }
 0xe2c   :  { %v14741_v13 = vpop.f32.mrf.mxu0 }
 0xe2d   :  { %v16821_v21 = vadd.f32 %v14741_v13, %v16748_v4 }
 0xe2e   :  { %v2336_v59 = vpop.f32.mrf.mxu0 }
 0xe2f   :  { %v16824_v12 = vadd.f32 %v2336_v59, %v16751_v6  ;;  %v2362_v24 = vmul.f32 %v16821_v21, %v16821_v21 }
 0xe31   :  { %v2368_v25 = vsel %vm185_vm0, %v2362_v24, 0.0  ;;  %v2361_v26 = vmul.f32 %v16824_v12, %v16824_v12 }
 0xe32   :  { %2369 = vadd.xlane.f32.xlu1 %v2368_v25 }
 0xe33   :  { %v2365_v27 = vsel %vm185_vm0, %v2361_v26, 0.0 }
 0xe34   :  { %2366 = vadd.xlane.f32.xlu0 %v2365_v27 }
 0xe3b   :  { %v14744_v4 = vpop.f32.mrf.mxu0 }
 0xe3c   :  { %v16833_v6 = vadd.f32 %v14744_v4, %v16760_v17  ;;  %v13459_v17 = vld [vmem:[%s16408_s9 + $0xf8] sm:$0xff] }
 0xe3d   :  { %v2346_v60 = vpop.f32.mrf.mxu0  ;;  %2457 = vmatprep.subr.mxu1 %v13459_v17 }
 0xe3e   :  { %v16836_v58 = vadd.f32 %v2346_v60, %v16763_v57  ;;  %v2364_v28 = vmul.f32 %v16833_v6, %v16833_v6  ;;  %v13458_v57 = vld [vmem:[%s16408_s9 + $0xf0] sm:$0xff]  ;;  %v16281_v60 = vld [vmem:[%s16492_s18 + $0x8] sm:$0xff]  ;;  %s16348_s9 = smov 1  }
 0xe3f   :  { %2458 = vmatpush1.msra.mxu1 %v13458_v57  ;;  %s17161_s15 = sld [smem:[%s18918_s0 + %s16348_s9]]  }
 0xe40   :  { %v2374_v29 = vsel %vm185_vm0, %v2364_v28, 0.0  ;;  %v2363_v30 = vmul.f32 %v16836_v58, %v16836_v58  ;;  %2459 = vmatprep.subr.mxu1 %v13457_v33  ;;  %s17598_s9 = sld [smem:[%s18918_s0 + %s16353_s8]]   ;;  %s16357_s8 = smov 19  }
 0xe41   :  { %2375 = vadd.xlane.f32.xlu1 %v2374_v29  ;;  %2460 = vmatpush1.msra.mxu1 %v13456_v35  ;;  %s17969_s12 = sld [smem:[%s18918_s0 + %s16357_s8]]  }
 0xe42   :  { %v2371_v31 = vsel %vm185_vm0, %v2363_v30, 0.0  ;;  %2461 = vmatprep.subr.mxu1 %v13455_v36  ;;  %v16282_v30 = vld [vmem:[%s16492_s18] sm:$0xff] }
 0xe43   :  { %2372 = vadd.xlane.f32.xlu0 %v2371_v31  ;;  %2462 = vmatpush1.msra.mxu1 %v13454_v37  ;;  %v16283_v36 = vld [vmem:[%s16492_s18 + $0x40] sm:$0xff] }
 0xe44   :  { %2463 = vmatprep.subr.mxu1 %v13453_v38  ;;  %v16284_v38 = vld [vmem:[%s16492_s18 + $0x48] sm:$0xff] }
 0xe45   :  { %2464 = vmatpush1.msra.mxu1 %v13452_v39 }
 0xe46   :  { %2465 = vmatprep.subr.mxu1 %v13451_v40 }
 0xe47   :  { %2466 = vmatpush1.msra.mxu1 %v13450_v41 }
 0xe48   :  { %2467 = vmatprep.subr.mxu1 %v13449_v42 }
 0xe49   :  { %2468 = vmatpush1.msra.mxu1 %v13448_v43 }
 0xe4a   :  { %2469 = vmatprep.subr.mxu1 %v13447_v44 }
 0xe4b   :  { %2470 = vmatpush1.msra.mxu1 %v13446_v32 }
 0xe4c   :  { %2471 = vmatprep.subr.mxu1 %v13445_v34 }
 0xe4d   :  { %2472 = vmatpush1.msra.mxu1 %v13444_v45 }
 0xebb   :  { %v2370_v46 = vpop.xlane.xlu1 %2369 }
 0xebc   :  { %v2378_v47 = vmul.f32 0.015625, %v2370_v46 }
 0xebd   :  { %v2367_v48 = vpop.xlane.xlu0 %2366 }
 0xebe   :  { %v2382_v49 = vadd.f32 1e-06, %v2378_v47  ;;  %v2377_v50 = vmul.f32 0.015625, %v2367_v48 }
 0xec0   :  { %v2381_v51 = vadd.f32 1e-06, %v2377_v50  ;;  %15877 = vrsqrt.f32 %v2382_v49 }
 0xec2   :  { %15879 = vrsqrt.f32 %v2381_v51 }
 0xeca   :  { %v2376_v19 = vpop.xlane.xlu1 %2375 }
 0xecb   :  { %v2380_v52 = vmul.f32 0.015625, %v2376_v19 }
 0xecc   :  { %v2373_v53 = vpop.xlane.xlu0 %2372 }
 0xecd   :  { %v2384_v15 = vadd.f32 1e-06, %v2380_v52  ;;  %v2379_v61 = vmul.f32 0.015625, %v2373_v53  ;;  %v15878_v62 = vpop.eup %15877 }
 0xece   :  { %v2390_v3 = vmul.f32 %v15878_v62, %v16821_v21 }
 0xecf   :  { %v15880_v63 = vpop.eup %15879  ;;  %v2383_v0 = vadd.f32 1e-06, %v2379_v61  ;;  %15881 = vrsqrt.f32 %v2384_v15 }
 0xed0   :  { %v2389_v56 = vmul.f32 %v15880_v63, %v16824_v12  ;;  %v2400_v23 = vmul.f32 %v13443_v54, %v2390_v3 }
 0xed1   :  { %15883 = vrsqrt.f32 %v2383_v0 }
 0xed2   :  { %v2399_v2 = vmul.f32 %v13443_v54, %v2389_v56 }
 0xed4   :  { %13468 = vmatmul.mubr.msk.f32.vlgmr.msra.gmra.mxu1 %vm185_vm0, %v2399_v2 }
 0xed5   :  { %2511 = vmatprep.mubr.f32.mxu1 %v16334_v20 }
 0xed8   :  { %13469 = vmatmul.mubr.msk.f32.gmra.mxu1 %vm185_vm0, %v2400_v23 }
 0xed9   :  { %2517 = vmatprep.mubr.f32.mxu1 %v16334_v20 }
 0xedc   :  { %v15882_v22 = vpop.eup %15881 }
 0xedd   :  { %v2392_v9 = vmul.f32 %v15882_v22, %v16833_v6 }
 0xede   :  { %v15884_v5 = vpop.eup %15883 }
 0xedf   :  { %v2391_v7 = vmul.f32 %v15884_v5, %v16836_v58  ;;  %v2402_v10 = vmul.f32 %v13443_v54, %v2392_v9 }
 0xee1   :  { %v2401_v8 = vmul.f32 %v13443_v54, %v2391_v7 }
 0xee3   :  { %13470 = vmatmul.mubr.msk.f32.gmra.mxu1 %vm185_vm0, %v2401_v8 }
 0xee4   :  { %2523 = vmatprep.mubr.f32.mxu1 %v16334_v20 }
 0xee7   :  { %13471 = vmatmul.mubr.msk.f32.gmra.mxu1 %vm185_vm0, %v2402_v10 }
 0xf94   :  { %v16872_v11 = vpop.f32.mrf.mxu1 }
 0xf95   :  { %2532 = vrot.lane.b32.xlu1 %v16872_v11, %s16336_s14  ;;  %14749 = vmatprep.mubr.msk.f32.mxu1 %vm356_vm1, %v16872_v11 }
 0xf96   :  { %v16878_v14 = vpop.f32.mrf.mxu1 }
 0xf98   :  { %v16880_v16 = vpop.f32.mrf.mxu1 }
 0xf99   :  { %2534 = vrot.lane.b32.xlu0 %v16880_v16, %s16336_s14 }
 0xf9a   :  { %v16884_v55 = vpop.f32.mrf.mxu1 }
 0xfa3   :  { %v16886_v18 = vpop.f32.mrf.mxu1 }
 0xfa4   :  { %14756 = vmatprep.mubr.msk.f32.mxu0 %vm356_vm1, %v16886_v18 }
 0xfa5   :  { %v16890_v1 = vpop.f32.mrf.mxu1 }
 0xfa7   :  { %v16892_v13 = vpop.f32.mrf.mxu1 }
 0xfa8   :  { %2623 = vrot.lane.b32.xlu1 %v16892_v13, %s16336_s14 }
 0xfa9   :  { %v16907_v25 = vpop.f32.mrf.mxu1 }
 0xfac   :  { %2621 = vrot.lane.b32.xlu1 %v16886_v18, %s16336_s14 }
0x1007   :  { %v2533_v24 = vpop.permute.xlu1 %2532 }
0x100b   :  { %v2535_v59 = vpop.permute.xlu0 %2534 }
0x100c   :  { %14745 = vmatprep.subr.msk.mxu1 %vm356_vm1, %v2535_v59 }
0x100d   :  { %14746 = vmatpush3.xpose.msk.msra.mxu1 %vm356_vm1, %v2535_v59 }
0x100e   :  { %14747 = vmatprep.subr.msk.mxu1 %vm356_vm1, %v2533_v24 }
0x1011   :  { %14748 = vmatpush3.xpose.msk.msra.mxu1 %vm356_vm1, %v2533_v24 }
0x1012   :  { %14759 = vmatprep.subr.mxu1 %v16884_v55 }
0x1014   :  { %14750 = vmatmul.mubr.msk.f32.vlgmr.msra.gmra.mxu1 %vm356_vm1, %v16880_v16 }
0x1015   :  { %14760 = vmatpush3.msra.mxu1 %v16884_v55 }
0x1016   :  { %14761 = vmatprep.subr.mxu1 %v16878_v14 }
0x1017   :  { %14762 = vmatpush3.msra.mxu1 %v16878_v14 }
0x1018   :  { %14766 = vmatprep.subr.mxu1 %v16907_v25 }
0x101a   :  { %v2624_v26 = vpop.permute.xlu1 %2623 }
0x101b   :  { %14752 = vmatprep.subr.msk.mxu0 %vm356_vm1, %v2624_v26 }
0x101c   :  { %14753 = vmatpush3.xpose.msk.msra.mxu0 %vm356_vm1, %v2624_v26 }
0x101e   :  { %v2622_v27 = vpop.permute.xlu1 %2621 }
0x101f   :  { %14754 = vmatprep.subr.msk.mxu0 %vm356_vm1, %v2622_v27 }
0x1020   :  { %14755 = vmatpush3.xpose.msk.msra.mxu0 %vm356_vm1, %v2622_v27 }
0x1023   :  { %14757 = vmatmul.mubr.msk.f32.vlgmr.msra.gmra.mxu0 %vm356_vm1, %v16892_v13 }
0x10d4   :  { %v14751_v4 = vpop.f32.mrf.mxu1 }
0x10d5   :  { %v2616_v28 = vadd.f32 %v16281_v60, %v14751_v4 }
0x10d6   :  { %v2610_v29 = vpop.f32.mrf.mxu1 }
0x10d7   :  { %v2611_v31 = vadd.f32 %v16282_v30, %v2610_v29  ;;  %v2711_v17 = vsel %vm356_vm1, %v2616_v28, -inf }
0x10d8   :  { %2712 = vmax.xlane.f32.xlu1 %v2711_v17  ;;  %v16285_v17 = vld [vmem:[%s16492_s18 + $0x18] sm:$0xff] }
0x10d9   :  { %v2708_v57 = vsel %vm356_vm1, %v2611_v31, -inf }
0x10da   :  { %2709 = vmax.xlane.f32.xlu0 %v2708_v57 }
0x10e3   :  { %v14758_v33 = vpop.f32.mrf.mxu0 }
0x10e4   :  { %v2705_v39 = vadd.f32 %v16284_v38, %v14758_v33 }
0x10e5   :  { %v2699_v35 = vpop.f32.mrf.mxu0 }
0x10e6   :  { %v2700_v37 = vadd.f32 %v16283_v36, %v2699_v35  ;;  %v2717_v41 = vsel %vm356_vm1, %v2705_v39, -inf  ;;  %v16286_v35 = vld [vmem:[%s16492_s18 + $0x10] sm:$0xff] }
0x10e8   :  { %v2714_v40 = vsel %vm356_vm1, %v2700_v37, -inf }
0x10e9   :  { %2715 = vmax.xlane.f32.xlu0 %v2714_v40 }
0x10ed   :  { %2718 = vmax.xlane.f32.xlu0 %v2717_v41 }
0x1161   :  { %v2713_v42 = vpop.xlane.xlu1 %2712 }
0x1162   :  { %v2721_v43 = vsub.f32 %v2616_v28, %v2713_v42 }
0x1163   :  { %v2710_v44 = vpop.xlane.xlu0 %2709 }
0x1164   :  { %v2726_v32 = vmul.f32 1.442695, %v2721_v43  ;;  %v2720_v34 = vsub.f32 %v2611_v31, %v2710_v44 }
0x1166   :  { %15885 = vpow2.f32 %v2726_v32  ;;  %v2724_v45 = vmul.f32 1.442695, %v2720_v34  ;;  %v16287_v32 = vld [vmem:[%s16492_s18 + $0x50] sm:$0xff] }
0x1168   :  { %15887 = vpow2.f32 %v2724_v45  ;;  %v16288_v45 = vld [vmem:[%s16492_s18 + $0x58] sm:$0xff] }
0x1172   :  { %v2716_v50 = vpop.xlane.xlu0 %2715 }
0x1173   :  { %v15886_v46 = vpop.eup %15885  ;;  %v2722_v51 = vsub.f32 %v2700_v37, %v2716_v50 }
0x1174   :  { %v2735_v47 = vsel %vm356_vm1, %v15886_v46, 0.0 }
0x1175   :  { %v15888_v48 = vpop.eup %15887  ;;  %2736 = vadd.xlane.f32.xlu1 %v2735_v47  ;;  %v2728_v52 = vmul.f32 1.442695, %v2722_v51 }
0x1176   :  { %v2732_v49 = vsel %vm356_vm1, %v15888_v48, 0.0  ;;  %v2719_v19 = vpop.xlane.xlu0 %2718 }
0x1177   :  { %2733 = vadd.xlane.f32.xlu0 %v2732_v49  ;;  %v2723_v53 = vsub.f32 %v2705_v39, %v2719_v19  ;;  %15889 = vpow2.f32 %v2728_v52 }
0x1179   :  { %v2730_v15 = vmul.f32 1.442695, %v2723_v53 }
0x117b   :  { %15891 = vpow2.f32 %v2730_v15 }
0x1184   :  { %v15890_v61 = vpop.eup %15889 }
0x1185   :  { %v2738_v62 = vsel %vm356_vm1, %v15890_v61, 0.0 }
0x1186   :  { %2918 = vrot.lane.b32.xlu1 %v16872_v11, %s16338_s19 }
0x1188   :  { %v15892_v63 = vpop.eup %15891 }
0x1189   :  { %v2741_v0 = vsel %vm356_vm1, %v15892_v63, 0.0 }
0x118a   :  { %2914 = vrot.lane.b32.xlu1 %v16872_v11, %s16339_s20 }
0x118d   :  { %2920 = vrot.lane.b32.xlu0 %v16880_v16, %s16338_s19 }
0x118e   :  { %2916 = vrot.lane.b32.xlu1 %v16880_v16, %s16339_s20 }
0x11ac   :  { %2739 = vadd.xlane.f32.xlu0 %v2738_v62 }
0x11b2   :  { %2742 = vadd.xlane.f32.xlu1 %v2741_v0 }
0x11c2   :  { %3011 = vrot.lane.b32.xlu0 %v16892_v13, %s16338_s19 }
0x11c3   :  { %3009 = vrot.lane.b32.xlu1 %v16886_v18, %s16338_s19 }
0x11c6   :  { %3005 = vrot.lane.b32.xlu0 %v16886_v18, %s16339_s20 }
0x11c7   :  { %3007 = vrot.lane.b32.xlu1 %v16892_v13, %s16339_s20 }
0x11fe   :  { %v2737_v56 = vpop.xlane.xlu1 %2736 }
0x11ff   :  { %15893 = vrcp.f32 %v2737_v56 }
0x1200   :  { %v2734_v54 = vpop.xlane.xlu0 %2733 }
0x1201   :  { %15895 = vrcp.f32 %v2734_v54 }
0x1202   :  { %v2919_v2 = vpop.permute.xlu1 %2918 }
0x1204   :  { %v2921_v3 = vpop.permute.xlu0 %2920 }
0x1205   :  { %14773 = vmatprep.subr.msk.mxu0 %vm356_vm1, %v2921_v3 }
0x1206   :  { %v2915_v23 = vpop.permute.xlu1 %2914  ;;  %14774 = vmatpush3.xpose.msk.msra.mxu0 %vm356_vm1, %v2921_v3 }
0x1207   :  { %14775 = vmatprep.subr.msk.mxu0 %vm356_vm1, %v2919_v2  ;;  %14777 = vmatprep.mubr.msk.f32.mxu0 %vm356_vm1, %v2915_v23 }
0x120a   :  { %14776 = vmatpush3.xpose.msk.msra.mxu0 %vm356_vm1, %v2919_v2  ;;  %v2917_v22 = vpop.permute.xlu1 %2916 }
0x120c   :  { %v15894_v5 = vpop.eup %15893 }
0x120d   :  { %14778 = vmatmul.mubr.msk.f32.vlgmr.msra.gmra.mxu0 %vm356_vm1, %v2917_v22  ;;  %v2747_v9 = vmul.f32 %v15894_v5, %v15886_v46 }
0x120e   :  { %v15896_v7 = vpop.eup %15895 }
0x120f   :  { %v2745_v8 = vmul.f32 %v15896_v7, %v15888_v48 }
0x1211   :  { %14763 = vmatprep.mubr.msk.f32.mxu1 %vm356_vm1, %v2745_v8 }
0x1212   :  { %14764 = vmatmul.mubr.msk.f32.vlgmr.msra.gmra.mxu1 %vm356_vm1, %v2747_v9 }
0x1213   :  { %14767 = vmatpush3.msra.mxu1 %v16907_v25 }
0x1214   :  { %14768 = vmatprep.subr.mxu1 %v16890_v1 }
0x1215   :  { %14769 = vmatpush3.msra.mxu1 %v16890_v1 }
0x1235   :  { %v2740_v10 = vpop.xlane.xlu0 %2739 }
0x1236   :  { %15897 = vrcp.f32 %v2740_v10 }
0x1239   :  { %v3012_v59 = vpop.permute.xlu0 %3011 }
0x123a   :  { %14780 = vmatprep.subr.msk.mxu1 %vm356_vm1, %v3012_v59 }
0x123b   :  { %v2743_v24 = vpop.xlane.xlu1 %2742 }
0x123c   :  { %15899 = vrcp.f32 %v2743_v24 }
0x123d   :  { %v3006_v28 = vpop.permute.xlu0 %3005 }
0x123f   :  { %v3010_v29 = vpop.permute.xlu1 %3009 }
0x1243   :  { %v15898_v26 = vpop.eup %15897  ;;  %v3008_v30 = vpop.permute.xlu1 %3007 }
0x1244   :  { %v2749_v27 = vmul.f32 %v15898_v26, %v15890_v61 }
0x1246   :  { %14770 = vmatprep.mubr.msk.f32.mxu1 %vm356_vm1, %v2749_v27 }
0x1249   :  { %v15900_v4 = vpop.eup %15899 }
0x124a   :  { %v2751_v60 = vmul.f32 %v15900_v4, %v15892_v63 }
0x124c   :  { %14771 = vmatmul.mubr.msk.f32.vlgmr.msra.gmra.mxu1 %vm356_vm1, %v2751_v60 }
0x124d   :  { %14781 = vmatpush3.xpose.msk.msra.mxu1 %vm356_vm1, %v3012_v59  ;;  %14784 = vmatprep.mubr.msk.f32.mxu1 %vm356_vm1, %v3006_v28 }
0x124e   :  { %14782 = vmatprep.subr.msk.mxu1 %vm356_vm1, %v3010_v29 }
0x1251   :  { %14783 = vmatpush3.xpose.msk.msra.mxu1 %vm356_vm1, %v3010_v29 }
0x1254   :  { %14785 = vmatmul.mubr.msk.f32.vlgmr.msra.gmra.mxu1 %vm356_vm1, %v3008_v30 }
0x12cd   :  { %v14779_v31 = vpop.f32.mrf.mxu0 }
0x12ce   :  { %v3002_v57 = vadd.f32 %v16285_v17, %v14779_v31 }
0x12cf   :  { %v2996_v33 = vpop.f32.mrf.mxu0 }
0x12d0   :  { %v2997_v36 = vadd.f32 %v16286_v35, %v2996_v33  ;;  %v3099_v37 = vsel %vm356_vm1, %v3002_v57, -inf }
0x12d1   :  { %3100 = vmax.xlane.f32.xlu1 %v3099_v37 }
0x12d2   :  { %v3096_v38 = vsel %vm356_vm1, %v2997_v36, -inf  ;;  %v16968_v39 = vpop.f32.mrf.mxu1 }
0x12d3   :  { %3097 = vmax.xlane.f32.xlu0 %v3096_v38 }
0x12d4   :  { %v16970_v40 = vpop.f32.mrf.mxu1 }
0x130c   :  { %v16972_v41 = vpop.f32.mrf.mxu1 }
0x130e   :  { %v16974_v42 = vpop.f32.mrf.mxu1 }
0x1314   :  { %v14786_v43 = vpop.f32.mrf.mxu1 }
0x1315   :  { %v3093_v46 = vadd.f32 %v16288_v45, %v14786_v43 }
0x1316   :  { %v3087_v44 = vpop.f32.mrf.mxu1 }
0x1317   :  { %v3088_v34 = vadd.f32 %v16287_v32, %v3087_v44  ;;  %v3105_v48 = vsel %vm356_vm1, %v3093_v46, -inf }
0x1319   :  { %v3102_v47 = vsel %vm356_vm1, %v3088_v34, -inf }
0x131a   :  { %3103 = vmax.xlane.f32.xlu0 %v3102_v47 }
0x131e   :  { %3106 = vmax.xlane.f32.xlu0 %v3105_v48 }
0x135a   :  { %v3101_v49 = vpop.xlane.xlu1 %3100 }
0x135b   :  { %v3109_v50 = vsub.f32 %v3002_v57, %v3101_v49  ;;  %v16289_v49 = vld [vmem:[%s16492_s18 + $0x28] sm:$0xff] }
0x135c   :  { %v3098_v51 = vpop.xlane.xlu0 %3097 }
0x135d   :  { %v3114_v19 = vmul.f32 1.442695, %v3109_v50  ;;  %v3108_v52 = vsub.f32 %v2997_v36, %v3098_v51 }
0x135f   :  { %15901 = vpow2.f32 %v3114_v19  ;;  %v3112_v53 = vmul.f32 1.442695, %v3108_v52  ;;  %v16290_v19 = vld [vmem:[%s16492_s18 + $0x20] sm:$0xff] }
0x1361   :  { %15903 = vpow2.f32 %v3112_v53 }
0x136c   :  { %v15902_v15 = vpop.eup %15901 }
0x136d   :  { %v3123_v61 = vsel %vm356_vm1, %v15902_v15, 0.0 }
0x136e   :  { %v15904_v62 = vpop.eup %15903  ;;  %3124 = vadd.xlane.f32.xlu1 %v3123_v61 }
0x136f   :  { %v3120_v63 = vsel %vm356_vm1, %v15904_v62, 0.0 }
0x1370   :  { %3121 = vadd.xlane.f32.xlu0 %v3120_v63 }
0x137f   :  { %3142 = vrot.lane.b32.xlu1 %v16878_v14, %s16339_s20 }
0x1383   :  { %3324 = vrot.lane.b32.xlu1 %v16880_v16, %s16340_s21 }
0x1386   :  { %3144 = vrot.lane.b32.xlu0 %v16884_v55, %s16339_s20 }
0x1387   :  { %3322 = vrot.lane.b32.xlu1 %v16872_v11, %s16340_s21 }
0x138a   :  { %3233 = vrot.lane.b32.xlu0 %v16907_v25, %s16339_s20 }
0x138b   :  { %3318 = vrot.lane.b32.xlu1 %v16872_v11, %s16341_s22 }
0x138e   :  { %3320 = vrot.lane.b32.xlu0 %v16880_v16, %s16341_s22 }
0x138f   :  { %3231 = vrot.lane.b32.xlu1 %v16890_v1, %s16339_s20 }
0x13a3   :  { %v3104_v0 = vpop.xlane.xlu0 %3103 }
0x13a4   :  { %v3110_v56 = vsub.f32 %v3088_v34, %v3104_v0 }
0x13a6   :  { %v3116_v54 = vmul.f32 1.442695, %v3110_v56  ;;  %v16291_v56 = vld [vmem:[%s16492_s18 + $0x60] sm:$0xff] }
0x13a7   :  { %v3107_v2 = vpop.xlane.xlu0 %3106 }
0x13a8   :  { %15905 = vpow2.f32 %v3116_v54  ;;  %v3111_v3 = vsub.f32 %v3093_v46, %v3107_v2  ;;  %v16292_v2 = vld [vmem:[%s16492_s18 + $0x68] sm:$0xff] }
0x13aa   :  { %v3118_v23 = vmul.f32 1.442695, %v3111_v3 }
0x13ac   :  { %15907 = vpow2.f32 %v3118_v23 }
0x13b5   :  { %v15906_v22 = vpop.eup %15905 }
0x13b6   :  { %v3126_v5 = vsel %vm356_vm1, %v15906_v22, 0.0 }
0x13b7   :  { %3127 = vadd.xlane.f32.xlu0 %v3126_v5 }
0x13b9   :  { %v15908_v7 = vpop.eup %15907 }
0x13ba   :  { %v3129_v8 = vsel %vm356_vm1, %v15908_v7, 0.0 }
0x13bb   :  { %3130 = vadd.xlane.f32.xlu1 %v3129_v8 }
0x13cc   :  { %3413 = vrot.lane.b32.xlu1 %v16886_v18, %s16340_s21 }
0x13cd   :  { %3415 = vrot.lane.b32.xlu0 %v16892_v13, %s16340_s21 }
0x13d0   :  { %3411 = vrot.lane.b32.xlu1 %v16892_v13, %s16341_s22 }
0x13d1   :  { %3409 = vrot.lane.b32.xlu0 %v16886_v18, %s16341_s22 }
0x13f7   :  { %v3125_v9 = vpop.xlane.xlu1 %3124 }
0x13f8   :  { %15909 = vrcp.f32 %v3125_v9 }
0x13f9   :  { %v3122_v10 = vpop.xlane.xlu0 %3121 }
0x13fa   :  { %15911 = vrcp.f32 %v3122_v10 }
0x13fb   :  { %v3143_v59 = vpop.permute.xlu1 %3142 }
0x13fd   :  { %v3145_v24 = vpop.permute.xlu0 %3144 }
0x13fe   :  { %14787 = vmatprep.subr.mxu0 %v3145_v24 }
0x13ff   :  { %v3325_v26 = vpop.permute.xlu1 %3324  ;;  %14788 = vmatpush3.msra.mxu0 %v3145_v24 }
0x1400   :  { %14789 = vmatprep.subr.mxu0 %v3143_v59 }
0x1401   :  { %14790 = vmatpush3.msra.mxu0 %v3143_v59  ;;  %v3234_v27 = vpop.permute.xlu0 %3233 }
0x1402   :  { %14794 = vmatprep.subr.mxu1 %v3234_v27  ;;  %14801 = vmatprep.subr.msk.mxu0 %vm356_vm1, %v3325_v26 }
0x1403   :  { %v3323_v4 = vpop.permute.xlu1 %3322  ;;  %14795 = vmatpush3.msra.mxu1 %v3234_v27 }
0x1405   :  { %v15910_v60 = vpop.eup %15909  ;;  %v3321_v57 = vpop.permute.xlu0 %3320 }
0x1406   :  { %v3135_v31 = vmul.f32 %v15910_v60, %v15902_v15 }
0x1407   :  { %v15912_v28 = vpop.eup %15911  ;;  %v3319_v29 = vpop.permute.xlu1 %3318 }
0x1408   :  { %v3133_v30 = vmul.f32 %v15912_v28, %v15904_v62 }
0x140a   :  { %14791 = vmatprep.mubr.msk.f32.mxu0 %vm356_vm1, %v3133_v30 }
0x140b   :  { %v3232_v17 = vpop.permute.xlu1 %3231  ;;  %14792 = vmatmul.mubr.msk.f32.vlgmr.msra.gmra.mxu0 %vm356_vm1, %v3135_v31 }
0x140c   :  { %14802 = vmatpush3.xpose.msk.msra.mxu0 %vm356_vm1, %v3325_v26  ;;  %14796 = vmatprep.subr.mxu1 %v3232_v17 }
0x140d   :  { %14803 = vmatprep.subr.msk.mxu0 %vm356_vm1, %v3323_v4  ;;  %14805 = vmatprep.mubr.msk.f32.mxu0 %vm356_vm1, %v3319_v29 }
0x140e   :  { %14797 = vmatpush3.msra.mxu1 %v3232_v17 }
0x1410   :  { %14804 = vmatpush3.xpose.msk.msra.mxu0 %vm356_vm1, %v3323_v4 }
0x1413   :  { %14806 = vmatmul.mubr.msk.f32.vlgmr.msra.gmra.mxu0 %vm356_vm1, %v3321_v57 }
0x1440   :  { %v3128_v33 = vpop.xlane.xlu0 %3127 }
0x1441   :  { %15913 = vrcp.f32 %v3128_v33 }
0x1444   :  { %v3131_v35 = vpop.xlane.xlu1 %3130  ;;  %v3416_v36 = vpop.permute.xlu0 %3415 }
0x1445   :  { %15915 = vrcp.f32 %v3131_v35  ;;  %14808 = vmatprep.subr.msk.mxu1 %vm356_vm1, %v3416_v36 }
0x1448   :  { %v3410_v32 = vpop.permute.xlu0 %3409  ;;  %v3414_v34 = vpop.permute.xlu1 %3413 }
0x144c   :  { %v3412_v45 = vpop.permute.xlu1 %3411 }
0x144e   :  { %v15914_v37 = vpop.eup %15913 }
0x144f   :  { %v3137_v38 = vmul.f32 %v15914_v37, %v15906_v22 }
0x1451   :  { %14798 = vmatprep.mubr.msk.f32.mxu1 %vm356_vm1, %v3137_v38 }
0x1452   :  { %v15916_v43 = vpop.eup %15915 }
0x1453   :  { %v3139_v44 = vmul.f32 %v15916_v43, %v15908_v7 }
0x1455   :  { %14799 = vmatmul.mubr.msk.f32.vlgmr.msra.gmra.mxu1 %vm356_vm1, %v3139_v44 }
0x1456   :  { %14809 = vmatpush3.xpose.msk.msra.mxu1 %vm356_vm1, %v3416_v36  ;;  %14812 = vmatprep.mubr.msk.f32.mxu1 %vm356_vm1, %v3410_v32 }
0x1457   :  { %14810 = vmatprep.subr.msk.mxu1 %vm356_vm1, %v3414_v34 }
0x145a   :  { %14811 = vmatpush3.xpose.msk.msra.mxu1 %vm356_vm1, %v3414_v34 }
0x145d   :  { %14813 = vmatmul.mubr.msk.f32.vlgmr.msra.gmra.mxu1 %vm356_vm1, %v3412_v45 }
0x14cb   :  { %v17024_v46 = vpop.f32.mrf.mxu0 }
0x14cd   :  { %v17026_v47 = vpop.f32.mrf.mxu0 }
0x14d3   :  { %v14807_v48 = vpop.f32.mrf.mxu0 }
0x14d4   :  { %v3406_v50 = vadd.f32 %v16289_v49, %v14807_v48 }
0x14d5   :  { %v3400_v51 = vpop.f32.mrf.mxu0 }
0x14d6   :  { %v3401_v52 = vadd.f32 %v16290_v19, %v3400_v51  ;;  %v3503_v53 = vsel %vm356_vm1, %v3406_v50, -inf }
0x14d7   :  { %3504 = vmax.xlane.f32.xlu1 %v3503_v53 }
0x14d8   :  { %v3500_v15 = vsel %vm356_vm1, %v3401_v52, -inf }
0x14d9   :  { %3501 = vmax.xlane.f32.xlu0 %v3500_v15 }
0x1515   :  { %v17032_v61 = vpop.f32.mrf.mxu1 }
0x1517   :  { %v17034_v62 = vpop.f32.mrf.mxu1 }
0x151d   :  { %v14814_v63 = vpop.f32.mrf.mxu1 }
0x151e   :  { %v3497_v3 = vadd.f32 %v16292_v2, %v14814_v63 }
0x151f   :  { %v3491_v0 = vpop.f32.mrf.mxu1 }
0x1520   :  { %v3492_v54 = vadd.f32 %v16291_v56, %v3491_v0  ;;  %v3509_v22 = vsel %vm356_vm1, %v3497_v3, -inf }
0x1522   :  { %v3506_v23 = vsel %vm356_vm1, %v3492_v54, -inf }
0x1523   :  { %3507 = vmax.xlane.f32.xlu0 %v3506_v23 }
0x1527   :  { %3510 = vmax.xlane.f32.xlu0 %v3509_v22 }
0x1560   :  { %v3505_v5 = vpop.xlane.xlu1 %3504 }
0x1561   :  { %v3513_v7 = vsub.f32 %v3406_v50, %v3505_v5  ;;  %v16293_v5 = vld [vmem:[%s16492_s18 + $0x38] sm:$0xff] }
0x1562   :  { %v3502_v8 = vpop.xlane.xlu0 %3501 }
0x1563   :  { %v3518_v9 = vmul.f32 1.442695, %v3513_v7  ;;  %v3512_v10 = vsub.f32 %v3401_v52, %v3502_v8 }
0x1565   :  { %15917 = vpow2.f32 %v3518_v9  ;;  %v3516_v59 = vmul.f32 1.442695, %v3512_v10  ;;  %v16294_v9 = vld [vmem:[%s16492_s18 + $0x30] sm:$0xff] }
0x1567   :  { %15919 = vpow2.f32 %v3516_v59 }
0x1572   :  { %v15918_v24 = vpop.eup %15917 }
0x1573   :  { %v3527_v26 = vsel %vm356_vm1, %v15918_v24, 0.0 }
0x1574   :  { %v15920_v27 = vpop.eup %15919  ;;  %3528 = vadd.xlane.f32.xlu1 %v3527_v26 }
0x1575   :  { %v3524_v4 = vsel %vm356_vm1, %v15920_v27, 0.0 }
0x1576   :  { %3525 = vadd.xlane.f32.xlu0 %v3524_v4 }
0x1585   :  { %3544 = vrot.lane.b32.xlu1 %v16878_v14, %s16341_s22 }
0x1589   :  { %3724 = vrot.lane.b32.xlu1 %v16880_v16, %s16342_s23 }
0x158c   :  { %3546 = vrot.lane.b32.xlu0 %v16884_v55, %s16341_s22 }
0x158d   :  { %3722 = vrot.lane.b32.xlu1 %v16872_v11, %s16342_s23 }
0x1590   :  { %3633 = vrot.lane.b32.xlu0 %v16907_v25, %s16341_s22 }
0x1591   :  { %3718 = vrot.lane.b32.xlu1 %v16872_v11, %s16343_s24 }
0x1594   :  { %3720 = vrot.lane.b32.xlu0 %v16880_v16, %s16343_s24 }
0x1595   :  { %3631 = vrot.lane.b32.xlu1 %v16890_v1, %s16341_s22 }
0x15ac   :  { %v3508_v60 = vpop.xlane.xlu0 %3507 }
0x15ad   :  { %v3514_v28 = vsub.f32 %v3492_v54, %v3508_v60 }
0x15af   :  { %v3520_v29 = vmul.f32 1.442695, %v3514_v28  ;;  %v16295_v28 = vld [vmem:[%s16492_s18 + $0x70] sm:$0xff] }
0x15b0   :  { %v3511_v30 = vpop.xlane.xlu0 %3510 }
0x15b1   :  { %15921 = vpow2.f32 %v3520_v29  ;;  %v3515_v31 = vsub.f32 %v3497_v3, %v3511_v30  ;;  %v16296_v30 = vld [vmem:[%s16492_s18 + $0x78] sm:$0xff]  ;;  %s16355_s18 = smov 17  }
0x15b3   :  { %v3522_v17 = vmul.f32 1.442695, %v3515_v31 }
0x15b5   :  { %15923 = vpow2.f32 %v3522_v17 }
0x15be   :  { %v15922_v57 = vpop.eup %15921 }
0x15bf   :  { %v3530_v33 = vsel %vm356_vm1, %v15922_v57, 0.0 }
0x15c0   :  { %3531 = vadd.xlane.f32.xlu0 %v3530_v33 }
0x15c2   :  { %v15924_v35 = vpop.eup %15923 }
0x15c3   :  { %v3533_v11 = vsel %vm356_vm1, %v15924_v35, 0.0 }
0x15c4   :  { %3534 = vadd.xlane.f32.xlu1 %v3533_v11 }
0x15d5   :  { %3813 = vrot.lane.b32.xlu1 %v16886_v18, %s16342_s23 }
0x15d6   :  { %3815 = vrot.lane.b32.xlu0 %v16892_v13, %s16342_s23 }
0x15d9   :  { %3811 = vrot.lane.b32.xlu1 %v16892_v13, %s16343_s24 }
0x15da   :  { %3809 = vrot.lane.b32.xlu0 %v16886_v18, %s16343_s24 }
0x15fd   :  { %v3529_v16 = vpop.xlane.xlu1 %3528 }
0x15fe   :  { %15925 = vrcp.f32 %v3529_v16 }
0x15ff   :  { %v3526_v36 = vpop.xlane.xlu0 %3525 }
0x1600   :  { %15927 = vrcp.f32 %v3526_v36 }
0x1601   :  { %v3545_v37 = vpop.permute.xlu1 %3544 }
0x1603   :  { %v3547_v38 = vpop.permute.xlu0 %3546 }
0x1604   :  { %14815 = vmatprep.subr.mxu0 %v3547_v38 }
0x1605   :  { %v3725_v43 = vpop.permute.xlu1 %3724  ;;  %14816 = vmatpush3.msra.mxu0 %v3547_v38 }
0x1606   :  { %14817 = vmatprep.subr.mxu0 %v3545_v37 }
0x1607   :  { %14818 = vmatpush3.msra.mxu0 %v3545_v37  ;;  %v3634_v44 = vpop.permute.xlu0 %3633 }
0x1608   :  { %14822 = vmatprep.subr.mxu1 %v3634_v44  ;;  %14829 = vmatprep.subr.msk.mxu0 %vm356_vm1, %v3725_v43 }
0x1609   :  { %v3723_v32 = vpop.permute.xlu1 %3722  ;;  %14823 = vmatpush3.msra.mxu1 %v3634_v44 }
0x160b   :  { %v15926_v13 = vpop.eup %15925  ;;  %v3721_v50 = vpop.permute.xlu0 %3720 }
0x160c   :  { %v3539_v48 = vmul.f32 %v15926_v13, %v15918_v24 }
0x160d   :  { %v15928_v34 = vpop.eup %15927  ;;  %v3719_v18 = vpop.permute.xlu1 %3718 }
0x160e   :  { %v3537_v45 = vmul.f32 %v15928_v34, %v15920_v27 }
0x1610   :  { %14819 = vmatprep.mubr.msk.f32.mxu0 %vm356_vm1, %v3537_v45 }
0x1611   :  { %v3632_v49 = vpop.permute.xlu1 %3631  ;;  %14820 = vmatmul.mubr.msk.f32.vlgmr.msra.gmra.mxu0 %vm356_vm1, %v3539_v48 }
0x1612   :  { %14830 = vmatpush3.xpose.msk.msra.mxu0 %vm356_vm1, %v3725_v43  ;;  %14824 = vmatprep.subr.mxu1 %v3632_v49 }
0x1613   :  { %14831 = vmatprep.subr.msk.mxu0 %vm356_vm1, %v3723_v32  ;;  %14833 = vmatprep.mubr.msk.f32.mxu0 %vm356_vm1, %v3719_v18 }
0x1614   :  { %14825 = vmatpush3.msra.mxu1 %v3632_v49 }
0x1616   :  { %14832 = vmatpush3.xpose.msk.msra.mxu0 %vm356_vm1, %v3723_v32 }
0x1619   :  { %14834 = vmatmul.mubr.msk.f32.vlgmr.msra.gmra.mxu0 %vm356_vm1, %v3721_v50 }
0x1649   :  { %v3532_v51 = vpop.xlane.xlu0 %3531 }
0x164a   :  { %15929 = vrcp.f32 %v3532_v51 }
0x164d   :  { %v3535_v19 = vpop.xlane.xlu1 %3534  ;;  %v3816_v52 = vpop.permute.xlu0 %3815 }
0x164e   :  { %15931 = vrcp.f32 %v3535_v19  ;;  %14836 = vmatprep.subr.msk.mxu1 %vm356_vm1, %v3816_v52 }
0x1651   :  { %v3810_v56 = vpop.permute.xlu0 %3809  ;;  %v3814_v54 = vpop.permute.xlu1 %3813 }
0x1655   :  { %v3812_v2 = vpop.permute.xlu1 %3811 }
0x1657   :  { %v15930_v53 = vpop.eup %15929 }
0x1658   :  { %v3541_v15 = vmul.f32 %v15930_v53, %v15922_v57 }
0x165a   :  { %14826 = vmatprep.mubr.msk.f32.mxu1 %vm356_vm1, %v3541_v15 }
0x165b   :  { %v15932_v63 = vpop.eup %15931 }
0x165c   :  { %v3543_v0 = vmul.f32 %v15932_v63, %v15924_v35 }
0x165e   :  { %14827 = vmatmul.mubr.msk.f32.vlgmr.msra.gmra.mxu1 %vm356_vm1, %v3543_v0 }
0x165f   :  { %14837 = vmatpush3.xpose.msk.msra.mxu1 %vm356_vm1, %v3816_v52  ;;  %14840 = vmatprep.mubr.msk.f32.mxu1 %vm356_vm1, %v3810_v56 }
0x1660   :  { %14838 = vmatprep.subr.msk.mxu1 %vm356_vm1, %v3814_v54 }
0x1663   :  { %14839 = vmatpush3.xpose.msk.msra.mxu1 %vm356_vm1, %v3814_v54 }
0x1666   :  { %14841 = vmatmul.mubr.msk.f32.vlgmr.msra.gmra.mxu1 %vm356_vm1, %v3812_v2 }
0x16d1   :  { %v14821_v3 = vpop.f32.mrf.mxu0 }
0x16d3   :  { %v3622_v23 = vpop.f32.mrf.mxu0 }
0x16d9   :  { %v14835_v22 = vpop.f32.mrf.mxu0 }
0x16da   :  { %v3806_v7 = vadd.f32 %v16293_v5, %v14835_v22  ;;  %v13467_v5 = vld [vmem:[%s16705_s28 + $0x78] sm:$0xff] }
0x16db   :  { %v3800_v8 = vpop.f32.mrf.mxu0 }
0x16dc   :  { %v3801_v10 = vadd.f32 %v16294_v9, %v3800_v8  ;;  %v3903_v59 = vsel %vm356_vm1, %v3806_v7, -inf  ;;  %v13465_v8 = vld [vmem:[%s16705_s28 + $0x68] sm:$0xff]  ;;  %v13464_v9 = vld [vmem:[%s16705_s28 + $0x60] sm:$0xff] }
0x16dd   :  { %3904 = vmax.xlane.f32.xlu1 %v3903_v59  ;;  %v13462_v59 = vld [vmem:[%s16705_s28 + $0x50] sm:$0xff] }
0x16de   :  { %v3900_v24 = vsel %vm356_vm1, %v3801_v10, -inf }
0x16df   :  { %3901 = vmax.xlane.f32.xlu0 %v3900_v24  ;;  %v13461_v24 = vld [vmem:[%s16705_s28 + $0x48] sm:$0xff] }
0x171e   :  { %v17088_v26 = vpop.f32.mrf.mxu1 }
0x1720   :  { %v17090_v27 = vpop.f32.mrf.mxu1 }
0x1726   :  { %v14842_v4 = vpop.f32.mrf.mxu1 }
0x1727   :  { %v3897_v31 = vadd.f32 %v16296_v30, %v14842_v4  ;;  %v13460_v4 = vld [vmem:[%s16705_s28 + $0x40] sm:$0xff] }
0x1728   :  { %v3891_v60 = vpop.f32.mrf.mxu1 }
0x1729   :  { %v3892_v29 = vadd.f32 %v16295_v28, %v3891_v60  ;;  %v3909_v57 = vsel %vm356_vm1, %v3897_v31, -inf }
0x172b   :  { %v3906_v17 = vsel %vm356_vm1, %v3892_v29, -inf }
0x172c   :  { %3907 = vmax.xlane.f32.xlu0 %v3906_v17 }
0x1730   :  { %3910 = vmax.xlane.f32.xlu0 %v3909_v57 }
0x1766   :  { %v3905_v33 = vpop.xlane.xlu1 %3904 }
0x1767   :  { %v3913_v35 = vsub.f32 %v3806_v7, %v3905_v33  ;;  %v13466_v7 = vld [vmem:[%s16705_s28 + $0x70] sm:$0xff] }
0x1768   :  { %v3902_v11 = vpop.xlane.xlu0 %3901 }
0x1769   :  { %v3918_v16 = vmul.f32 1.442695, %v3913_v35  ;;  %v3912_v36 = vsub.f32 %v3801_v10, %v3902_v11  ;;  %v13463_v10 = vld [vmem:[%s16705_s28 + $0x58] sm:$0xff]  ;;  %s17641_s28 = sld [smem:[%s18918_s0 + %s16355_s18]]  }
0x176a   :  { %s18033_s18 = sld [smem:[%s18918_s0 + %s16358_s13]]  }
0x176b   :  { %15933 = vpow2.f32 %v3918_v16  ;;  %v3916_v37 = vmul.f32 1.442695, %v3912_v36 }
0x176d   :  { %15935 = vpow2.f32 %v3916_v37 }
0x1778   :  { %v15934_v38 = vpop.eup %15933 }
0x1779   :  { %v3927_v43 = vsel %vm356_vm1, %v15934_v38, 0.0 }
0x177a   :  { %v15936_v44 = vpop.eup %15935  ;;  %3928 = vadd.xlane.f32.xlu1 %v3927_v43 }
0x177b   :  { %v3924_v32 = vsel %vm356_vm1, %v15936_v44, 0.0 }
0x177c   :  { %3925 = vadd.xlane.f32.xlu0 %v3924_v32 }
0x17b5   :  { %v3908_v13 = vpop.xlane.xlu0 %3907 }
0x17b6   :  { %v3914_v34 = vsub.f32 %v3892_v29, %v3908_v13 }
0x17b8   :  { %v3920_v18 = vmul.f32 1.442695, %v3914_v34 }
0x17b9   :  { %v3911_v45 = vpop.xlane.xlu0 %3910 }
0x17ba   :  { %15937 = vpow2.f32 %v3920_v18  ;;  %v3915_v48 = vsub.f32 %v3897_v31, %v3911_v45 }
0x17bc   :  { %v3922_v49 = vmul.f32 1.442695, %v3915_v48 }
0x17be   :  { %15939 = vpow2.f32 %v3922_v49 }
0x17c7   :  { %v15938_v50 = vpop.eup %15937 }
0x17c8   :  { %v3930_v51 = vsel %vm356_vm1, %v15938_v50, 0.0 }
0x17c9   :  { %3931 = vadd.xlane.f32.xlu0 %v3930_v51 }
0x17cb   :  { %v15940_v19 = vpop.eup %15939 }
0x17cc   :  { %v3933_v52 = vsel %vm356_vm1, %v15940_v19, 0.0 }
0x17cd   :  { %3934 = vadd.xlane.f32.xlu1 %v3933_v52 }
0x17de   :  { %3944 = vrot.lane.b32.xlu1 %v16878_v14, %s16343_s24 }
0x17df   :  { %3946 = vrot.lane.b32.xlu0 %v16884_v55, %s16343_s24 }
0x17e2   :  { %4033 = vrot.lane.b32.xlu1 %v16907_v25, %s16343_s24 }
0x17e3   :  { %4122 = vrot.lane.b32.xlu0 %v17026_v47, %s16342_s23 }
0x17e6   :  { %4031 = vrot.lane.b32.xlu1 %v16890_v1, %s16343_s24 }
0x17e7   :  { %4138 = vrot.lane.b32.xlu0 %v3622_v23, %s16340_s21 }
0x17ea   :  { %4124 = vrot.lane.b32.xlu1 %v17024_v46, %s16342_s23 }
0x17ee   :  { %4140 = vrot.lane.b32.xlu1 %v14821_v3, %s16340_s21 }
0x1803   :  { %v3929_v25 = vpop.xlane.xlu1 %3928 }
0x1805   :  { %v3926_v14 = vpop.xlane.xlu0 %3925 }
0x1806   :  { %15941 = vrcp.f32 %v3926_v14  ;;  %v17177_v14 = vld [vmem:[%s17161_s15 + $0x18] sm:$0xff] }
0x1807   :  { %15943 = vrcp.f32 %v3929_v25  ;;  %v4590_v25 = vmul.f32 %v17177_v14, %v17177_v14 }
0x1813   :  { %v15942_v53 = vpop.eup %15941 }
0x1814   :  { %v3937_v55 = vmul.f32 %v15942_v53, %v15936_v44  ;;  %v15944_v1 = vpop.eup %15943 }
0x1815   :  { %v3939_v46 = vmul.f32 %v15944_v1, %v15934_v38 }
0x1816   :  { %14847 = vmatprep.mubr.msk.f32.mxu0 %vm356_vm1, %v3937_v55 }
0x1852   :  { %v3932_v15 = vpop.xlane.xlu0 %3931 }
0x1853   :  { %15945 = vrcp.f32 %v3932_v15  ;;  %v4600_v15 = vsel %vm185_vm0, %v4590_v25, 0.0 }
0x1856   :  { %v3935_v47 = vpop.xlane.xlu1 %3934  ;;  %v3947_v63 = vpop.permute.xlu0 %3946 }
0x1857   :  { %15947 = vrcp.f32 %v3935_v47  ;;  %14843 = vmatprep.subr.mxu0 %v3947_v63 }
0x1858   :  { %14844 = vmatpush3.msra.mxu0 %v3947_v63 }
0x185a   :  { %v3945_v0 = vpop.permute.xlu1 %3944  ;;  %v4123_v17 = vpop.permute.xlu0 %4122 }
0x185b   :  { %14845 = vmatprep.subr.mxu0 %v3945_v0 }
0x185c   :  { %14846 = vmatpush3.msra.mxu0 %v3945_v0 }
0x185d   :  { %14848 = vmatmul.mubr.msk.f32.vlgmr.msra.gmra.mxu0 %vm356_vm1, %v3939_v46  ;;  %14857 = vmatprep.subr.mxu0 %v13467_v5 }
0x185e   :  { %v4034_v56 = vpop.permute.xlu1 %4033  ;;  %14858 = vmatpush3.msra.mxu0 %v13467_v5  ;;  %v4139_v33 = vpop.permute.xlu0 %4138  ;;  %v13531_v5 = vld [vmem:[%s16773_s2 + $0x68] sm:$0xff] }
0x185f   :  { %14850 = vmatprep.subr.mxu1 %v4034_v56  ;;  %14859 = vmatprep.subr.mxu0 %v13466_v7 }
0x1860   :  { %v15946_v54 = vpop.eup %15945  ;;  %14851 = vmatpush3.msra.mxu1 %v4034_v56  ;;  %14860 = vmatpush3.msra.mxu0 %v13466_v7  ;;  %v17196_v56 = vld [vmem:[%s17161_s15] sm:$0xff] }
0x1861   :  { %v3941_v2 = vmul.f32 %v15946_v54, %v15938_v50  ;;  %14861 = vmatprep.subr.mxu0 %v13465_v8 }
0x1862   :  { %v4032_v3 = vpop.permute.xlu1 %4031  ;;  %14862 = vmatpush3.msra.mxu0 %v13465_v8 }
0x1863   :  { %14852 = vmatprep.subr.mxu1 %v4032_v3  ;;  %14854 = vmatprep.mubr.msk.f32.mxu1 %vm356_vm1, %v3941_v2 }
0x1864   :  { %v15948_v23 = vpop.eup %15947  ;;  %14853 = vmatpush3.msra.mxu1 %v4032_v3  ;;  %14863 = vmatprep.subr.mxu0 %v13464_v9  ;;  %v4587_v3 = vmul.f32 %v17196_v56, %v17196_v56 }
0x1865   :  { %v3943_v22 = vmul.f32 %v15948_v23, %v15940_v19  ;;  %14864 = vmatpush3.msra.mxu0 %v13464_v9  ;;  %v17204_v23 = vld [vmem:[%s17161_s15 + $0x10] sm:$0xff] }
0x1866   :  { %14865 = vmatprep.subr.mxu0 %v13463_v10  ;;  %v4125_v31 = vpop.permute.xlu1 %4124  ;;  %v4591_v7 = vsel %vm185_vm0, %v4587_v3, 0.0  ;;  %v4589_v8 = vmul.f32 %v17204_v23, %v17204_v23 }
0x1867   :  { %14855 = vmatmul.mubr.msk.f32.vlgmr.msra.gmra.mxu1 %vm356_vm1, %v3943_v22  ;;  %14866 = vmatpush3.msra.mxu0 %v13463_v10  ;;  %v13530_v10 = vld [vmem:[%s16773_s2 + $0x60] sm:$0xff] }
0x1868   :  { %14867 = vmatprep.subr.mxu0 %v13462_v59  ;;  %v4597_v9 = vsel %vm185_vm0, %v4589_v8, 0.0 }
0x1869   :  { %14868 = vmatpush3.msra.mxu0 %v13462_v59  ;;  %v13529_v59 = vld [vmem:[%s16773_s2 + $0x58] sm:$0xff] }
0x186a   :  { %14869 = vmatprep.subr.mxu0 %v13461_v24  ;;  %v4141_v57 = vpop.permute.xlu1 %4140 }
0x186b   :  { %14870 = vmatpush3.msra.mxu0 %v13461_v24  ;;  %v13528_v24 = vld [vmem:[%s16773_s2 + $0x50] sm:$0xff] }
0x186c   :  { %14871 = vmatprep.subr.mxu0 %v13460_v4 }
0x186d   :  { %14872 = vmatpush3.msra.mxu0 %v13460_v4  ;;  %v13527_v4 = vld [vmem:[%s16773_s2 + $0x48] sm:$0xff] }
0x191d   :  { %v14849_v60 = vpop.f32.mrf.mxu0 }
0x191e   :  { %4156 = vrot.lane.b32.xlu1 %v14849_v60, %s16338_s19  ;;  %v13526_v60 = vld [vmem:[%s16773_s2 + $0x40] sm:$0xff] }
0x191f   :  { %v4022_v28 = vpop.f32.mrf.mxu0 }
0x1920   :  { %4154 = vrot.lane.b32.xlu0 %v4022_v28, %s16338_s19  ;;  %v4644_v28 = vld [vmem:[%s17221_s25 + $0x78] sm:$0xff] }
0x1922   :  { %4128 = vrot.lane.b32.xlu1 %v17032_v61, %s16342_s23 }
0x1924   :  { %4126 = vrot.lane.b32.xlu0 %v17034_v62, %s16342_s23  ;;  %v4166_v62 = vsel %vm356_vm1, %v16970_v40, %v4123_v17  ;;  %v13546_v17 = vld [vmem:[%s16787_s6 + $0xe0] sm:$0xff] }
0x1925   :  { %v4170_v35 = vsel %vm1991_vm2, %v4166_v62, %v4139_v33  ;;  %v13544_v33 = vld [vmem:[%s16787_s6 + $0xd0] sm:$0xff]  ;;  %v13542_v62 = vld [vmem:[%s16787_s6 + $0xc0] sm:$0xff] }
0x1926   :  { %4144 = vrot.lane.b32.xlu1 %v17088_v26, %s16340_s21  ;;  %v4167_v26 = vsel %vm356_vm1, %v16968_v39, %v4125_v31  ;;  %v13547_v31 = vld [vmem:[%s16787_s6 + $0xe8] sm:$0xff] }
0x1927   :  { %v14856_v29 = vpop.f32.mrf.mxu1 }
0x1928   :  { %4142 = vrot.lane.b32.xlu0 %v17090_v27, %s16340_s21  ;;  %v4171_v27 = vsel %vm1991_vm2, %v4167_v26, %v4141_v57  ;;  %v13545_v57 = vld [vmem:[%s16787_s6 + $0xd8] sm:$0xff]  ;;  %v13540_v26 = vld [vmem:[%s16787_s6 + $0xb0] sm:$0xff] }
0x1929   :  { %v4109_v30 = vpop.f32.mrf.mxu1 }
0x192a   :  { %4160 = vrot.lane.b32.xlu1 %v14856_v29, %s16338_s19  ;;  %v13549_v29 = vld [vmem:[%s16787_s6 + $0xf8] sm:$0xff] }
0x192b   :  { %14901 = vmatprep.subr.mxu0 %v13549_v29 }
0x192c   :  { %4158 = vrot.lane.b32.xlu0 %v4109_v30, %s16338_s19  ;;  %v13548_v30 = vld [vmem:[%s16787_s6 + $0xf0] sm:$0xff] }
0x1990   :  { %v4157_v61 = vpop.permute.xlu1 %4156 }
0x1991   :  { %v4175_v36 = vsel %vm1996_vm3, %v4171_v27, %v4157_v61  ;;  %v13543_v61 = vld [vmem:[%s16787_s6 + $0xc8] sm:$0xff]  ;;  %v13538_v27 = vld [vmem:[%s16787_s6 + $0xa0] sm:$0xff] }
0x1992   :  { %v4155_v11 = vpop.permute.xlu0 %4154 }
0x1993   :  { %v4174_v16 = vsel %vm1996_vm3, %v4170_v35, %v4155_v11  ;;  %v13541_v35 = vld [vmem:[%s16787_s6 + $0xb8] sm:$0xff]  ;;  %v13539_v11 = vld [vmem:[%s16787_s6 + $0xa8] sm:$0xff] }
0x1994   :  { %v4129_v37 = vpop.permute.xlu1 %4128  ;;  %14873 = vmatprep.mubr.msk.f32.mxu0 %vm185_vm0, %v4174_v16  ;;  %v13537_v16 = vld [vmem:[%s16787_s6 + $0x98] sm:$0xff] }
0x1995   :  { %14874 = vmatmul.mubr.msk.f32.vlgmr.msra.gmra.mxu0 %vm185_vm0, %v4175_v36  ;;  %v4169_v39 = vsel %vm356_vm1, %v16972_v41, %v4129_v37 }
0x1996   :  { %v4127_v38 = vpop.permute.xlu0 %4126  ;;  %14902 = vmatpush3.msra.mxu0 %v13549_v29  ;;  %v4634_v29 = vld [vmem:[%s17221_s25 + $0x28] sm:$0xff] }
0x1997   :  { %v4168_v44 = vsel %vm356_vm1, %v16974_v42, %v4127_v38  ;;  %v17164_v42 = vld [vmem:[%s17161_s15 + $0x8] sm:$0xff]  ;;  %14903 = vmatprep.subr.mxu0 %v13548_v30 }
0x1998   :  { %v4145_v43 = vpop.permute.xlu1 %4144  ;;  %v4588_v52 = vmul.f32 %v17164_v42, %v17164_v42  ;;  %14904 = vmatpush3.msra.mxu0 %v13548_v30  ;;  %v4633_v30 = vld [vmem:[%s17221_s25 + $0x20] sm:$0xff] }
0x1999   :  { %v4173_v18 = vsel %vm1991_vm2, %v4169_v39, %v4145_v43  ;;  %14905 = vmatprep.subr.mxu0 %v13547_v31 }
0x199a   :  { %v4143_v40 = vpop.permute.xlu0 %4142  ;;  %14906 = vmatpush3.msra.mxu0 %v13547_v31 }
0x199b   :  { %v4172_v13 = vsel %vm1991_vm2, %v4168_v44, %v4143_v40  ;;  %14907 = vmatprep.subr.mxu0 %v13546_v17 }
0x199c   :  { %v4161_v32 = vpop.permute.xlu1 %4160  ;;  %14908 = vmatpush3.msra.mxu0 %v13546_v17  ;;  %v4632_v17 = vld [vmem:[%s17221_s25 + $0x18] sm:$0xff] }
0x199d   :  { %v4177_v48 = vsel %vm1996_vm3, %v4173_v18, %v4161_v32  ;;  %14909 = vmatprep.subr.mxu0 %v13545_v57 }
0x199e   :  { %v4159_v34 = vpop.permute.xlu0 %4158  ;;  %14910 = vmatpush3.msra.mxu0 %v13545_v57 }
0x199f   :  { %v4176_v45 = vsel %vm1996_vm3, %v4172_v13, %v4159_v34  ;;  %14911 = vmatprep.subr.mxu0 %v13544_v33 }
0x19a0   :  { %14876 = vmatprep.mubr.msk.f32.mxu0 %vm185_vm0, %v4176_v45  ;;  %14912 = vmatpush3.msra.mxu0 %v13544_v33  ;;  %v4631_v33 = vld [vmem:[%s17221_s25 + $0x10] sm:$0xff] }
0x19a1   :  { %14877 = vmatmul.mubr.msk.f32.gmra.mxu0 %vm185_vm0, %v4177_v48  ;;  %14913 = vmatprep.subr.mxu0 %v13543_v61 }
0x19a2   :  { %14914 = vmatpush3.msra.mxu0 %v13543_v61 }
0x19a3   :  { %14915 = vmatprep.subr.mxu0 %v13542_v62 }
0x19a4   :  { %14916 = vmatpush3.msra.mxu0 %v13542_v62  ;;  %v4630_v62 = vld [vmem:[%s17221_s25 + $0x8] sm:$0xff] }
0x19a5   :  { %14917 = vmatprep.subr.mxu0 %v13541_v35 }
0x19a6   :  { %14918 = vmatpush3.msra.mxu0 %v13541_v35 }
0x19a7   :  { %14919 = vmatprep.subr.mxu0 %v13540_v26 }
0x19a8   :  { %14920 = vmatpush3.msra.mxu0 %v13540_v26 }
0x19a9   :  { %14921 = vmatprep.subr.mxu0 %v13539_v11 }
0x19aa   :  { %14922 = vmatpush3.msra.mxu0 %v13539_v11  ;;  %v4629_v11 = vld [vmem:[%s17221_s25] sm:$0xff] }
0x19ab   :  { %14923 = vmatprep.subr.mxu0 %v13538_v27 }
0x19ac   :  { %14924 = vmatpush3.msra.mxu0 %v13538_v27 }
0x19ad   :  { %14925 = vmatprep.subr.mxu0 %v13537_v16 }
0x19ae   :  { %14926 = vmatpush3.msra.mxu0 %v13537_v16  ;;  %v13555_v16 = vld [vmem:[%s17255_s29] ss:$0 sm:$0xff] }
0x1a55   :  { %v14875_v41 = vpop.f32.mrf.mxu0 }
0x1a56   :  { %v17167_v49 = vadd.f32 %v14875_v41, %v16821_v21 }
0x1a57   :  { %v4256_v50 = vpop.f32.mrf.mxu0 }
0x1a58   :  { %v17170_v51 = vadd.f32 %v4256_v50, %v16824_v12  ;;  %v4282_v19 = vmul.f32 %v17167_v49, %v17167_v49  ;;  %v4594_v12 = vsel %vm185_vm0, %v4588_v52, 0.0 }
0x1a5a   :  { %v4288_v53 = vsel %vm185_vm0, %v4282_v19, 0.0  ;;  %v4281_v55 = vmul.f32 %v17170_v51, %v17170_v51 }
0x1a5b   :  { %4289 = vadd.xlane.f32.xlu1 %v4288_v53  ;;  %v13525_v53 = vld [vmem:[%s16805_s11 + $0x1] ss:$0 sm:$0xff]  ;;  %s16366_s11 = smov 28  }
0x1a5c   :  { %v4285_v21 = vsel %vm185_vm0, %v4281_v55, 0.0  ;;  %s13377_s16 = sld [smem:[%s18918_s0 + %s16366_s11]]  }
0x1a5d   :  { %4286 = vadd.xlane.f32.xlu0 %v4285_v21 }
0x1a5f   :  { %4595 = vadd.xlane.f32.xlu1 %v4594_v12 }
0x1a61   :  { %v14878_v47 = vpop.f32.mrf.mxu0 }
0x1a62   :  { %v17188_v1 = vadd.f32 %v14878_v47, %v16833_v6  ;;  %v13533_v6 = vld [vmem:[%s16773_s2 + $0x78] sm:$0xff] }
0x1a63   :  { %v4266_v63 = vpop.f32.mrf.mxu0  ;;  %4601 = vadd.xlane.f32.xlu1 %v4600_v15  ;;  %14879 = vmatprep.subr.mxu1 %v13533_v6 }
0x1a64   :  { %v17191_v0 = vadd.f32 %v4266_v63, %v16836_v58  ;;  %v4284_v2 = vmul.f32 %v17188_v1, %v17188_v1  ;;  %v13532_v58 = vld [vmem:[%s16773_s2 + $0x70] sm:$0xff]  ;;  %14880 = vmatpush3.msra.mxu1 %v13533_v6  ;;  %s16356_s2 = smov 4  }
0x1a65   :  { %14881 = vmatprep.subr.mxu1 %v13532_v58 }
0x1a66   :  { %v4283_v46 = vmul.f32 %v17191_v0, %v17191_v0  ;;  %v4294_v22 = vsel %vm185_vm0, %v4284_v2, 0.0  ;;  %14882 = vmatpush3.msra.mxu1 %v13532_v58  ;;  %v4642_v2 = vld [vmem:[%s17221_s25 + $0x68] sm:$0xff]  ;;  %v4641_v58 = vld [vmem:[%s17221_s25 + $0x60] sm:$0xff] }
0x1a67   :  { %14883 = vmatprep.subr.mxu1 %v13531_v5 }
0x1a68   :  { %v4291_v54 = vsel %vm185_vm0, %v4283_v46, 0.0  ;;  %14884 = vmatpush3.msra.mxu1 %v13531_v5  ;;  %v4643_v46 = vld [vmem:[%s17221_s25 + $0x70] sm:$0xff]  ;;  %v4640_v5 = vld [vmem:[%s17221_s25 + $0x58] sm:$0xff] }
0x1a69   :  { %4292 = vadd.xlane.f32.xlu0 %v4291_v54  ;;  %14885 = vmatprep.subr.mxu1 %v13530_v10 }
0x1a6a   :  { %14886 = vmatpush3.msra.mxu1 %v13530_v10  ;;  %v4638_v10 = vld [vmem:[%s17221_s25 + $0x48] sm:$0xff] }
0x1a6b   :  { %14887 = vmatprep.subr.mxu1 %v13529_v59 }
0x1a6c   :  { %14888 = vmatpush3.msra.mxu1 %v13529_v59  ;;  %v4637_v59 = vld [vmem:[%s17221_s25 + $0x40] sm:$0xff] }
0x1a6d   :  { %4295 = vadd.xlane.f32.xlu0 %v4294_v22  ;;  %14889 = vmatprep.subr.mxu1 %v13528_v24 }
0x1a6e   :  { %14890 = vmatpush3.msra.mxu1 %v13528_v24  ;;  %v4636_v24 = vld [vmem:[%s17221_s25 + $0x38] sm:$0xff] }
0x1a6f   :  { %14891 = vmatprep.subr.mxu1 %v13527_v4 }
0x1a70   :  { %14892 = vmatpush3.msra.mxu1 %v13527_v4 }
0x1a71   :  { %4592 = vadd.xlane.f32.xlu0 %v4591_v7  ;;  %14893 = vmatprep.subr.mxu1 %v13526_v60  ;;  %v4639_v7 = vld [vmem:[%s17221_s25 + $0x50] sm:$0xff] }
0x1a72   :  { %14894 = vmatpush3.msra.mxu1 %v13526_v60  ;;  %v4635_v60 = vld [vmem:[%s17221_s25 + $0x30] sm:$0xff] }
0x1a73   :  { %4681 = vmatprep.subr.mxu1 %v4644_v28 }
0x1a75   :  { %4598 = vadd.xlane.f32.xlu0 %v4597_v9 }
0x1ae4   :  { %v4290_v36 = vpop.xlane.xlu1 %4289 }
0x1ae5   :  { %v4298_v37 = vmul.f32 0.015625, %v4290_v36 }
0x1ae6   :  { %v4287_v38 = vpop.xlane.xlu0 %4286 }
0x1ae7   :  { %v4302_v43 = vadd.f32 1e-06, %v4298_v37  ;;  %v4297_v40 = vmul.f32 0.015625, %v4287_v38 }
0x1ae8   :  { %v4596_v39 = vpop.xlane.xlu1 %4595 }
0x1ae9   :  { %15949 = vrsqrt.f32 %v4302_v43  ;;  %v4301_v44 = vadd.f32 1e-06, %v4297_v40  ;;  %v4604_v18 = vmul.f32 0.015625, %v4596_v39 }
0x1aeb   :  { %15951 = vrsqrt.f32 %v4301_v44  ;;  %v4608_v21 = vadd.f32 1e-06, %v4604_v18 }
0x1aec   :  { %v4602_v25 = vpop.xlane.xlu1 %4601 }
0x1aed   :  { %v4606_v3 = vmul.f32 0.015625, %v4602_v25 }
0x1aef   :  { %v4610_v9 = vadd.f32 1e-06, %v4606_v3 }
0x1af2   :  { %v4293_v32 = vpop.xlane.xlu0 %4292 }
0x1af3   :  { %v4299_v13 = vmul.f32 0.015625, %v4293_v32 }
0x1af5   :  { %v4303_v34 = vadd.f32 1e-06, %v4299_v13  ;;  %v13536_v13 = vld [vmem:[%s16787_s6 + $0x90] sm:$0xff] }
0x1af6   :  { %v15950_v45 = vpop.eup %15949  ;;  %v4296_v48 = vpop.xlane.xlu0 %4295  ;;  %14927 = vmatprep.subr.mxu0 %v13536_v13 }
0x1af7   :  { %15953 = vrsqrt.f32 %v4303_v34  ;;  %v4300_v41 = vmul.f32 0.015625, %v4296_v48  ;;  %v4310_v19 = vmul.f32 %v15950_v45, %v17167_v49  ;;  %14928 = vmatpush3.msra.mxu0 %v13536_v13  ;;  %v13534_v34 = vld [vmem:[%s16787_s6 + $0x80] sm:$0xff] }
0x1af8   :  { %v15952_v50 = vpop.eup %15951 }
0x1af9   :  { %v4304_v52 = vadd.f32 1e-06, %v4300_v41  ;;  %v4309_v55 = vmul.f32 %v15952_v50, %v17170_v51  ;;  %v4320_v63 = vmul.f32 %v13525_v53, %v4310_v19 }
0x1afa   :  { %v4593_v12 = vpop.xlane.xlu0 %4592 }
0x1afb   :  { %15955 = vrsqrt.f32 %v4304_v52  ;;  %v4603_v15 = vmul.f32 0.015625, %v4593_v12  ;;  %v4319_v47 = vmul.f32 %v13525_v53, %v4309_v55 }
0x1afc   :  { %15957 = vrsqrt.f32 %v4608_v21 }
0x1afd   :  { %v4607_v54 = vadd.f32 1e-06, %v4603_v15  ;;  %14895 = vmatprep.mubr.msk.f32.mxu1 %vm185_vm0, %v4319_v47 }
0x1afe   :  { %14896 = vmatmul.mubr.msk.f32.vlgmr.msra.gmra.mxu1 %vm185_vm0, %v4320_v63  ;;  %v4599_v6 = vpop.xlane.xlu0 %4598 }
0x1aff   :  { %15959 = vrsqrt.f32 %v4607_v54  ;;  %4682 = vmatpush1.msra.mxu1 %v4643_v46  ;;  %v4605_v22 = vmul.f32 0.015625, %v4599_v6 }
0x1b00   :  { %4683 = vmatprep.subr.mxu1 %v4642_v2 }
0x1b01   :  { %v4609_v8 = vadd.f32 1e-06, %v4605_v22  ;;  %4684 = vmatpush1.msra.mxu1 %v4641_v58  ;;  %v145_v58 = vld [vmem:[%s17331_s3 + $0x8] sm:$0xff] }
0x1b02   :  { %4685 = vmatprep.subr.mxu1 %v4640_v5 }
0x1b03   :  { %15961 = vrsqrt.f32 %v4609_v8  ;;  %4686 = vmatpush1.msra.mxu1 %v4639_v7  ;;  %v144_v7 = vld [vmem:[%s17331_s3] sm:$0xff] }
0x1b04   :  { %v15954_v4 = vpop.eup %15953  ;;  %4687 = vmatprep.subr.mxu1 %v4638_v10  ;;  %15963 = vrsqrt.f32 %v4610_v9 }
0x1b05   :  { %4688 = vmatpush1.msra.mxu1 %v4637_v59  ;;  %v4311_v28 = vmul.f32 %v15954_v4, %v17191_v0 }
0x1b06   :  { %4689 = vmatprep.subr.mxu1 %v4636_v24 }
0x1b07   :  { %v4321_v31 = vmul.f32 %v13525_v53, %v4311_v28  ;;  %4690 = vmatpush1.msra.mxu1 %v4635_v60 }
0x1b08   :  { %v15956_v57 = vpop.eup %15955  ;;  %4691 = vmatprep.subr.mxu1 %v4634_v29  ;;  %v152_v29 = vld [vmem:[%s17331_s3 + $0x40] sm:$0xff] }
0x1b09   :  { %14898 = vmatprep.mubr.msk.f32.mxu1 %vm185_vm0, %v4321_v31  ;;  %4692 = vmatpush1.msra.mxu1 %v4633_v30  ;;  %v4312_v61 = vmul.f32 %v15956_v57, %v17188_v1  ;;  %v15958_v35 = vpop.eup %15957  ;;  %v153_v30 = vld [vmem:[%s17331_s3 + $0x48] sm:$0xff] }
0x1b0a   :  { %4693 = vmatprep.subr.mxu1 %v4632_v17  ;;  %v4616_v37 = vmul.f32 %v15958_v35, %v17164_v42 }
0x1b0b   :  { %v4322_v26 = vmul.f32 %v13525_v53, %v4312_v61  ;;  %4694 = vmatpush1.msra.mxu1 %v4631_v33 }
0x1b0c   :  { %v15960_v27 = vpop.eup %15959  ;;  %4695 = vmatprep.subr.mxu1 %v4630_v62  ;;  %v4626_v40 = vmul.f32 %v13555_v16, %v4616_v37 }
0x1b0d   :  { %v4615_v36 = vmul.f32 %v15960_v27, %v17196_v56  ;;  %14899 = vmatmul.mubr.msk.f32.gmra.mxu1 %vm185_vm0, %v4322_v26 }
0x1b0e   :  { %4696 = vmatpush1.msra.mxu1 %v4629_v11  ;;  %4729 = vmatprep.mubr.f32.mxu1 %v16334_v20 }
0x1b0f   :  { %v4625_v38 = vmul.f32 %v13555_v16, %v4615_v36 }
0x1b10   :  { %v15962_v43 = vpop.eup %15961 }
0x1b11   :  { %13556 = vmatmul.mubr.msk.f32.vlgmr.msra.gmra.mxu1 %vm185_vm0, %v4625_v38  ;;  %v4617_v44 = vmul.f32 %v15962_v43, %v17204_v23  ;;  %v15964_v32 = vpop.eup %15963  ;;  %v13535_v23 = vld [vmem:[%s16787_s6 + $0x88] sm:$0xff]  ;;  %s17754_s6 = sld [smem:[%s18918_s0 + %s16356_s2]]   ;;  %s16360_s2 = smov 20  }
0x1b12   :  { %4735 = vmatprep.mubr.f32.mxu1 %v16334_v20  ;;  %v4618_v42 = vmul.f32 %v15964_v32, %v17177_v14  ;;  %14929 = vmatprep.subr.mxu0 %v13535_v23  ;;  %s18065_s8 = sld [smem:[%s18918_s0 + %s16360_s2]]  }
0x1b13   :  { %v4627_v56 = vmul.f32 %v13555_v16, %v4617_v44  ;;  %14930 = vmatpush3.msra.mxu0 %v13535_v23 }
0x1b14   :  { %v4628_v39 = vmul.f32 %v13555_v16, %v4618_v42  ;;  %14931 = vmatprep.subr.mxu0 %v13534_v34 }
0x1b15   :  { %13557 = vmatmul.mubr.msk.f32.gmra.mxu1 %vm185_vm0, %v4626_v40  ;;  %14932 = vmatpush3.msra.mxu0 %v13534_v34 }
0x1b16   :  { %4741 = vmatprep.mubr.f32.mxu1 %v16334_v20 }
0x1b19   :  { %13558 = vmatmul.mubr.msk.f32.gmra.mxu1 %vm185_vm0, %v4627_v56 }
0x1b1a   :  { %4747 = vmatprep.mubr.f32.mxu1 %v16334_v20 }
0x1b1d   :  { %13559 = vmatmul.mubr.msk.f32.gmra.mxu1 %vm185_vm0, %v4628_v39 }
0x1bbe   :  { %v14897_v18 = vpop.f32.mrf.mxu1 }
0x1bbf   :  { %v4447_v48 = vmax.f32 %v14897_v18, 0.0 }
0x1bc0   :  { %v4427_v14 = vpop.f32.mrf.mxu1 }
0x1bc1   :  { %v4446_v45 = vmax.f32 %v4427_v14, 0.0 }
0x1bc3   :  { %14933 = vmatprep.mubr.f32.mxu0 %v4446_v45 }
0x1bc4   :  { %14934 = vmatmul.mubr.f32.vlgmr.msra.gmra.mxu0 %v4447_v48 }
0x1bcd   :  { %v14900_v41 = vpop.f32.mrf.mxu1 }
0x1bce   :  { %v4449_v52 = vmax.f32 %v14900_v41, 0.0 }
0x1bcf   :  { %v4437_v50 = vpop.f32.mrf.mxu1 }
0x1bd0   :  { %v4448_v19 = vmax.f32 %v4437_v50, 0.0 }
0x1bd1   :  { %v17283_v53 = vpop.f32.mrf.mxu1 }
0x1bd2   :  { %14936 = vmatprep.mubr.f32.mxu0 %v4448_v19  ;;  %4756 = vrot.lane.b32.xlu1 %v17283_v53, %s16336_s14 }
0x1bd3   :  { %14943 = vmatprep.mubr.msk.f32.mxu1 %vm356_vm1, %v17283_v53  ;;  %14937 = vmatmul.mubr.f32.gmra.mxu0 %v4449_v52  ;;  %v17289_v55 = vpop.f32.mrf.mxu1 }
0x1bd5   :  { %v17291_v21 = vpop.f32.mrf.mxu1 }
0x1bd6   :  { %4758 = vrot.lane.b32.xlu0 %v17291_v21, %s16336_s14 }
0x1bd7   :  { %v17295_v12 = vpop.f32.mrf.mxu1 }
0x1bd9   :  { %v17297_v25 = vpop.f32.mrf.mxu1 }
0x1bda   :  { %14950 = vmatprep.mubr.msk.f32.mxu0 %vm356_vm1, %v17297_v25 }
0x1bdb   :  { %v17301_v15 = vpop.f32.mrf.mxu1 }
0x1bdd   :  { %v17303_v47 = vpop.f32.mrf.mxu1 }
0x1bde   :  { %4847 = vrot.lane.b32.xlu1 %v17303_v47, %s16336_s14 }
0x1bdf   :  { %v17320_v2 = vpop.f32.mrf.mxu1 }
0x1be2   :  { %4845 = vrot.lane.b32.xlu1 %v17297_v25, %s16336_s14 }
0x1c44   :  { %v4757_v46 = vpop.permute.xlu1 %4756 }
0x1c48   :  { %v4759_v63 = vpop.permute.xlu0 %4758 }
0x1c49   :  { %14939 = vmatprep.subr.msk.mxu1 %vm356_vm1, %v4759_v63 }
0x1c4a   :  { %14940 = vmatpush3.xpose.msk.msra.mxu1 %vm356_vm1, %v4759_v63 }
0x1c4b   :  { %14941 = vmatprep.subr.msk.mxu1 %vm356_vm1, %v4757_v46 }
0x1c4e   :  { %14942 = vmatpush3.xpose.msk.msra.mxu1 %vm356_vm1, %v4757_v46 }
0x1c4f   :  { %14953 = vmatprep.subr.mxu1 %v17295_v12 }
0x1c50   :  { %v4848_v54 = vpop.permute.xlu1 %4847 }
0x1c51   :  { %14944 = vmatmul.mubr.msk.f32.vlgmr.msra.gmra.mxu1 %vm356_vm1, %v17291_v21  ;;  %14946 = vmatprep.subr.msk.mxu0 %vm356_vm1, %v4848_v54 }
0x1c52   :  { %14947 = vmatpush3.xpose.msk.msra.mxu0 %vm356_vm1, %v4848_v54  ;;  %14954 = vmatpush3.msra.mxu1 %v17295_v12 }
0x1c53   :  { %14955 = vmatprep.subr.mxu1 %v17289_v55 }
0x1c54   :  { %v4846_v3 = vpop.permute.xlu1 %4845  ;;  %14956 = vmatpush3.msra.mxu1 %v17289_v55 }
0x1c55   :  { %14948 = vmatprep.subr.msk.mxu0 %vm356_vm1, %v4846_v3  ;;  %14960 = vmatprep.subr.mxu1 %v17320_v2 }
0x1c56   :  { %14949 = vmatpush3.xpose.msk.msra.mxu0 %vm356_vm1, %v4846_v3 }
0x1c59   :  { %14951 = vmatmul.mubr.msk.f32.vlgmr.msra.gmra.mxu0 %vm356_vm1, %v17303_v47 }
0x1c84   :  { %v17333_v6 = vpop.f32.mrf.mxu0 }
0x1c86   :  { %v17336_v22 = vpop.f32.mrf.mxu0 }
0x1c93   :  { %v17339_v9 = vpop.f32.mrf.mxu0 }
0x1c95   :  { %v17343_v60 = vpop.f32.mrf.mxu0 }
0x1d11   :  { %v14945_v5 = vpop.f32.mrf.mxu1 }
0x1d12   :  { %v4840_v8 = vadd.f32 %v14945_v5, %v145_v58 }
0x1d13   :  { %v4834_v10 = vpop.f32.mrf.mxu1 }
0x1d14   :  { %v4835_v59 = vadd.f32 %v4834_v10, %v144_v7  ;;  %v4935_v24 = vsel %vm356_vm1, %v4840_v8, -inf }
0x1d15   :  { %4936 = vmax.xlane.f32.xlu1 %v4935_v24 }
0x1d16   :  { %v4932_v4 = vsel %vm356_vm1, %v4835_v59, -inf }
0x1d17   :  { %4933 = vmax.xlane.f32.xlu0 %v4932_v4 }
0x1d19   :  { %v14952_v28 = vpop.f32.mrf.mxu0 }
0x1d1a   :  { %v4929_v57 = vadd.f32 %v14952_v28, %v153_v30 }
0x1d1b   :  { %v4923_v31 = vpop.f32.mrf.mxu0 }
0x1d1c   :  { %v4924_v17 = vadd.f32 %v4923_v31, %v152_v29  ;;  %v4941_v61 = vsel %vm356_vm1, %v4929_v57, -inf  ;;  %v147_v29 = vld [vmem:[%s17331_s3 + $0x18] sm:$0xff]  ;;  %v146_v31 = vld [vmem:[%s17331_s3 + $0x10] sm:$0xff] }
0x1d1e   :  { %v4938_v33 = vsel %vm356_vm1, %v4924_v17, -inf }
0x1d1f   :  { %4939 = vmax.xlane.f32.xlu0 %v4938_v33 }
0x1d23   :  { %4942 = vmax.xlane.f32.xlu0 %v4941_v61 }
0x1d26   :  { %5142 = vrot.lane.b32.xlu1 %v17283_v53, %s16338_s19 }
0x1d2a   :  { %5138 = vrot.lane.b32.xlu1 %v17283_v53, %s16339_s20 }
0x1d2e   :  { %5140 = vrot.lane.b32.xlu1 %v17291_v21, %s16339_s20 }
0x1d39   :  { %5144 = vrot.lane.b32.xlu0 %v17291_v21, %s16338_s19 }
0x1d9e   :  { %v4937_v62 = vpop.xlane.xlu1 %4936 }
0x1d9f   :  { %v4945_v35 = vsub.f32 %v4840_v8, %v4937_v62 }
0x1da0   :  { %v4934_v26 = vpop.xlane.xlu0 %4933 }
0x1da1   :  { %v4950_v11 = vmul.f32 1.442695, %v4945_v35  ;;  %v4944_v27 = vsub.f32 %v4835_v59, %v4934_v26 }
0x1da2   :  { %v5143_v16 = vpop.permute.xlu1 %5142 }
0x1da3   :  { %15965 = vpow2.f32 %v4950_v11  ;;  %v4948_v36 = vmul.f32 1.442695, %v4944_v27 }
0x1da5   :  { %15967 = vpow2.f32 %v4948_v36 }
0x1da6   :  { %v5139_v37 = vpop.permute.xlu1 %5138 }
0x1da7   :  { %14971 = vmatprep.mubr.msk.f32.mxu0 %vm356_vm1, %v5139_v37 }
0x1da8   :  { %v4940_v38 = vpop.xlane.xlu0 %4939 }
0x1da9   :  { %v4946_v43 = vsub.f32 %v4924_v17, %v4940_v38 }
0x1daa   :  { %v5141_v18 = vpop.permute.xlu1 %5140 }
0x1dab   :  { %v4952_v40 = vmul.f32 1.442695, %v4946_v43 }
0x1dac   :  { %v4943_v44 = vpop.xlane.xlu0 %4942 }
0x1dad   :  { %15969 = vpow2.f32 %v4952_v40  ;;  %v4947_v32 = vsub.f32 %v4929_v57, %v4943_v44 }
0x1daf   :  { %v4954_v56 = vmul.f32 1.442695, %v4947_v32 }
0x1db0   :  { %v15966_v42 = vpop.eup %15965  ;;  %v5145_v39 = vpop.permute.xlu0 %5144 }
0x1db1   :  { %15971 = vpow2.f32 %v4954_v56  ;;  %14967 = vmatprep.subr.msk.mxu0 %vm356_vm1, %v5145_v39  ;;  %v4959_v13 = vsel %vm356_vm1, %v15966_v42, 0.0 }
0x1db2   :  { %v15968_v23 = vpop.eup %15967  ;;  %4960 = vadd.xlane.f32.xlu1 %v4959_v13  ;;  %14968 = vmatpush3.xpose.msk.msra.mxu0 %vm356_vm1, %v5145_v39  ;;  %v155_v39 = vld [vmem:[%s17331_s3 + $0x58] sm:$0xff] }
0x1db3   :  { %14969 = vmatprep.subr.msk.mxu0 %vm356_vm1, %v5143_v16  ;;  %v4956_v34 = vsel %vm356_vm1, %v15968_v23, 0.0 }
0x1db4   :  { %4957 = vadd.xlane.f32.xlu0 %v4956_v34 }
0x1db6   :  { %14970 = vmatpush3.xpose.msk.msra.mxu0 %vm356_vm1, %v5143_v16 }
0x1db9   :  { %14972 = vmatmul.mubr.msk.f32.vlgmr.msra.gmra.mxu0 %vm356_vm1, %v5141_v18 }
0x1dba   :  { %v15970_v14 = vpop.eup %15969 }
0x1dbb   :  { %v4962_v45 = vsel %vm356_vm1, %v15970_v14, 0.0 }
0x1dbc   :  { %4963 = vadd.xlane.f32.xlu0 %v4962_v45 }
0x1dbe   :  { %v15972_v48 = vpop.eup %15971 }
0x1dbf   :  { %v4965_v41 = vsel %vm356_vm1, %v15972_v48, 0.0 }
0x1dc0   :  { %4966 = vadd.xlane.f32.xlu1 %v4965_v41 }
0x1dd1   :  { %5233 = vrot.lane.b32.xlu1 %v17297_v25, %s16338_s19 }
0x1dd2   :  { %5235 = vrot.lane.b32.xlu0 %v17303_v47, %s16338_s19 }
0x1dd5   :  { %5231 = vrot.lane.b32.xlu1 %v17303_v47, %s16339_s20 }
0x1dd6   :  { %5229 = vrot.lane.b32.xlu0 %v17297_v25, %s16339_s20 }
0x1e3b   :  { %v4961_v50 = vpop.xlane.xlu1 %4960 }
0x1e3c   :  { %15973 = vrcp.f32 %v4961_v50 }
0x1e3d   :  { %v4958_v19 = vpop.xlane.xlu0 %4957 }
0x1e3e   :  { %15975 = vrcp.f32 %v4958_v19 }
0x1e45   :  { %v4964_v52 = vpop.xlane.xlu0 %4963 }
0x1e46   :  { %15977 = vrcp.f32 %v4964_v52 }
0x1e49   :  { %v4967_v63 = vpop.xlane.xlu1 %4966  ;;  %v15974_v46 = vpop.eup %15973 }
0x1e4a   :  { %15979 = vrcp.f32 %v4967_v63  ;;  %v4971_v58 = vmul.f32 %v15974_v46, %v15966_v42  ;;  %v5236_v5 = vpop.permute.xlu0 %5235  ;;  %v154_v42 = vld [vmem:[%s17331_s3 + $0x50] sm:$0xff] }
0x1e4b   :  { %v15976_v54 = vpop.eup %15975 }
0x1e4c   :  { %v4969_v3 = vmul.f32 %v15976_v54, %v15968_v23 }
0x1e4d   :  { %v5234_v4 = vpop.permute.xlu1 %5233 }
0x1e4e   :  { %14957 = vmatprep.mubr.msk.f32.mxu1 %vm356_vm1, %v4969_v3  ;;  %v5230_v24 = vpop.permute.xlu0 %5229 }
0x1e4f   :  { %14958 = vmatmul.mubr.msk.f32.vlgmr.msra.gmra.mxu1 %vm356_vm1, %v4971_v58 }
0x1e50   :  { %14961 = vmatpush3.msra.mxu1 %v17320_v2 }
0x1e51   :  { %14962 = vmatprep.subr.mxu1 %v17301_v15  ;;  %v5232_v28 = vpop.permute.xlu1 %5231 }
0x1e52   :  { %14963 = vmatpush3.msra.mxu1 %v17301_v15 }
0x1e53   :  { %v15978_v7 = vpop.eup %15977  ;;  %14974 = vmatprep.subr.msk.mxu1 %vm356_vm1, %v5236_v5 }
0x1e54   :  { %v4973_v8 = vmul.f32 %v15978_v7, %v15970_v14 }
0x1e56   :  { %14964 = vmatprep.mubr.msk.f32.mxu1 %vm356_vm1, %v4973_v8 }
0x1e57   :  { %v15980_v10 = vpop.eup %15979 }
0x1e58   :  { %v4975_v59 = vmul.f32 %v15980_v10, %v15972_v48 }
0x1e5a   :  { %14965 = vmatmul.mubr.msk.f32.vlgmr.msra.gmra.mxu1 %vm356_vm1, %v4975_v59 }
0x1e5b   :  { %14975 = vmatpush3.xpose.msk.msra.mxu1 %vm356_vm1, %v5236_v5  ;;  %14978 = vmatprep.mubr.msk.f32.mxu1 %vm356_vm1, %v5230_v24 }
0x1e5c   :  { %14976 = vmatprep.subr.msk.mxu1 %vm356_vm1, %v5234_v4 }
0x1e5f   :  { %14977 = vmatpush3.xpose.msk.msra.mxu1 %vm356_vm1, %v5234_v4 }
0x1e62   :  { %14979 = vmatmul.mubr.msk.f32.vlgmr.msra.gmra.mxu1 %vm356_vm1, %v5232_v28 }
0x1e79   :  { %v14973_v30 = vpop.f32.mrf.mxu0 }
0x1e7a   :  { %v5226_v17 = vadd.f32 %v14973_v30, %v147_v29 }
0x1e7b   :  { %v5220_v57 = vpop.f32.mrf.mxu0 }
0x1e7c   :  { %v5221_v33 = vadd.f32 %v5220_v57, %v146_v31  ;;  %v5323_v61 = vsel %vm356_vm1, %v5226_v17, -inf }
0x1e7d   :  { %5324 = vmax.xlane.f32.xlu1 %v5323_v61 }
0x1e7e   :  { %v5320_v62 = vsel %vm356_vm1, %v5221_v33, -inf }
0x1e7f   :  { %5321 = vmax.xlane.f32.xlu0 %v5320_v62 }
0x1f06   :  { %v5325_v35 = vpop.xlane.xlu1 %5324 }
0x1f07   :  { %v5333_v26 = vsub.f32 %v5226_v17, %v5325_v35 }
0x1f08   :  { %v5322_v27 = vpop.xlane.xlu0 %5321 }
0x1f09   :  { %v5338_v11 = vmul.f32 1.442695, %v5333_v26  ;;  %v5332_v36 = vsub.f32 %v5221_v33, %v5322_v27 }
0x1f0b   :  { %15981 = vpow2.f32 %v5338_v11  ;;  %v5336_v40 = vmul.f32 1.442695, %v5332_v36 }
0x1f0d   :  { %15983 = vpow2.f32 %v5336_v40 }
0x1f0f   :  { %v17392_v16 = vpop.f32.mrf.mxu1 }
0x1f11   :  { %v17398_v43 = vpop.f32.mrf.mxu1 }
0x1f18   :  { %v17394_v37 = vpop.eup %15981 }
0x1f19   :  { %v5347_v38 = vsel %vm356_vm1, %v17394_v37, 0.0 }
0x1f1a   :  { %5348 = vadd.xlane.f32.xlu1 %v5347_v38  ;;  %v17400_v44 = vpop.f32.mrf.mxu1  ;;  %v15984_v45 = vpop.eup %15983 }
0x1f1b   :  { %v5344_v48 = vsel %vm356_vm1, %v15984_v45, 0.0 }
0x1f1c   :  { %v17402_v32 = vpop.f32.mrf.mxu1 }
0x1f22   :  { %v14980_v56 = vpop.f32.mrf.mxu1 }
0x1f23   :  { %v5317_v34 = vadd.f32 %v14980_v56, %v155_v39 }
0x1f24   :  { %v5311_v13 = vpop.f32.mrf.mxu1 }
0x1f25   :  { %v5312_v23 = vadd.f32 %v5311_v13, %v154_v42  ;;  %v5329_v14 = vsel %vm356_vm1, %v5317_v34, -inf  ;;  %v149_v13 = vld [vmem:[%s17331_s3 + $0x28] sm:$0xff] }
0x1f27   :  { %v5326_v18 = vsel %vm356_vm1, %v5312_v23, -inf }
0x1f28   :  { %5327 = vmax.xlane.f32.xlu0 %v5326_v18 }
0x1f2b   :  { %5366 = vrot.lane.b32.xlu1 %v17289_v55, %s16339_s20 }
0x1f2c   :  { %5330 = vmax.xlane.f32.xlu0 %v5329_v14 }
0x1f2f   :  { %5548 = vrot.lane.b32.xlu1 %v17291_v21, %s16340_s21 }
0x1f30   :  { %5345 = vadd.xlane.f32.xlu0 %v5344_v48 }
0x1f33   :  { %5457 = vrot.lane.b32.xlu1 %v17320_v2, %s16339_s20 }
0x1f37   :  { %5455 = vrot.lane.b32.xlu1 %v17301_v15, %s16339_s20 }
0x1f3b   :  { %5544 = vrot.lane.b32.xlu1 %v17291_v21, %s16341_s22 }
0x1f46   :  { %5368 = vrot.lane.b32.xlu0 %v17295_v12, %s16339_s20 }
0x1f4a   :  { %5546 = vrot.lane.b32.xlu0 %v17283_v53, %s16340_s21 }
0x1f4e   :  { %5542 = vrot.lane.b32.xlu0 %v17283_v53, %s16341_s22 }
0x1fa3   :  { %v5349_v41 = vpop.xlane.xlu1 %5348 }
0x1fa7   :  { %v5367_v50 = vpop.permute.xlu1 %5366 }
0x1fab   :  { %v5549_v19 = vpop.permute.xlu1 %5548 }
0x1faf   :  { %v5458_v52 = vpop.permute.xlu1 %5457 }
0x1fb0   :  { %14988 = vmatprep.subr.mxu1 %v5458_v52 }
0x1fb1   :  { %v5328_v63 = vpop.xlane.xlu0 %5327  ;;  %14989 = vmatpush3.msra.mxu1 %v5458_v52 }
0x1fb2   :  { %v5334_v46 = vsub.f32 %v5312_v23, %v5328_v63 }
0x1fb3   :  { %v5456_v54 = vpop.permute.xlu1 %5455 }
0x1fb4   :  { %v5340_v3 = vmul.f32 1.442695, %v5334_v46  ;;  %14990 = vmatprep.subr.mxu1 %v5456_v54 }
0x1fb5   :  { %v5331_v58 = vpop.xlane.xlu0 %5330  ;;  %14991 = vmatpush3.msra.mxu1 %v5456_v54 }
0x1fb6   :  { %15985 = vpow2.f32 %v5340_v3  ;;  %v5335_v5 = vsub.f32 %v5317_v34, %v5331_v58  ;;  %v148_v34 = vld [vmem:[%s17331_s3 + $0x20] sm:$0xff] }
0x1fb7   :  { %15987 = vrcp.f32 %v5349_v41  ;;  %v5545_v61 = vpop.permute.xlu1 %5544 }
0x1fb8   :  { %v5342_v7 = vmul.f32 1.442695, %v5335_v5 }
0x1fb9   :  { %v5346_v8 = vpop.xlane.xlu0 %5345 }
0x1fba   :  { %15989 = vpow2.f32 %v5342_v7  ;;  %v156_v7 = vld [vmem:[%s17331_s3 + $0x60] sm:$0xff] }
0x1fbb   :  { %15991 = vrcp.f32 %v5346_v8  ;;  %v157_v8 = vld [vmem:[%s17331_s3 + $0x68] sm:$0xff] }
0x1fbd   :  { %v5369_v10 = vpop.permute.xlu0 %5368 }
0x1fbe   :  { %14981 = vmatprep.subr.mxu0 %v5369_v10 }
0x1fbf   :  { %14982 = vmatpush3.msra.mxu0 %v5369_v10 }
0x1fc0   :  { %14983 = vmatprep.subr.mxu0 %v5367_v50 }
0x1fc1   :  { %14984 = vmatpush3.msra.mxu0 %v5367_v50  ;;  %v5547_v28 = vpop.permute.xlu0 %5546 }
0x1fc2   :  { %14995 = vmatprep.subr.msk.mxu0 %vm356_vm1, %v5549_v19 }
0x1fc3   :  { %v15986_v59 = vpop.eup %15985 }
0x1fc4   :  { %v5350_v24 = vsel %vm356_vm1, %v15986_v59, 0.0  ;;  %v15988_v4 = vpop.eup %15987 }
0x1fc5   :  { %5351 = vadd.xlane.f32.xlu0 %v5350_v24  ;;  %v5359_v57 = vmul.f32 %v15988_v4, %v17394_v37  ;;  %v5543_v33 = vpop.permute.xlu0 %5542 }
0x1fc7   :  { %v15990_v29 = vpop.eup %15989 }
0x1fc8   :  { %v15992_v30 = vpop.eup %15991  ;;  %v5353_v31 = vsel %vm356_vm1, %v15990_v29, 0.0 }
0x1fc9   :  { %5354 = vadd.xlane.f32.xlu1 %v5353_v31  ;;  %v5357_v17 = vmul.f32 %v15992_v30, %v15984_v45 }
0x1fcb   :  { %14985 = vmatprep.mubr.msk.f32.mxu0 %vm356_vm1, %v5357_v17 }
0x1fcc   :  { %14986 = vmatmul.mubr.msk.f32.vlgmr.msra.gmra.mxu0 %vm356_vm1, %v5359_v57 }
0x1fcd   :  { %14996 = vmatpush3.xpose.msk.msra.mxu0 %vm356_vm1, %v5549_v19  ;;  %14999 = vmatprep.mubr.msk.f32.mxu0 %vm356_vm1, %v5543_v33 }
0x1fce   :  { %14997 = vmatprep.subr.msk.mxu0 %vm356_vm1, %v5547_v28 }
0x1fd1   :  { %14998 = vmatpush3.xpose.msk.msra.mxu0 %vm356_vm1, %v5547_v28 }
0x1fd4   :  { %15000 = vmatmul.mubr.msk.f32.vlgmr.msra.gmra.mxu0 %vm356_vm1, %v5545_v61 }
0x1fda   :  { %5637 = vrot.lane.b32.xlu1 %v17297_v25, %s16340_s21 }
0x1fdb   :  { %5639 = vrot.lane.b32.xlu0 %v17303_v47, %s16340_s21 }
0x1fde   :  { %5635 = vrot.lane.b32.xlu1 %v17303_v47, %s16341_s22 }
0x1fdf   :  { %5633 = vrot.lane.b32.xlu0 %v17297_v25, %s16341_s22 }
0x204e   :  { %v5352_v62 = vpop.xlane.xlu0 %5351 }
0x204f   :  { %15993 = vrcp.f32 %v5352_v62 }
0x2052   :  { %v5355_v35 = vpop.xlane.xlu1 %5354  ;;  %v5640_v26 = vpop.permute.xlu0 %5639 }
0x2053   :  { %15995 = vrcp.f32 %v5355_v35  ;;  %15002 = vmatprep.subr.msk.mxu1 %vm356_vm1, %v5640_v26 }
0x2056   :  { %v5634_v38 = vpop.permute.xlu0 %5633  ;;  %v5638_v40 = vpop.permute.xlu1 %5637 }
0x205a   :  { %v5636_v56 = vpop.permute.xlu1 %5635 }
0x205c   :  { %v15994_v11 = vpop.eup %15993 }
0x205d   :  { %v5361_v27 = vmul.f32 %v15994_v11, %v15986_v59 }
0x205f   :  { %14992 = vmatprep.mubr.msk.f32.mxu1 %vm356_vm1, %v5361_v27 }
0x2060   :  { %v15996_v36 = vpop.eup %15995 }
0x2061   :  { %v5363_v37 = vmul.f32 %v15996_v36, %v15990_v29 }
0x2063   :  { %14993 = vmatmul.mubr.msk.f32.vlgmr.msra.gmra.mxu1 %vm356_vm1, %v5363_v37 }
0x2064   :  { %15003 = vmatpush3.xpose.msk.msra.mxu1 %vm356_vm1, %v5640_v26  ;;  %15006 = vmatprep.mubr.msk.f32.mxu1 %vm356_vm1, %v5634_v38 }
0x2065   :  { %15004 = vmatprep.subr.msk.mxu1 %vm356_vm1, %v5638_v40 }
0x2068   :  { %15005 = vmatpush3.xpose.msk.msra.mxu1 %vm356_vm1, %v5638_v40 }
0x206b   :  { %15007 = vmatmul.mubr.msk.f32.vlgmr.msra.gmra.mxu1 %vm356_vm1, %v5636_v56 }
0x208c   :  { %v17452_v42 = vpop.f32.mrf.mxu0 }
0x208e   :  { %v17454_v39 = vpop.f32.mrf.mxu0 }
0x2094   :  { %v15001_v23 = vpop.f32.mrf.mxu0 }
0x2095   :  { %v5630_v18 = vadd.f32 %v15001_v23, %v149_v13 }
0x2096   :  { %v5624_v14 = vpop.f32.mrf.mxu0 }
0x2097   :  { %v5625_v45 = vadd.f32 %v5624_v14, %v148_v34  ;;  %v5727_v48 = vsel %vm356_vm1, %v5630_v18, -inf }
0x2098   :  { %5728 = vmax.xlane.f32.xlu1 %v5727_v48 }
0x2099   :  { %v5724_v41 = vsel %vm356_vm1, %v5625_v45, -inf }
0x209a   :  { %5725 = vmax.xlane.f32.xlu0 %v5724_v41 }
0x2121   :  { %v5729_v50 = vpop.xlane.xlu1 %5728 }
0x2122   :  { %v5737_v19 = vsub.f32 %v5630_v18, %v5729_v50 }
0x2123   :  { %v5726_v52 = vpop.xlane.xlu0 %5725  ;;  %v17460_v54 = vpop.f32.mrf.mxu1 }
0x2124   :  { %v5742_v63 = vmul.f32 1.442695, %v5737_v19  ;;  %v5736_v46 = vsub.f32 %v5625_v45, %v5726_v52 }
0x2125   :  { %v17462_v58 = vpop.f32.mrf.mxu1 }
0x2126   :  { %15997 = vpow2.f32 %v5742_v63  ;;  %v5740_v3 = vmul.f32 1.442695, %v5736_v46 }
0x2128   :  { %15999 = vpow2.f32 %v5740_v3 }
0x212b   :  { %v15008_v5 = vpop.f32.mrf.mxu1 }
0x212c   :  { %v5721_v24 = vadd.f32 %v15008_v5, %v157_v8 }
0x212d   :  { %v5715_v10 = vpop.f32.mrf.mxu1 }
0x212e   :  { %v5716_v59 = vadd.f32 %v5715_v10, %v156_v7  ;;  %v5733_v30 = vsel %vm356_vm1, %v5721_v24, -inf }
0x2130   :  { %v5730_v4 = vsel %vm356_vm1, %v5716_v59, -inf }
0x2131   :  { %5731 = vmax.xlane.f32.xlu0 %v5730_v4 }
0x2133   :  { %v15998_v28 = vpop.eup %15997 }
0x2134   :  { %v5751_v29 = vsel %vm356_vm1, %v15998_v28, 0.0 }
0x2135   :  { %v16000_v31 = vpop.eup %15999  ;;  %5752 = vadd.xlane.f32.xlu1 %v5751_v29  ;;  %5734 = vmax.xlane.f32.xlu0 %v5733_v30 }
0x2136   :  { %v5748_v17 = vsel %vm356_vm1, %v16000_v31, 0.0 }
0x2139   :  { %5749 = vadd.xlane.f32.xlu0 %v5748_v17 }
0x2146   :  { %5768 = vrot.lane.b32.xlu1 %v17289_v55, %s16341_s22 }
0x214a   :  { %5948 = vrot.lane.b32.xlu1 %v17291_v21, %s16342_s23 }
0x214e   :  { %5857 = vrot.lane.b32.xlu1 %v17320_v2, %s16341_s22 }
0x214f   :  { %5770 = vrot.lane.b32.xlu0 %v17295_v12, %s16341_s22 }
0x2152   :  { %5855 = vrot.lane.b32.xlu1 %v17301_v15, %s16341_s22 }
0x2153   :  { %5946 = vrot.lane.b32.xlu0 %v17283_v53, %s16342_s23 }
0x2156   :  { %5944 = vrot.lane.b32.xlu1 %v17291_v21, %s16343_s24 }
0x2157   :  { %5942 = vrot.lane.b32.xlu0 %v17283_v53, %s16343_s24 }
0x21ba   :  { %v5732_v57 = vpop.xlane.xlu0 %5731 }
0x21bb   :  { %v5738_v33 = vsub.f32 %v5716_v59, %v5732_v57 }
0x21bd   :  { %v5744_v61 = vmul.f32 1.442695, %v5738_v33 }
0x21be   :  { %v5753_v62 = vpop.xlane.xlu1 %5752  ;;  %v5735_v35 = vpop.xlane.xlu0 %5734 }
0x21bf   :  { %16001 = vpow2.f32 %v5744_v61  ;;  %v5739_v26 = vsub.f32 %v5721_v24, %v5735_v35  ;;  %v151_v24 = vld [vmem:[%s17331_s3 + $0x38] sm:$0xff] }
0x21c0   :  { %16003 = vrcp.f32 %v5753_v62 }
0x21c1   :  { %v5746_v11 = vmul.f32 1.442695, %v5739_v26 }
0x21c2   :  { %v5769_v27 = vpop.permute.xlu1 %5768  ;;  %v5750_v36 = vpop.xlane.xlu0 %5749 }
0x21c3   :  { %16005 = vpow2.f32 %v5746_v11 }
0x21c4   :  { %16007 = vrcp.f32 %v5750_v36 }
0x21c6   :  { %v5949_v37 = vpop.permute.xlu1 %5948  ;;  %v5771_v38 = vpop.permute.xlu0 %5770 }
0x21c7   :  { %15009 = vmatprep.subr.mxu0 %v5771_v38 }
0x21c8   :  { %15010 = vmatpush3.msra.mxu0 %v5771_v38  ;;  %v158_v38 = vld [vmem:[%s17331_s3 + $0x70] sm:$0xff] }
0x21c9   :  { %15011 = vmatprep.subr.mxu0 %v5769_v27 }
0x21ca   :  { %v5858_v21 = vpop.permute.xlu1 %5857  ;;  %15012 = vmatpush3.msra.mxu0 %v5769_v27  ;;  %v5947_v23 = vpop.permute.xlu0 %5946 }
0x21cb   :  { %15016 = vmatprep.subr.mxu1 %v5858_v21  ;;  %15023 = vmatprep.subr.msk.mxu0 %vm356_vm1, %v5949_v37 }
0x21cc   :  { %v16002_v53 = vpop.eup %16001  ;;  %15017 = vmatpush3.msra.mxu1 %v5858_v21  ;;  %v159_v21 = vld [vmem:[%s17331_s3 + $0x78] sm:$0xff] }
0x21cd   :  { %v5754_v40 = vsel %vm356_vm1, %v16002_v53, 0.0  ;;  %v16004_v13 = vpop.eup %16003 }
0x21ce   :  { %v5856_v56 = vpop.permute.xlu1 %5855  ;;  %5755 = vadd.xlane.f32.xlu0 %v5754_v40  ;;  %v5763_v48 = vmul.f32 %v16004_v13, %v15998_v28  ;;  %v5943_v41 = vpop.permute.xlu0 %5942  ;;  %v150_v28 = vld [vmem:[%s17331_s3 + $0x30] sm:$0xff] }
0x21cf   :  { %15018 = vmatprep.subr.mxu1 %v5856_v56 }
0x21d0   :  { %v16006_v34 = vpop.eup %16005  ;;  %15019 = vmatpush3.msra.mxu1 %v5856_v56 }
0x21d1   :  { %v16008_v18 = vpop.eup %16007  ;;  %v5757_v14 = vsel %vm356_vm1, %v16006_v34, 0.0 }
0x21d2   :  { %5758 = vadd.xlane.f32.xlu1 %v5757_v14  ;;  %v5761_v45 = vmul.f32 %v16008_v18, %v16000_v31  ;;  %v5945_v50 = vpop.permute.xlu1 %5944 }
0x21d4   :  { %15013 = vmatprep.mubr.msk.f32.mxu0 %vm356_vm1, %v5761_v45 }
0x21d5   :  { %15014 = vmatmul.mubr.msk.f32.vlgmr.msra.gmra.mxu0 %vm356_vm1, %v5763_v48 }
0x21d6   :  { %15024 = vmatpush3.xpose.msk.msra.mxu0 %vm356_vm1, %v5949_v37  ;;  %15027 = vmatprep.mubr.msk.f32.mxu0 %vm356_vm1, %v5943_v41 }
0x21d7   :  { %15025 = vmatprep.subr.msk.mxu0 %vm356_vm1, %v5947_v23 }
0x21da   :  { %15026 = vmatpush3.xpose.msk.msra.mxu0 %vm356_vm1, %v5947_v23 }
0x21dd   :  { %15028 = vmatmul.mubr.msk.f32.vlgmr.msra.gmra.mxu0 %vm356_vm1, %v5945_v50 }
0x21e3   :  { %6037 = vrot.lane.b32.xlu1 %v17297_v25, %s16342_s23 }
0x21e4   :  { %6039 = vrot.lane.b32.xlu0 %v17303_v47, %s16342_s23 }
0x21e7   :  { %6035 = vrot.lane.b32.xlu1 %v17303_v47, %s16343_s24 }
0x21e8   :  { %6033 = vrot.lane.b32.xlu0 %v17297_v25, %s16343_s24 }
0x2257   :  { %v5756_v19 = vpop.xlane.xlu0 %5755 }
0x2258   :  { %16009 = vrcp.f32 %v5756_v19 }
0x225b   :  { %v5759_v52 = vpop.xlane.xlu1 %5758  ;;  %v6040_v63 = vpop.permute.xlu0 %6039 }
0x225c   :  { %16011 = vrcp.f32 %v5759_v52  ;;  %15030 = vmatprep.subr.msk.mxu1 %vm356_vm1, %v6040_v63 }
0x225f   :  { %v6034_v8 = vpop.permute.xlu0 %6033  ;;  %v6038_v47 = vpop.permute.xlu1 %6037 }
0x2263   :  { %v6036_v25 = vpop.permute.xlu1 %6035 }
0x2265   :  { %v16010_v46 = vpop.eup %16009 }
0x2266   :  { %v5765_v3 = vmul.f32 %v16010_v46, %v16002_v53 }
0x2268   :  { %15020 = vmatprep.mubr.msk.f32.mxu1 %vm356_vm1, %v5765_v3 }
0x2269   :  { %v16012_v5 = vpop.eup %16011 }
0x226a   :  { %v5767_v7 = vmul.f32 %v16012_v5, %v16006_v34 }
0x226c   :  { %15021 = vmatmul.mubr.msk.f32.vlgmr.msra.gmra.mxu1 %vm356_vm1, %v5767_v7 }
0x226d   :  { %15031 = vmatpush3.xpose.msk.msra.mxu1 %vm356_vm1, %v6040_v63  ;;  %15034 = vmatprep.mubr.msk.f32.mxu1 %vm356_vm1, %v6034_v8 }
0x226e   :  { %15032 = vmatprep.subr.msk.mxu1 %vm356_vm1, %v6038_v47 }
0x2271   :  { %15033 = vmatpush3.xpose.msk.msra.mxu1 %vm356_vm1, %v6038_v47 }
0x2274   :  { %15035 = vmatmul.mubr.msk.f32.vlgmr.msra.gmra.mxu1 %vm356_vm1, %v6036_v25 }
0x2295   :  { %v17512_v10 = vpop.f32.mrf.mxu0 }
0x2297   :  { %v5846_v59 = vpop.f32.mrf.mxu0 }
0x229d   :  { %v15029_v4 = vpop.f32.mrf.mxu0 }
0x229e   :  { %v6030_v29 = vadd.f32 %v15029_v4, %v151_v24 }
0x229f   :  { %v6024_v30 = vpop.f32.mrf.mxu0 }
0x22a0   :  { %v6025_v31 = vadd.f32 %v6024_v30, %v150_v28  ;;  %v6127_v17 = vsel %vm356_vm1, %v6030_v29, -inf }
0x22a1   :  { %6128 = vmax.xlane.f32.xlu1 %v6127_v17  ;;  %v4651_v17 = vld [vmem:[%s17552_s7 + $0x30] sm:$0xff] }
0x22a2   :  { %v6124_v57 = vsel %vm356_vm1, %v6025_v31, -inf }
0x22a3   :  { %6125 = vmax.xlane.f32.xlu0 %v6124_v57  ;;  %v4650_v57 = vld [vmem:[%s17552_s7 + $0x28] sm:$0xff] }
0x232a   :  { %v6129_v33 = vpop.xlane.xlu1 %6128 }
0x232b   :  { %v6137_v61 = vsub.f32 %v6030_v29, %v6129_v33  ;;  %v4649_v33 = vld [vmem:[%s17552_s7 + $0x20] sm:$0xff] }
0x232c   :  { %v6126_v62 = vpop.xlane.xlu0 %6125  ;;  %v17518_v11 = vpop.f32.mrf.mxu1 }
0x232d   :  { %v6142_v35 = vmul.f32 1.442695, %v6137_v61  ;;  %v6136_v26 = vsub.f32 %v6025_v31, %v6126_v62  ;;  %v4652_v31 = vld [vmem:[%s17552_s7 + $0x38] sm:$0xff]  ;;  %v4647_v62 = vld [vmem:[%s17552_s7 + $0x10] sm:$0xff] }
0x232e   :  { %v17520_v36 = vpop.f32.mrf.mxu1  ;;  %v4648_v61 = vld [vmem:[%s17552_s7 + $0x18] sm:$0xff] }
0x232f   :  { %16013 = vpow2.f32 %v6142_v35  ;;  %v6140_v27 = vmul.f32 1.442695, %v6136_v26  ;;  %v4646_v35 = vld [vmem:[%s17552_s7 + $0x8] sm:$0xff]  ;;  %v4645_v26 = vld [vmem:[%s17552_s7] sm:$0xff] }
0x2331   :  { %16015 = vpow2.f32 %v6140_v27 }
0x2334   :  { %v15036_v37 = vpop.f32.mrf.mxu1 }
0x2335   :  { %v6121_v56 = vadd.f32 %v15036_v37, %v159_v21 }
0x2336   :  { %v6115_v53 = vpop.f32.mrf.mxu1 }
0x2337   :  { %v6116_v40 = vadd.f32 %v6115_v53, %v158_v38  ;;  %v6133_v18 = vsel %vm356_vm1, %v6121_v56, -inf  ;;  %v17576_v53 = vadd.f32 %v17336_v22, %v17170_v51 }
0x2339   :  { %v6130_v13 = vsel %vm356_vm1, %v6116_v40, -inf }
0x233a   :  { %6131 = vmax.xlane.f32.xlu0 %v6130_v13 }
0x233c   :  { %v16014_v23 = vpop.eup %16013 }
0x233d   :  { %v6151_v34 = vsel %vm356_vm1, %v16014_v23, 0.0 }
0x233e   :  { %v16016_v14 = vpop.eup %16015  ;;  %6152 = vadd.xlane.f32.xlu1 %v6151_v34  ;;  %6134 = vmax.xlane.f32.xlu0 %v6133_v18 }
0x233f   :  { %v6148_v45 = vsel %vm356_vm1, %v16016_v14, 0.0 }
0x2342   :  { %6149 = vadd.xlane.f32.xlu0 %v6148_v45 }
0x23c3   :  { %v6132_v48 = vpop.xlane.xlu0 %6131 }
0x23c4   :  { %v6138_v41 = vsub.f32 %v6116_v40, %v6132_v48 }
0x23c6   :  { %v6144_v50 = vmul.f32 1.442695, %v6138_v41 }
0x23c7   :  { %v6135_v19 = vpop.xlane.xlu0 %6134 }
0x23c8   :  { %16017 = vpow2.f32 %v6144_v50  ;;  %v6139_v52 = vsub.f32 %v6121_v56, %v6135_v19 }
0x23ca   :  { %v6146_v63 = vmul.f32 1.442695, %v6139_v52  ;;  %v6560_v52 = vld [vmem:[%s17598_s9 + $0x30] sm:$0xff] }
0x23cb   :  { %v6150_v46 = vpop.xlane.xlu0 %6149 }
0x23cc   :  { %16019 = vpow2.f32 %v6146_v63  ;;  %v6559_v63 = vld [vmem:[%s17598_s9 + $0x28] sm:$0xff] }
0x23cd   :  { %16021 = vrcp.f32 %v6150_v46  ;;  %v6558_v46 = vld [vmem:[%s17598_s9 + $0x20] sm:$0xff] }
0x23d5   :  { %v16018_v3 = vpop.eup %16017 }
0x23d6   :  { %v6154_v5 = vsel %vm356_vm1, %v16018_v3, 0.0 }
0x23d7   :  { %6155 = vadd.xlane.f32.xlu0 %v6154_v5  ;;  %v6557_v5 = vld [vmem:[%s17598_s9 + $0x18] sm:$0xff] }
0x23d9   :  { %v16020_v7 = vpop.eup %16019 }
0x23da   :  { %v16022_v8 = vpop.eup %16021  ;;  %v6157_v47 = vsel %vm356_vm1, %v16020_v7, 0.0 }
0x23db   :  { %6158 = vadd.xlane.f32.xlu1 %v6157_v47  ;;  %v6161_v25 = vmul.f32 %v16022_v8, %v16016_v14 }
0x23dd   :  { %15041 = vmatprep.mubr.msk.f32.mxu0 %vm356_vm1, %v6161_v25 }
0x23ec   :  { %6168 = vrot.lane.b32.xlu1 %v17289_v55, %s16343_s24  ;;  %v6153_v55 = vpop.xlane.xlu1 %6152 }
0x23ed   :  { %6170 = vrot.lane.b32.xlu0 %v17295_v12, %s16343_s24  ;;  %16023 = vrcp.f32 %v6153_v55 }
0x23f0   :  { %6257 = vrot.lane.b32.xlu1 %v17320_v2, %s16343_s24 }
0x23f1   :  { %6346 = vrot.lane.b32.xlu0 %v17454_v39, %s16342_s23 }
0x23f4   :  { %6255 = vrot.lane.b32.xlu1 %v17301_v15, %s16343_s24 }
0x23f5   :  { %6362 = vrot.lane.b32.xlu0 %v5846_v59, %s16340_s21 }
0x23f8   :  { %6348 = vrot.lane.b32.xlu1 %v17452_v42, %s16342_s23 }
0x23fa   :  { %v16024_v39 = vpop.eup %16023 }
0x23fb   :  { %v6163_v15 = vmul.f32 %v16024_v39, %v16014_v23 }
0x23fc   :  { %6364 = vrot.lane.b32.xlu1 %v17512_v10, %s16340_s21 }
0x2460   :  { %v6156_v12 = vpop.xlane.xlu0 %6155 }
0x2461   :  { %16025 = vrcp.f32 %v6156_v12 }
0x2464   :  { %v6159_v24 = vpop.xlane.xlu1 %6158  ;;  %v6171_v2 = vpop.permute.xlu0 %6170 }
0x2465   :  { %16027 = vrcp.f32 %v6159_v24  ;;  %15037 = vmatprep.subr.mxu0 %v6171_v2  ;;  %v6555_v24 = vld [vmem:[%s17598_s9 + $0x8] sm:$0xff] }
0x2466   :  { %15038 = vmatpush3.msra.mxu0 %v6171_v2 }
0x2468   :  { %v6169_v4 = vpop.permute.xlu1 %6168 }
0x2469   :  { %15039 = vmatprep.subr.mxu0 %v6169_v4 }
0x246a   :  { %15040 = vmatpush3.msra.mxu0 %v6169_v4 }
0x246b   :  { %15042 = vmatmul.mubr.msk.f32.vlgmr.msra.gmra.mxu0 %vm356_vm1, %v6163_v15  ;;  %15051 = vmatprep.subr.mxu0 %v4652_v31 }
0x246c   :  { %v6258_v42 = vpop.permute.xlu1 %6257  ;;  %15052 = vmatpush3.msra.mxu0 %v4652_v31 }
0x246d   :  { %15044 = vmatprep.subr.mxu1 %v6258_v42  ;;  %15053 = vmatprep.subr.mxu0 %v4651_v17 }
0x246e   :  { %v16026_v59 = vpop.eup %16025  ;;  %15045 = vmatpush3.msra.mxu1 %v6258_v42  ;;  %15054 = vmatpush3.msra.mxu0 %v4651_v17 }
0x246f   :  { %v6165_v10 = vmul.f32 %v16026_v59, %v16018_v3  ;;  %15055 = vmatprep.subr.mxu0 %v4650_v57 }
0x2470   :  { %v6256_v28 = vpop.permute.xlu1 %6255  ;;  %15056 = vmatpush3.msra.mxu0 %v4650_v57 }
0x2471   :  { %15046 = vmatprep.subr.mxu1 %v6256_v28  ;;  %15048 = vmatprep.mubr.msk.f32.mxu1 %vm356_vm1, %v6165_v10 }
0x2472   :  { %v16028_v29 = vpop.eup %16027  ;;  %15047 = vmatpush3.msra.mxu1 %v6256_v28  ;;  %15057 = vmatprep.subr.mxu0 %v4649_v33 }
0x2473   :  { %v6167_v30 = vmul.f32 %v16028_v29, %v16020_v7  ;;  %15058 = vmatpush3.msra.mxu0 %v4649_v33  ;;  %v6556_v7 = vld [vmem:[%s17598_s9 + $0x10] sm:$0xff] }
0x2474   :  { %15059 = vmatprep.subr.mxu0 %v4648_v61 }
0x2475   :  { %15049 = vmatmul.mubr.msk.f32.vlgmr.msra.gmra.mxu1 %vm356_vm1, %v6167_v30  ;;  %15060 = vmatpush3.msra.mxu0 %v4648_v61  ;;  %v17631_v30 = vld [vmem:[%s13361_s17] ss:$0 sm:$0xff]  ;;  %s16367_s17 = smov 25  }
0x2476   :  { %15061 = vmatprep.subr.mxu0 %v4647_v62  ;;  %s13374_s27 = sld [smem:[%s18918_s0 + %s16367_s17]]  }
0x2477   :  { %15062 = vmatpush3.msra.mxu0 %v4647_v62  ;;  %v6553_v62 = vld [vmem:[%s17641_s28 + $0x38] sm:$0xff] }
0x2478   :  { %15063 = vmatprep.subr.mxu0 %v4646_v35  ;;  %15073 = vmatprep.subr.mxu1 %v6553_v62 }
0x2479   :  { %15064 = vmatpush3.msra.mxu0 %v4646_v35  ;;  %v6552_v35 = vld [vmem:[%s17641_s28 + $0x30] sm:$0xff]  ;;  %15074 = vmatpush3.msra.mxu1 %v6553_v62 }
0x247a   :  { %15065 = vmatprep.subr.mxu0 %v4645_v26  ;;  %15075 = vmatprep.subr.mxu1 %v6552_v35 }
0x247b   :  { %15066 = vmatpush3.msra.mxu0 %v4645_v26  ;;  %v6551_v26 = vld [vmem:[%s17641_s28 + $0x28] sm:$0xff]  ;;  %15076 = vmatpush3.msra.mxu1 %v6552_v35 }
0x247c   :  { %15077 = vmatprep.subr.mxu1 %v6551_v26 }
0x247d   :  { %15078 = vmatpush3.msra.mxu1 %v6551_v26 }
0x252b   :  { %v15043_v27 = vpop.f32.mrf.mxu0 }
0x252c   :  { %6380 = vrot.lane.b32.xlu1 %v15043_v27, %s16338_s19  ;;  %v6550_v27 = vld [vmem:[%s17641_s28 + $0x20] sm:$0xff] }
0x252d   :  { %v6246_v37 = vpop.f32.mrf.mxu0  ;;  %15079 = vmatprep.subr.mxu1 %v6550_v27 }
0x252e   :  { %6378 = vrot.lane.b32.xlu0 %v6246_v37, %s16338_s19  ;;  %v6549_v37 = vld [vmem:[%s17641_s28 + $0x18] sm:$0xff]  ;;  %15080 = vmatpush3.msra.mxu1 %v6550_v27 }
0x252f   :  { %15081 = vmatprep.subr.mxu1 %v6549_v37 }
0x2530   :  { %6352 = vrot.lane.b32.xlu1 %v17460_v54, %s16342_s23  ;;  %v17580_v54 = vadd.f32 %v17333_v6, %v17167_v49  ;;  %v6349_v6 = vpop.permute.xlu1 %6348  ;;  %15082 = vmatpush3.msra.mxu1 %v6549_v37 }
0x2531   :  { %v6391_v14 = vsel %vm356_vm1, %v17392_v16, %v6349_v6 }
0x2532   :  { %6350 = vrot.lane.b32.xlu0 %v17462_v58, %s16342_s23  ;;  %v4540_v58 = vmul.f32 %v17576_v53, %v17576_v53 }
0x2534   :  { %6368 = vrot.lane.b32.xlu1 %v17518_v11, %s16340_s21  ;;  %v4541_v11 = vmul.f32 %v17580_v54, %v17580_v54  ;;  %v4544_v40 = vsel %vm185_vm0, %v4540_v58, 0.0  ;;  %v6365_v56 = vpop.permute.xlu1 %6364 }
0x2535   :  { %v15050_v38 = vpop.f32.mrf.mxu1  ;;  %v6395_v48 = vsel %vm1991_vm2, %v6391_v14, %v6365_v56 }
0x2536   :  { %6366 = vrot.lane.b32.xlu0 %v17520_v36, %s16340_s21  ;;  %v17588_v36 = vadd.f32 %v17339_v9, %v17188_v1  ;;  %v4547_v22 = vsel %vm185_vm0, %v4541_v11, 0.0  ;;  %v6561_v1 = vld [vmem:[%s17598_s9 + $0x38] sm:$0xff]  ;;  %v6347_v9 = vpop.permute.xlu0 %6346  ;;  %v16297_v11 = vld [vmem:[%s17161_s15 + $0x8] sm:$0xff] }
0x2537   :  { %v6333_v21 = vpop.f32.mrf.mxu1  ;;  %15095 = vmatprep.subr.mxu0 %v6561_v1  ;;  %v6390_v34 = vsel %vm356_vm1, %v17398_v43, %v6347_v9 }
0x2538   :  { %6384 = vrot.lane.b32.xlu1 %v15050_v38, %s16338_s19  ;;  %v4543_v51 = vmul.f32 %v17588_v36, %v17588_v36  ;;  %v6548_v38 = vld [vmem:[%s17641_s28 + $0x10] sm:$0xff] }
0x2539   :  { %15083 = vmatprep.subr.mxu1 %v6548_v38 }
0x253a   :  { %6382 = vrot.lane.b32.xlu0 %v6333_v21, %s16338_s19  ;;  %v4553_v49 = vsel %vm185_vm0, %v4543_v51, 0.0  ;;  %v6363_v13 = vpop.permute.xlu0 %6362  ;;  %v6547_v21 = vld [vmem:[%s17641_s28 + $0x8] sm:$0xff]  ;;  %15084 = vmatpush3.msra.mxu1 %v6548_v38  ;;  %v16298_v51 = vld [vmem:[%s17161_s15] sm:$0xff] }
0x253b   :  { %v6394_v18 = vsel %vm1991_vm2, %v6390_v34, %v6363_v13  ;;  %15085 = vmatprep.subr.mxu1 %v6547_v21  ;;  %v16299_v34 = vld [vmem:[%s17161_s15 + $0x18] sm:$0xff] }
0x253c   :  { %15086 = vmatpush3.msra.mxu1 %v6547_v21 }
0x2559   :  { %4545 = vadd.xlane.f32.xlu0 %v4544_v40 }
0x255c   :  { %4548 = vadd.xlane.f32.xlu1 %v4547_v22 }
0x2560   :  { %4554 = vadd.xlane.f32.xlu1 %v4553_v49 }
0x259e   :  { %v6381_v23 = vpop.permute.xlu1 %6380 }
0x259f   :  { %v6399_v50 = vsel %vm1996_vm3, %v6395_v48, %v6381_v23 }
0x25a0   :  { %v6379_v45 = vpop.permute.xlu0 %6378 }
0x25a1   :  { %v6398_v41 = vsel %vm1996_vm3, %v6394_v18, %v6379_v45  ;;  %v16300_v45 = vld [vmem:[%s17161_s15 + $0x10] sm:$0xff]  ;;  %s16368_s15 = smov 29  }
0x25a2   :  { %v6353_v19 = vpop.permute.xlu1 %6352  ;;  %15067 = vmatprep.mubr.msk.f32.mxu0 %vm185_vm0, %v6398_v41  ;;  %s13378_s4 = sld [smem:[%s18918_s0 + %s16368_s15]]  }
0x25a3   :  { %15068 = vmatmul.mubr.msk.f32.vlgmr.msra.gmra.mxu0 %vm185_vm0, %v6399_v50  ;;  %v6393_v25 = vsel %vm356_vm1, %v17400_v44, %v6353_v19 }
0x25a4   :  { %v6351_v43 = vpop.permute.xlu0 %6350  ;;  %15096 = vmatpush3.msra.mxu0 %v6561_v1  ;;  %v4537_v1 = vadd.f32 %v17343_v60, %v17191_v0 }
0x25a5   :  { %15097 = vmatprep.subr.mxu0 %v6560_v52  ;;  %v6392_v8 = vsel %vm356_vm1, %v17402_v32, %v6351_v43  ;;  %v6554_v32 = vld [vmem:[%s17598_s9] sm:$0xff] }
0x25a6   :  { %v6369_v16 = vpop.permute.xlu1 %6368  ;;  %15098 = vmatpush3.msra.mxu0 %v6560_v52  ;;  %v4542_v56 = vmul.f32 %v4537_v1, %v4537_v1 }
0x25a7   :  { %15099 = vmatprep.subr.mxu0 %v6559_v63  ;;  %v6397_v2 = vsel %vm1991_vm2, %v6393_v25, %v6369_v16 }
0x25a8   :  { %v6367_v3 = vpop.permute.xlu0 %6366  ;;  %15100 = vmatpush3.msra.mxu0 %v6559_v63  ;;  %v4550_v0 = vsel %vm185_vm0, %v4542_v56, 0.0 }
0x25a9   :  { %15101 = vmatprep.subr.mxu0 %v6558_v46  ;;  %v6396_v55 = vsel %vm1991_vm2, %v6392_v8, %v6367_v3 }
0x25aa   :  { %15102 = vmatpush3.msra.mxu0 %v6558_v46  ;;  %v6385_v47 = vpop.permute.xlu1 %6384 }
0x25ab   :  { %15103 = vmatprep.subr.mxu0 %v6557_v5  ;;  %v6401_v4 = vsel %vm1996_vm3, %v6397_v2, %v6385_v47 }
0x25ac   :  { %v6383_v12 = vpop.permute.xlu0 %6382  ;;  %15104 = vmatpush3.msra.mxu0 %v6557_v5 }
0x25ad   :  { %v6400_v39 = vsel %vm1996_vm3, %v6396_v55, %v6383_v12  ;;  %15105 = vmatprep.subr.mxu0 %v6556_v7 }
0x25ae   :  { %15070 = vmatprep.mubr.msk.f32.mxu0 %vm185_vm0, %v6400_v39  ;;  %15106 = vmatpush3.msra.mxu0 %v6556_v7 }
0x25af   :  { %15071 = vmatmul.mubr.msk.f32.gmra.mxu0 %vm185_vm0, %v6401_v4  ;;  %15107 = vmatprep.subr.mxu0 %v6555_v24 }
0x25b0   :  { %15108 = vmatpush3.msra.mxu0 %v6555_v24 }
0x25b1   :  { %15109 = vmatprep.subr.mxu0 %v6554_v32 }
0x25b2   :  { %15110 = vmatpush3.msra.mxu0 %v6554_v32 }
0x25e2   :  { %v4546_v44 = vpop.xlane.xlu0 %4545 }
0x25e3   :  { %v4556_v15 = vmul.f32 0.015625, %v4546_v44 }
0x25e5   :  { %v4560_v42 = vadd.f32 1e-06, %v4556_v15  ;;  %v4549_v59 = vpop.xlane.xlu1 %4548 }
0x25e6   :  { %v4557_v10 = vmul.f32 0.015625, %v4549_v59 }
0x25e7   :  { %16029 = vrsqrt.f32 %v4560_v42  ;;  %v13612_v42 = vld [vmem:[%s17693_s1] ss:$0 sm:$0xff] }
0x25e8   :  { %v4561_v28 = vadd.f32 1e-06, %v4557_v10 }
0x25e9   :  { %v4555_v43 = vpop.xlane.xlu1 %4554 }
0x25ea   :  { %16031 = vrsqrt.f32 %v4561_v28  ;;  %v4559_v46 = vmul.f32 0.015625, %v4555_v43 }
0x25ec   :  { %v4563_v8 = vadd.f32 1e-06, %v4559_v46 }
0x25f4   :  { %v16030_v29 = vpop.eup %16029 }
0x25f5   :  { %v4568_v31 = vmul.f32 %v16030_v29, %v17576_v53  ;;  %v6546_v53 = vld [vmem:[%s17641_s28] sm:$0xff] }
0x25f6   :  { %15087 = vmatprep.subr.mxu1 %v6546_v53 }
0x25f7   :  { %v16032_v17 = vpop.eup %16031  ;;  %v17635_v57 = vmul.f32 %v17631_v30, %v4568_v31  ;;  %15088 = vmatpush3.msra.mxu1 %v6546_v53 }
0x25f8   :  { %v4569_v33 = vmul.f32 %v16032_v17, %v17580_v54 }
0x25f9   :  { %15111 = vmatprep.mubr.msk.f32.mxu0 %vm185_vm0, %v17635_v57 }
0x25fa   :  { %v17646_v61 = vmul.f32 %v17631_v30, %v4569_v33 }
0x25fc   :  { %15112 = vmatmul.mubr.msk.f32.vlgmr.msra.gmra.mxu0 %vm185_vm0, %v17646_v61 }
0x2663   :  { %v15069_v54 = vpop.f32.mrf.mxu0 }
0x2664   :  { %v17659_v40 = vadd.f32 %v16297_v11, %v15069_v54 }
0x2665   :  { %v6480_v58 = vpop.f32.mrf.mxu0 }
0x2666   :  { %v17662_v22 = vadd.f32 %v16298_v51, %v6480_v58  ;;  %v6505_v9 = vmul.f32 %v17659_v40, %v17659_v40 }
0x2668   :  { %v6504_v49 = vmul.f32 %v17662_v22, %v17662_v22  ;;  %v6511_v13 = vsel %vm185_vm0, %v6505_v9, 0.0  ;;  %v161_v9 = vld [vmem:[%s17754_s6 + $0x8] sm:$0xff] }
0x266a   :  { %v6508_v6 = vsel %vm185_vm0, %v6504_v49, 0.0 }
0x266b   :  { %6509 = vadd.xlane.f32.xlu0 %v6508_v6 }
0x266f   :  { %6512 = vadd.xlane.f32.xlu0 %v6511_v13  ;;  %v15072_v23 = vpop.f32.mrf.mxu0  ;;  %v160_v13 = vld [vmem:[%s17754_s6] sm:$0xff] }
0x2670   :  { %v17673_v18 = vadd.f32 %v16299_v34, %v15072_v23 }
0x2671   :  { %v6490_v14 = vpop.f32.mrf.mxu0 }
0x2672   :  { %v17676_v48 = vadd.f32 %v16300_v45, %v6490_v14  ;;  %v6507_v60 = vmul.f32 %v17673_v18, %v17673_v18 }
0x2673   :  { %4551 = vadd.xlane.f32.xlu0 %v4550_v0 }
0x2674   :  { %v6517_v41 = vsel %vm185_vm0, %v6507_v60, 0.0  ;;  %v6506_v50 = vmul.f32 %v17676_v48, %v17676_v48  ;;  %v169_v60 = vld [vmem:[%s17754_s6 + $0x48] sm:$0xff] }
0x2675   :  { %6518 = vadd.xlane.f32.xlu1 %v6517_v41 }
0x2676   :  { %v6514_v19 = vsel %vm185_vm0, %v6506_v50, 0.0  ;;  %v168_v50 = vld [vmem:[%s17754_s6 + $0x40] sm:$0xff] }
0x2677   :  { %6515 = vadd.xlane.f32.xlu0 %v6514_v19 }
0x26bc   :  { %v17685_v52 = vpop.f32.mrf.mxu0 }
0x26bd   :  { %15117 = vmatprep.subr.msk.mxu1 %vm356_vm1, %v17685_v52 }
0x26be   :  { %v17701_v27 = vpop.f32.mrf.mxu0 }
0x26f4   :  { %v6510_v63 = vpop.xlane.xlu0 %6509 }
0x26f5   :  { %v6520_v16 = vmul.f32 0.015625, %v6510_v63 }
0x26f7   :  { %v6524_v3 = vadd.f32 1e-06, %v6520_v16 }
0x26f8   :  { %v6513_v5 = vpop.xlane.xlu0 %6512 }
0x26f9   :  { %16033 = vrsqrt.f32 %v6524_v3  ;;  %v6521_v7 = vmul.f32 0.015625, %v6513_v5 }
0x26fb   :  { %v6525_v47 = vadd.f32 1e-06, %v6521_v7 }
0x26fc   :  { %v4552_v25 = vpop.xlane.xlu0 %4551 }
0x26fd   :  { %16035 = vrsqrt.f32 %v6525_v47  ;;  %v4558_v55 = vmul.f32 0.015625, %v4552_v25 }
0x26fe   :  { %16037 = vrsqrt.f32 %v4563_v8  ;;  %v6519_v12 = vpop.xlane.xlu1 %6518 }
0x26ff   :  { %v4562_v24 = vadd.f32 1e-06, %v4558_v55  ;;  %v6523_v2 = vmul.f32 0.015625, %v6519_v12 }
0x2700   :  { %v6516_v39 = vpop.xlane.xlu0 %6515 }
0x2701   :  { %16039 = vrsqrt.f32 %v4562_v24  ;;  %v6527_v4 = vadd.f32 1e-06, %v6523_v2  ;;  %v6522_v32 = vmul.f32 0.015625, %v6516_v39 }
0x2703   :  { %16041 = vrsqrt.f32 %v6527_v4  ;;  %v6526_v44 = vadd.f32 1e-06, %v6522_v32 }
0x2705   :  { %16043 = vrsqrt.f32 %v6526_v44 }
0x2706   :  { %v16034_v15 = vpop.eup %16033 }
0x2707   :  { %v6532_v59 = vmul.f32 %v16034_v15, %v17662_v22 }
0x2709   :  { %v6542_v10 = vmul.f32 %v13612_v42, %v6532_v59 }
0x270a   :  { %v16036_v28 = vpop.eup %16035 }
0x270b   :  { %v16038_v29 = vpop.eup %16037  ;;  %15089 = vmatprep.mubr.msk.f32.mxu1 %vm185_vm0, %v6542_v10  ;;  %v6533_v31 = vmul.f32 %v16036_v28, %v17659_v40 }
0x270c   :  { %v4571_v62 = vmul.f32 %v16038_v29, %v17588_v36 }
0x270d   :  { %v6543_v17 = vmul.f32 %v13612_v42, %v6533_v31 }
0x270e   :  { %v16040_v33 = vpop.eup %16039  ;;  %v17711_v21 = vmul.f32 %v17631_v30, %v4571_v62 }
0x270f   :  { %15090 = vmatmul.mubr.msk.f32.vlgmr.msra.gmra.mxu1 %vm185_vm0, %v6543_v17  ;;  %v4570_v35 = vmul.f32 %v16040_v33, %v4537_v1 }
0x2710   :  { %v16042_v26 = vpop.eup %16041  ;;  %15118 = vmatpush3.xpose.msk.msra.mxu1 %vm356_vm1, %v17685_v52 }
0x2711   :  { %15119 = vmatprep.subr.msk.mxu1 %vm356_vm1, %v17701_v27  ;;  %v17708_v37 = vmul.f32 %v17631_v30, %v4570_v35  ;;  %v6535_v36 = vmul.f32 %v16042_v26, %v17673_v18 }
0x2712   :  { %v16044_v38 = vpop.eup %16043 }
0x2713   :  { %15114 = vmatprep.mubr.msk.f32.mxu0 %vm185_vm0, %v17708_v37  ;;  %v6534_v53 = vmul.f32 %v16044_v38, %v17676_v48  ;;  %v6545_v58 = vmul.f32 %v13612_v42, %v6535_v36 }
0x2714   :  { %15120 = vmatpush3.xpose.msk.msra.mxu1 %vm356_vm1, %v17701_v27  ;;  %15115 = vmatmul.mubr.msk.f32.gmra.mxu0 %vm185_vm0, %v17711_v21 }
0x2715   :  { %v6544_v54 = vmul.f32 %v13612_v42, %v6534_v53 }
0x2717   :  { %15092 = vmatprep.mubr.msk.f32.mxu1 %vm185_vm0, %v6544_v54 }
0x2718   :  { %15093 = vmatmul.mubr.msk.f32.gmra.mxu1 %vm185_vm0, %v6545_v58 }
0x27cf   :  { %v17723_v30 = vpop.f32.mrf.mxu1 }
0x27d1   :  { %v17725_v11 = vpop.f32.mrf.mxu1 }
0x27d2   :  { %15121 = vmatprep.mubr.msk.f32.mxu1 %vm356_vm1, %v17725_v11 }
0x27d3   :  { %15122 = vmatmul.mubr.msk.f32.vlgmr.msra.gmra.mxu1 %vm356_vm1, %v17723_v30 }
0x27d4   :  { %v17731_v51 = vpop.f32.mrf.mxu0 }
0x27d5   :  { %15124 = vmatprep.subr.msk.mxu1 %vm356_vm1, %v17731_v51 }
0x27d6   :  { %v17735_v49 = vpop.f32.mrf.mxu0  ;;  %15125 = vmatpush3.xpose.msk.msra.mxu1 %vm356_vm1, %v17731_v51 }
0x27d7   :  { %15126 = vmatprep.subr.msk.mxu1 %vm356_vm1, %v17735_v49 }
0x27d8   :  { %v17741_v1 = vpop.f32.mrf.mxu1 }
0x27da   :  { %v17743_v6 = vpop.f32.mrf.mxu1  ;;  %15127 = vmatpush3.xpose.msk.msra.mxu1 %vm356_vm1, %v17735_v49 }
0x27db   :  { %15128 = vmatprep.mubr.msk.f32.mxu1 %vm356_vm1, %v17743_v6 }
0x27dd   :  { %15129 = vmatmul.mubr.msk.f32.vlgmr.msra.gmra.mxu1 %vm356_vm1, %v17741_v1 }
0x2893   :  { %v15123_v56 = vpop.f32.mrf.mxu1 }
0x2894   :  { %v6848_v23 = vadd.f32 %v15123_v56, %v161_v9 }
0x2895   :  { %v6842_v34 = vpop.f32.mrf.mxu1 }
0x2896   :  { %v6843_v14 = vadd.f32 %v6842_v34, %v160_v13  ;;  %v6941_v45 = vsel %vm356_vm1, %v6848_v23, -inf }
0x2897   :  { %6942 = vmax.xlane.f32.xlu1 %v6941_v45 }
0x2898   :  { %v6938_v0 = vsel %vm356_vm1, %v6843_v14, -inf }
0x2899   :  { %6939 = vmax.xlane.f32.xlu0 %v6938_v0 }
0x289d   :  { %v15130_v41 = vpop.f32.mrf.mxu1 }
0x289e   :  { %v6935_v19 = vadd.f32 %v15130_v41, %v169_v60 }
0x289f   :  { %v6929_v43 = vpop.f32.mrf.mxu1 }
0x28a0   :  { %v6930_v63 = vadd.f32 %v6929_v43, %v168_v50  ;;  %v6947_v16 = vsel %vm356_vm1, %v6935_v19, -inf }
0x28a1   :  { %6948 = vmax.xlane.f32.xlu1 %v6947_v16 }
0x28a2   :  { %v6944_v46 = vsel %vm356_vm1, %v6930_v63, -inf }
0x28a3   :  { %6945 = vmax.xlane.f32.xlu0 %v6944_v46  ;;  %v163_v46 = vld [vmem:[%s17754_s6 + $0x18] sm:$0xff] }
0x2920   :  { %v6943_v3 = vpop.xlane.xlu1 %6942 }
0x2921   :  { %v6951_v5 = vsub.f32 %v6848_v23, %v6943_v3 }
0x2922   :  { %v6940_v7 = vpop.xlane.xlu0 %6939 }
0x2923   :  { %v6956_v8 = vmul.f32 1.442695, %v6951_v5  ;;  %v6950_v47 = vsub.f32 %v6843_v14, %v6940_v7  ;;  %v162_v5 = vld [vmem:[%s17754_s6 + $0x10] sm:$0xff] }
0x2925   :  { %16045 = vpow2.f32 %v6956_v8  ;;  %v6954_v25 = vmul.f32 1.442695, %v6950_v47 }
0x2927   :  { %16047 = vpow2.f32 %v6954_v25 }
0x292a   :  { %v6949_v32 = vpop.xlane.xlu1 %6948 }
0x292b   :  { %v6953_v15 = vsub.f32 %v6935_v19, %v6949_v32 }
0x292c   :  { %v6946_v39 = vpop.xlane.xlu0 %6945 }
0x292d   :  { %v6952_v4 = vsub.f32 %v6930_v63, %v6946_v39  ;;  %v6960_v42 = vmul.f32 1.442695, %v6953_v15  ;;  %v170_v39 = vld [vmem:[%s17754_s6 + $0x50] sm:$0xff] }
0x292f   :  { %v6958_v44 = vmul.f32 1.442695, %v6952_v4  ;;  %v171_v4 = vld [vmem:[%s17754_s6 + $0x58] sm:$0xff] }
0x2931   :  { %16049 = vpow2.f32 %v6958_v44 }
0x2932   :  { %v16046_v55 = vpop.eup %16045  ;;  %16051 = vpow2.f32 %v6960_v42 }
0x2933   :  { %v6965_v12 = vsel %vm356_vm1, %v16046_v55, 0.0 }
0x2934   :  { %v16048_v24 = vpop.eup %16047  ;;  %6966 = vadd.xlane.f32.xlu1 %v6965_v12 }
0x2935   :  { %v6962_v2 = vsel %vm356_vm1, %v16048_v24, 0.0 }
0x2936   :  { %6963 = vadd.xlane.f32.xlu0 %v6962_v2 }
0x293e   :  { %v16050_v59 = vpop.eup %16049 }
0x293f   :  { %v6968_v10 = vsel %vm356_vm1, %v16050_v59, 0.0  ;;  %v16052_v28 = vpop.eup %16051 }
0x2940   :  { %v6971_v29 = vsel %vm356_vm1, %v16052_v28, 0.0 }
0x2945   :  { %6982 = vrot.lane.b32.xlu1 %v17701_v27, %s16336_s14 }
0x2949   :  { %7162 = vrot.lane.b32.xlu1 %v17685_v52, %s16339_s20 }
0x294c   :  { %6984 = vrot.lane.b32.xlu0 %v17685_v52, %s16336_s14 }
0x294d   :  { %7071 = vrot.lane.b32.xlu1 %v17731_v51, %s16336_s14 }
0x2950   :  { %7160 = vrot.lane.b32.xlu0 %v17701_v27, %s16339_s20 }
0x2951   :  { %7069 = vrot.lane.b32.xlu1 %v17735_v49, %s16336_s14 }
0x2954   :  { %7156 = vrot.lane.b32.xlu0 %v17725_v11, %s16339_s20 }
0x2955   :  { %7158 = vrot.lane.b32.xlu1 %v17723_v30, %s16339_s20 }
0x2973   :  { %6969 = vadd.xlane.f32.xlu0 %v6968_v10 }
0x2979   :  { %6972 = vadd.xlane.f32.xlu1 %v6971_v29 }
0x2989   :  { %7253 = vrot.lane.b32.xlu0 %v17731_v51, %s16339_s20 }
0x298a   :  { %7251 = vrot.lane.b32.xlu1 %v17735_v49, %s16339_s20 }
0x298d   :  { %7247 = vrot.lane.b32.xlu0 %v17743_v6, %s16339_s20 }
0x298e   :  { %7249 = vrot.lane.b32.xlu1 %v17741_v1, %s16339_s20 }
0x29bd   :  { %v6967_v31 = vpop.xlane.xlu1 %6966 }
0x29be   :  { %16053 = vrcp.f32 %v6967_v31 }
0x29bf   :  { %v6964_v17 = vpop.xlane.xlu0 %6963 }
0x29c0   :  { %16055 = vrcp.f32 %v6964_v17 }
0x29c1   :  { %v6983_v33 = vpop.permute.xlu1 %6982 }
0x29c3   :  { %v6985_v62 = vpop.permute.xlu0 %6984 }
0x29c4   :  { %15131 = vmatprep.subr.mxu1 %v6985_v62 }
0x29c5   :  { %v7163_v35 = vpop.permute.xlu1 %7162  ;;  %15132 = vmatpush3.msra.mxu1 %v6985_v62 }
0x29c6   :  { %15133 = vmatprep.subr.mxu1 %v6983_v33 }
0x29c7   :  { %15134 = vmatpush3.msra.mxu1 %v6983_v33  ;;  %v7161_v38 = vpop.permute.xlu0 %7160 }
0x29c8   :  { %15145 = vmatprep.subr.msk.mxu1 %vm356_vm1, %v7163_v35 }
0x29c9   :  { %v7072_v26 = vpop.permute.xlu1 %7071 }
0x29ca   :  { %15138 = vmatprep.subr.mxu0 %v7072_v26 }
0x29cb   :  { %15139 = vmatpush3.msra.mxu0 %v7072_v26  ;;  %v16054_v36 = vpop.eup %16053  ;;  %v7157_v56 = vpop.permute.xlu0 %7156 }
0x29cc   :  { %v6977_v9 = vmul.f32 %v16054_v36, %v16046_v55 }
0x29cd   :  { %v16056_v53 = vpop.eup %16055  ;;  %v7070_v54 = vpop.permute.xlu1 %7069 }
0x29ce   :  { %15140 = vmatprep.subr.mxu0 %v7070_v54  ;;  %v6975_v58 = vmul.f32 %v16056_v53, %v16048_v24 }
0x29cf   :  { %15141 = vmatpush3.msra.mxu0 %v7070_v54 }
0x29d0   :  { %15135 = vmatprep.mubr.msk.f32.mxu1 %vm356_vm1, %v6975_v58 }
0x29d1   :  { %15136 = vmatmul.mubr.msk.f32.vlgmr.msra.gmra.mxu1 %vm356_vm1, %v6977_v9  ;;  %v7159_v13 = vpop.permute.xlu1 %7158 }
0x29d2   :  { %15146 = vmatpush3.xpose.msk.msra.mxu1 %vm356_vm1, %v7163_v35  ;;  %15149 = vmatprep.mubr.msk.f32.mxu1 %vm356_vm1, %v7157_v56 }
0x29d3   :  { %15147 = vmatprep.subr.msk.mxu1 %vm356_vm1, %v7161_v38 }
0x29d6   :  { %15148 = vmatpush3.xpose.msk.msra.mxu1 %vm356_vm1, %v7161_v38 }
0x29d9   :  { %15150 = vmatmul.mubr.msk.f32.vlgmr.msra.gmra.mxu1 %vm356_vm1, %v7159_v13 }
0x29fc   :  { %v6970_v23 = vpop.xlane.xlu0 %6969 }
0x29fd   :  { %16057 = vrcp.f32 %v6970_v23 }
0x2a00   :  { %v7254_v34 = vpop.permute.xlu0 %7253 }
0x2a01   :  { %15152 = vmatprep.subr.msk.mxu0 %vm356_vm1, %v7254_v34 }
0x2a02   :  { %v6973_v14 = vpop.xlane.xlu1 %6972 }
0x2a03   :  { %16059 = vrcp.f32 %v6973_v14 }
0x2a04   :  { %v7248_v50 = vpop.permute.xlu0 %7247 }
0x2a06   :  { %v7252_v19 = vpop.permute.xlu1 %7251 }
0x2a0a   :  { %v16058_v45 = vpop.eup %16057  ;;  %v7250_v43 = vpop.permute.xlu1 %7249 }
0x2a0b   :  { %v6979_v0 = vmul.f32 %v16058_v45, %v16050_v59 }
0x2a0d   :  { %15142 = vmatprep.mubr.msk.f32.mxu0 %vm356_vm1, %v6979_v0 }
0x2a10   :  { %v16060_v60 = vpop.eup %16059 }
0x2a11   :  { %v6981_v41 = vmul.f32 %v16060_v60, %v16052_v28 }
0x2a13   :  { %15143 = vmatmul.mubr.msk.f32.vlgmr.msra.gmra.mxu0 %vm356_vm1, %v6981_v41 }
0x2a14   :  { %15153 = vmatpush3.xpose.msk.msra.mxu0 %vm356_vm1, %v7254_v34  ;;  %15156 = vmatprep.mubr.msk.f32.mxu0 %vm356_vm1, %v7248_v50 }
0x2a15   :  { %15154 = vmatprep.subr.msk.mxu0 %vm356_vm1, %v7252_v19 }
0x2a18   :  { %15155 = vmatpush3.xpose.msk.msra.mxu0 %vm356_vm1, %v7252_v19 }
0x2a1b   :  { %15157 = vmatmul.mubr.msk.f32.vlgmr.msra.gmra.mxu0 %vm356_vm1, %v7250_v43 }
0x2a91   :  { %v17808_v63 = vpop.f32.mrf.mxu1 }
0x2a93   :  { %v17810_v16 = vpop.f32.mrf.mxu1 }
0x2a99   :  { %v15151_v3 = vpop.f32.mrf.mxu1 }
0x2a9a   :  { %v7244_v7 = vadd.f32 %v15151_v3, %v163_v46 }
0x2a9b   :  { %v7238_v8 = vpop.f32.mrf.mxu1 }
0x2a9c   :  { %v7239_v47 = vadd.f32 %v7238_v8, %v162_v5  ;;  %v7341_v25 = vsel %vm356_vm1, %v7244_v7, -inf }
0x2a9d   :  { %7342 = vmax.xlane.f32.xlu1 %v7341_v25 }
0x2a9e   :  { %v7338_v55 = vsel %vm356_vm1, %v7239_v47, -inf }
0x2a9f   :  { %7339 = vmax.xlane.f32.xlu0 %v7338_v55 }
0x2ad3   :  { %v17816_v12 = vpop.f32.mrf.mxu0 }
0x2ad5   :  { %v17818_v24 = vpop.f32.mrf.mxu0 }
0x2adb   :  { %v15158_v2 = vpop.f32.mrf.mxu0 }
0x2adc   :  { %v7335_v15 = vadd.f32 %v15158_v2, %v171_v4 }
0x2add   :  { %v7329_v32 = vpop.f32.mrf.mxu0 }
0x2ade   :  { %v7330_v44 = vadd.f32 %v7329_v32, %v170_v39  ;;  %v7347_v59 = vsel %vm356_vm1, %v7335_v15, -inf }
0x2ae0   :  { %v7344_v42 = vsel %vm356_vm1, %v7330_v44, -inf }
0x2ae1   :  { %7345 = vmax.xlane.f32.xlu0 %v7344_v42 }
0x2ae5   :  { %7348 = vmax.xlane.f32.xlu0 %v7347_v59 }
0x2b26   :  { %v7343_v10 = vpop.xlane.xlu1 %7342 }
0x2b27   :  { %v7351_v28 = vsub.f32 %v7244_v7, %v7343_v10 }
0x2b28   :  { %v7340_v29 = vpop.xlane.xlu0 %7339 }
0x2b29   :  { %v7356_v31 = vmul.f32 1.442695, %v7351_v28  ;;  %v7350_v17 = vsub.f32 %v7239_v47, %v7340_v29 }
0x2b2b   :  { %16061 = vpow2.f32 %v7356_v31  ;;  %v7354_v33 = vmul.f32 1.442695, %v7350_v17  ;;  %v165_v31 = vld [vmem:[%s17754_s6 + $0x28] sm:$0xff] }
0x2b2d   :  { %16063 = vpow2.f32 %v7354_v33  ;;  %v164_v33 = vld [vmem:[%s17754_s6 + $0x20] sm:$0xff] }
0x2b38   :  { %v16062_v62 = vpop.eup %16061 }
0x2b39   :  { %v7365_v35 = vsel %vm356_vm1, %v16062_v62, 0.0 }
0x2b3a   :  { %v16064_v26 = vpop.eup %16063  ;;  %7366 = vadd.xlane.f32.xlu1 %v7365_v35 }
0x2b3b   :  { %v7362_v38 = vsel %vm356_vm1, %v16064_v26, 0.0 }
0x2b3c   :  { %7363 = vadd.xlane.f32.xlu0 %v7362_v38 }
0x2b4b   :  { %7382 = vrot.lane.b32.xlu1 %v17701_v27, %s16338_s19 }
0x2b4f   :  { %7562 = vrot.lane.b32.xlu1 %v17685_v52, %s16341_s22 }
0x2b52   :  { %7384 = vrot.lane.b32.xlu0 %v17685_v52, %s16338_s19 }
0x2b53   :  { %7471 = vrot.lane.b32.xlu1 %v17731_v51, %s16338_s19 }
0x2b56   :  { %7560 = vrot.lane.b32.xlu0 %v17701_v27, %s16341_s22 }
0x2b57   :  { %7469 = vrot.lane.b32.xlu1 %v17735_v49, %s16338_s19 }
0x2b5a   :  { %7556 = vrot.lane.b32.xlu0 %v17725_v11, %s16341_s22 }
0x2b5b   :  { %7558 = vrot.lane.b32.xlu1 %v17723_v30, %s16341_s22 }
0x2b6a   :  { %v7346_v36 = vpop.xlane.xlu0 %7345 }
0x2b6b   :  { %v7352_v53 = vsub.f32 %v7330_v44, %v7346_v36 }
0x2b6d   :  { %v7358_v54 = vmul.f32 1.442695, %v7352_v53 }
0x2b6e   :  { %v7349_v58 = vpop.xlane.xlu0 %7348 }
0x2b6f   :  { %16065 = vpow2.f32 %v7358_v54  ;;  %v7353_v9 = vsub.f32 %v7335_v15, %v7349_v58 }
0x2b71   :  { %v7360_v56 = vmul.f32 1.442695, %v7353_v9  ;;  %v172_v9 = vld [vmem:[%s17754_s6 + $0x60] sm:$0xff] }
0x2b73   :  { %16067 = vpow2.f32 %v7360_v56  ;;  %v173_v56 = vld [vmem:[%s17754_s6 + $0x68] sm:$0xff] }
0x2b7c   :  { %v16066_v13 = vpop.eup %16065 }
0x2b7d   :  { %v7368_v23 = vsel %vm356_vm1, %v16066_v13, 0.0 }
0x2b7e   :  { %7369 = vadd.xlane.f32.xlu0 %v7368_v23 }
0x2b80   :  { %v16068_v34 = vpop.eup %16067 }
0x2b81   :  { %v7371_v14 = vsel %vm356_vm1, %v16068_v34, 0.0 }
0x2b82   :  { %7372 = vadd.xlane.f32.xlu1 %v7371_v14 }
0x2b93   :  { %7651 = vrot.lane.b32.xlu1 %v17735_v49, %s16341_s22 }
0x2b94   :  { %7653 = vrot.lane.b32.xlu0 %v17731_v51, %s16341_s22 }
0x2b97   :  { %7649 = vrot.lane.b32.xlu1 %v17741_v1, %s16341_s22 }
0x2b98   :  { %7647 = vrot.lane.b32.xlu0 %v17743_v6, %s16341_s22 }
0x2bc3   :  { %v7367_v45 = vpop.xlane.xlu1 %7366 }
0x2bc4   :  { %16069 = vrcp.f32 %v7367_v45 }
0x2bc5   :  { %v7364_v0 = vpop.xlane.xlu0 %7363 }
0x2bc6   :  { %16071 = vrcp.f32 %v7364_v0 }
0x2bc7   :  { %v7383_v60 = vpop.permute.xlu1 %7382 }
0x2bc9   :  { %v7385_v41 = vpop.permute.xlu0 %7384 }
0x2bca   :  { %15159 = vmatprep.subr.mxu1 %v7385_v41 }
0x2bcb   :  { %v7563_v50 = vpop.permute.xlu1 %7562  ;;  %15160 = vmatpush3.msra.mxu1 %v7385_v41 }
0x2bcc   :  { %15161 = vmatprep.subr.mxu1 %v7383_v60 }
0x2bcd   :  { %15162 = vmatpush3.msra.mxu1 %v7383_v60  ;;  %v7561_v43 = vpop.permute.xlu0 %7560 }
0x2bce   :  { %15173 = vmatprep.subr.msk.mxu1 %vm356_vm1, %v7563_v50 }
0x2bcf   :  { %v7472_v19 = vpop.permute.xlu1 %7471 }
0x2bd0   :  { %15166 = vmatprep.subr.mxu0 %v7472_v19 }
0x2bd1   :  { %15167 = vmatpush3.msra.mxu0 %v7472_v19  ;;  %v16070_v46 = vpop.eup %16069  ;;  %v7557_v47 = vpop.permute.xlu0 %7556 }
0x2bd2   :  { %v7377_v8 = vmul.f32 %v16070_v46, %v16062_v62 }
0x2bd3   :  { %v16072_v3 = vpop.eup %16071  ;;  %v7470_v5 = vpop.permute.xlu1 %7469 }
0x2bd4   :  { %15168 = vmatprep.subr.mxu0 %v7470_v5  ;;  %v7375_v7 = vmul.f32 %v16072_v3, %v16064_v26 }
0x2bd5   :  { %15169 = vmatpush3.msra.mxu0 %v7470_v5 }
0x2bd6   :  { %15163 = vmatprep.mubr.msk.f32.mxu1 %vm356_vm1, %v7375_v7 }
0x2bd7   :  { %15164 = vmatmul.mubr.msk.f32.vlgmr.msra.gmra.mxu1 %vm356_vm1, %v7377_v8  ;;  %v7559_v25 = vpop.permute.xlu1 %7558 }
0x2bd8   :  { %15174 = vmatpush3.xpose.msk.msra.mxu1 %vm356_vm1, %v7563_v50  ;;  %15177 = vmatprep.mubr.msk.f32.mxu1 %vm356_vm1, %v7557_v47 }
0x2bd9   :  { %15175 = vmatprep.subr.msk.mxu1 %vm356_vm1, %v7561_v43 }
0x2bdc   :  { %15176 = vmatpush3.xpose.msk.msra.mxu1 %vm356_vm1, %v7561_v43 }
0x2bdf   :  { %15178 = vmatmul.mubr.msk.f32.vlgmr.msra.gmra.mxu1 %vm356_vm1, %v7559_v25 }
0x2c07   :  { %v7370_v55 = vpop.xlane.xlu0 %7369 }
0x2c08   :  { %16073 = vrcp.f32 %v7370_v55 }
0x2c0b   :  { %v7373_v2 = vpop.xlane.xlu1 %7372  ;;  %v7654_v39 = vpop.permute.xlu0 %7653 }
0x2c0c   :  { %16075 = vrcp.f32 %v7373_v2  ;;  %15180 = vmatprep.subr.msk.mxu0 %vm356_vm1, %v7654_v39 }
0x2c0f   :  { %v7648_v42 = vpop.permute.xlu0 %7647  ;;  %v7652_v59 = vpop.permute.xlu1 %7651 }
0x2c13   :  { %v7650_v10 = vpop.permute.xlu1 %7649 }
0x2c15   :  { %v16074_v4 = vpop.eup %16073 }
0x2c16   :  { %v7379_v32 = vmul.f32 %v16074_v4, %v16066_v13 }
0x2c18   :  { %15170 = vmatprep.mubr.msk.f32.mxu0 %vm356_vm1, %v7379_v32 }
0x2c19   :  { %v16076_v44 = vpop.eup %16075 }
0x2c1a   :  { %v7381_v15 = vmul.f32 %v16076_v44, %v16068_v34 }
0x2c1c   :  { %15171 = vmatmul.mubr.msk.f32.vlgmr.msra.gmra.mxu0 %vm356_vm1, %v7381_v15 }
0x2c1d   :  { %15181 = vmatpush3.xpose.msk.msra.mxu0 %vm356_vm1, %v7654_v39  ;;  %15184 = vmatprep.mubr.msk.f32.mxu0 %vm356_vm1, %v7648_v42 }
0x2c1e   :  { %15182 = vmatprep.subr.msk.mxu0 %vm356_vm1, %v7652_v59 }
0x2c21   :  { %15183 = vmatpush3.xpose.msk.msra.mxu0 %vm356_vm1, %v7652_v59 }
0x2c24   :  { %15185 = vmatmul.mubr.msk.f32.vlgmr.msra.gmra.mxu0 %vm356_vm1, %v7650_v10 }
0x2c97   :  { %v17868_v28 = vpop.f32.mrf.mxu1 }
0x2c99   :  { %v17870_v29 = vpop.f32.mrf.mxu1 }
0x2c9f   :  { %v15179_v17 = vpop.f32.mrf.mxu1 }
0x2ca0   :  { %v7644_v62 = vadd.f32 %v15179_v17, %v165_v31 }
0x2ca1   :  { %v7638_v35 = vpop.f32.mrf.mxu1 }
0x2ca2   :  { %v7639_v26 = vadd.f32 %v7638_v35, %v164_v33  ;;  %v7741_v38 = vsel %vm356_vm1, %v7644_v62, -inf }
0x2ca3   :  { %7742 = vmax.xlane.f32.xlu1 %v7741_v38 }
0x2ca4   :  { %v7738_v36 = vsel %vm356_vm1, %v7639_v26, -inf }
0x2ca5   :  { %7739 = vmax.xlane.f32.xlu0 %v7738_v36 }
0x2cdc   :  { %v17876_v53 = vpop.f32.mrf.mxu0 }
0x2cde   :  { %v17878_v54 = vpop.f32.mrf.mxu0 }
0x2ce4   :  { %v15186_v58 = vpop.f32.mrf.mxu0 }
0x2ce5   :  { %v7735_v34 = vadd.f32 %v15186_v58, %v173_v56 }
0x2ce6   :  { %v7729_v13 = vpop.f32.mrf.mxu0 }
0x2ce7   :  { %v7730_v23 = vadd.f32 %v7729_v13, %v172_v9  ;;  %v7747_v45 = vsel %vm356_vm1, %v7735_v34, -inf }
0x2ce9   :  { %v7744_v14 = vsel %vm356_vm1, %v7730_v23, -inf }
0x2cea   :  { %7745 = vmax.xlane.f32.xlu0 %v7744_v14 }
0x2cee   :  { %7748 = vmax.xlane.f32.xlu0 %v7747_v45 }
0x2d2c   :  { %v7743_v0 = vpop.xlane.xlu1 %7742 }
0x2d2d   :  { %v7751_v60 = vsub.f32 %v7644_v62, %v7743_v0 }
0x2d2e   :  { %v7740_v41 = vpop.xlane.xlu0 %7739 }
0x2d2f   :  { %v7756_v50 = vmul.f32 1.442695, %v7751_v60  ;;  %v7750_v19 = vsub.f32 %v7639_v26, %v7740_v41 }
0x2d31   :  { %16077 = vpow2.f32 %v7756_v50  ;;  %v7754_v43 = vmul.f32 1.442695, %v7750_v19  ;;  %v167_v50 = vld [vmem:[%s17754_s6 + $0x38] sm:$0xff] }
0x2d33   :  { %16079 = vpow2.f32 %v7754_v43  ;;  %v166_v43 = vld [vmem:[%s17754_s6 + $0x30] sm:$0xff] }
0x2d3e   :  { %v16078_v46 = vpop.eup %16077 }
0x2d3f   :  { %v7765_v3 = vsel %vm356_vm1, %v16078_v46, 0.0 }
0x2d40   :  { %v16080_v5 = vpop.eup %16079  ;;  %7766 = vadd.xlane.f32.xlu1 %v7765_v3 }
0x2d41   :  { %v7762_v7 = vsel %vm356_vm1, %v16080_v5, 0.0 }
0x2d42   :  { %7763 = vadd.xlane.f32.xlu0 %v7762_v7 }
0x2d51   :  { %7782 = vrot.lane.b32.xlu1 %v17701_v27, %s16340_s21 }
0x2d55   :  { %7962 = vrot.lane.b32.xlu1 %v17685_v52, %s16343_s24 }
0x2d58   :  { %7784 = vrot.lane.b32.xlu0 %v17685_v52, %s16340_s21 }
0x2d59   :  { %7871 = vrot.lane.b32.xlu1 %v17731_v51, %s16340_s21 }
0x2d5c   :  { %7960 = vrot.lane.b32.xlu0 %v17701_v27, %s16343_s24 }
0x2d5d   :  { %7869 = vrot.lane.b32.xlu1 %v17735_v49, %s16340_s21 }
0x2d60   :  { %7956 = vrot.lane.b32.xlu0 %v17725_v11, %s16343_s24 }
0x2d61   :  { %7958 = vrot.lane.b32.xlu1 %v17723_v30, %s16343_s24 }
0x2d73   :  { %v7746_v8 = vpop.xlane.xlu0 %7745 }
0x2d74   :  { %v7752_v47 = vsub.f32 %v7730_v23, %v7746_v8 }
0x2d76   :  { %v7758_v25 = vmul.f32 1.442695, %v7752_v47 }
0x2d77   :  { %v7749_v55 = vpop.xlane.xlu0 %7748 }
0x2d78   :  { %16081 = vpow2.f32 %v7758_v25  ;;  %v7753_v2 = vsub.f32 %v7735_v34, %v7749_v55 }
0x2d7a   :  { %v7760_v39 = vmul.f32 1.442695, %v7753_v2  ;;  %v174_v2 = vld [vmem:[%s17754_s6 + $0x70] sm:$0xff] }
0x2d7c   :  { %16083 = vpow2.f32 %v7760_v39  ;;  %v175_v39 = vld [vmem:[%s17754_s6 + $0x78] sm:$0xff] }
0x2d85   :  { %v16082_v4 = vpop.eup %16081 }
0x2d86   :  { %v7768_v32 = vsel %vm356_vm1, %v16082_v4, 0.0 }
0x2d87   :  { %7769 = vadd.xlane.f32.xlu0 %v7768_v32 }
0x2d89   :  { %v16084_v44 = vpop.eup %16083 }
0x2d8a   :  { %v7771_v15 = vsel %vm356_vm1, %v16084_v44, 0.0 }
0x2d8b   :  { %7772 = vadd.xlane.f32.xlu1 %v7771_v15 }
0x2d9c   :  { %8051 = vrot.lane.b32.xlu1 %v17735_v49, %s16343_s24 }
0x2d9d   :  { %8053 = vrot.lane.b32.xlu0 %v17731_v51, %s16343_s24 }
0x2da0   :  { %8049 = vrot.lane.b32.xlu1 %v17741_v1, %s16343_s24 }
0x2da1   :  { %8047 = vrot.lane.b32.xlu0 %v17743_v6, %s16343_s24 }
0x2dc9   :  { %v7767_v30 = vpop.xlane.xlu1 %7766 }
0x2dca   :  { %16085 = vrcp.f32 %v7767_v30 }
0x2dcb   :  { %v7764_v11 = vpop.xlane.xlu0 %7763 }
0x2dcc   :  { %16087 = vrcp.f32 %v7764_v11 }
0x2dcd   :  { %v7783_v42 = vpop.permute.xlu1 %7782 }
0x2dcf   :  { %v7785_v59 = vpop.permute.xlu0 %7784 }
0x2dd0   :  { %15187 = vmatprep.subr.mxu1 %v7785_v59 }
0x2dd1   :  { %v7963_v10 = vpop.permute.xlu1 %7962  ;;  %15188 = vmatpush3.msra.mxu1 %v7785_v59 }
0x2dd2   :  { %15189 = vmatprep.subr.mxu1 %v7783_v42 }
0x2dd3   :  { %15190 = vmatpush3.msra.mxu1 %v7783_v42  ;;  %v7961_v17 = vpop.permute.xlu0 %7960 }
0x2dd4   :  { %15201 = vmatprep.subr.msk.mxu1 %vm356_vm1, %v7963_v10 }
0x2dd5   :  { %v7872_v31 = vpop.permute.xlu1 %7871 }
0x2dd6   :  { %15194 = vmatprep.subr.mxu0 %v7872_v31 }
0x2dd7   :  { %15195 = vmatpush3.msra.mxu0 %v7872_v31  ;;  %v16086_v1 = vpop.eup %16085  ;;  %v7957_v26 = vpop.permute.xlu0 %7956 }
0x2dd8   :  { %v7777_v35 = vmul.f32 %v16086_v1, %v16078_v46 }
0x2dd9   :  { %v16088_v33 = vpop.eup %16087  ;;  %v7870_v6 = vpop.permute.xlu1 %7869 }
0x2dda   :  { %15196 = vmatprep.subr.mxu0 %v7870_v6  ;;  %v7775_v62 = vmul.f32 %v16088_v33, %v16080_v5 }
0x2ddb   :  { %15197 = vmatpush3.msra.mxu0 %v7870_v6 }
0x2ddc   :  { %15191 = vmatprep.mubr.msk.f32.mxu1 %vm356_vm1, %v7775_v62 }
0x2ddd   :  { %15192 = vmatmul.mubr.msk.f32.vlgmr.msra.gmra.mxu1 %vm356_vm1, %v7777_v35  ;;  %v7959_v38 = vpop.permute.xlu1 %7958 }
0x2dde   :  { %15202 = vmatpush3.xpose.msk.msra.mxu1 %vm356_vm1, %v7963_v10  ;;  %15205 = vmatprep.mubr.msk.f32.mxu1 %vm356_vm1, %v7957_v26 }
0x2ddf   :  { %15203 = vmatprep.subr.msk.mxu1 %vm356_vm1, %v7961_v17 }
0x2de2   :  { %15204 = vmatpush3.xpose.msk.msra.mxu1 %vm356_vm1, %v7961_v17 }
0x2de5   :  { %15206 = vmatmul.mubr.msk.f32.vlgmr.msra.gmra.mxu1 %vm356_vm1, %v7959_v38 }
0x2e10   :  { %v7770_v36 = vpop.xlane.xlu0 %7769 }
0x2e11   :  { %16089 = vrcp.f32 %v7770_v36 }
0x2e14   :  { %v7773_v58 = vpop.xlane.xlu1 %7772  ;;  %v8054_v9 = vpop.permute.xlu0 %8053 }
0x2e15   :  { %16091 = vrcp.f32 %v7773_v58  ;;  %15208 = vmatprep.subr.msk.mxu0 %vm356_vm1, %v8054_v9 }
0x2e18   :  { %v8048_v14 = vpop.permute.xlu0 %8047  ;;  %v8052_v45 = vpop.permute.xlu1 %8051 }
0x2e1c   :  { %v8050_v0 = vpop.permute.xlu1 %8049 }
0x2e1e   :  { %v16090_v56 = vpop.eup %16089 }
0x2e1f   :  { %v7779_v13 = vmul.f32 %v16090_v56, %v16082_v4 }
0x2e21   :  { %15198 = vmatprep.mubr.msk.f32.mxu0 %vm356_vm1, %v7779_v13 }
0x2e22   :  { %v16092_v23 = vpop.eup %16091 }
0x2e23   :  { %v7781_v34 = vmul.f32 %v16092_v23, %v16084_v44 }
0x2e25   :  { %15199 = vmatmul.mubr.msk.f32.vlgmr.msra.gmra.mxu0 %vm356_vm1, %v7781_v34 }
0x2e26   :  { %15209 = vmatpush3.xpose.msk.msra.mxu0 %vm356_vm1, %v8054_v9  ;;  %15212 = vmatprep.mubr.msk.f32.mxu0 %vm356_vm1, %v8048_v14 }
0x2e27   :  { %15210 = vmatprep.subr.msk.mxu0 %vm356_vm1, %v8052_v45 }
0x2e2a   :  { %15211 = vmatpush3.xpose.msk.msra.mxu0 %vm356_vm1, %v8052_v45 }
0x2e2d   :  { %15213 = vmatmul.mubr.msk.f32.vlgmr.msra.gmra.mxu0 %vm356_vm1, %v8050_v0 }
0x2e9d   :  { %v15193_v60 = vpop.f32.mrf.mxu1 }
0x2e9f   :  { %v7860_v41 = vpop.f32.mrf.mxu1 }
0x2ea5   :  { %v15207_v19 = vpop.f32.mrf.mxu1 }
0x2ea6   :  { %v8044_v46 = vadd.f32 %v15207_v19, %v167_v50 }
0x2ea7   :  { %v8038_v3 = vpop.f32.mrf.mxu1 }
0x2ea8   :  { %v8039_v5 = vadd.f32 %v8038_v3, %v166_v43  ;;  %v8141_v7 = vsel %vm356_vm1, %v8044_v46, -inf  ;;  %v6568_v3 = vld [vmem:[%s17969_s12 + $0x30] sm:$0xff] }
0x2ea9   :  { %8142 = vmax.xlane.f32.xlu1 %v8141_v7  ;;  %v6566_v7 = vld [vmem:[%s17969_s12 + $0x20] sm:$0xff] }
0x2eaa   :  { %v8138_v8 = vsel %vm356_vm1, %v8039_v5, -inf }
0x2eab   :  { %8139 = vmax.xlane.f32.xlu0 %v8138_v8  ;;  %v6565_v8 = vld [vmem:[%s17969_s12 + $0x18] sm:$0xff] }
0x2ee5   :  { %v17932_v47 = vpop.f32.mrf.mxu0 }
0x2ee7   :  { %v17934_v25 = vpop.f32.mrf.mxu0 }
0x2eed   :  { %v15214_v55 = vpop.f32.mrf.mxu0 }
0x2eee   :  { %v8135_v44 = vadd.f32 %v15214_v55, %v175_v39  ;;  %v6564_v55 = vld [vmem:[%s17969_s12 + $0x10] sm:$0xff]  ;;  %v6562_v39 = vld [vmem:[%s17969_s12] sm:$0xff] }
0x2eef   :  { %v8129_v4 = vpop.f32.mrf.mxu0 }
0x2ef0   :  { %v8130_v32 = vadd.f32 %v8129_v4, %v174_v2  ;;  %v8147_v30 = vsel %vm356_vm1, %v8135_v44, -inf  ;;  %v6563_v2 = vld [vmem:[%s17969_s12 + $0x8] sm:$0xff] }
0x2ef2   :  { %v8144_v15 = vsel %vm356_vm1, %v8130_v32, -inf }
0x2ef3   :  { %8145 = vmax.xlane.f32.xlu0 %v8144_v15 }
0x2ef7   :  { %8148 = vmax.xlane.f32.xlu0 %v8147_v30 }
0x2f32   :  { %v8143_v11 = vpop.xlane.xlu1 %8142 }
0x2f33   :  { %v8151_v42 = vsub.f32 %v8044_v46, %v8143_v11  ;;  %v6569_v46 = vld [vmem:[%s17969_s12 + $0x38] sm:$0xff] }
0x2f34   :  { %v8140_v59 = vpop.xlane.xlu0 %8139 }
0x2f35   :  { %v8156_v10 = vmul.f32 1.442695, %v8151_v42  ;;  %v8150_v31 = vsub.f32 %v8039_v5, %v8140_v59  ;;  %v6567_v5 = vld [vmem:[%s17969_s12 + $0x28] sm:$0xff] }
0x2f37   :  { %16093 = vpow2.f32 %v8156_v10  ;;  %v8154_v17 = vmul.f32 1.442695, %v8150_v31 }
0x2f39   :  { %16095 = vpow2.f32 %v8154_v17 }
0x2f44   :  { %v16094_v1 = vpop.eup %16093 }
0x2f45   :  { %v8165_v33 = vsel %vm356_vm1, %v16094_v1, 0.0 }
0x2f46   :  { %v16096_v6 = vpop.eup %16095  ;;  %8166 = vadd.xlane.f32.xlu1 %v8165_v33 }
0x2f47   :  { %v8162_v62 = vsel %vm356_vm1, %v16096_v6, 0.0 }
0x2f48   :  { %8163 = vadd.xlane.f32.xlu0 %v8162_v62 }
0x2f7c   :  { %v8146_v35 = vpop.xlane.xlu0 %8145 }
0x2f7d   :  { %v8152_v26 = vsub.f32 %v8130_v32, %v8146_v35 }
0x2f7f   :  { %v8158_v38 = vmul.f32 1.442695, %v8152_v26 }
0x2f80   :  { %v8149_v36 = vpop.xlane.xlu0 %8148 }
0x2f81   :  { %16097 = vpow2.f32 %v8158_v38  ;;  %v8153_v58 = vsub.f32 %v8135_v44, %v8149_v36 }
0x2f83   :  { %v8160_v9 = vmul.f32 1.442695, %v8153_v58 }
0x2f85   :  { %16099 = vpow2.f32 %v8160_v9 }
0x2f8e   :  { %v16098_v56 = vpop.eup %16097 }
0x2f8f   :  { %v8168_v13 = vsel %vm356_vm1, %v16098_v56, 0.0 }
0x2f90   :  { %8169 = vadd.xlane.f32.xlu0 %v8168_v13 }
0x2f92   :  { %v16100_v23 = vpop.eup %16099 }
0x2f93   :  { %v8171_v34 = vsel %vm356_vm1, %v16100_v23, 0.0 }
0x2f94   :  { %8172 = vadd.xlane.f32.xlu1 %v8171_v34 }
0x2fa5   :  { %8182 = vrot.lane.b32.xlu1 %v17701_v27, %s16342_s23 }
0x2fa6   :  { %8184 = vrot.lane.b32.xlu0 %v17685_v52, %s16342_s23 }
0x2fa9   :  { %8271 = vrot.lane.b32.xlu1 %v17731_v51, %s16342_s23 }
0x2faa   :  { %8360 = vrot.lane.b32.xlu0 %v17870_v29, %s16342_s23 }
0x2fad   :  { %8269 = vrot.lane.b32.xlu1 %v17735_v49, %s16342_s23 }
0x2fae   :  { %8376 = vrot.lane.b32.xlu0 %v7860_v41, %s16340_s21 }
0x2fb1   :  { %8362 = vrot.lane.b32.xlu1 %v17868_v28, %s16342_s23 }
0x2fb2   :  { %8364 = vrot.lane.b32.xlu0 %v17878_v54, %s16342_s23 }
0x2fb5   :  { %8378 = vrot.lane.b32.xlu1 %v15193_v60, %s16340_s21 }
0x2fb9   :  { %8366 = vrot.lane.b32.xlu1 %v17876_v53, %s16342_s23 }
0x2fcf   :  { %v8167_v49 = vpop.xlane.xlu1 %8166 }
0x2fd1   :  { %v8164_v52 = vpop.xlane.xlu0 %8163 }
0x2fd2   :  { %16101 = vrcp.f32 %v8164_v52 }
0x2fd3   :  { %16103 = vrcp.f32 %v8167_v49 }
0x2fdf   :  { %v16102_v27 = vpop.eup %16101 }
0x2fe0   :  { %v8175_v51 = vmul.f32 %v16102_v27, %v16096_v6  ;;  %v16104_v54 = vpop.eup %16103 }
0x2fe1   :  { %v8177_v0 = vmul.f32 %v16104_v54, %v16094_v1 }
0x2fe2   :  { %15219 = vmatprep.mubr.msk.f32.mxu1 %vm356_vm1, %v8175_v51 }
0x3019   :  { %v8170_v29 = vpop.xlane.xlu0 %8169 }
0x301a   :  { %16105 = vrcp.f32 %v8170_v29 }
0x301d   :  { %v8173_v14 = vpop.xlane.xlu1 %8172  ;;  %v8185_v28 = vpop.permute.xlu0 %8184 }
0x301e   :  { %16107 = vrcp.f32 %v8173_v14  ;;  %15215 = vmatprep.subr.mxu1 %v8185_v28 }
0x301f   :  { %15216 = vmatpush3.msra.mxu1 %v8185_v28 }
0x3021   :  { %v8183_v45 = vpop.permute.xlu1 %8182  ;;  %v8361_v11 = vpop.permute.xlu0 %8360 }
0x3022   :  { %15217 = vmatprep.subr.mxu1 %v8183_v45  ;;  %v8404_v17 = vsel %vm356_vm1, %v17810_v16, %v8361_v11  ;;  %v8571_v11 = vld [vmem:[%s18047_s30 + $0x18] sm:$0xff] }
0x3023   :  { %15218 = vmatpush3.msra.mxu1 %v8183_v45 }
0x3024   :  { %15220 = vmatmul.mubr.msk.f32.vlgmr.msra.gmra.mxu1 %vm356_vm1, %v8177_v0  ;;  %15229 = vmatprep.subr.mxu1 %v6569_v46 }
0x3025   :  { %v8272_v53 = vpop.permute.xlu1 %8271  ;;  %15230 = vmatpush3.msra.mxu1 %v6569_v46  ;;  %v8377_v59 = vpop.permute.xlu0 %8376  ;;  %v8560_v46 = vld [vmem:[%s18033_s18] sm:$0xff] }
0x3026   :  { %15222 = vmatprep.subr.mxu0 %v8272_v53  ;;  %15231 = vmatprep.subr.mxu1 %v6568_v3 }
0x3027   :  { %v16106_v60 = vpop.eup %16105  ;;  %15223 = vmatpush3.msra.mxu0 %v8272_v53  ;;  %15232 = vmatpush3.msra.mxu1 %v6568_v3  ;;  %v8566_v53 = vld [vmem:[%s18033_s18 + $0x30] sm:$0xff]  ;;  %v8583_v3 = vld [vmem:[%s18047_s30 + $0x78] sm:$0xff] }
0x3028   :  { %v8179_v41 = vmul.f32 %v16106_v60, %v16098_v56  ;;  %15233 = vmatprep.subr.mxu1 %v6567_v5  ;;  %v8565_v60 = vld [vmem:[%s18033_s18 + $0x28] sm:$0xff] }
0x3029   :  { %v8270_v50 = vpop.permute.xlu1 %8269  ;;  %15234 = vmatpush3.msra.mxu1 %v6567_v5  ;;  %v8365_v31 = vpop.permute.xlu0 %8364  ;;  %v8582_v5 = vld [vmem:[%s18047_s30 + $0x70] sm:$0xff] }
0x302a   :  { %15224 = vmatprep.subr.mxu0 %v8270_v50  ;;  %15226 = vmatprep.mubr.msk.f32.mxu0 %vm356_vm1, %v8179_v41  ;;  %v8406_v16 = vsel %vm356_vm1, %v17818_v24, %v8365_v31  ;;  %v8564_v41 = vld [vmem:[%s18033_s18 + $0x20] sm:$0xff] }
0x302b   :  { %v16108_v19 = vpop.eup %16107  ;;  %15225 = vmatpush3.msra.mxu0 %v8270_v50  ;;  %15235 = vmatprep.subr.mxu1 %v6566_v7  ;;  %v8563_v50 = vld [vmem:[%s18033_s18 + $0x18] sm:$0xff] }
0x302c   :  { %v8181_v43 = vmul.f32 %v16108_v19, %v16100_v23  ;;  %15236 = vmatpush3.msra.mxu1 %v6566_v7  ;;  %v8562_v19 = vld [vmem:[%s18033_s18 + $0x10] sm:$0xff]  ;;  %v8581_v7 = vld [vmem:[%s18047_s30 + $0x68] sm:$0xff] }
0x302d   :  { %15237 = vmatprep.subr.mxu1 %v6565_v8  ;;  %v8363_v30 = vpop.permute.xlu1 %8362 }
0x302e   :  { %15227 = vmatmul.mubr.msk.f32.vlgmr.msra.gmra.mxu0 %vm356_vm1, %v8181_v43  ;;  %15238 = vmatpush3.msra.mxu1 %v6565_v8  ;;  %v8561_v43 = vld [vmem:[%s18033_s18 + $0x8] sm:$0xff]  ;;  %v8580_v8 = vld [vmem:[%s18047_s30 + $0x60] sm:$0xff] }
0x302f   :  { %15239 = vmatprep.subr.mxu1 %v6564_v55 }
0x3030   :  { %15240 = vmatpush3.msra.mxu1 %v6564_v55  ;;  %v8579_v55 = vld [vmem:[%s18047_s30 + $0x58] sm:$0xff] }
0x3031   :  { %15241 = vmatprep.subr.mxu1 %v6563_v2  ;;  %v8379_v42 = vpop.permute.xlu1 %8378 }
0x3032   :  { %15242 = vmatpush3.msra.mxu1 %v6563_v2  ;;  %v8578_v2 = vld [vmem:[%s18047_s30 + $0x50] sm:$0xff] }
0x3033   :  { %15243 = vmatprep.subr.mxu1 %v6562_v39 }
0x3034   :  { %15244 = vmatpush3.msra.mxu1 %v6562_v39  ;;  %v8577_v39 = vld [vmem:[%s18047_s30 + $0x48] sm:$0xff] }
0x3035   :  { %v8367_v10 = vpop.permute.xlu1 %8366  ;;  %15273 = vmatprep.subr.mxu1 %v8583_v3 }
0x30e4   :  { %v15221_v4 = vpop.f32.mrf.mxu1 }
0x30e5   :  { %8394 = vrot.lane.b32.xlu1 %v15221_v4, %s16338_s19  ;;  %v8576_v4 = vld [vmem:[%s18047_s30 + $0x40] sm:$0xff] }
0x30e6   :  { %v8260_v32 = vpop.f32.mrf.mxu1 }
0x30e7   :  { %8392 = vrot.lane.b32.xlu0 %v8260_v32, %s16338_s19  ;;  %v8575_v32 = vld [vmem:[%s18047_s30 + $0x38] sm:$0xff] }
0x30e9   :  { %8382 = vrot.lane.b32.xlu1 %v17932_v47, %s16340_s21  ;;  %v8408_v47 = vsel %vm1991_vm2, %v8404_v17, %v8377_v59 }
0x30eb   :  { %8380 = vrot.lane.b32.xlu0 %v17934_v25, %s16340_s21  ;;  %v8405_v25 = vsel %vm356_vm1, %v17808_v63, %v8363_v30  ;;  %v8407_v63 = vsel %vm356_vm1, %v17816_v12, %v8367_v10  ;;  %v8572_v30 = vld [vmem:[%s18047_s30 + $0x20] sm:$0xff] }
0x30ec   :  { %v8409_v6 = vsel %vm1991_vm2, %v8405_v25, %v8379_v42 }
0x30ee   :  { %v15228_v44 = vpop.f32.mrf.mxu0 }
0x30ef   :  { %8398 = vrot.lane.b32.xlu1 %v15228_v44, %s16338_s19  ;;  %v8574_v44 = vld [vmem:[%s18047_s30 + $0x30] sm:$0xff] }
0x30f0   :  { %v8347_v15 = vpop.f32.mrf.mxu0 }
0x30f1   :  { %8396 = vrot.lane.b32.xlu0 %v8347_v15, %s16338_s19  ;;  %v8573_v15 = vld [vmem:[%s18047_s30 + $0x28] sm:$0xff] }
0x3157   :  { %v8395_v1 = vpop.permute.xlu1 %8394 }
0x3158   :  { %v8413_v35 = vsel %vm1996_vm3, %v8409_v6, %v8395_v1 }
0x3159   :  { %v8393_v33 = vpop.permute.xlu0 %8392 }
0x315a   :  { %v8412_v62 = vsel %vm1996_vm3, %v8408_v47, %v8393_v33 }
0x315b   :  { %15245 = vmatprep.mubr.msk.f32.mxu1 %vm185_vm0, %v8412_v62  ;;  %v8383_v26 = vpop.permute.xlu1 %8382 }
0x315c   :  { %15246 = vmatmul.mubr.msk.f32.vlgmr.msra.gmra.mxu1 %vm185_vm0, %v8413_v35  ;;  %v8411_v56 = vsel %vm1991_vm2, %v8407_v63, %v8383_v26 }
0x315d   :  { %v8381_v38 = vpop.permute.xlu0 %8380  ;;  %15274 = vmatpush3.msra.mxu1 %v8583_v3 }
0x315e   :  { %v8410_v58 = vsel %vm1991_vm2, %v8406_v16, %v8381_v38  ;;  %15275 = vmatprep.subr.mxu1 %v8582_v5 }
0x315f   :  { %15276 = vmatpush3.msra.mxu1 %v8582_v5 }
0x3160   :  { %15277 = vmatprep.subr.mxu1 %v8581_v7 }
0x3161   :  { %v8399_v36 = vpop.permute.xlu1 %8398  ;;  %15278 = vmatpush3.msra.mxu1 %v8581_v7 }
0x3162   :  { %v8415_v23 = vsel %vm1996_vm3, %v8411_v56, %v8399_v36  ;;  %15279 = vmatprep.subr.mxu1 %v8580_v8  ;;  %v13673_v36 = vld [vmem:[%s18065_s8] ss:$0 sm:$0xff] }
0x3163   :  { %v8397_v9 = vpop.permute.xlu0 %8396  ;;  %15280 = vmatpush3.msra.mxu1 %v8580_v8 }
0x3164   :  { %v8414_v13 = vsel %vm1996_vm3, %v8410_v58, %v8397_v9  ;;  %15281 = vmatprep.subr.mxu1 %v8579_v55 }
0x3165   :  { %15248 = vmatprep.mubr.msk.f32.mxu1 %vm185_vm0, %v8414_v13  ;;  %15282 = vmatpush3.msra.mxu1 %v8579_v55 }
0x3166   :  { %15249 = vmatmul.mubr.msk.f32.gmra.mxu1 %vm185_vm0, %v8415_v23  ;;  %15283 = vmatprep.subr.mxu1 %v8578_v2 }
0x3167   :  { %15284 = vmatpush3.msra.mxu1 %v8578_v2 }
0x3168   :  { %15285 = vmatprep.subr.mxu1 %v8577_v39 }
0x3169   :  { %15286 = vmatpush3.msra.mxu1 %v8577_v39 }
0x316a   :  { %15287 = vmatprep.subr.mxu1 %v8576_v4 }
0x316b   :  { %15288 = vmatpush3.msra.mxu1 %v8576_v4 }
0x316c   :  { %15289 = vmatprep.subr.mxu1 %v8575_v32 }
0x316d   :  { %15290 = vmatpush3.msra.mxu1 %v8575_v32  ;;  %v13693_v32 = vld [vmem:[%s17221_s25 + $0xe8] sm:$0xff] }
0x316e   :  { %15291 = vmatprep.subr.mxu1 %v8574_v44 }
0x316f   :  { %15292 = vmatpush3.msra.mxu1 %v8574_v44  ;;  %v13692_v44 = vld [vmem:[%s17221_s25 + $0xe0] sm:$0xff] }
0x3170   :  { %15293 = vmatprep.subr.mxu1 %v8573_v15 }
0x3171   :  { %15294 = vmatpush3.msra.mxu1 %v8573_v15  ;;  %v13691_v15 = vld [vmem:[%s17221_s25 + $0xd8] sm:$0xff] }
0x3172   :  { %15295 = vmatprep.subr.mxu1 %v8572_v30 }
0x3173   :  { %15296 = vmatpush3.msra.mxu1 %v8572_v30  ;;  %v13690_v30 = vld [vmem:[%s17221_s25 + $0xd0] sm:$0xff] }
0x3174   :  { %15297 = vmatprep.subr.mxu1 %v8571_v11 }
0x3175   :  { %15298 = vmatpush3.msra.mxu1 %v8571_v11  ;;  %v13689_v11 = vld [vmem:[%s17221_s25 + $0xc8] sm:$0xff] }
0x321c   :  { %v15247_v34 = vpop.f32.mrf.mxu1 }
0x321d   :  { %v18008_v24 = vadd.f32 %v15247_v34, %v17659_v40 }
0x321e   :  { %v8494_v52 = vpop.f32.mrf.mxu1 }
0x321f   :  { %v18011_v12 = vadd.f32 %v8494_v52, %v17662_v22  ;;  %v8519_v27 = vmul.f32 %v18008_v24, %v18008_v24 }
0x3221   :  { %v8525_v51 = vsel %vm185_vm0, %v8519_v27, 0.0  ;;  %v8518_v49 = vmul.f32 %v18011_v12, %v18011_v12 }
0x3222   :  { %8526 = vadd.xlane.f32.xlu1 %v8525_v51  ;;  %v8570_v51 = vld [vmem:[%s18047_s30 + $0x10] sm:$0xff] }
0x3223   :  { %v8522_v29 = vsel %vm185_vm0, %v8518_v49, 0.0  ;;  %15299 = vmatprep.subr.mxu1 %v8570_v51  ;;  %v8569_v49 = vld [vmem:[%s18047_s30 + $0x8] sm:$0xff] }
0x3224   :  { %8523 = vadd.xlane.f32.xlu0 %v8522_v29  ;;  %15300 = vmatpush3.msra.mxu1 %v8570_v51  ;;  %v8568_v29 = vld [vmem:[%s18047_s30] sm:$0xff] }
0x3225   :  { %15301 = vmatprep.subr.mxu1 %v8569_v49 }
0x3226   :  { %v15250_v14 = vpop.f32.mrf.mxu1  ;;  %15302 = vmatpush3.msra.mxu1 %v8569_v49 }
0x3227   :  { %v18020_v40 = vadd.f32 %v15250_v14, %v17673_v18  ;;  %15303 = vmatprep.subr.mxu1 %v8568_v29 }
0x3228   :  { %v8504_v28 = vpop.f32.mrf.mxu1  ;;  %15304 = vmatpush3.msra.mxu1 %v8568_v29 }
0x3229   :  { %v18023_v22 = vadd.f32 %v8504_v28, %v17676_v48  ;;  %v8521_v0 = vmul.f32 %v18020_v40, %v18020_v40  ;;  %v8567_v48 = vld [vmem:[%s18033_s18 + $0x38] sm:$0xff] }
0x322a   :  { %15251 = vmatprep.subr.mxu0 %v8567_v48 }
0x322b   :  { %v8520_v54 = vmul.f32 %v18023_v22, %v18023_v22  ;;  %v8531_v18 = vsel %vm185_vm0, %v8521_v0, 0.0  ;;  %15252 = vmatpush3.msra.mxu0 %v8567_v48 }
0x322c   :  { %15253 = vmatprep.subr.mxu0 %v8566_v53 }
0x322d   :  { %v8528_v45 = vsel %vm185_vm0, %v8520_v54, 0.0  ;;  %15254 = vmatpush3.msra.mxu0 %v8566_v53 }
0x322e   :  { %8529 = vadd.xlane.f32.xlu0 %v8528_v45  ;;  %15255 = vmatprep.subr.mxu0 %v8565_v60 }
0x322f   :  { %15256 = vmatpush3.msra.mxu0 %v8565_v60 }
0x3230   :  { %15257 = vmatprep.subr.mxu0 %v8564_v41 }
0x3231   :  { %15258 = vmatpush3.msra.mxu0 %v8564_v41 }
0x3232   :  { %8532 = vadd.xlane.f32.xlu0 %v8531_v18  ;;  %15259 = vmatprep.subr.mxu0 %v8563_v50 }
0x3233   :  { %15260 = vmatpush3.msra.mxu0 %v8563_v50 }
0x3234   :  { %15261 = vmatprep.subr.mxu0 %v8562_v19 }
0x3235   :  { %15262 = vmatpush3.msra.mxu0 %v8562_v19 }
0x3236   :  { %15263 = vmatprep.subr.mxu0 %v8561_v43 }
0x3237   :  { %15264 = vmatpush3.msra.mxu0 %v8561_v43 }
0x3238   :  { %15265 = vmatprep.subr.mxu0 %v8560_v46 }
0x3239   :  { %15266 = vmatpush3.msra.mxu0 %v8560_v46 }
0x32ab   :  { %v8527_v42 = vpop.xlane.xlu1 %8526 }
0x32ac   :  { %v8535_v59 = vmul.f32 0.015625, %v8527_v42  ;;  %v13688_v42 = vld [vmem:[%s17221_s25 + $0xc0] sm:$0xff] }
0x32ad   :  { %v8524_v10 = vpop.xlane.xlu0 %8523 }
0x32ae   :  { %v8539_v31 = vadd.f32 1e-06, %v8535_v59  ;;  %v8534_v17 = vmul.f32 0.015625, %v8524_v10  ;;  %v13687_v59 = vld [vmem:[%s17221_s25 + $0xb8] sm:$0xff]  ;;  %v13686_v10 = vld [vmem:[%s17221_s25 + $0xb0] sm:$0xff] }
0x32b0   :  { %16109 = vrsqrt.f32 %v8539_v31  ;;  %v8538_v1 = vadd.f32 1e-06, %v8534_v17  ;;  %v13685_v31 = vld [vmem:[%s17221_s25 + $0xa8] sm:$0xff]  ;;  %v13684_v17 = vld [vmem:[%s17221_s25 + $0xa0] sm:$0xff] }
0x32b2   :  { %16111 = vrsqrt.f32 %v8538_v1  ;;  %v13683_v1 = vld [vmem:[%s17221_s25 + $0x98] sm:$0xff] }
0x32b7   :  { %v8530_v47 = vpop.xlane.xlu0 %8529 }
0x32b8   :  { %v8536_v25 = vmul.f32 0.015625, %v8530_v47  ;;  %v13682_v47 = vld [vmem:[%s17221_s25 + $0x90] sm:$0xff] }
0x32ba   :  { %v8540_v33 = vadd.f32 1e-06, %v8536_v25  ;;  %v13681_v25 = vld [vmem:[%s17221_s25 + $0x88] sm:$0xff] }
0x32bb   :  { %v8533_v6 = vpop.xlane.xlu0 %8532 }
0x32bc   :  { %16113 = vrsqrt.f32 %v8540_v33  ;;  %v8537_v62 = vmul.f32 0.015625, %v8533_v6  ;;  %v13680_v33 = vld [vmem:[%s17221_s25 + $0x80] sm:$0xff] }
0x32bd   :  { %v16110_v35 = vpop.eup %16109 }
0x32be   :  { %v8541_v26 = vadd.f32 1e-06, %v8537_v62  ;;  %v8547_v16 = vmul.f32 %v16110_v35, %v18008_v24 }
0x32bf   :  { %v16112_v38 = vpop.eup %16111 }
0x32c0   :  { %16115 = vrsqrt.f32 %v8541_v26  ;;  %v8546_v63 = vmul.f32 %v16112_v38, %v18011_v12  ;;  %v8557_v9 = vmul.f32 %v13673_v36, %v8547_v16 }
0x32c2   :  { %v8556_v58 = vmul.f32 %v13673_v36, %v8546_v63 }
0x32c4   :  { %15267 = vmatprep.mubr.msk.f32.mxu0 %vm185_vm0, %v8556_v58 }
0x32c5   :  { %15268 = vmatmul.mubr.msk.f32.vlgmr.msra.gmra.mxu0 %vm185_vm0, %v8557_v9 }
0x32c9   :  { %v16114_v56 = vpop.eup %16113 }
0x32ca   :  { %v8548_v13 = vmul.f32 %v16114_v56, %v18023_v22 }
0x32cc   :  { %v8558_v23 = vmul.f32 %v13673_v36, %v8548_v13 }
0x32cd   :  { %v16116_v34 = vpop.eup %16115 }
0x32ce   :  { %15270 = vmatprep.mubr.msk.f32.mxu0 %vm185_vm0, %v8558_v23  ;;  %v8549_v52 = vmul.f32 %v16116_v34, %v18020_v40 }
0x32d0   :  { %v8559_v27 = vmul.f32 %v13673_v36, %v8549_v52 }
0x32d2   :  { %15271 = vmatmul.mubr.msk.f32.gmra.mxu0 %vm185_vm0, %v8559_v27  ;;  %v13679_v27 = vld [vmem:[%s17255_s29 + $0x1] ss:$0 sm:$0xff]  ;;  %s16364_s29 = smov 24  }
0x32d3   :  { %8920 = vmatprep.mubr.f32.mxu0 %v16334_v20 }
0x3385   :  { %v15269_v14 = vpop.f32.mrf.mxu0 }
0x3386   :  { %v8682_v45 = vmax.f32 %v15269_v14, 0.0 }
0x3387   :  { %v8662_v28 = vpop.f32.mrf.mxu0 }
0x3388   :  { %v8681_v54 = vmax.f32 %v8662_v28, 0.0 }
0x338a   :  { %15305 = vmatprep.mubr.f32.mxu1 %v8681_v54 }
0x338b   :  { %15306 = vmatmul.mubr.f32.vlgmr.msra.gmra.mxu1 %v8682_v45 }
0x3392   :  { %v15272_v0 = vpop.f32.mrf.mxu0 }
0x3393   :  { %v8684_v53 = vmax.f32 %v15272_v0, 0.0 }
0x3394   :  { %v8672_v18 = vpop.f32.mrf.mxu0 }
0x3395   :  { %v8683_v48 = vmax.f32 %v8672_v18, 0.0 }
0x3397   :  { %15308 = vmatprep.mubr.f32.mxu1 %v8683_v48 }
0x3398   :  { %15309 = vmatmul.mubr.f32.gmra.mxu1 %v8684_v53 }
0x344b   :  { %v15307_v60 = vpop.f32.mrf.mxu1 }
0x344c   :  { %v18081_v41 = vadd.f32 %v15307_v60, %v18008_v24 }
0x344d   :  { %v8751_v50 = vpop.f32.mrf.mxu1 }
0x344e   :  { %v18084_v19 = vadd.f32 %v8751_v50, %v18011_v12  ;;  %v8777_v43 = vmul.f32 %v18081_v41, %v18081_v41 }
0x3450   :  { %v8783_v46 = vsel %vm185_vm0, %v8777_v43, 0.0  ;;  %v8776_v3 = vmul.f32 %v18084_v19, %v18084_v19 }
0x3451   :  { %8784 = vadd.xlane.f32.xlu1 %v8783_v46 }
0x3452   :  { %v8780_v5 = vsel %vm185_vm0, %v8776_v3, 0.0 }
0x3453   :  { %8781 = vadd.xlane.f32.xlu0 %v8780_v5 }
0x3458   :  { %v15310_v24 = vpop.f32.mrf.mxu1 }
0x3459   :  { %v18093_v12 = vadd.f32 %v15310_v24, %v18020_v40  ;;  %v13695_v40 = vld [vmem:[%s17221_s25 + $0xf8] sm:$0xff] }
0x345a   :  { %v8761_v7 = vpop.f32.mrf.mxu1  ;;  %8872 = vmatprep.subr.mxu0 %v13695_v40 }
0x345b   :  { %v18096_v8 = vadd.f32 %v8761_v7, %v18023_v22  ;;  %v8779_v55 = vmul.f32 %v18093_v12, %v18093_v12  ;;  %v13694_v22 = vld [vmem:[%s17221_s25 + $0xf0] sm:$0xff] }
0x345c   :  { %8873 = vmatpush1.msra.mxu0 %v13694_v22 }
0x345d   :  { %v8789_v2 = vsel %vm185_vm0, %v8779_v55, 0.0  ;;  %v8778_v39 = vmul.f32 %v18096_v8, %v18096_v8  ;;  %8874 = vmatprep.subr.mxu0 %v13693_v32  ;;  %v16302_v32 = vld [vmem:[%s17331_s3] sm:$0xff] }
0x345e   :  { %8790 = vadd.xlane.f32.xlu1 %v8789_v2  ;;  %8875 = vmatpush1.msra.mxu0 %v13692_v44 }
0x345f   :  { %v8786_v4 = vsel %vm185_vm0, %v8778_v39, 0.0  ;;  %8876 = vmatprep.subr.mxu0 %v13691_v15 }
0x3460   :  { %8787 = vadd.xlane.f32.xlu0 %v8786_v4  ;;  %8877 = vmatpush1.msra.mxu0 %v13690_v30  ;;  %v16301_v4 = vld [vmem:[%s17331_s3 + $0x8] sm:$0xff] }
0x3461   :  { %8878 = vmatprep.subr.mxu0 %v13689_v11 }
0x3462   :  { %8879 = vmatpush1.msra.mxu0 %v13688_v42 }
0x3463   :  { %8880 = vmatprep.subr.mxu0 %v13687_v59  ;;  %v16303_v59 = vld [vmem:[%s17331_s3 + $0x40] sm:$0xff] }
0x3464   :  { %8881 = vmatpush1.msra.mxu0 %v13686_v10 }
0x3465   :  { %8882 = vmatprep.subr.mxu0 %v13685_v31  ;;  %v16304_v31 = vld [vmem:[%s17331_s3 + $0x48] sm:$0xff] }
0x3466   :  { %8883 = vmatpush1.msra.mxu0 %v13684_v17 }
0x3467   :  { %8884 = vmatprep.subr.mxu0 %v13683_v1 }
0x3468   :  { %8885 = vmatpush1.msra.mxu0 %v13682_v47 }
0x3469   :  { %8886 = vmatprep.subr.mxu0 %v13681_v25 }
0x346a   :  { %8887 = vmatpush1.msra.mxu0 %v13680_v33 }
0x34da   :  { %v8785_v6 = vpop.xlane.xlu1 %8784 }
0x34db   :  { %v8793_v62 = vmul.f32 0.015625, %v8785_v6 }
0x34dc   :  { %v8782_v35 = vpop.xlane.xlu0 %8781 }
0x34dd   :  { %v8797_v26 = vadd.f32 1e-06, %v8793_v62  ;;  %v8792_v38 = vmul.f32 0.015625, %v8782_v35 }
0x34df   :  { %v8796_v16 = vadd.f32 1e-06, %v8792_v38  ;;  %16117 = vrsqrt.f32 %v8797_v26 }
0x34e1   :  { %16119 = vrsqrt.f32 %v8796_v16 }
0x34e7   :  { %v8791_v36 = vpop.xlane.xlu1 %8790 }
0x34e8   :  { %v8795_v63 = vmul.f32 0.015625, %v8791_v36 }
0x34e9   :  { %v8788_v58 = vpop.xlane.xlu0 %8787 }
0x34ea   :  { %v8799_v9 = vadd.f32 1e-06, %v8795_v63  ;;  %v8794_v56 = vmul.f32 0.015625, %v8788_v58 }
0x34ec   :  { %v8798_v13 = vadd.f32 1e-06, %v8794_v56  ;;  %v16118_v23 = vpop.eup %16117  ;;  %16121 = vrsqrt.f32 %v8799_v9 }
0x34ed   :  { %v8805_v49 = vmul.f32 %v16118_v23, %v18081_v41 }
0x34ee   :  { %v16120_v34 = vpop.eup %16119  ;;  %16123 = vrsqrt.f32 %v8798_v13 }
0x34ef   :  { %v8804_v52 = vmul.f32 %v16120_v34, %v18084_v19  ;;  %v8815_v29 = vmul.f32 %v13679_v27, %v8805_v49 }
0x34f1   :  { %v8814_v51 = vmul.f32 %v13679_v27, %v8804_v52 }
0x34f3   :  { %13704 = vmatmul.mubr.msk.f32.vlgmr.msra.gmra.mxu0 %vm185_vm0, %v8814_v51 }
0x34f4   :  { %8926 = vmatprep.mubr.f32.mxu0 %v16334_v20 }
0x34f7   :  { %13705 = vmatmul.mubr.msk.f32.gmra.mxu0 %vm185_vm0, %v8815_v29 }
0x34f8   :  { %8932 = vmatprep.mubr.f32.mxu0 %v16334_v20 }
0x34f9   :  { %v16122_v14 = vpop.eup %16121 }
0x34fa   :  { %v8807_v0 = vmul.f32 %v16122_v14, %v18093_v12 }
0x34fb   :  { %v16124_v28 = vpop.eup %16123 }
0x34fc   :  { %v8806_v54 = vmul.f32 %v16124_v28, %v18096_v8  ;;  %v8817_v18 = vmul.f32 %v13679_v27, %v8807_v0 }
0x34fe   :  { %v8816_v45 = vmul.f32 %v13679_v27, %v8806_v54 }
0x3500   :  { %13706 = vmatmul.mubr.msk.f32.gmra.mxu0 %vm185_vm0, %v8816_v45 }
0x3501   :  { %8938 = vmatprep.mubr.f32.mxu0 %v16334_v20 }
0x3504   :  { %13707 = vmatmul.mubr.msk.f32.gmra.mxu0 %vm185_vm0, %v8817_v18 }
0x35b3   :  { %v18132_v48 = vpop.f32.mrf.mxu0 }
0x35b4   :  { %8947 = vrot.lane.b32.xlu1 %v18132_v48, %s16336_s14  ;;  %15315 = vmatprep.mubr.msk.f32.mxu0 %vm356_vm1, %v18132_v48 }
0x35b5   :  { %v18138_v53 = vpop.f32.mrf.mxu0 }
0x35b7   :  { %v18140_v60 = vpop.f32.mrf.mxu0 }
0x35b8   :  { %8949 = vrot.lane.b32.xlu0 %v18140_v60, %s16336_s14 }
0x35b9   :  { %v18144_v50 = vpop.f32.mrf.mxu0 }
0x35c0   :  { %v18146_v43 = vpop.f32.mrf.mxu0 }
0x35c1   :  { %15322 = vmatprep.mubr.msk.f32.mxu1 %vm356_vm1, %v18146_v43 }
0x35c2   :  { %v18150_v46 = vpop.f32.mrf.mxu0 }
0x35c4   :  { %v18152_v3 = vpop.f32.mrf.mxu0 }
0x35c5   :  { %9038 = vrot.lane.b32.xlu1 %v18152_v3, %s16336_s14 }
0x35c6   :  { %v18167_v7 = vpop.f32.mrf.mxu0 }
0x35c9   :  { %9036 = vrot.lane.b32.xlu1 %v18146_v43, %s16336_s14 }
0x3626   :  { %v8948_v24 = vpop.permute.xlu1 %8947 }
0x362a   :  { %v8950_v5 = vpop.permute.xlu0 %8949 }
0x362b   :  { %15311 = vmatprep.subr.msk.mxu0 %vm356_vm1, %v8950_v5 }
0x362c   :  { %15312 = vmatpush3.xpose.msk.msra.mxu0 %vm356_vm1, %v8950_v5 }
0x362d   :  { %15313 = vmatprep.subr.msk.mxu0 %vm356_vm1, %v8948_v24 }
0x3630   :  { %15314 = vmatpush3.xpose.msk.msra.mxu0 %vm356_vm1, %v8948_v24 }
0x3631   :  { %15325 = vmatprep.subr.mxu0 %v18144_v50 }
0x3633   :  { %15316 = vmatmul.mubr.msk.f32.vlgmr.msra.gmra.mxu0 %vm356_vm1, %v18140_v60 }
0x3634   :  { %15326 = vmatpush3.msra.mxu0 %v18144_v50 }
0x3635   :  { %15327 = vmatprep.subr.mxu0 %v18138_v53 }
0x3636   :  { %15328 = vmatpush3.msra.mxu0 %v18138_v53 }
0x3637   :  { %v9039_v55 = vpop.permute.xlu1 %9038  ;;  %15332 = vmatprep.subr.mxu0 %v18167_v7 }
0x3638   :  { %15318 = vmatprep.subr.msk.mxu1 %vm356_vm1, %v9039_v55 }
0x3639   :  { %15319 = vmatpush3.xpose.msk.msra.mxu1 %vm356_vm1, %v9039_v55 }
0x363b   :  { %v9037_v2 = vpop.permute.xlu1 %9036 }
0x363c   :  { %15320 = vmatprep.subr.msk.mxu1 %vm356_vm1, %v9037_v2 }
0x363d   :  { %15321 = vmatpush3.xpose.msk.msra.mxu1 %vm356_vm1, %v9037_v2 }
0x3640   :  { %15323 = vmatmul.mubr.msk.f32.vlgmr.msra.gmra.mxu1 %vm356_vm1, %v18152_v3 }
0x36f3   :  { %v15317_v39 = vpop.f32.mrf.mxu0 }
0x36f4   :  { %v9031_v40 = vadd.f32 %v16301_v4, %v15317_v39 }
0x36f5   :  { %v9025_v22 = vpop.f32.mrf.mxu0 }
0x36f6   :  { %v9026_v44 = vadd.f32 %v16302_v32, %v9025_v22  ;;  %v9126_v15 = vsel %vm356_vm1, %v9031_v40, -inf }
0x36f7   :  { %9127 = vmax.xlane.f32.xlu1 %v9126_v15 }
0x36f8   :  { %v9123_v30 = vsel %vm356_vm1, %v9026_v44, -inf }
0x36f9   :  { %9124 = vmax.xlane.f32.xlu0 %v9123_v30 }
0x3700   :  { %v15324_v11 = vpop.f32.mrf.mxu1 }
0x3701   :  { %v9120_v17 = vadd.f32 %v16304_v31, %v15324_v11 }
0x3702   :  { %v9114_v42 = vpop.f32.mrf.mxu1 }
0x3703   :  { %v9115_v10 = vadd.f32 %v16303_v59, %v9114_v42  ;;  %v9132_v47 = vsel %vm356_vm1, %v9120_v17, -inf  ;;  %v16305_v59 = vld [vmem:[%s17331_s3 + $0x18] sm:$0xff] }
0x3705   :  { %v9129_v1 = vsel %vm356_vm1, %v9115_v10, -inf }
0x3706   :  { %9130 = vmax.xlane.f32.xlu0 %v9129_v1 }
0x370a   :  { %9133 = vmax.xlane.f32.xlu0 %v9132_v47 }
0x3780   :  { %v9128_v25 = vpop.xlane.xlu1 %9127 }
0x3781   :  { %v9136_v33 = vsub.f32 %v9031_v40, %v9128_v25 }
0x3782   :  { %v9125_v6 = vpop.xlane.xlu0 %9124 }
0x3783   :  { %v9141_v62 = vmul.f32 1.442695, %v9136_v33  ;;  %v9135_v35 = vsub.f32 %v9026_v44, %v9125_v6 }
0x3785   :  { %16125 = vpow2.f32 %v9141_v62  ;;  %v9139_v26 = vmul.f32 1.442695, %v9135_v35 }
0x3787   :  { %16127 = vpow2.f32 %v9139_v26 }
0x378f   :  { %v9131_v58 = vpop.xlane.xlu0 %9130 }
0x3790   :  { %v9137_v9 = vsub.f32 %v9115_v10, %v9131_v58 }
0x3792   :  { %v16126_v38 = vpop.eup %16125  ;;  %v9143_v13 = vmul.f32 1.442695, %v9137_v9 }
0x3793   :  { %v9150_v16 = vsel %vm356_vm1, %v16126_v38, 0.0  ;;  %v9134_v56 = vpop.xlane.xlu0 %9133 }
0x3794   :  { %v16128_v36 = vpop.eup %16127  ;;  %9151 = vadd.xlane.f32.xlu1 %v9150_v16  ;;  %v9138_v23 = vsub.f32 %v9120_v17, %v9134_v56  ;;  %16129 = vpow2.f32 %v9143_v13  ;;  %v16306_v17 = vld [vmem:[%s17331_s3 + $0x10] sm:$0xff] }
0x3795   :  { %v9147_v63 = vsel %vm356_vm1, %v16128_v36, 0.0  ;;  %v16307_v16 = vld [vmem:[%s17331_s3 + $0x50] sm:$0xff] }
0x3796   :  { %9148 = vadd.xlane.f32.xlu0 %v9147_v63  ;;  %v9145_v34 = vmul.f32 1.442695, %v9138_v23  ;;  %v16308_v63 = vld [vmem:[%s17331_s3 + $0x58] sm:$0xff] }
0x3798   :  { %16131 = vpow2.f32 %v9145_v34 }
0x37a1   :  { %v16130_v52 = vpop.eup %16129 }
0x37a2   :  { %v9153_v27 = vsel %vm356_vm1, %v16130_v52, 0.0 }
0x37a5   :  { %9333 = vrot.lane.b32.xlu1 %v18132_v48, %s16338_s19  ;;  %v16132_v51 = vpop.eup %16131 }
0x37a6   :  { %v9156_v49 = vsel %vm356_vm1, %v16132_v51, 0.0 }
0x37a9   :  { %9329 = vrot.lane.b32.xlu1 %v18132_v48, %s16339_s20 }
0x37ac   :  { %9335 = vrot.lane.b32.xlu0 %v18140_v60, %s16338_s19 }
0x37ad   :  { %9426 = vrot.lane.b32.xlu1 %v18152_v3, %s16338_s19 }
0x37cb   :  { %9154 = vadd.xlane.f32.xlu0 %v9153_v27 }
0x37d1   :  { %9157 = vadd.xlane.f32.xlu1 %v9156_v49 }
0x37e1   :  { %9331 = vrot.lane.b32.xlu0 %v18140_v60, %s16339_s20 }
0x37e2   :  { %9424 = vrot.lane.b32.xlu1 %v18146_v43, %s16338_s19 }
0x37e5   :  { %9420 = vrot.lane.b32.xlu0 %v18146_v43, %s16339_s20 }
0x37e6   :  { %9422 = vrot.lane.b32.xlu1 %v18152_v3, %s16339_s20 }
0x381d   :  { %v9152_v29 = vpop.xlane.xlu1 %9151 }
0x381e   :  { %16133 = vrcp.f32 %v9152_v29 }
0x381f   :  { %v9149_v14 = vpop.xlane.xlu0 %9148 }
0x3820   :  { %16135 = vrcp.f32 %v9149_v14 }
0x3821   :  { %v9334_v28 = vpop.permute.xlu1 %9333 }
0x3823   :  { %v9336_v54 = vpop.permute.xlu0 %9335 }
0x3824   :  { %15339 = vmatprep.subr.msk.mxu1 %vm356_vm1, %v9336_v54 }
0x3825   :  { %v9330_v45 = vpop.permute.xlu1 %9329  ;;  %15340 = vmatpush3.xpose.msk.msra.mxu1 %vm356_vm1, %v9336_v54 }
0x3826   :  { %15341 = vmatprep.subr.msk.mxu1 %vm356_vm1, %v9334_v28  ;;  %15343 = vmatprep.mubr.msk.f32.mxu1 %vm356_vm1, %v9330_v45 }
0x3829   :  { %15342 = vmatpush3.xpose.msk.msra.mxu1 %vm356_vm1, %v9334_v28  ;;  %v9427_v55 = vpop.permute.xlu1 %9426 }
0x382b   :  { %v16134_v0 = vpop.eup %16133 }
0x382c   :  { %v9162_v24 = vmul.f32 %v16134_v0, %v16126_v38 }
0x382d   :  { %v16136_v18 = vpop.eup %16135 }
0x382e   :  { %v9160_v5 = vmul.f32 %v16136_v18, %v16128_v36 }
0x3830   :  { %15329 = vmatprep.mubr.msk.f32.mxu0 %vm356_vm1, %v9160_v5 }
0x3831   :  { %15330 = vmatmul.mubr.msk.f32.vlgmr.msra.gmra.mxu0 %vm356_vm1, %v9162_v24 }
0x3832   :  { %15333 = vmatpush3.msra.mxu0 %v18167_v7 }
0x3833   :  { %15334 = vmatprep.subr.mxu0 %v18150_v46 }
0x3834   :  { %15335 = vmatpush3.msra.mxu0 %v18150_v46 }
0x3835   :  { %15346 = vmatprep.subr.msk.mxu0 %vm356_vm1, %v9427_v55 }
0x3854   :  { %v9155_v2 = vpop.xlane.xlu0 %9154 }
0x3855   :  { %16137 = vrcp.f32 %v9155_v2 }
0x3858   :  { %v9332_v39 = vpop.permute.xlu0 %9331 }
0x3859   :  { %15344 = vmatmul.mubr.msk.f32.vlgmr.msra.gmra.mxu1 %vm356_vm1, %v9332_v39 }
0x385a   :  { %v9158_v4 = vpop.xlane.xlu1 %9157 }
0x385b   :  { %16139 = vrcp.f32 %v9158_v4 }
0x385c   :  { %v9421_v15 = vpop.permute.xlu0 %9420 }
0x385e   :  { %v9425_v30 = vpop.permute.xlu1 %9424 }
0x3862   :  { %v16138_v40 = vpop.eup %16137  ;;  %v9423_v11 = vpop.permute.xlu1 %9422 }
0x3863   :  { %v9164_v22 = vmul.f32 %v16138_v40, %v16130_v52 }
0x3865   :  { %15336 = vmatprep.mubr.msk.f32.mxu0 %vm356_vm1, %v9164_v22 }
0x3868   :  { %v16140_v32 = vpop.eup %16139 }
0x3869   :  { %v9166_v44 = vmul.f32 %v16140_v32, %v16132_v51 }
0x386b   :  { %15337 = vmatmul.mubr.msk.f32.vlgmr.msra.gmra.mxu0 %vm356_vm1, %v9166_v44 }
0x386c   :  { %15347 = vmatpush3.xpose.msk.msra.mxu0 %vm356_vm1, %v9427_v55  ;;  %15350 = vmatprep.mubr.msk.f32.mxu0 %vm356_vm1, %v9421_v15 }
0x386d   :  { %15348 = vmatprep.subr.msk.mxu0 %vm356_vm1, %v9425_v30 }
0x3870   :  { %15349 = vmatpush3.xpose.msk.msra.mxu0 %vm356_vm1, %v9425_v30 }
0x3873   :  { %15351 = vmatmul.mubr.msk.f32.vlgmr.msra.gmra.mxu0 %vm356_vm1, %v9423_v11 }
0x38f1   :  { %v18228_v33 = vpop.f32.mrf.mxu0 }
0x38f3   :  { %v18230_v6 = vpop.f32.mrf.mxu0 }
0x3919   :  { %v15345_v42 = vpop.f32.mrf.mxu1 }
0x391a   :  { %v9417_v10 = vadd.f32 %v16305_v59, %v15345_v42 }
0x391b   :  { %v9411_v31 = vpop.f32.mrf.mxu1 }
0x391c   :  { %v9412_v1 = vadd.f32 %v16306_v17, %v9411_v31  ;;  %v9514_v47 = vsel %vm356_vm1, %v9417_v10, -inf }
0x391d   :  { %9515 = vmax.xlane.f32.xlu1 %v9514_v47 }
0x391e   :  { %v9511_v25 = vsel %vm356_vm1, %v9412_v1, -inf }
0x391f   :  { %9512 = vmax.xlane.f32.xlu0 %v9511_v25 }
0x392b   :  { %v18232_v62 = vpop.f32.mrf.mxu0 }
0x392d   :  { %v18234_v35 = vpop.f32.mrf.mxu0 }
0x3933   :  { %v15352_v26 = vpop.f32.mrf.mxu0 }
0x3934   :  { %v9508_v58 = vadd.f32 %v16308_v63, %v15352_v26 }
0x3935   :  { %v9502_v38 = vpop.f32.mrf.mxu0 }
0x3936   :  { %v9503_v36 = vadd.f32 %v16307_v16, %v9502_v38  ;;  %v9520_v56 = vsel %vm356_vm1, %v9508_v58, -inf }
0x3938   :  { %v9517_v9 = vsel %vm356_vm1, %v9503_v36, -inf }
0x3939   :  { %9518 = vmax.xlane.f32.xlu0 %v9517_v9 }
0x393d   :  { %9521 = vmax.xlane.f32.xlu0 %v9520_v56 }
0x39a6   :  { %v9516_v13 = vpop.xlane.xlu1 %9515 }
0x39a7   :  { %v9524_v23 = vsub.f32 %v9417_v10, %v9516_v13 }
0x39a8   :  { %v9513_v34 = vpop.xlane.xlu0 %9512 }
0x39a9   :  { %v9529_v52 = vmul.f32 1.442695, %v9524_v23  ;;  %v9523_v27 = vsub.f32 %v9412_v1, %v9513_v34 }
0x39ab   :  { %16141 = vpow2.f32 %v9529_v52  ;;  %v9527_v51 = vmul.f32 1.442695, %v9523_v27  ;;  %v16309_v27 = vld [vmem:[%s17331_s3 + $0x28] sm:$0xff] }
0x39ad   :  { %16143 = vpow2.f32 %v9527_v51 }
0x39b8   :  { %v16142_v49 = vpop.eup %16141 }
0x39b9   :  { %v9538_v29 = vsel %vm356_vm1, %v16142_v49, 0.0 }
0x39ba   :  { %v16144_v14 = vpop.eup %16143  ;;  %9539 = vadd.xlane.f32.xlu1 %v9538_v29  ;;  %v16310_v29 = vld [vmem:[%s17331_s3 + $0x20] sm:$0xff] }
0x39bb   :  { %v9535_v28 = vsel %vm356_vm1, %v16144_v14, 0.0 }
0x39bc   :  { %9536 = vadd.xlane.f32.xlu0 %v9535_v28 }
0x39c2   :  { %v9519_v54 = vpop.xlane.xlu0 %9518 }
0x39c3   :  { %v9525_v45 = vsub.f32 %v9503_v36, %v9519_v54 }
0x39c5   :  { %v9531_v18 = vmul.f32 1.442695, %v9525_v45 }
0x39c6   :  { %v9522_v0 = vpop.xlane.xlu0 %9521 }
0x39c7   :  { %v9526_v5 = vsub.f32 %v9508_v58, %v9522_v0  ;;  %16145 = vpow2.f32 %v9531_v18 }
0x39c9   :  { %v9533_v24 = vmul.f32 1.442695, %v9526_v5 }
0x39cb   :  { %9557 = vrot.lane.b32.xlu1 %v18138_v53, %s16339_s20  ;;  %16147 = vpow2.f32 %v9533_v24  ;;  %v16311_v24 = vld [vmem:[%s17331_s3 + $0x60] sm:$0xff] }
0x39cf   :  { %9739 = vrot.lane.b32.xlu1 %v18140_v60, %s16340_s21 }
0x39d2   :  { %9559 = vrot.lane.b32.xlu0 %v18144_v50, %s16339_s20 }
0x39d3   :  { %9648 = vrot.lane.b32.xlu1 %v18167_v7, %s16339_s20 }
0x39d4   :  { %v16146_v55 = vpop.eup %16145 }
0x39d5   :  { %v9541_v2 = vsel %vm356_vm1, %v16146_v55, 0.0 }
0x39d6   :  { %9737 = vrot.lane.b32.xlu0 %v18132_v48, %s16340_s21 }
0x39d7   :  { %9646 = vrot.lane.b32.xlu1 %v18150_v46, %s16339_s20 }
0x39d8   :  { %v16148_v39 = vpop.eup %16147 }
0x39d9   :  { %v9544_v4 = vsel %vm356_vm1, %v16148_v39, 0.0 }
0x39da   :  { %9733 = vrot.lane.b32.xlu0 %v18132_v48, %s16341_s22 }
0x39db   :  { %9830 = vrot.lane.b32.xlu1 %v18152_v3, %s16340_s21 }
0x39f9   :  { %9542 = vadd.xlane.f32.xlu0 %v9541_v2  ;;  %v16312_v2 = vld [vmem:[%s17331_s3 + $0x68] sm:$0xff] }
0x39ff   :  { %9545 = vadd.xlane.f32.xlu1 %v9544_v4 }
0x3a0f   :  { %9735 = vrot.lane.b32.xlu0 %v18140_v60, %s16341_s22 }
0x3a10   :  { %9828 = vrot.lane.b32.xlu1 %v18146_v43, %s16340_s21 }
0x3a13   :  { %9824 = vrot.lane.b32.xlu0 %v18146_v43, %s16341_s22 }
0x3a14   :  { %9826 = vrot.lane.b32.xlu1 %v18152_v3, %s16341_s22 }
0x3a43   :  { %v9540_v40 = vpop.xlane.xlu1 %9539 }
0x3a44   :  { %16149 = vrcp.f32 %v9540_v40 }
0x3a45   :  { %v9537_v22 = vpop.xlane.xlu0 %9536 }
0x3a46   :  { %16151 = vrcp.f32 %v9537_v22 }
0x3a47   :  { %v9558_v32 = vpop.permute.xlu1 %9557 }
0x3a49   :  { %v9560_v44 = vpop.permute.xlu0 %9559 }
0x3a4a   :  { %15353 = vmatprep.subr.mxu1 %v9560_v44 }
0x3a4b   :  { %v9740_v15 = vpop.permute.xlu1 %9739  ;;  %15354 = vmatpush3.msra.mxu1 %v9560_v44 }
0x3a4c   :  { %15355 = vmatprep.subr.mxu1 %v9558_v32 }
0x3a4d   :  { %15356 = vmatpush3.msra.mxu1 %v9558_v32  ;;  %v9738_v11 = vpop.permute.xlu0 %9737 }
0x3a4e   :  { %15367 = vmatprep.subr.msk.mxu1 %vm356_vm1, %v9740_v15 }
0x3a4f   :  { %v9649_v30 = vpop.permute.xlu1 %9648 }
0x3a50   :  { %15360 = vmatprep.subr.mxu0 %v9649_v30 }
0x3a51   :  { %15361 = vmatpush3.msra.mxu0 %v9649_v30  ;;  %v16150_v42 = vpop.eup %16149  ;;  %v9734_v1 = vpop.permute.xlu0 %9733 }
0x3a52   :  { %v9550_v17 = vmul.f32 %v16150_v42, %v16142_v49 }
0x3a53   :  { %v16152_v59 = vpop.eup %16151  ;;  %v9647_v10 = vpop.permute.xlu1 %9646 }
0x3a54   :  { %15362 = vmatprep.subr.mxu0 %v9647_v10  ;;  %v9548_v31 = vmul.f32 %v16152_v59, %v16144_v14 }
0x3a55   :  { %15363 = vmatpush3.msra.mxu0 %v9647_v10 }
0x3a56   :  { %15357 = vmatprep.mubr.msk.f32.mxu1 %vm356_vm1, %v9548_v31 }
0x3a57   :  { %v9831_v47 = vpop.permute.xlu1 %9830  ;;  %15358 = vmatmul.mubr.msk.f32.vlgmr.msra.gmra.mxu1 %vm356_vm1, %v9550_v17 }
0x3a58   :  { %15368 = vmatpush3.xpose.msk.msra.mxu1 %vm356_vm1, %v9740_v15  ;;  %15371 = vmatprep.mubr.msk.f32.mxu1 %vm356_vm1, %v9734_v1 }
0x3a59   :  { %15369 = vmatprep.subr.msk.mxu1 %vm356_vm1, %v9738_v11  ;;  %15374 = vmatprep.subr.msk.mxu0 %vm356_vm1, %v9831_v47 }
0x3a5c   :  { %15370 = vmatpush3.xpose.msk.msra.mxu1 %vm356_vm1, %v9738_v11 }
0x3a82   :  { %v9543_v25 = vpop.xlane.xlu0 %9542 }
0x3a83   :  { %16153 = vrcp.f32 %v9543_v25 }
0x3a86   :  { %v9736_v26 = vpop.permute.xlu0 %9735 }
0x3a87   :  { %15372 = vmatmul.mubr.msk.f32.vlgmr.msra.gmra.mxu1 %vm356_vm1, %v9736_v26 }
0x3a88   :  { %v9546_v38 = vpop.xlane.xlu1 %9545 }
0x3a89   :  { %16155 = vrcp.f32 %v9546_v38 }
0x3a8a   :  { %v9825_v9 = vpop.permute.xlu0 %9824 }
0x3a8c   :  { %v9829_v56 = vpop.permute.xlu1 %9828 }
0x3a90   :  { %v16154_v16 = vpop.eup %16153  ;;  %v9827_v13 = vpop.permute.xlu1 %9826 }
0x3a91   :  { %v9552_v36 = vmul.f32 %v16154_v16, %v16146_v55 }
0x3a93   :  { %15364 = vmatprep.mubr.msk.f32.mxu0 %vm356_vm1, %v9552_v36 }
0x3a96   :  { %v16156_v63 = vpop.eup %16155 }
0x3a97   :  { %v9554_v58 = vmul.f32 %v16156_v63, %v16148_v39 }
0x3a99   :  { %15365 = vmatmul.mubr.msk.f32.vlgmr.msra.gmra.mxu0 %vm356_vm1, %v9554_v58 }
0x3a9a   :  { %15375 = vmatpush3.xpose.msk.msra.mxu0 %vm356_vm1, %v9831_v47  ;;  %15378 = vmatprep.mubr.msk.f32.mxu0 %vm356_vm1, %v9825_v9 }
0x3a9b   :  { %15376 = vmatprep.subr.msk.mxu0 %vm356_vm1, %v9829_v56 }
0x3a9e   :  { %15377 = vmatpush3.xpose.msk.msra.mxu0 %vm356_vm1, %v9829_v56 }
0x3aa1   :  { %15379 = vmatmul.mubr.msk.f32.vlgmr.msra.gmra.mxu0 %vm356_vm1, %v9827_v13 }
0x3b17   :  { %v18284_v23 = vpop.f32.mrf.mxu1 }
0x3b19   :  { %v18286_v34 = vpop.f32.mrf.mxu1 }
0x3b47   :  { %v15373_v52 = vpop.f32.mrf.mxu1 }
0x3b48   :  { %v9821_v51 = vadd.f32 %v16309_v27, %v15373_v52 }
0x3b49   :  { %v9815_v49 = vpop.f32.mrf.mxu1 }
0x3b4a   :  { %v9816_v14 = vadd.f32 %v16310_v29, %v9815_v49  ;;  %v9918_v28 = vsel %vm356_vm1, %v9821_v51, -inf }
0x3b4b   :  { %9919 = vmax.xlane.f32.xlu1 %v9918_v28 }
0x3b4c   :  { %v9915_v54 = vsel %vm356_vm1, %v9816_v14, -inf }
0x3b4d   :  { %9916 = vmax.xlane.f32.xlu0 %v9915_v54 }
0x3b59   :  { %v18292_v45 = vpop.f32.mrf.mxu0 }
0x3b5b   :  { %v18294_v0 = vpop.f32.mrf.mxu0 }
0x3b61   :  { %v15380_v18 = vpop.f32.mrf.mxu0 }
0x3b62   :  { %v9912_v39 = vadd.f32 %v16312_v2, %v15380_v18 }
0x3b63   :  { %v9906_v5 = vpop.f32.mrf.mxu0 }
0x3b64   :  { %v9907_v55 = vadd.f32 %v16311_v24, %v9906_v5  ;;  %v9924_v40 = vsel %vm356_vm1, %v9912_v39, -inf }
0x3b66   :  { %v9921_v4 = vsel %vm356_vm1, %v9907_v55, -inf }
0x3b67   :  { %9922 = vmax.xlane.f32.xlu0 %v9921_v4 }
0x3b6b   :  { %9925 = vmax.xlane.f32.xlu0 %v9924_v40 }
0x3bd4   :  { %v9920_v22 = vpop.xlane.xlu1 %9919 }
0x3bd5   :  { %v9928_v32 = vsub.f32 %v9821_v51, %v9920_v22 }
0x3bd6   :  { %v9917_v44 = vpop.xlane.xlu0 %9916 }
0x3bd7   :  { %v9933_v15 = vmul.f32 1.442695, %v9928_v32  ;;  %v9927_v30 = vsub.f32 %v9816_v14, %v9917_v44 }
0x3bd9   :  { %16157 = vpow2.f32 %v9933_v15  ;;  %v9931_v11 = vmul.f32 1.442695, %v9927_v30  ;;  %v16313_v30 = vld [vmem:[%s17331_s3 + $0x38] sm:$0xff] }
0x3bdb   :  { %16159 = vpow2.f32 %v9931_v11 }
0x3be6   :  { %v16158_v42 = vpop.eup %16157 }
0x3be7   :  { %v9942_v59 = vsel %vm356_vm1, %v16158_v42, 0.0 }
0x3be8   :  { %v16160_v10 = vpop.eup %16159  ;;  %9943 = vadd.xlane.f32.xlu1 %v9942_v59  ;;  %v16314_v59 = vld [vmem:[%s17331_s3 + $0x30] sm:$0xff] }
0x3be9   :  { %v9939_v31 = vsel %vm356_vm1, %v16160_v10, 0.0 }
0x3bea   :  { %9940 = vadd.xlane.f32.xlu0 %v9939_v31 }
0x3bf0   :  { %v9923_v17 = vpop.xlane.xlu0 %9922 }
0x3bf1   :  { %v9929_v1 = vsub.f32 %v9907_v55, %v9923_v17 }
0x3bf3   :  { %v9935_v25 = vmul.f32 1.442695, %v9929_v1 }
0x3bf4   :  { %v9926_v47 = vpop.xlane.xlu0 %9925 }
0x3bf5   :  { %v9930_v26 = vsub.f32 %v9912_v39, %v9926_v47  ;;  %16161 = vpow2.f32 %v9935_v25 }
0x3bf7   :  { %v9937_v38 = vmul.f32 1.442695, %v9930_v26 }
0x3bf9   :  { %9959 = vrot.lane.b32.xlu1 %v18138_v53, %s16341_s22  ;;  %16163 = vpow2.f32 %v9937_v38  ;;  %v16315_v38 = vld [vmem:[%s17331_s3 + $0x70] sm:$0xff] }
0x3bfd   :  { %10139 = vrot.lane.b32.xlu1 %v18140_v60, %s16342_s23 }
0x3c00   :  { %9961 = vrot.lane.b32.xlu0 %v18144_v50, %s16341_s22 }
0x3c01   :  { %10048 = vrot.lane.b32.xlu1 %v18167_v7, %s16341_s22 }
0x3c02   :  { %v16162_v16 = vpop.eup %16161 }
0x3c03   :  { %v9945_v36 = vsel %vm356_vm1, %v16162_v16, 0.0 }
0x3c04   :  { %10137 = vrot.lane.b32.xlu0 %v18132_v48, %s16342_s23 }
0x3c05   :  { %10046 = vrot.lane.b32.xlu1 %v18150_v46, %s16341_s22 }
0x3c06   :  { %v16164_v63 = vpop.eup %16163 }
0x3c07   :  { %v9948_v58 = vsel %vm356_vm1, %v16164_v63, 0.0 }
0x3c08   :  { %10133 = vrot.lane.b32.xlu0 %v18132_v48, %s16343_s24 }
0x3c09   :  { %10230 = vrot.lane.b32.xlu1 %v18152_v3, %s16342_s23 }
0x3c27   :  { %9946 = vadd.xlane.f32.xlu0 %v9945_v36  ;;  %v16316_v36 = vld [vmem:[%s17331_s3 + $0x78] sm:$0xff] }
0x3c2d   :  { %9949 = vadd.xlane.f32.xlu1 %v9948_v58 }
0x3c3d   :  { %10135 = vrot.lane.b32.xlu0 %v18140_v60, %s16343_s24 }
0x3c3e   :  { %10228 = vrot.lane.b32.xlu1 %v18146_v43, %s16342_s23 }
0x3c41   :  { %10224 = vrot.lane.b32.xlu0 %v18146_v43, %s16343_s24 }
0x3c42   :  { %10226 = vrot.lane.b32.xlu1 %v18152_v3, %s16343_s24 }
0x3c71   :  { %v9944_v48 = vpop.xlane.xlu1 %9943 }
0x3c72   :  { %16165 = vrcp.f32 %v9944_v48 }
0x3c73   :  { %v9941_v9 = vpop.xlane.xlu0 %9940 }
0x3c74   :  { %16167 = vrcp.f32 %v9941_v9 }
0x3c75   :  { %v9960_v56 = vpop.permute.xlu1 %9959 }
0x3c77   :  { %v9962_v13 = vpop.permute.xlu0 %9961 }
0x3c78   :  { %15381 = vmatprep.subr.mxu1 %v9962_v13 }
0x3c79   :  { %v10140_v52 = vpop.permute.xlu1 %10139  ;;  %15382 = vmatpush3.msra.mxu1 %v9962_v13 }
0x3c7a   :  { %15383 = vmatprep.subr.mxu1 %v9960_v56 }
0x3c7b   :  { %15384 = vmatpush3.msra.mxu1 %v9960_v56  ;;  %v10138_v27 = vpop.permute.xlu0 %10137 }
0x3c7c   :  { %15395 = vmatprep.subr.msk.mxu1 %vm356_vm1, %v10140_v52 }
0x3c7d   :  { %v10049_v60 = vpop.permute.xlu1 %10048 }
0x3c7e   :  { %15388 = vmatprep.subr.mxu0 %v10049_v60 }
0x3c7f   :  { %15389 = vmatpush3.msra.mxu0 %v10049_v60  ;;  %v16166_v43 = vpop.eup %16165  ;;  %v10134_v14 = vpop.permute.xlu0 %10133 }
0x3c80   :  { %v9954_v29 = vmul.f32 %v16166_v43, %v16158_v42 }
0x3c81   :  { %v16168_v51 = vpop.eup %16167  ;;  %v10047_v3 = vpop.permute.xlu1 %10046 }
0x3c82   :  { %15390 = vmatprep.subr.mxu0 %v10047_v3  ;;  %v9952_v49 = vmul.f32 %v16168_v51, %v16160_v10 }
0x3c83   :  { %15391 = vmatpush3.msra.mxu0 %v10047_v3 }
0x3c84   :  { %15385 = vmatprep.mubr.msk.f32.mxu1 %vm356_vm1, %v9952_v49 }
0x3c85   :  { %v10231_v28 = vpop.permute.xlu1 %10230  ;;  %15386 = vmatmul.mubr.msk.f32.vlgmr.msra.gmra.mxu1 %vm356_vm1, %v9954_v29 }
0x3c86   :  { %15396 = vmatpush3.xpose.msk.msra.mxu1 %vm356_vm1, %v10140_v52  ;;  %15399 = vmatprep.mubr.msk.f32.mxu1 %vm356_vm1, %v10134_v14 }
0x3c87   :  { %15397 = vmatprep.subr.msk.mxu1 %vm356_vm1, %v10138_v27  ;;  %15402 = vmatprep.subr.msk.mxu0 %vm356_vm1, %v10231_v28 }
0x3c8a   :  { %15398 = vmatpush3.xpose.msk.msra.mxu1 %vm356_vm1, %v10138_v27 }
0x3cb0   :  { %v9947_v54 = vpop.xlane.xlu0 %9946 }
0x3cb1   :  { %16169 = vrcp.f32 %v9947_v54 }
0x3cb4   :  { %v10136_v18 = vpop.permute.xlu0 %10135 }
0x3cb5   :  { %15400 = vmatmul.mubr.msk.f32.vlgmr.msra.gmra.mxu1 %vm356_vm1, %v10136_v18 }
0x3cb6   :  { %v9950_v5 = vpop.xlane.xlu1 %9949 }
0x3cb7   :  { %16171 = vrcp.f32 %v9950_v5 }
0x3cb8   :  { %v10225_v4 = vpop.permute.xlu0 %10224 }
0x3cba   :  { %v10229_v40 = vpop.permute.xlu1 %10228 }
0x3cbe   :  { %v16170_v24 = vpop.eup %16169  ;;  %v10227_v22 = vpop.permute.xlu1 %10226 }
0x3cbf   :  { %v9956_v55 = vmul.f32 %v16170_v24, %v16162_v16 }
0x3cc1   :  { %15392 = vmatprep.mubr.msk.f32.mxu0 %vm356_vm1, %v9956_v55 }
0x3cc4   :  { %v16172_v2 = vpop.eup %16171 }
0x3cc5   :  { %v9958_v39 = vmul.f32 %v16172_v2, %v16164_v63 }
0x3cc7   :  { %15393 = vmatmul.mubr.msk.f32.vlgmr.msra.gmra.mxu0 %vm356_vm1, %v9958_v39 }
0x3cc8   :  { %15403 = vmatpush3.xpose.msk.msra.mxu0 %vm356_vm1, %v10231_v28  ;;  %15406 = vmatprep.mubr.msk.f32.mxu0 %vm356_vm1, %v10225_v4 }
0x3cc9   :  { %15404 = vmatprep.subr.msk.mxu0 %vm356_vm1, %v10229_v40 }
0x3ccc   :  { %15405 = vmatpush3.xpose.msk.msra.mxu0 %vm356_vm1, %v10229_v40 }
0x3ccf   :  { %15407 = vmatmul.mubr.msk.f32.vlgmr.msra.gmra.mxu0 %vm356_vm1, %v10227_v22 }
0x3d45   :  { %v15387_v32 = vpop.f32.mrf.mxu1 }
0x3d47   :  { %v10037_v44 = vpop.f32.mrf.mxu1 }
0x3d75   :  { %v15401_v15 = vpop.f32.mrf.mxu1 }
0x3d76   :  { %v10221_v11 = vadd.f32 %v16313_v30, %v15401_v15 }
0x3d77   :  { %v10215_v42 = vpop.f32.mrf.mxu1 }
0x3d78   :  { %v10216_v10 = vadd.f32 %v16314_v59, %v10215_v42  ;;  %v10318_v31 = vsel %vm356_vm1, %v10221_v11, -inf }
0x3d79   :  { %10319 = vmax.xlane.f32.xlu1 %v10318_v31  ;;  %v13702_v31 = vld [vmem:[%s17552_s7 + $0x70] sm:$0xff] }
0x3d7a   :  { %v10315_v17 = vsel %vm356_vm1, %v10216_v10, -inf }
0x3d7b   :  { %10316 = vmax.xlane.f32.xlu0 %v10315_v17  ;;  %v13701_v17 = vld [vmem:[%s17552_s7 + $0x68] sm:$0xff] }
0x3d87   :  { %v18348_v1 = vpop.f32.mrf.mxu0 }
0x3d89   :  { %v18350_v47 = vpop.f32.mrf.mxu0 }
0x3d8f   :  { %v15408_v25 = vpop.f32.mrf.mxu0 }
0x3d90   :  { %v10312_v63 = vadd.f32 %v16316_v36, %v15408_v25  ;;  %v13700_v25 = vld [vmem:[%s17552_s7 + $0x60] sm:$0xff] }
0x3d91   :  { %v10306_v26 = vpop.f32.mrf.mxu0  ;;  %v13696_v36 = vld [vmem:[%s17552_s7 + $0x40] sm:$0xff] }
0x3d92   :  { %v10307_v16 = vadd.f32 %v16315_v38, %v10306_v26  ;;  %v10324_v48 = vsel %vm356_vm1, %v10312_v63, -inf  ;;  %v13699_v26 = vld [vmem:[%s17552_s7 + $0x58] sm:$0xff]  ;;  %v13698_v38 = vld [vmem:[%s17552_s7 + $0x50] sm:$0xff] }
0x3d94   :  { %v10321_v58 = vsel %vm356_vm1, %v10307_v16, -inf }
0x3d95   :  { %10322 = vmax.xlane.f32.xlu0 %v10321_v58 }
0x3d99   :  { %10325 = vmax.xlane.f32.xlu0 %v10324_v48 }
0x3e02   :  { %v10320_v9 = vpop.xlane.xlu1 %10319 }
0x3e03   :  { %v10328_v56 = vsub.f32 %v10221_v11, %v10320_v9 }
0x3e04   :  { %v10317_v13 = vpop.xlane.xlu0 %10316 }
0x3e05   :  { %v10333_v52 = vmul.f32 1.442695, %v10328_v56  ;;  %v10327_v60 = vsub.f32 %v10216_v10, %v10317_v13  ;;  %v13703_v10 = vld [vmem:[%s17552_s7 + $0x78] sm:$0xff] }
0x3e07   :  { %16173 = vpow2.f32 %v10333_v52  ;;  %v10331_v27 = vmul.f32 1.442695, %v10327_v60 }
0x3e09   :  { %16175 = vpow2.f32 %v10331_v27 }
0x3e14   :  { %v16174_v43 = vpop.eup %16173 }
0x3e15   :  { %v10342_v51 = vsel %vm356_vm1, %v16174_v43, 0.0 }
0x3e16   :  { %v16176_v3 = vpop.eup %16175  ;;  %10343 = vadd.xlane.f32.xlu1 %v10342_v51 }
0x3e17   :  { %v10339_v49 = vsel %vm356_vm1, %v16176_v3, 0.0 }
0x3e18   :  { %10340 = vadd.xlane.f32.xlu0 %v10339_v49 }
0x3e1e   :  { %v10323_v29 = vpop.xlane.xlu0 %10322 }
0x3e1f   :  { %v10329_v14 = vsub.f32 %v10307_v16, %v10323_v29  ;;  %v13697_v16 = vld [vmem:[%s17552_s7 + $0x48] sm:$0xff] }
0x3e21   :  { %v10335_v28 = vmul.f32 1.442695, %v10329_v14  ;;  %v13776_v14 = vld [vmem:[%s17598_s9 + $0x70] sm:$0xff] }
0x3e22   :  { %v10326_v54 = vpop.xlane.xlu0 %10325 }
0x3e23   :  { %16177 = vpow2.f32 %v10335_v28  ;;  %v10330_v18 = vsub.f32 %v10312_v63, %v10326_v54  ;;  %v13777_v63 = vld [vmem:[%s17598_s9 + $0x78] sm:$0xff]  ;;  %v13775_v28 = vld [vmem:[%s17598_s9 + $0x68] sm:$0xff]  ;;  %v13774_v54 = vld [vmem:[%s17598_s9 + $0x60] sm:$0xff] }
0x3e25   :  { %v10337_v5 = vmul.f32 1.442695, %v10330_v18 }
0x3e27   :  { %16179 = vpow2.f32 %v10337_v5  ;;  %v13773_v5 = vld [vmem:[%s17598_s9 + $0x58] sm:$0xff] }
0x3e30   :  { %v16178_v24 = vpop.eup %16177 }
0x3e31   :  { %v10345_v55 = vsel %vm356_vm1, %v16178_v24, 0.0 }
0x3e32   :  { %10346 = vadd.xlane.f32.xlu0 %v10345_v55 }
0x3e34   :  { %v16180_v2 = vpop.eup %16179 }
0x3e35   :  { %v10348_v39 = vsel %vm356_vm1, %v16180_v2, 0.0 }
0x3e36   :  { %10349 = vadd.xlane.f32.xlu1 %v10348_v39 }
0x3e47   :  { %10359 = vrot.lane.b32.xlu1 %v18138_v53, %s16343_s24 }
0x3e48   :  { %10361 = vrot.lane.b32.xlu0 %v18144_v50, %s16343_s24 }
0x3e4b   :  { %10448 = vrot.lane.b32.xlu1 %v18167_v7, %s16343_s24 }
0x3e4c   :  { %10537 = vrot.lane.b32.xlu0 %v18286_v34, %s16342_s23 }
0x3e4f   :  { %10446 = vrot.lane.b32.xlu1 %v18150_v46, %s16343_s24 }
0x3e50   :  { %10553 = vrot.lane.b32.xlu0 %v10037_v44, %s16340_s21 }
0x3e53   :  { %10539 = vrot.lane.b32.xlu1 %v18284_v23, %s16342_s23 }
0x3e57   :  { %10555 = vrot.lane.b32.xlu1 %v15387_v32, %s16340_s21 }
0x3e9f   :  { %v10344_v40 = vpop.xlane.xlu1 %10343 }
0x3ea1   :  { %v10341_v53 = vpop.xlane.xlu0 %10340 }
0x3ea2   :  { %16181 = vrcp.f32 %v10341_v53 }
0x3ea3   :  { %16183 = vrcp.f32 %v10344_v40 }
0x3eaf   :  { %v16182_v4 = vpop.eup %16181 }
0x3eb0   :  { %v10352_v50 = vmul.f32 %v16182_v4, %v16176_v3  ;;  %v16184_v46 = vpop.eup %16183 }
0x3eb1   :  { %v10354_v23 = vmul.f32 %v16184_v46, %v16174_v43  ;;  %v13766_v46 = vld [vmem:[%s17641_s28 + $0x60] sm:$0xff] }
0x3eb2   :  { %15413 = vmatprep.mubr.msk.f32.mxu1 %vm356_vm1, %v10352_v50  ;;  %v13771_v50 = vld [vmem:[%s17598_s9 + $0x48] sm:$0xff] }
0x3ebb   :  { %v10347_v7 = vpop.xlane.xlu0 %10346 }
0x3ebc   :  { %16185 = vrcp.f32 %v10347_v7 }
0x3ebf   :  { %v10350_v34 = vpop.xlane.xlu1 %10349  ;;  %v10362_v22 = vpop.permute.xlu0 %10361 }
0x3ec0   :  { %16187 = vrcp.f32 %v10350_v34  ;;  %15409 = vmatprep.subr.mxu1 %v10362_v22 }
0x3ec1   :  { %15410 = vmatpush3.msra.mxu1 %v10362_v22  ;;  %v13768_v22 = vld [vmem:[%s17641_s28 + $0x70] sm:$0xff] }
0x3ec3   :  { %v10360_v44 = vpop.permute.xlu1 %10359  ;;  %v10538_v52 = vpop.permute.xlu0 %10537 }
0x3ec4   :  { %15411 = vmatprep.subr.mxu1 %v10360_v44 }
0x3ec5   :  { %15412 = vmatpush3.msra.mxu1 %v10360_v44  ;;  %v13764_v44 = vld [vmem:[%s17641_s28 + $0x50] sm:$0xff] }
0x3ec6   :  { %15414 = vmatmul.mubr.msk.f32.vlgmr.msra.gmra.mxu1 %vm356_vm1, %v10354_v23  ;;  %15423 = vmatprep.subr.mxu1 %v13703_v10 }
0x3ec7   :  { %v10449_v32 = vpop.permute.xlu1 %10448  ;;  %15424 = vmatpush3.msra.mxu1 %v13703_v10 }
0x3ec8   :  { %15416 = vmatprep.subr.mxu0 %v10449_v32  ;;  %15425 = vmatprep.subr.mxu1 %v13702_v31 }
0x3ec9   :  { %v16186_v15 = vpop.eup %16185  ;;  %15417 = vmatpush3.msra.mxu0 %v10449_v32  ;;  %15426 = vmatpush3.msra.mxu1 %v13702_v31 }
0x3eca   :  { %v10356_v30 = vmul.f32 %v16186_v15, %v16178_v24  ;;  %15427 = vmatprep.subr.mxu1 %v13701_v17  ;;  %v13772_v24 = vld [vmem:[%s17598_s9 + $0x50] sm:$0xff] }
0x3ecb   :  { %v10447_v11 = vpop.permute.xlu1 %10446  ;;  %15428 = vmatpush3.msra.mxu1 %v13701_v17 }
0x3ecc   :  { %15418 = vmatprep.subr.mxu0 %v10447_v11  ;;  %15420 = vmatprep.mubr.msk.f32.mxu0 %vm356_vm1, %v10356_v30 }
0x3ecd   :  { %v16188_v42 = vpop.eup %16187  ;;  %15419 = vmatpush3.msra.mxu0 %v10447_v11  ;;  %15429 = vmatprep.subr.mxu1 %v13700_v25 }
0x3ece   :  { %v10358_v59 = vmul.f32 %v16188_v42, %v16180_v2  ;;  %15430 = vmatpush3.msra.mxu1 %v13700_v25 }
0x3ecf   :  { %15431 = vmatprep.subr.mxu1 %v13699_v26  ;;  %v10540_v13 = vpop.permute.xlu1 %10539 }
0x3ed0   :  { %15421 = vmatmul.mubr.msk.f32.vlgmr.msra.gmra.mxu0 %vm356_vm1, %v10358_v59  ;;  %15432 = vmatpush3.msra.mxu1 %v13699_v26 }
0x3ed1   :  { %15433 = vmatprep.subr.mxu1 %v13698_v38 }
0x3ed2   :  { %15434 = vmatpush3.msra.mxu1 %v13698_v38 }
0x3ed3   :  { %15435 = vmatprep.subr.mxu1 %v13697_v16  ;;  %v10556_v60 = vpop.permute.xlu1 %10555 }
0x3ed4   :  { %15436 = vmatpush3.msra.mxu1 %v13697_v16 }
0x3ed5   :  { %15437 = vmatprep.subr.mxu1 %v13696_v36 }
0x3ed6   :  { %15438 = vmatpush3.msra.mxu1 %v13696_v36 }
0x3ed7   :  { %15467 = vmatprep.subr.mxu1 %v13777_v63 }
0x3f86   :  { %v15415_v58 = vpop.f32.mrf.mxu1 }
0x3f87   :  { %10571 = vrot.lane.b32.xlu1 %v15415_v58, %s16338_s19 }
0x3f88   :  { %v10437_v48 = vpop.f32.mrf.mxu1 }
0x3f89   :  { %10569 = vrot.lane.b32.xlu0 %v10437_v48, %s16338_s19 }
0x3f8b   :  { %10543 = vrot.lane.b32.xlu1 %v18292_v45, %s16342_s23  ;;  %v10554_v45 = vpop.permute.xlu0 %10553 }
0x3f8d   :  { %10541 = vrot.lane.b32.xlu0 %v18294_v0, %s16342_s23  ;;  %v10581_v0 = vsel %vm356_vm1, %v18230_v6, %v10538_v52 }
0x3f8f   :  { %10559 = vrot.lane.b32.xlu1 %v18348_v1, %s16340_s21  ;;  %v10585_v1 = vsel %vm1991_vm2, %v10581_v0, %v10554_v45 }
0x3f90   :  { %v15422_v9 = vpop.f32.mrf.mxu0 }
0x3f91   :  { %10557 = vrot.lane.b32.xlu0 %v18350_v47, %s16340_s21  ;;  %v10582_v47 = vsel %vm356_vm1, %v18228_v33, %v10540_v13 }
0x3f92   :  { %v10524_v56 = vpop.f32.mrf.mxu0  ;;  %v10586_v51 = vsel %vm1991_vm2, %v10582_v47, %v10556_v60 }
0x3f93   :  { %10575 = vrot.lane.b32.xlu1 %v15422_v9, %s16338_s19 }
0x3f95   :  { %10573 = vrot.lane.b32.xlu0 %v10524_v56, %s16338_s19 }
0x3ff9   :  { %v10572_v27 = vpop.permute.xlu1 %10571 }
0x3ffa   :  { %v10590_v49 = vsel %vm1996_vm3, %v10586_v51, %v10572_v27 }
0x3ffb   :  { %v10570_v43 = vpop.permute.xlu0 %10569 }
0x3ffc   :  { %v10589_v3 = vsel %vm1996_vm3, %v10585_v1, %v10570_v43  ;;  %v13761_v43 = vld [vmem:[%s17693_s1 + $0x1] ss:$0 sm:$0xff] }
0x3ffd   :  { %v10544_v29 = vpop.permute.xlu1 %10543  ;;  %15439 = vmatprep.mubr.msk.f32.mxu1 %vm185_vm0, %v10589_v3 }
0x3ffe   :  { %15440 = vmatmul.mubr.msk.f32.vlgmr.msra.gmra.mxu1 %vm185_vm0, %v10590_v49  ;;  %v10584_v39 = vsel %vm356_vm1, %v18232_v62, %v10544_v29  ;;  %v13769_v62 = vld [vmem:[%s17641_s28 + $0x78] sm:$0xff] }
0x3fff   :  { %15468 = vmatpush3.msra.mxu1 %v13777_v63  ;;  %v10542_v6 = vpop.permute.xlu0 %10541  ;;  %15445 = vmatprep.subr.mxu0 %v13769_v62 }
0x4000   :  { %15469 = vmatprep.subr.mxu1 %v13776_v14  ;;  %v10583_v55 = vsel %vm356_vm1, %v18234_v35, %v10542_v6  ;;  %v13770_v35 = vld [vmem:[%s17598_s9 + $0x40] sm:$0xff]  ;;  %15446 = vmatpush3.msra.mxu0 %v13769_v62  ;;  %s18835_s9 = sld [smem:[%s18918_s0 + %s16364_s29]]  }
0x4001   :  { %v10560_v33 = vpop.permute.xlu1 %10559  ;;  %15470 = vmatpush3.msra.mxu1 %v13776_v14  ;;  %15447 = vmatprep.subr.mxu0 %v13768_v22 }
0x4002   :  { %15471 = vmatprep.subr.mxu1 %v13775_v28  ;;  %v10588_v40 = vsel %vm1991_vm2, %v10584_v39, %v10560_v33  ;;  %15448 = vmatpush3.msra.mxu0 %v13768_v22 }
0x4003   :  { %15472 = vmatpush3.msra.mxu1 %v13775_v28  ;;  %v10558_v18 = vpop.permute.xlu0 %10557 }
0x4004   :  { %15473 = vmatprep.subr.mxu1 %v13774_v54  ;;  %v10587_v53 = vsel %vm1991_vm2, %v10583_v55, %v10558_v18 }
0x4005   :  { %15474 = vmatpush3.msra.mxu1 %v13774_v54  ;;  %v10576_v2 = vpop.permute.xlu1 %10575 }
0x4006   :  { %15475 = vmatprep.subr.mxu1 %v13773_v5  ;;  %v10592_v34 = vsel %vm1996_vm3, %v10588_v40, %v10576_v2 }
0x4007   :  { %15476 = vmatpush3.msra.mxu1 %v13773_v5  ;;  %v10574_v4 = vpop.permute.xlu0 %10573 }
0x4008   :  { %v10591_v7 = vsel %vm1996_vm3, %v10587_v53, %v10574_v4  ;;  %15477 = vmatprep.subr.mxu1 %v13772_v24 }
0x4009   :  { %15442 = vmatprep.mubr.msk.f32.mxu1 %vm185_vm0, %v10591_v7  ;;  %15478 = vmatpush3.msra.mxu1 %v13772_v24 }
0x400a   :  { %15443 = vmatmul.mubr.msk.f32.gmra.mxu1 %vm185_vm0, %v10592_v34  ;;  %15479 = vmatprep.subr.mxu1 %v13771_v50  ;;  %v16318_v34 = vld [vmem:[%s17754_s6] sm:$0xff] }
0x400b   :  { %15480 = vmatpush3.msra.mxu1 %v13771_v50  ;;  %15483 = vmatprep.mubr.msk.f32.mxu1 %vm185_vm0, %v17635_v57  ;;  %v13767_v57 = vld [vmem:[%s17641_s28 + $0x68] sm:$0xff] }
0x400c   :  { %15481 = vmatprep.subr.mxu1 %v13770_v35  ;;  %15449 = vmatprep.subr.mxu0 %v13767_v57  ;;  %v16317_v50 = vld [vmem:[%s17754_s6 + $0x8] sm:$0xff] }
0x400d   :  { %15482 = vmatpush3.msra.mxu1 %v13770_v35  ;;  %15450 = vmatpush3.msra.mxu0 %v13767_v57 }
0x400e   :  { %15484 = vmatmul.mubr.msk.f32.vlgmr.msra.gmra.mxu1 %vm185_vm0, %v17646_v61  ;;  %15451 = vmatprep.subr.mxu0 %v13766_v46  ;;  %v13765_v61 = vld [vmem:[%s17641_s28 + $0x58] sm:$0xff] }
0x400f   :  { %15486 = vmatprep.mubr.msk.f32.mxu1 %vm185_vm0, %v17708_v37  ;;  %15452 = vmatpush3.msra.mxu0 %v13766_v46  ;;  %v13763_v37 = vld [vmem:[%s17641_s28 + $0x48] sm:$0xff] }
0x4010   :  { %15453 = vmatprep.subr.mxu0 %v13765_v61  ;;  %v16319_v46 = vld [vmem:[%s17754_s6 + $0x48] sm:$0xff] }
0x4011   :  { %15454 = vmatpush3.msra.mxu0 %v13765_v61 }
0x4012   :  { %15487 = vmatmul.mubr.msk.f32.gmra.mxu1 %vm185_vm0, %v17711_v21  ;;  %15455 = vmatprep.subr.mxu0 %v13764_v44  ;;  %v13762_v21 = vld [vmem:[%s17641_s28 + $0x40] sm:$0xff]  ;;  %s16365_s28 = smov 26  }
0x4013   :  { %15456 = vmatpush3.msra.mxu0 %v13764_v44  ;;  %s18863_s10 = sld [smem:[%s18918_s0 + %s16365_s28]]  }
0x4014   :  { %15457 = vmatprep.subr.mxu0 %v13763_v37 }
0x4015   :  { %15458 = vmatpush3.msra.mxu0 %v13763_v37  ;;  %v16320_v37 = vld [vmem:[%s17754_s6 + $0x40] sm:$0xff] }
0x4016   :  { %15459 = vmatprep.subr.mxu0 %v13762_v21 }
0x4017   :  { %15460 = vmatpush3.msra.mxu0 %v13762_v21 }
0x40be   :  { %v15441_v23 = vpop.f32.mrf.mxu1 }
0x40bf   :  { %v18443_v32 = vadd.f32 %v15441_v23, %v18081_v41 }
0x40c0   :  { %v10671_v15 = vpop.f32.mrf.mxu1 }
0x40c1   :  { %v18446_v30 = vadd.f32 %v10671_v15, %v18084_v19  ;;  %v10697_v11 = vmul.f32 %v18443_v32, %v18443_v32 }
0x40c3   :  { %v10703_v42 = vsel %vm185_vm0, %v10697_v11, 0.0  ;;  %v10696_v59 = vmul.f32 %v18446_v30, %v18446_v30 }
0x40c4   :  { %10704 = vadd.xlane.f32.xlu1 %v10703_v42 }
0x40c5   :  { %v10700_v10 = vsel %vm185_vm0, %v10696_v59, 0.0 }
0x40c6   :  { %10701 = vadd.xlane.f32.xlu0 %v10700_v10 }
0x40ca   :  { %v15444_v31 = vpop.f32.mrf.mxu1 }
0x40cb   :  { %v18455_v41 = vadd.f32 %v15444_v31, %v18093_v12 }
0x40cc   :  { %v10681_v17 = vpop.f32.mrf.mxu1 }
0x40cd   :  { %v18458_v19 = vadd.f32 %v10681_v17, %v18096_v8  ;;  %v10699_v16 = vmul.f32 %v18455_v41, %v18455_v41 }
0x40ce   :  { %v18460_v25 = vpop.f32.mrf.mxu1 }
0x40cf   :  { %15489 = vmatprep.subr.msk.mxu0 %vm356_vm1, %v18460_v25  ;;  %v10698_v26 = vmul.f32 %v18458_v19, %v18458_v19  ;;  %v10709_v12 = vsel %vm185_vm0, %v10699_v16, 0.0 }
0x40d0   :  { %v18475_v29 = vpop.f32.mrf.mxu1 }
0x40d1   :  { %v10706_v38 = vsel %vm185_vm0, %v10698_v26, 0.0 }
0x40d2   :  { %10707 = vadd.xlane.f32.xlu0 %v10706_v38  ;;  %v18481_v14 = vpop.f32.mrf.mxu1 }
0x40d4   :  { %v18499_v2 = vpop.f32.mrf.mxu1 }
0x40d6   :  { %10710 = vadd.xlane.f32.xlu0 %v10709_v12 }
0x414d   :  { %v10705_v36 = vpop.xlane.xlu1 %10704 }
0x414e   :  { %v10713_v8 = vmul.f32 0.015625, %v10705_v36 }
0x414f   :  { %v10702_v63 = vpop.xlane.xlu0 %10701 }
0x4150   :  { %v10717_v58 = vadd.f32 1e-06, %v10713_v8  ;;  %v10712_v48 = vmul.f32 0.015625, %v10702_v63 }
0x4152   :  { %16189 = vrsqrt.f32 %v10717_v58  ;;  %v10716_v9 = vadd.f32 1e-06, %v10712_v48 }
0x4154   :  { %16191 = vrsqrt.f32 %v10716_v9 }
0x415b   :  { %v10708_v56 = vpop.xlane.xlu0 %10707 }
0x415c   :  { %v10714_v13 = vmul.f32 0.015625, %v10708_v56 }
0x415e   :  { %v10718_v52 = vadd.f32 1e-06, %v10714_v13 }
0x415f   :  { %v16190_v60 = vpop.eup %16189  ;;  %v10711_v45 = vpop.xlane.xlu0 %10710 }
0x4160   :  { %16193 = vrsqrt.f32 %v10718_v52  ;;  %v10715_v27 = vmul.f32 0.015625, %v10711_v45  ;;  %v10725_v1 = vmul.f32 %v16190_v60, %v18443_v32 }
0x4161   :  { %v16192_v0 = vpop.eup %16191 }
0x4162   :  { %v10719_v47 = vadd.f32 1e-06, %v10715_v27  ;;  %v10724_v51 = vmul.f32 %v16192_v0, %v18446_v30  ;;  %v10735_v49 = vmul.f32 %v13761_v43, %v10725_v1 }
0x4164   :  { %16195 = vrsqrt.f32 %v10719_v47  ;;  %v10734_v3 = vmul.f32 %v13761_v43, %v10724_v51 }
0x4166   :  { %15461 = vmatprep.mubr.msk.f32.mxu0 %vm185_vm0, %v10734_v3 }
0x4167   :  { %15462 = vmatmul.mubr.msk.f32.vlgmr.msra.gmra.mxu0 %vm185_vm0, %v10735_v49 }
0x4168   :  { %15490 = vmatpush3.xpose.msk.msra.mxu0 %vm356_vm1, %v18460_v25 }
0x4169   :  { %15491 = vmatprep.subr.msk.mxu0 %vm356_vm1, %v18475_v29 }
0x416c   :  { %15492 = vmatpush3.xpose.msk.msra.mxu0 %vm356_vm1, %v18475_v29 }
0x416d   :  { %v16194_v6 = vpop.eup %16193  ;;  %15496 = vmatprep.subr.msk.mxu0 %vm356_vm1, %v18481_v14 }
0x416e   :  { %v10726_v28 = vmul.f32 %v16194_v6, %v18458_v19 }
0x4170   :  { %v10736_v33 = vmul.f32 %v13761_v43, %v10726_v28 }
0x4171   :  { %v16196_v54 = vpop.eup %16195 }
0x4172   :  { %15464 = vmatprep.mubr.msk.f32.mxu0 %vm185_vm0, %v10736_v33  ;;  %v10727_v18 = vmul.f32 %v16196_v54, %v18455_v41 }
0x4174   :  { %v10737_v5 = vmul.f32 %v13761_v43, %v10727_v18 }
0x4176   :  { %15465 = vmatmul.mubr.msk.f32.gmra.mxu0 %vm185_vm0, %v10737_v5 }
0x4227   :  { %v18491_v24 = vpop.f32.mrf.mxu0 }
0x4229   :  { %v18493_v55 = vpop.f32.mrf.mxu0 }
0x422a   :  { %15493 = vmatprep.mubr.msk.f32.mxu0 %vm356_vm1, %v18493_v55 }
0x422b   :  { %15494 = vmatmul.mubr.msk.f32.vlgmr.msra.gmra.mxu0 %vm356_vm1, %v18491_v24 }
0x422c   :  { %15497 = vmatpush3.xpose.msk.msra.mxu0 %vm356_vm1, %v18481_v14 }
0x422d   :  { %15498 = vmatprep.subr.msk.mxu0 %vm356_vm1, %v18499_v2 }
0x4230   :  { %15499 = vmatpush3.xpose.msk.msra.mxu0 %vm356_vm1, %v18499_v2 }
0x4236   :  { %v18507_v39 = vpop.f32.mrf.mxu0 }
0x4238   :  { %v18509_v53 = vpop.f32.mrf.mxu0 }
0x4239   :  { %15500 = vmatprep.mubr.msk.f32.mxu0 %vm356_vm1, %v18509_v53 }
0x423a   :  { %15501 = vmatmul.mubr.msk.f32.vlgmr.msra.gmra.mxu0 %vm356_vm1, %v18507_v39 }
0x42eb   :  { %v15495_v4 = vpop.f32.mrf.mxu0 }
0x42ec   :  { %v11031_v40 = vadd.f32 %v16317_v50, %v15495_v4 }
0x42ed   :  { %v11025_v7 = vpop.f32.mrf.mxu0 }
0x42ee   :  { %v11026_v35 = vadd.f32 %v16318_v34, %v11025_v7  ;;  %v11124_v62 = vsel %vm356_vm1, %v11031_v40, -inf }
0x42ef   :  { %11125 = vmax.xlane.f32.xlu1 %v11124_v62 }
0x42f0   :  { %v11121_v22 = vsel %vm356_vm1, %v11026_v35, -inf }
0x42f1   :  { %11122 = vmax.xlane.f32.xlu0 %v11121_v22 }
0x42fa   :  { %v15502_v57 = vpop.f32.mrf.mxu0 }
0x42fb   :  { %v11118_v61 = vadd.f32 %v16319_v46, %v15502_v57 }
0x42fc   :  { %v11112_v44 = vpop.f32.mrf.mxu0 }
0x42fd   :  { %v11113_v21 = vadd.f32 %v16320_v37, %v11112_v44  ;;  %v11130_v23 = vsel %vm356_vm1, %v11118_v61, -inf  ;;  %v16321_v37 = vld [vmem:[%s17754_s6 + $0x18] sm:$0xff] }
0x42fe   :  { %11131 = vmax.xlane.f32.xlu1 %v11130_v23 }
0x42ff   :  { %v11127_v15 = vsel %vm356_vm1, %v11113_v21, -inf }
0x4300   :  { %11128 = vmax.xlane.f32.xlu0 %v11127_v15  ;;  %v16322_v15 = vld [vmem:[%s17754_s6 + $0x10] sm:$0xff] }
0x4378   :  { %v11126_v11 = vpop.xlane.xlu1 %11125 }
0x4379   :  { %v11134_v42 = vsub.f32 %v11031_v40, %v11126_v11 }
0x437a   :  { %v11123_v59 = vpop.xlane.xlu0 %11122 }
0x437b   :  { %v11139_v10 = vmul.f32 1.442695, %v11134_v42  ;;  %v11133_v31 = vsub.f32 %v11026_v35, %v11123_v59 }
0x437d   :  { %16197 = vpow2.f32 %v11139_v10  ;;  %v11137_v17 = vmul.f32 1.442695, %v11133_v31 }
0x437f   :  { %16199 = vpow2.f32 %v11137_v17 }
0x4387   :  { %v11132_v63 = vpop.xlane.xlu1 %11131 }
0x4388   :  { %v11136_v48 = vsub.f32 %v11118_v61, %v11132_v63 }
0x4389   :  { %v11129_v36 = vpop.xlane.xlu0 %11128 }
0x438a   :  { %v16198_v26 = vpop.eup %16197  ;;  %v11135_v8 = vsub.f32 %v11113_v21, %v11129_v36  ;;  %v11143_v9 = vmul.f32 1.442695, %v11136_v48 }
0x438b   :  { %v11148_v38 = vsel %vm356_vm1, %v16198_v26, 0.0 }
0x438c   :  { %v16200_v16 = vpop.eup %16199  ;;  %11149 = vadd.xlane.f32.xlu1 %v11148_v38  ;;  %v11141_v58 = vmul.f32 1.442695, %v11135_v8  ;;  %v16323_v38 = vld [vmem:[%s17754_s6 + $0x50] sm:$0xff] }
0x438d   :  { %v11145_v12 = vsel %vm356_vm1, %v16200_v16, 0.0 }
0x438e   :  { %11146 = vadd.xlane.f32.xlu0 %v11145_v12  ;;  %16201 = vpow2.f32 %v11141_v58  ;;  %v16324_v12 = vld [vmem:[%s17754_s6 + $0x58] sm:$0xff] }
0x438f   :  { %16203 = vpow2.f32 %v11143_v9 }
0x439b   :  { %v16202_v56 = vpop.eup %16201 }
0x439c   :  { %v11151_v13 = vsel %vm356_vm1, %v16202_v56, 0.0  ;;  %v16204_v52 = vpop.eup %16203 }
0x439d   :  { %11165 = vrot.lane.b32.xlu1 %v18475_v29, %s16336_s14  ;;  %v11154_v60 = vsel %vm356_vm1, %v16204_v52, 0.0 }
0x43a1   :  { %11254 = vrot.lane.b32.xlu1 %v18481_v14, %s16336_s14 }
0x43a4   :  { %11167 = vrot.lane.b32.xlu0 %v18460_v25, %s16336_s14 }
0x43a5   :  { %11345 = vrot.lane.b32.xlu1 %v18460_v25, %s16339_s20 }
0x43a8   :  { %11252 = vrot.lane.b32.xlu0 %v18499_v2, %s16336_s14  ;;  %s16362_s14 = smov 23  }
0x43a9   :  { %11343 = vrot.lane.b32.xlu1 %v18475_v29, %s16339_s20 }
0x43ac   :  { %11436 = vrot.lane.b32.xlu0 %v18481_v14, %s16339_s20 }
0x43ad   :  { %11339 = vrot.lane.b32.xlu1 %v18493_v55, %s16339_s20 }
0x43cb   :  { %11152 = vadd.xlane.f32.xlu0 %v11151_v13 }
0x43d1   :  { %11155 = vadd.xlane.f32.xlu1 %v11154_v60 }
0x43e1   :  { %11341 = vrot.lane.b32.xlu0 %v18491_v24, %s16339_s20 }
0x43e2   :  { %11434 = vrot.lane.b32.xlu1 %v18499_v2, %s16339_s20 }
0x43e5   :  { %11430 = vrot.lane.b32.xlu0 %v18509_v53, %s16339_s20 }
0x43e6   :  { %11432 = vrot.lane.b32.xlu1 %v18507_v39, %s16339_s20  ;;  %s16370_s20 = smov 30  }
0x4415   :  { %v11150_v45 = vpop.xlane.xlu1 %11149 }
0x4416   :  { %16205 = vrcp.f32 %v11150_v45 }
0x4417   :  { %v11147_v27 = vpop.xlane.xlu0 %11146 }
0x4418   :  { %16207 = vrcp.f32 %v11147_v27 }
0x4419   :  { %v11166_v0 = vpop.permute.xlu1 %11165 }
0x441b   :  { %v11168_v1 = vpop.permute.xlu0 %11167 }
0x441c   :  { %15503 = vmatprep.subr.mxu0 %v11168_v1 }
0x441d   :  { %v11255_v47 = vpop.permute.xlu1 %11254  ;;  %15504 = vmatpush3.msra.mxu0 %v11168_v1 }
0x441e   :  { %15505 = vmatprep.subr.mxu0 %v11166_v0  ;;  %15510 = vmatprep.subr.mxu1 %v11255_v47 }
0x441f   :  { %15506 = vmatpush3.msra.mxu0 %v11166_v0  ;;  %15511 = vmatpush3.msra.mxu1 %v11255_v47  ;;  %v11253_v43 = vpop.permute.xlu0 %11252 }
0x4420   :  { %15512 = vmatprep.subr.mxu1 %v11253_v43 }
0x4421   :  { %v11346_v51 = vpop.permute.xlu1 %11345  ;;  %15513 = vmatpush3.msra.mxu1 %v11253_v43 }
0x4422   :  { %15517 = vmatprep.subr.msk.mxu0 %vm356_vm1, %v11346_v51 }
0x4423   :  { %v11437_v3 = vpop.permute.xlu0 %11436  ;;  %v16206_v49 = vpop.eup %16205 }
0x4424   :  { %15524 = vmatprep.subr.msk.mxu1 %vm356_vm1, %v11437_v3  ;;  %v11160_v54 = vmul.f32 %v16206_v49, %v16198_v26 }
0x4425   :  { %v16208_v6 = vpop.eup %16207  ;;  %v11344_v28 = vpop.permute.xlu1 %11343 }
0x4426   :  { %v11158_v33 = vmul.f32 %v16208_v6, %v16200_v16 }
0x4428   :  { %15507 = vmatprep.mubr.msk.f32.mxu0 %vm356_vm1, %v11158_v33 }
0x4429   :  { %v11340_v18 = vpop.permute.xlu1 %11339  ;;  %15508 = vmatmul.mubr.msk.f32.vlgmr.msra.gmra.mxu0 %vm356_vm1, %v11160_v54 }
0x442a   :  { %15518 = vmatpush3.xpose.msk.msra.mxu0 %vm356_vm1, %v11346_v51  ;;  %15521 = vmatprep.mubr.msk.f32.mxu0 %vm356_vm1, %v11340_v18 }
0x442b   :  { %15519 = vmatprep.subr.msk.mxu0 %vm356_vm1, %v11344_v28 }
0x442e   :  { %15520 = vmatpush3.xpose.msk.msra.mxu0 %vm356_vm1, %v11344_v28 }
0x4454   :  { %v11153_v5 = vpop.xlane.xlu0 %11152 }
0x4455   :  { %16209 = vrcp.f32 %v11153_v5 }
0x4458   :  { %v11342_v4 = vpop.permute.xlu0 %11341 }
0x4459   :  { %15522 = vmatmul.mubr.msk.f32.vlgmr.msra.gmra.mxu0 %vm356_vm1, %v11342_v4 }
0x445a   :  { %v11156_v50 = vpop.xlane.xlu1 %11155 }
0x445b   :  { %16211 = vrcp.f32 %v11156_v50 }
0x445c   :  { %v11431_v62 = vpop.permute.xlu0 %11430 }
0x445e   :  { %v11435_v22 = vpop.permute.xlu1 %11434 }
0x4462   :  { %v16210_v40 = vpop.eup %16209  ;;  %v11433_v57 = vpop.permute.xlu1 %11432 }
0x4463   :  { %v11162_v7 = vmul.f32 %v16210_v40, %v16202_v56 }
0x4465   :  { %15514 = vmatprep.mubr.msk.f32.mxu1 %vm356_vm1, %v11162_v7 }
0x4468   :  { %v16212_v34 = vpop.eup %16211 }
0x4469   :  { %v11164_v35 = vmul.f32 %v16212_v34, %v16204_v52 }
0x446b   :  { %15515 = vmatmul.mubr.msk.f32.vlgmr.msra.gmra.mxu1 %vm356_vm1, %v11164_v35 }
0x446c   :  { %15525 = vmatpush3.xpose.msk.msra.mxu1 %vm356_vm1, %v11437_v3  ;;  %15528 = vmatprep.mubr.msk.f32.mxu1 %vm356_vm1, %v11431_v62 }
0x446d   :  { %15526 = vmatprep.subr.msk.mxu1 %vm356_vm1, %v11435_v22 }
0x4470   :  { %15527 = vmatpush3.xpose.msk.msra.mxu1 %vm356_vm1, %v11435_v22 }
0x4473   :  { %15529 = vmatmul.mubr.msk.f32.vlgmr.msra.gmra.mxu1 %vm356_vm1, %v11433_v57 }
0x44e9   :  { %v18567_v46 = vpop.f32.mrf.mxu0 }
0x44eb   :  { %v18569_v61 = vpop.f32.mrf.mxu0 }
0x4519   :  { %v15523_v44 = vpop.f32.mrf.mxu0 }
0x451a   :  { %v11427_v21 = vadd.f32 %v16321_v37, %v15523_v44 }
0x451b   :  { %v11421_v23 = vpop.f32.mrf.mxu0 }
0x451c   :  { %v11422_v11 = vadd.f32 %v16322_v15, %v11421_v23  ;;  %v11524_v42 = vsel %vm356_vm1, %v11427_v21, -inf }
0x451d   :  { %11525 = vmax.xlane.f32.xlu1 %v11524_v42 }
0x451e   :  { %v11521_v59 = vsel %vm356_vm1, %v11422_v11, -inf }
0x451f   :  { %11522 = vmax.xlane.f32.xlu0 %v11521_v59 }
0x452b   :  { %v18575_v10 = vpop.f32.mrf.mxu1 }
0x452d   :  { %v18577_v31 = vpop.f32.mrf.mxu1 }
0x4533   :  { %v15530_v17 = vpop.f32.mrf.mxu1 }
0x4534   :  { %v11518_v36 = vadd.f32 %v16324_v12, %v15530_v17 }
0x4535   :  { %v11512_v26 = vpop.f32.mrf.mxu1 }
0x4536   :  { %v11513_v16 = vadd.f32 %v16323_v38, %v11512_v26  ;;  %v11530_v63 = vsel %vm356_vm1, %v11518_v36, -inf }
0x4538   :  { %v11527_v8 = vsel %vm356_vm1, %v11513_v16, -inf }
0x4539   :  { %11528 = vmax.xlane.f32.xlu0 %v11527_v8 }
0x453d   :  { %11531 = vmax.xlane.f32.xlu0 %v11530_v63 }
0x45a6   :  { %v11526_v58 = vpop.xlane.xlu1 %11525 }
0x45a7   :  { %v11534_v48 = vsub.f32 %v11427_v21, %v11526_v58  ;;  %v16325_v58 = vld [vmem:[%s17754_s6 + $0x28] sm:$0xff] }
0x45a8   :  { %v11523_v9 = vpop.xlane.xlu0 %11522 }
0x45a9   :  { %v11539_v56 = vmul.f32 1.442695, %v11534_v48  ;;  %v11533_v13 = vsub.f32 %v11422_v11, %v11523_v9 }
0x45ab   :  { %16213 = vpow2.f32 %v11539_v56  ;;  %v11537_v52 = vmul.f32 1.442695, %v11533_v13  ;;  %v16326_v56 = vld [vmem:[%s17754_s6 + $0x20] sm:$0xff] }
0x45ad   :  { %16215 = vpow2.f32 %v11537_v52 }
0x45b8   :  { %v16214_v60 = vpop.eup %16213 }
0x45b9   :  { %v11548_v45 = vsel %vm356_vm1, %v16214_v60, 0.0 }
0x45ba   :  { %v16216_v27 = vpop.eup %16215  ;;  %11549 = vadd.xlane.f32.xlu1 %v11548_v45 }
0x45bb   :  { %v11545_v0 = vsel %vm356_vm1, %v16216_v27, 0.0 }
0x45bc   :  { %11546 = vadd.xlane.f32.xlu0 %v11545_v0 }
0x45c2   :  { %v11529_v1 = vpop.xlane.xlu0 %11528 }
0x45c3   :  { %v11535_v47 = vsub.f32 %v11513_v16, %v11529_v1 }
0x45c5   :  { %v11541_v51 = vmul.f32 1.442695, %v11535_v47  ;;  %v16327_v47 = vld [vmem:[%s17754_s6 + $0x60] sm:$0xff] }
0x45c6   :  { %v11532_v43 = vpop.xlane.xlu0 %11531 }
0x45c7   :  { %v11536_v3 = vsub.f32 %v11518_v36, %v11532_v43  ;;  %16217 = vpow2.f32 %v11541_v51  ;;  %v16328_v51 = vld [vmem:[%s17754_s6 + $0x68] sm:$0xff] }
0x45c9   :  { %v11543_v49 = vmul.f32 1.442695, %v11536_v3 }
0x45cb   :  { %11565 = vrot.lane.b32.xlu1 %v18475_v29, %s16338_s19  ;;  %16219 = vpow2.f32 %v11543_v49 }
0x45cf   :  { %11654 = vrot.lane.b32.xlu1 %v18481_v14, %s16338_s19 }
0x45d2   :  { %11567 = vrot.lane.b32.xlu0 %v18460_v25, %s16338_s19 }
0x45d3   :  { %11745 = vrot.lane.b32.xlu1 %v18460_v25, %s16341_s22 }
0x45d4   :  { %v16218_v6 = vpop.eup %16217 }
0x45d5   :  { %v11551_v28 = vsel %vm356_vm1, %v16218_v6, 0.0 }
0x45d6   :  { %11652 = vrot.lane.b32.xlu0 %v18499_v2, %s16338_s19 }
0x45d7   :  { %11743 = vrot.lane.b32.xlu1 %v18475_v29, %s16341_s22 }
0x45d8   :  { %v16220_v33 = vpop.eup %16219 }
0x45d9   :  { %v11554_v54 = vsel %vm356_vm1, %v16220_v33, 0.0 }
0x45da   :  { %11836 = vrot.lane.b32.xlu0 %v18481_v14, %s16341_s22 }
0x45db   :  { %11739 = vrot.lane.b32.xlu1 %v18493_v55, %s16341_s22 }
0x45f9   :  { %11552 = vadd.xlane.f32.xlu0 %v11551_v28 }
0x45ff   :  { %11555 = vadd.xlane.f32.xlu1 %v11554_v54 }
0x460f   :  { %11741 = vrot.lane.b32.xlu0 %v18491_v24, %s16341_s22 }
0x4610   :  { %11834 = vrot.lane.b32.xlu1 %v18499_v2, %s16341_s22 }
0x4613   :  { %11830 = vrot.lane.b32.xlu0 %v18509_v53, %s16341_s22 }
0x4614   :  { %11832 = vrot.lane.b32.xlu1 %v18507_v39, %s16341_s22  ;;  %s16363_s22 = smov 5  }
0x4615   :  { %s13354_s25 = sld [smem:[%s18918_s0 + %s16363_s22]]  }
0x4643   :  { %v11550_v18 = vpop.xlane.xlu1 %11549 }
0x4644   :  { %16221 = vrcp.f32 %v11550_v18 }
0x4645   :  { %v11547_v5 = vpop.xlane.xlu0 %11546 }
0x4646   :  { %16223 = vrcp.f32 %v11547_v5 }
0x4647   :  { %v11566_v4 = vpop.permute.xlu1 %11565 }
0x4649   :  { %v11568_v50 = vpop.permute.xlu0 %11567 }
0x464a   :  { %15531 = vmatprep.subr.mxu0 %v11568_v50 }
0x464b   :  { %v11655_v40 = vpop.permute.xlu1 %11654  ;;  %15532 = vmatpush3.msra.mxu0 %v11568_v50 }
0x464c   :  { %15533 = vmatprep.subr.mxu0 %v11566_v4  ;;  %15538 = vmatprep.subr.mxu1 %v11655_v40 }
0x464d   :  { %15534 = vmatpush3.msra.mxu0 %v11566_v4  ;;  %15539 = vmatpush3.msra.mxu1 %v11655_v40  ;;  %v11653_v7 = vpop.permute.xlu0 %11652 }
0x464e   :  { %15540 = vmatprep.subr.mxu1 %v11653_v7 }
0x464f   :  { %v11746_v34 = vpop.permute.xlu1 %11745  ;;  %15541 = vmatpush3.msra.mxu1 %v11653_v7 }
0x4650   :  { %15545 = vmatprep.subr.msk.mxu0 %vm356_vm1, %v11746_v34 }
0x4651   :  { %v11837_v35 = vpop.permute.xlu0 %11836  ;;  %v16222_v62 = vpop.eup %16221 }
0x4652   :  { %15552 = vmatprep.subr.msk.mxu1 %vm356_vm1, %v11837_v35  ;;  %v11560_v37 = vmul.f32 %v16222_v62, %v16214_v60 }
0x4653   :  { %v16224_v22 = vpop.eup %16223  ;;  %v11744_v57 = vpop.permute.xlu1 %11743 }
0x4654   :  { %v11558_v44 = vmul.f32 %v16224_v22, %v16216_v27 }
0x4656   :  { %15535 = vmatprep.mubr.msk.f32.mxu0 %vm356_vm1, %v11558_v44 }
0x4657   :  { %v11740_v21 = vpop.permute.xlu1 %11739  ;;  %15536 = vmatmul.mubr.msk.f32.vlgmr.msra.gmra.mxu0 %vm356_vm1, %v11560_v37 }
0x4658   :  { %15546 = vmatpush3.xpose.msk.msra.mxu0 %vm356_vm1, %v11746_v34  ;;  %15549 = vmatprep.mubr.msk.f32.mxu0 %vm356_vm1, %v11740_v21 }
0x4659   :  { %15547 = vmatprep.subr.msk.mxu0 %vm356_vm1, %v11744_v57 }
0x465c   :  { %15548 = vmatpush3.xpose.msk.msra.mxu0 %vm356_vm1, %v11744_v57 }
0x4682   :  { %v11553_v23 = vpop.xlane.xlu0 %11552 }
0x4683   :  { %16225 = vrcp.f32 %v11553_v23 }
0x4686   :  { %v11742_v15 = vpop.permute.xlu0 %11741 }
0x4687   :  { %15550 = vmatmul.mubr.msk.f32.vlgmr.msra.gmra.mxu0 %vm356_vm1, %v11742_v15 }
0x4688   :  { %v11556_v11 = vpop.xlane.xlu1 %11555 }
0x4689   :  { %16227 = vrcp.f32 %v11556_v11 }
0x468a   :  { %v11831_v38 = vpop.permute.xlu0 %11830 }
0x468c   :  { %v11835_v16 = vpop.permute.xlu1 %11834 }
0x4690   :  { %v16226_v42 = vpop.eup %16225  ;;  %v11833_v12 = vpop.permute.xlu1 %11832 }
0x4691   :  { %v11562_v59 = vmul.f32 %v16226_v42, %v16218_v6 }
0x4693   :  { %15542 = vmatprep.mubr.msk.f32.mxu1 %vm356_vm1, %v11562_v59 }
0x4696   :  { %v16228_v17 = vpop.eup %16227 }
0x4697   :  { %v11564_v26 = vmul.f32 %v16228_v17, %v16220_v33 }
0x4699   :  { %15543 = vmatmul.mubr.msk.f32.vlgmr.msra.gmra.mxu1 %vm356_vm1, %v11564_v26 }
0x469a   :  { %15553 = vmatpush3.xpose.msk.msra.mxu1 %vm356_vm1, %v11837_v35  ;;  %15556 = vmatprep.mubr.msk.f32.mxu1 %vm356_vm1, %v11831_v38 }
0x469b   :  { %15554 = vmatprep.subr.msk.mxu1 %vm356_vm1, %v11835_v16 }
0x469e   :  { %15555 = vmatpush3.xpose.msk.msra.mxu1 %vm356_vm1, %v11835_v16 }
0x46a1   :  { %15557 = vmatmul.mubr.msk.f32.vlgmr.msra.gmra.mxu1 %vm356_vm1, %v11833_v12 }
0x4717   :  { %v18627_v36 = vpop.f32.mrf.mxu0 }
0x4719   :  { %v18629_v8 = vpop.f32.mrf.mxu0 }
0x4747   :  { %v15551_v63 = vpop.f32.mrf.mxu0 }
0x4748   :  { %v11827_v48 = vadd.f32 %v16325_v58, %v15551_v63 }
0x4749   :  { %v11821_v9 = vpop.f32.mrf.mxu0 }
0x474a   :  { %v11822_v13 = vadd.f32 %v16326_v56, %v11821_v9  ;;  %v11924_v52 = vsel %vm356_vm1, %v11827_v48, -inf }
0x474b   :  { %11925 = vmax.xlane.f32.xlu1 %v11924_v52 }
0x474c   :  { %v11921_v60 = vsel %vm356_vm1, %v11822_v13, -inf }
0x474d   :  { %11922 = vmax.xlane.f32.xlu0 %v11921_v60 }
0x4759   :  { %v18635_v45 = vpop.f32.mrf.mxu1 }
0x475b   :  { %v18637_v27 = vpop.f32.mrf.mxu1 }
0x4761   :  { %v15558_v0 = vpop.f32.mrf.mxu1 }
0x4762   :  { %v11918_v3 = vadd.f32 %v16328_v51, %v15558_v0 }
0x4763   :  { %v11912_v1 = vpop.f32.mrf.mxu1 }
0x4764   :  { %v11913_v43 = vadd.f32 %v16327_v47, %v11912_v1  ;;  %v11930_v6 = vsel %vm356_vm1, %v11918_v3, -inf }
0x4766   :  { %v11927_v49 = vsel %vm356_vm1, %v11913_v43, -inf }
0x4767   :  { %11928 = vmax.xlane.f32.xlu0 %v11927_v49 }
0x476b   :  { %11931 = vmax.xlane.f32.xlu0 %v11930_v6 }
0x47d4   :  { %v11926_v28 = vpop.xlane.xlu1 %11925 }
0x47d5   :  { %v11934_v33 = vsub.f32 %v11827_v48, %v11926_v28  ;;  %v16329_v28 = vld [vmem:[%s17754_s6 + $0x38] sm:$0xff] }
0x47d6   :  { %v11923_v54 = vpop.xlane.xlu0 %11922 }
0x47d7   :  { %v11939_v18 = vmul.f32 1.442695, %v11934_v33  ;;  %v11933_v5 = vsub.f32 %v11822_v13, %v11923_v54 }
0x47d9   :  { %16229 = vpow2.f32 %v11939_v18  ;;  %v11937_v4 = vmul.f32 1.442695, %v11933_v5  ;;  %v16330_v18 = vld [vmem:[%s17754_s6 + $0x30] sm:$0xff] }
0x47db   :  { %16231 = vpow2.f32 %v11937_v4 }
0x47e6   :  { %v16230_v50 = vpop.eup %16229 }
0x47e7   :  { %v11948_v40 = vsel %vm356_vm1, %v16230_v50, 0.0 }
0x47e8   :  { %v16232_v7 = vpop.eup %16231  ;;  %11949 = vadd.xlane.f32.xlu1 %v11948_v40 }
0x47e9   :  { %v11945_v34 = vsel %vm356_vm1, %v16232_v7, 0.0 }
0x47ea   :  { %11946 = vadd.xlane.f32.xlu0 %v11945_v34 }
0x47f0   :  { %v11929_v35 = vpop.xlane.xlu0 %11928 }
0x47f1   :  { %v11935_v62 = vsub.f32 %v11913_v43, %v11929_v35 }
0x47f3   :  { %v11941_v57 = vmul.f32 1.442695, %v11935_v62  ;;  %v16331_v62 = vld [vmem:[%s17754_s6 + $0x70] sm:$0xff] }
0x47f4   :  { %v11932_v22 = vpop.xlane.xlu0 %11931 }
0x47f5   :  { %v11936_v44 = vsub.f32 %v11918_v3, %v11932_v22  ;;  %16233 = vpow2.f32 %v11941_v57  ;;  %v16332_v57 = vld [vmem:[%s17754_s6 + $0x78] sm:$0xff] }
0x47f7   :  { %v11943_v37 = vmul.f32 1.442695, %v11936_v44 }
0x47f9   :  { %11965 = vrot.lane.b32.xlu1 %v18475_v29, %s16340_s21  ;;  %16235 = vpow2.f32 %v11943_v37 }
0x47fd   :  { %12054 = vrot.lane.b32.xlu1 %v18481_v14, %s16340_s21 }
0x4800   :  { %11967 = vrot.lane.b32.xlu0 %v18460_v25, %s16340_s21 }
0x4801   :  { %12145 = vrot.lane.b32.xlu1 %v18460_v25, %s16343_s24 }
0x4802   :  { %v16234_v21 = vpop.eup %16233 }
0x4803   :  { %v11951_v23 = vsel %vm356_vm1, %v16234_v21, 0.0 }
0x4804   :  { %12052 = vrot.lane.b32.xlu0 %v18499_v2, %s16340_s21 }
0x4805   :  { %12143 = vrot.lane.b32.xlu1 %v18475_v29, %s16343_s24 }
0x4806   :  { %v16236_v15 = vpop.eup %16235 }
0x4807   :  { %v11954_v11 = vsel %vm356_vm1, %v16236_v15, 0.0 }
0x4808   :  { %12236 = vrot.lane.b32.xlu0 %v18481_v14, %s16343_s24 }
0x4809   :  { %12139 = vrot.lane.b32.xlu1 %v18493_v55, %s16343_s24 }
0x4827   :  { %11952 = vadd.xlane.f32.xlu0 %v11951_v23 }
0x482d   :  { %11955 = vadd.xlane.f32.xlu1 %v11954_v11 }
0x483d   :  { %12141 = vrot.lane.b32.xlu0 %v18491_v24, %s16343_s24 }
0x483e   :  { %12234 = vrot.lane.b32.xlu1 %v18499_v2, %s16343_s24 }
0x4841   :  { %12230 = vrot.lane.b32.xlu0 %v18509_v53, %s16343_s24 }
0x4842   :  { %12232 = vrot.lane.b32.xlu1 %v18507_v39, %s16343_s24 }
0x4871   :  { %v11950_v55 = vpop.xlane.xlu1 %11949 }
0x4872   :  { %16237 = vrcp.f32 %v11950_v55 }
0x4873   :  { %v11947_v42 = vpop.xlane.xlu0 %11946 }
0x4874   :  { %16239 = vrcp.f32 %v11947_v42 }
0x4875   :  { %v11966_v59 = vpop.permute.xlu1 %11965 }
0x4877   :  { %v11968_v17 = vpop.permute.xlu0 %11967 }
0x4878   :  { %15559 = vmatprep.subr.mxu0 %v11968_v17 }
0x4879   :  { %v12055_v26 = vpop.permute.xlu1 %12054  ;;  %15560 = vmatpush3.msra.mxu0 %v11968_v17 }
0x487a   :  { %15561 = vmatprep.subr.mxu0 %v11966_v59  ;;  %15566 = vmatprep.subr.mxu1 %v12055_v26 }
0x487b   :  { %15562 = vmatpush3.msra.mxu0 %v11966_v59  ;;  %15567 = vmatpush3.msra.mxu1 %v12055_v26  ;;  %v12053_v24 = vpop.permute.xlu0 %12052 }
0x487c   :  { %15568 = vmatprep.subr.mxu1 %v12053_v24 }
0x487d   :  { %v12146_v38 = vpop.permute.xlu1 %12145  ;;  %15569 = vmatpush3.msra.mxu1 %v12053_v24 }
0x487e   :  { %15573 = vmatprep.subr.msk.mxu0 %vm356_vm1, %v12146_v38 }
0x487f   :  { %v12237_v39 = vpop.permute.xlu0 %12236  ;;  %v16238_v53 = vpop.eup %16237 }
0x4880   :  { %15580 = vmatprep.subr.msk.mxu1 %vm356_vm1, %v12237_v39  ;;  %v11960_v58 = vmul.f32 %v16238_v53, %v16230_v50 }
0x4881   :  { %v16240_v16 = vpop.eup %16239  ;;  %v12144_v12 = vpop.permute.xlu1 %12143 }
0x4882   :  { %v11958_v63 = vmul.f32 %v16240_v16, %v16232_v7 }
0x4884   :  { %15563 = vmatprep.mubr.msk.f32.mxu0 %vm356_vm1, %v11958_v63 }
0x4885   :  { %v12140_v48 = vpop.permute.xlu1 %12139  ;;  %15564 = vmatmul.mubr.msk.f32.vlgmr.msra.gmra.mxu0 %vm356_vm1, %v11960_v58 }
0x4886   :  { %15574 = vmatpush3.xpose.msk.msra.mxu0 %vm356_vm1, %v12146_v38  ;;  %15577 = vmatprep.mubr.msk.f32.mxu0 %vm356_vm1, %v12140_v48 }
0x4887   :  { %15575 = vmatprep.subr.msk.mxu0 %vm356_vm1, %v12144_v12 }
0x488a   :  { %15576 = vmatpush3.xpose.msk.msra.mxu0 %vm356_vm1, %v12144_v12 }
0x48b0   :  { %v11953_v9 = vpop.xlane.xlu0 %11952 }
0x48b1   :  { %16241 = vrcp.f32 %v11953_v9 }
0x48b4   :  { %v12142_v56 = vpop.permute.xlu0 %12141 }
0x48b5   :  { %15578 = vmatmul.mubr.msk.f32.vlgmr.msra.gmra.mxu0 %vm356_vm1, %v12142_v56 }
0x48b6   :  { %v11956_v13 = vpop.xlane.xlu1 %11955 }
0x48b7   :  { %16243 = vrcp.f32 %v11956_v13 }
0x48b8   :  { %v12231_v47 = vpop.permute.xlu0 %12230 }
0x48ba   :  { %v12235_v43 = vpop.permute.xlu1 %12234 }
0x48be   :  { %v16242_v52 = vpop.eup %16241  ;;  %v12233_v51 = vpop.permute.xlu1 %12232 }
0x48bf   :  { %v11962_v60 = vmul.f32 %v16242_v52, %v16234_v21 }
0x48c1   :  { %15570 = vmatprep.mubr.msk.f32.mxu1 %vm356_vm1, %v11962_v60 }
0x48c4   :  { %v16244_v0 = vpop.eup %16243 }
0x48c5   :  { %v11964_v1 = vmul.f32 %v16244_v0, %v16236_v15 }
0x48c7   :  { %15571 = vmatmul.mubr.msk.f32.vlgmr.msra.gmra.mxu1 %vm356_vm1, %v11964_v1 }
0x48c8   :  { %15581 = vmatpush3.xpose.msk.msra.mxu1 %vm356_vm1, %v12237_v39  ;;  %15584 = vmatprep.mubr.msk.f32.mxu1 %vm356_vm1, %v12231_v47 }
0x48c9   :  { %15582 = vmatprep.subr.msk.mxu1 %vm356_vm1, %v12235_v43 }
0x48cc   :  { %15583 = vmatpush3.xpose.msk.msra.mxu1 %vm356_vm1, %v12235_v43 }
0x48cf   :  { %15585 = vmatmul.mubr.msk.f32.vlgmr.msra.gmra.mxu1 %vm356_vm1, %v12233_v51 }
0x4945   :  { %v15565_v3 = vpop.f32.mrf.mxu0 }
0x4947   :  { %v12043_v49 = vpop.f32.mrf.mxu0 }
0x4975   :  { %v15579_v6 = vpop.f32.mrf.mxu0 }
0x4976   :  { %v12227_v33 = vadd.f32 %v16329_v28, %v15579_v6  ;;  %v13784_v6 = vld [vmem:[%s17969_s12 + $0x70] sm:$0xff]  ;;  %v13783_v28 = vld [vmem:[%s17969_s12 + $0x68] sm:$0xff] }
0x4977   :  { %v12221_v54 = vpop.f32.mrf.mxu0 }
0x4978   :  { %v12222_v5 = vadd.f32 %v16330_v18, %v12221_v54  ;;  %v12324_v4 = vsel %vm356_vm1, %v12227_v33, -inf  ;;  %v13781_v54 = vld [vmem:[%s17969_s12 + $0x58] sm:$0xff]  ;;  %v13780_v18 = vld [vmem:[%s17969_s12 + $0x50] sm:$0xff] }
0x4979   :  { %12325 = vmax.xlane.f32.xlu1 %v12324_v4  ;;  %v13778_v4 = vld [vmem:[%s17969_s12 + $0x40] sm:$0xff] }
0x497a   :  { %v12321_v50 = vsel %vm356_vm1, %v12222_v5, -inf }
0x497b   :  { %12322 = vmax.xlane.f32.xlu0 %v12321_v50 }
0x4987   :  { %v15572_v40 = vpop.f32.mrf.mxu1 }
0x4989   :  { %v12130_v7 = vpop.f32.mrf.mxu1 }
0x498f   :  { %v15586_v34 = vpop.f32.mrf.mxu1 }
0x4990   :  { %v12318_v44 = vadd.f32 %v16332_v57, %v15586_v34 }
0x4991   :  { %v12312_v35 = vpop.f32.mrf.mxu1 }
0x4992   :  { %v12313_v22 = vadd.f32 %v16331_v62, %v12312_v35  ;;  %v12330_v21 = vsel %vm356_vm1, %v12318_v44, -inf }
0x4994   :  { %v12327_v37 = vsel %vm356_vm1, %v12313_v22, -inf }
0x4995   :  { %12328 = vmax.xlane.f32.xlu0 %v12327_v37 }
0x4999   :  { %12331 = vmax.xlane.f32.xlu0 %v12330_v21 }
0x4a02   :  { %v12326_v23 = vpop.xlane.xlu1 %12325 }
0x4a03   :  { %v12334_v15 = vsub.f32 %v12227_v33, %v12326_v23  ;;  %v13782_v33 = vld [vmem:[%s17969_s12 + $0x60] sm:$0xff] }
0x4a04   :  { %v12323_v11 = vpop.xlane.xlu0 %12322 }
0x4a05   :  { %v12339_v55 = vmul.f32 1.442695, %v12334_v15  ;;  %v12333_v42 = vsub.f32 %v12222_v5, %v12323_v11  ;;  %v13779_v5 = vld [vmem:[%s17969_s12 + $0x48] sm:$0xff] }
0x4a07   :  { %16245 = vpow2.f32 %v12339_v55  ;;  %v12337_v59 = vmul.f32 1.442695, %v12333_v42 }
0x4a09   :  { %16247 = vpow2.f32 %v12337_v59 }
0x4a14   :  { %v16246_v17 = vpop.eup %16245 }
0x4a15   :  { %v12348_v26 = vsel %vm356_vm1, %v16246_v17, 0.0 }
0x4a16   :  { %v16248_v24 = vpop.eup %16247  ;;  %12349 = vadd.xlane.f32.xlu1 %v12348_v26 }
0x4a17   :  { %v12345_v38 = vsel %vm356_vm1, %v16248_v24, 0.0 }
0x4a18   :  { %12346 = vadd.xlane.f32.xlu0 %v12345_v38 }
0x4a1e   :  { %v12329_v39 = vpop.xlane.xlu0 %12328 }
0x4a1f   :  { %v12335_v53 = vsub.f32 %v12313_v22, %v12329_v39 }
0x4a21   :  { %v12341_v16 = vmul.f32 1.442695, %v12335_v53 }
0x4a22   :  { %v12332_v12 = vpop.xlane.xlu0 %12331 }
0x4a23   :  { %16249 = vpow2.f32 %v12341_v16  ;;  %v12336_v63 = vsub.f32 %v12318_v44, %v12332_v12 }
0x4a25   :  { %v12343_v58 = vmul.f32 1.442695, %v12336_v63 }
0x4a27   :  { %16251 = vpow2.f32 %v12343_v58 }
0x4a30   :  { %v16250_v48 = vpop.eup %16249 }
0x4a31   :  { %v12351_v9 = vsel %vm356_vm1, %v16250_v48, 0.0 }
0x4a32   :  { %12352 = vadd.xlane.f32.xlu0 %v12351_v9 }
0x4a34   :  { %v16252_v56 = vpop.eup %16251 }
0x4a35   :  { %v12354_v13 = vsel %vm356_vm1, %v16252_v56, 0.0 }
0x4a36   :  { %12355 = vadd.xlane.f32.xlu1 %v12354_v13 }
0x4a47   :  { %12365 = vrot.lane.b32.xlu1 %v18475_v29, %s16342_s23 }
0x4a48   :  { %12367 = vrot.lane.b32.xlu0 %v18460_v25, %s16342_s23 }
0x4a4b   :  { %12454 = vrot.lane.b32.xlu1 %v18481_v14, %s16342_s23 }
0x4a4c   :  { %12543 = vrot.lane.b32.xlu0 %v18629_v8, %s16342_s23 }
0x4a4f   :  { %12452 = vrot.lane.b32.xlu1 %v18499_v2, %s16342_s23 }
0x4a50   :  { %12559 = vrot.lane.b32.xlu0 %v12043_v49, %s16340_s21  ;;  %v13785_v49 = vld [vmem:[%s17969_s12 + $0x78] sm:$0xff] }
0x4a53   :  { %12545 = vrot.lane.b32.xlu1 %v18627_v36, %s16342_s23 }
0x4a54   :  { %12547 = vrot.lane.b32.xlu0 %v18637_v27, %s16342_s23 }
0x4a57   :  { %12561 = vrot.lane.b32.xlu1 %v15565_v3, %s16340_s21 }
0x4a58   :  { %12563 = vrot.lane.b32.xlu0 %v12130_v7, %s16340_s21 }
0x4a5b   :  { %12549 = vrot.lane.b32.xlu1 %v18635_v45, %s16342_s23  ;;  %s13379_s23 = sld [smem:[%s18918_s0 + %s16370_s20]]  }
0x4a5f   :  { %12565 = vrot.lane.b32.xlu1 %v15572_v40, %s16340_s21  ;;  %s13372_s21 = sld [smem:[%s18918_s0 + %s16362_s14]]  }
0x4a9f   :  { %v12350_v2 = vpop.xlane.xlu1 %12349 }
0x4aa1   :  { %v12347_v25 = vpop.xlane.xlu0 %12346 }
0x4aa2   :  { %16253 = vrcp.f32 %v12347_v25 }
0x4aa3   :  { %16255 = vrcp.f32 %v12350_v2 }
0x4aaf   :  { %v16254_v29 = vpop.eup %16253 }
0x4ab0   :  { %v12358_v14 = vmul.f32 %v16254_v29, %v16248_v24  ;;  %v16256_v52 = vpop.eup %16255 }
0x4ab1   :  { %v12360_v45 = vmul.f32 %v16256_v52, %v16246_v17  ;;  %v13853_v52 = vld [vmem:[%s18033_s18 + $0x68] sm:$0xff] }
0x4ab2   :  { %15591 = vmatprep.mubr.msk.f32.mxu0 %vm356_vm1, %v12358_v14 }
0x4abb   :  { %v12353_v36 = vpop.xlane.xlu0 %12352 }
0x4abc   :  { %16257 = vrcp.f32 %v12353_v36 }
0x4abf   :  { %v12356_v8 = vpop.xlane.xlu1 %12355  ;;  %v12368_v27 = vpop.permute.xlu0 %12367 }
0x4ac0   :  { %16259 = vrcp.f32 %v12356_v8  ;;  %15587 = vmatprep.subr.mxu0 %v12368_v27 }
0x4ac1   :  { %15588 = vmatpush3.msra.mxu0 %v12368_v27 }
0x4ac3   :  { %v12366_v60 = vpop.permute.xlu1 %12365  ;;  %v12544_v62 = vpop.permute.xlu0 %12543 }
0x4ac4   :  { %15589 = vmatprep.subr.mxu0 %v12366_v60  ;;  %v12587_v15 = vsel %vm356_vm1, %v18569_v61, %v12544_v62 }
0x4ac5   :  { %15590 = vmatpush3.msra.mxu0 %v12366_v60  ;;  %v13852_v60 = vld [vmem:[%s18033_s18 + $0x60] sm:$0xff] }
0x4ac6   :  { %15592 = vmatmul.mubr.msk.f32.vlgmr.msra.gmra.mxu0 %vm356_vm1, %v12360_v45  ;;  %15601 = vmatprep.subr.mxu0 %v13785_v49  ;;  %v13851_v45 = vld [vmem:[%s18033_s18 + $0x58] sm:$0xff] }
0x4ac7   :  { %v12455_v0 = vpop.permute.xlu1 %12454  ;;  %15602 = vmatpush3.msra.mxu0 %v13785_v49  ;;  %v12560_v57 = vpop.permute.xlu0 %12559  ;;  %v13868_v49 = vld [vmem:[%s18047_s30 + $0xe0] sm:$0xff] }
0x4ac8   :  { %15594 = vmatprep.subr.mxu1 %v12455_v0  ;;  %15603 = vmatprep.subr.mxu0 %v13784_v6  ;;  %v12591_v55 = vsel %vm1991_vm2, %v12587_v15, %v12560_v57 }
0x4ac9   :  { %v16258_v1 = vpop.eup %16257  ;;  %15595 = vmatpush3.msra.mxu1 %v12455_v0  ;;  %15604 = vmatpush3.msra.mxu0 %v13784_v6  ;;  %v13850_v0 = vld [vmem:[%s18033_s18 + $0x50] sm:$0xff]  ;;  %v13867_v6 = vld [vmem:[%s18047_s30 + $0xd8] sm:$0xff] }
0x4aca   :  { %v12362_v47 = vmul.f32 %v16258_v1, %v16250_v48  ;;  %15605 = vmatprep.subr.mxu0 %v13783_v28  ;;  %v13849_v1 = vld [vmem:[%s18033_s18 + $0x48] sm:$0xff] }
0x4acb   :  { %v12453_v43 = vpop.permute.xlu1 %12452  ;;  %15606 = vmatpush3.msra.mxu0 %v13783_v28  ;;  %v12548_v37 = vpop.permute.xlu0 %12547  ;;  %v13866_v28 = vld [vmem:[%s18047_s30 + $0xd0] sm:$0xff] }
0x4acc   :  { %15596 = vmatprep.subr.mxu1 %v12453_v43  ;;  %15598 = vmatprep.mubr.msk.f32.mxu1 %vm356_vm1, %v12362_v47  ;;  %v12589_v61 = vsel %vm356_vm1, %v18577_v31, %v12548_v37  ;;  %v13848_v47 = vld [vmem:[%s18033_s18 + $0x40] sm:$0xff] }
0x4acd   :  { %v16260_v51 = vpop.eup %16259  ;;  %15597 = vmatpush3.msra.mxu1 %v12453_v43  ;;  %15607 = vmatprep.subr.mxu0 %v13782_v33  ;;  %v13871_v43 = vld [vmem:[%s18047_s30 + $0xf8] sm:$0xff] }
0x4ace   :  { %v12364_v3 = vmul.f32 %v16260_v51, %v16252_v56  ;;  %15608 = vmatpush3.msra.mxu0 %v13782_v33  ;;  %v13870_v51 = vld [vmem:[%s18047_s30 + $0xf0] sm:$0xff]  ;;  %v13865_v33 = vld [vmem:[%s18047_s30 + $0xc8] sm:$0xff] }
0x4acf   :  { %15609 = vmatprep.subr.mxu0 %v13781_v54  ;;  %v12546_v35 = vpop.permute.xlu1 %12545  ;;  %v12564_v23 = vpop.permute.xlu0 %12563 }
0x4ad0   :  { %15599 = vmatmul.mubr.msk.f32.vlgmr.msra.gmra.mxu1 %vm356_vm1, %v12364_v3  ;;  %15610 = vmatpush3.msra.mxu0 %v13781_v54  ;;  %v12588_v42 = vsel %vm356_vm1, %v18567_v46, %v12546_v35  ;;  %v12593_v39 = vsel %vm1991_vm2, %v12589_v61, %v12564_v23  ;;  %v13869_v3 = vld [vmem:[%s18047_s30 + $0xe8] sm:$0xff]  ;;  %v13864_v54 = vld [vmem:[%s18047_s30 + $0xc0] sm:$0xff] }
0x4ad1   :  { %15611 = vmatprep.subr.mxu0 %v13780_v18 }
0x4ad2   :  { %15612 = vmatpush3.msra.mxu0 %v13780_v18  ;;  %v13863_v18 = vld [vmem:[%s18047_s30 + $0xb8] sm:$0xff] }
0x4ad3   :  { %15613 = vmatprep.subr.mxu0 %v13779_v5  ;;  %v12562_v22 = vpop.permute.xlu1 %12561 }
0x4ad4   :  { %15614 = vmatpush3.msra.mxu0 %v13779_v5  ;;  %v12592_v17 = vsel %vm1991_vm2, %v12588_v42, %v12562_v22  ;;  %v13862_v5 = vld [vmem:[%s18047_s30 + $0xb0] sm:$0xff] }
0x4ad5   :  { %15615 = vmatprep.subr.mxu0 %v13778_v4 }
0x4ad6   :  { %15616 = vmatpush3.msra.mxu0 %v13778_v4  ;;  %v13861_v4 = vld [vmem:[%s18047_s30 + $0xa8] sm:$0xff] }
0x4ad7   :  { %v12550_v44 = vpop.permute.xlu1 %12549  ;;  %15645 = vmatprep.subr.mxu0 %v13871_v43 }
0x4ad8   :  { %v12590_v46 = vsel %vm356_vm1, %v18575_v10, %v12550_v44 }
0x4adb   :  { %v12566_v21 = vpop.permute.xlu1 %12565 }
0x4adc   :  { %v12594_v16 = vsel %vm1991_vm2, %v12590_v46, %v12566_v21 }
0x4b86   :  { %v15593_v50 = vpop.f32.mrf.mxu0 }
0x4b87   :  { %12577 = vrot.lane.b32.xlu1 %v15593_v50, %s16338_s19  ;;  %v13860_v50 = vld [vmem:[%s18047_s30 + $0xa0] sm:$0xff] }
0x4b88   :  { %v12443_v40 = vpop.f32.mrf.mxu0 }
0x4b89   :  { %12575 = vrot.lane.b32.xlu0 %v12443_v40, %s16338_s19  ;;  %v13859_v40 = vld [vmem:[%s18047_s30 + $0x98] sm:$0xff] }
0x4b90   :  { %v15600_v7 = vpop.f32.mrf.mxu1 }
0x4b91   :  { %12581 = vrot.lane.b32.xlu1 %v15600_v7, %s16338_s19 }
0x4b92   :  { %v12530_v34 = vpop.f32.mrf.mxu1 }
0x4b93   :  { %12579 = vrot.lane.b32.xlu0 %v12530_v34, %s16338_s19  ;;  %s13376_s19 = sld [smem:[%s18918_s0 + %s16369_s5]]  }
0x4bf9   :  { %v12578_v11 = vpop.permute.xlu1 %12577 }
0x4bfa   :  { %v12596_v24 = vsel %vm1996_vm3, %v12592_v17, %v12578_v11  ;;  %v13847_v17 = vld [vmem:[%s18065_s8 + $0x1] ss:$0 sm:$0xff] }
0x4bfb   :  { %v12576_v59 = vpop.permute.xlu0 %12575 }
0x4bfc   :  { %v12595_v26 = vsel %vm1996_vm3, %v12591_v55, %v12576_v59 }
0x4bfd   :  { %15617 = vmatprep.mubr.msk.f32.mxu0 %vm185_vm0, %v12595_v26 }
0x4bfe   :  { %15618 = vmatmul.mubr.msk.f32.vlgmr.msra.gmra.mxu0 %vm185_vm0, %v12596_v24 }
0x4bff   :  { %15646 = vmatpush3.msra.mxu0 %v13871_v43 }
0x4c00   :  { %15647 = vmatprep.subr.mxu0 %v13870_v51 }
0x4c01   :  { %15648 = vmatpush3.msra.mxu0 %v13870_v51 }
0x4c02   :  { %15649 = vmatprep.subr.mxu0 %v13869_v3 }
0x4c03   :  { %v12582_v38 = vpop.permute.xlu1 %12581  ;;  %15650 = vmatpush3.msra.mxu0 %v13869_v3 }
0x4c04   :  { %v12598_v63 = vsel %vm1996_vm3, %v12594_v16, %v12582_v38  ;;  %15651 = vmatprep.subr.mxu0 %v13868_v49 }
0x4c05   :  { %v12580_v53 = vpop.permute.xlu0 %12579  ;;  %15652 = vmatpush3.msra.mxu0 %v13868_v49 }
0x4c06   :  { %v12597_v12 = vsel %vm1996_vm3, %v12593_v39, %v12580_v53  ;;  %15653 = vmatprep.subr.mxu0 %v13867_v6 }
0x4c07   :  { %15620 = vmatprep.mubr.msk.f32.mxu0 %vm185_vm0, %v12597_v12  ;;  %15654 = vmatpush3.msra.mxu0 %v13867_v6 }
0x4c08   :  { %15621 = vmatmul.mubr.msk.f32.gmra.mxu0 %vm185_vm0, %v12598_v63  ;;  %15655 = vmatprep.subr.mxu0 %v13866_v28  ;;  %v13858_v63 = vld [vmem:[%s18047_s30 + $0x90] sm:$0xff] }
0x4c09   :  { %15656 = vmatpush3.msra.mxu0 %v13866_v28 }
0x4c0a   :  { %15657 = vmatprep.subr.mxu0 %v13865_v33 }
0x4c0b   :  { %15658 = vmatpush3.msra.mxu0 %v13865_v33 }
0x4c0c   :  { %15659 = vmatprep.subr.mxu0 %v13864_v54 }
0x4c0d   :  { %15660 = vmatpush3.msra.mxu0 %v13864_v54 }
0x4c0e   :  { %15661 = vmatprep.subr.mxu0 %v13863_v18 }
0x4c0f   :  { %15662 = vmatpush3.msra.mxu0 %v13863_v18 }
0x4c10   :  { %15663 = vmatprep.subr.mxu0 %v13862_v5 }
0x4c11   :  { %15664 = vmatpush3.msra.mxu0 %v13862_v5 }
0x4c12   :  { %15665 = vmatprep.subr.mxu0 %v13861_v4 }
0x4c13   :  { %15666 = vmatpush3.msra.mxu0 %v13861_v4 }
0x4c14   :  { %15667 = vmatprep.subr.mxu0 %v13860_v50 }
0x4c15   :  { %15668 = vmatpush3.msra.mxu0 %v13860_v50 }
0x4c16   :  { %15669 = vmatprep.subr.mxu0 %v13859_v40 }
0x4c17   :  { %15670 = vmatpush3.msra.mxu0 %v13859_v40 }
0x4c18   :  { %15671 = vmatprep.subr.mxu0 %v13858_v63 }
0x4c19   :  { %15672 = vmatpush3.msra.mxu0 %v13858_v63  ;;  %v13180_v63 = vld [vmem:[%s18863_s10 + $0x70] sm:$0xff] }
0x4cbe   :  { %v15619_v58 = vpop.f32.mrf.mxu0 }
0x4cbf   :  { %v18756_v31 = vadd.f32 %v15619_v58, %v18443_v32  ;;  %v13857_v58 = vld [vmem:[%s18047_s30 + $0x88] sm:$0xff] }
0x4cc0   :  { %v12677_v48 = vpop.f32.mrf.mxu0  ;;  %15673 = vmatprep.subr.mxu0 %v13857_v58 }
0x4cc1   :  { %v18759_v9 = vadd.f32 %v12677_v48, %v18446_v30  ;;  %v12703_v10 = vmul.f32 %v18756_v31, %v18756_v31  ;;  %15674 = vmatpush3.msra.mxu0 %v13857_v58  ;;  %v13856_v48 = vld [vmem:[%s18047_s30 + $0x80] sm:$0xff] }
0x4cc2   :  { %15675 = vmatprep.subr.mxu0 %v13856_v48 }
0x4cc3   :  { %v12709_v56 = vsel %vm185_vm0, %v12703_v10, 0.0  ;;  %v12702_v13 = vmul.f32 %v18759_v9, %v18759_v9  ;;  %15676 = vmatpush3.msra.mxu0 %v13856_v48  ;;  %v13179_v48 = vld [vmem:[%s18863_s10 + $0x68] sm:$0xff] }
0x4cc4   :  { %12710 = vadd.xlane.f32.xlu1 %v12709_v56  ;;  %15748 = vmatprep.subr.mxu0 %v16334_v20 }
0x4cc5   :  { %v12706_v25 = vsel %vm185_vm0, %v12702_v13, 0.0 }
0x4cc6   :  { %12707 = vadd.xlane.f32.xlu0 %v12706_v25 }
0x4cc8   :  { %v15622_v32 = vpop.f32.mrf.mxu0 }
0x4cc9   :  { %v18768_v30 = vadd.f32 %v15622_v32, %v18455_v41  ;;  %v13855_v41 = vld [vmem:[%s18033_s18 + $0x78] sm:$0xff] }
0x4cca   :  { %v12687_v29 = vpop.f32.mrf.mxu0  ;;  %15623 = vmatprep.subr.mxu1 %v13855_v41 }
0x4ccb   :  { %v18771_v14 = vadd.f32 %v12687_v29, %v18458_v19  ;;  %v12705_v8 = vmul.f32 %v18768_v30, %v18768_v30  ;;  %15624 = vmatpush3.msra.mxu1 %v13855_v41  ;;  %v13854_v19 = vld [vmem:[%s18033_s18 + $0x70] sm:$0xff] }
0x4ccc   :  { %15625 = vmatprep.subr.mxu1 %v13854_v19 }
0x4ccd   :  { %v12704_v2 = vmul.f32 %v18771_v14, %v18771_v14  ;;  %v12715_v27 = vsel %vm185_vm0, %v12705_v8, 0.0  ;;  %15626 = vmatpush3.msra.mxu1 %v13854_v19 }
0x4cce   :  { %15627 = vmatprep.subr.mxu1 %v13853_v52 }
0x4ccf   :  { %v12712_v36 = vsel %vm185_vm0, %v12704_v2, 0.0  ;;  %15628 = vmatpush3.msra.mxu1 %v13853_v52 }
0x4cd0   :  { %12713 = vadd.xlane.f32.xlu0 %v12712_v36  ;;  %15629 = vmatprep.subr.mxu1 %v13852_v60 }
0x4cd1   :  { %15630 = vmatpush3.msra.mxu1 %v13852_v60 }
0x4cd2   :  { %15631 = vmatprep.subr.mxu1 %v13851_v45 }
0x4cd3   :  { %15632 = vmatpush3.msra.mxu1 %v13851_v45 }
0x4cd4   :  { %12716 = vadd.xlane.f32.xlu0 %v12715_v27  ;;  %15633 = vmatprep.subr.mxu1 %v13850_v0 }
0x4cd5   :  { %15634 = vmatpush3.msra.mxu1 %v13850_v0 }
0x4cd6   :  { %15635 = vmatprep.subr.mxu1 %v13849_v1 }
0x4cd7   :  { %15636 = vmatpush3.msra.mxu1 %v13849_v1 }
0x4cd8   :  { %15637 = vmatprep.subr.mxu1 %v13848_v47 }
0x4cd9   :  { %15638 = vmatpush3.msra.mxu1 %v13848_v47 }
0x4cda   :  { %15683 = vmatprep.subr.mxu1 %v16334_v20 }
0x4d4d   :  { %v12711_v7 = vpop.xlane.xlu1 %12710 }
0x4d4e   :  { %v12719_v34 = vmul.f32 0.015625, %v12711_v7 }
0x4d4f   :  { %v12708_v35 = vpop.xlane.xlu0 %12707 }
0x4d50   :  { %v12723_v62 = vadd.f32 1e-06, %v12719_v34  ;;  %v12718_v22 = vmul.f32 0.015625, %v12708_v35  ;;  %v13876_v35 = vld [vmem:[%s13372_s21] ss:$0 sm:$0xff] }
0x4d52   :  { %16261 = vrsqrt.f32 %v12723_v62  ;;  %v12722_v57 = vadd.f32 1e-06, %v12718_v22 }
0x4d54   :  { %16263 = vrsqrt.f32 %v12722_v57 }
0x4d59   :  { %v12714_v44 = vpop.xlane.xlu0 %12713 }
0x4d5a   :  { %v12720_v37 = vmul.f32 0.015625, %v12714_v44 }
0x4d5c   :  { %v12724_v21 = vadd.f32 1e-06, %v12720_v37 }
0x4d5d   :  { %v12717_v23 = vpop.xlane.xlu0 %12716 }
0x4d5e   :  { %16265 = vrsqrt.f32 %v12724_v21  ;;  %v12721_v15 = vmul.f32 0.015625, %v12717_v23 }
0x4d5f   :  { %v16262_v11 = vpop.eup %16261 }
0x4d60   :  { %v12725_v55 = vadd.f32 1e-06, %v12721_v15  ;;  %v12731_v59 = vmul.f32 %v16262_v11, %v18756_v31 }
0x4d61   :  { %v16264_v42 = vpop.eup %16263 }
0x4d62   :  { %16267 = vrsqrt.f32 %v12725_v55  ;;  %v12730_v26 = vmul.f32 %v16264_v42, %v18759_v9  ;;  %v12741_v61 = vmul.f32 %v13847_v17, %v12731_v59  ;;  %v13003_v59 = vld [vmem:[%s13354_s25] sm:$0x3] }
0x4d64   :  { %v12740_v24 = vmul.f32 %v13847_v17, %v12730_v26  ;;  %v13083_v26 = vld [vmem:[%s18835_s9 + $0x30] sm:$0xff] }
0x4d66   :  { %15639 = vmatprep.mubr.msk.f32.mxu1 %vm185_vm0, %v12740_v24  ;;  %v13082_v24 = vld [vmem:[%s18835_s9 + $0x28] sm:$0xff] }
0x4d67   :  { %15640 = vmatmul.mubr.msk.f32.vlgmr.msra.gmra.mxu1 %vm185_vm0, %v12741_v61  ;;  %v13081_v61 = vld [vmem:[%s18835_s9 + $0x20] sm:$0xff] }
0x4d6b   :  { %v16266_v38 = vpop.eup %16265 }
0x4d6c   :  { %v12732_v39 = vmul.f32 %v16266_v38, %v18771_v14  ;;  %v13080_v38 = vld [vmem:[%s18835_s9 + $0x18] sm:$0xff] }
0x4d6e   :  { %v12742_v46 = vmul.f32 %v13847_v17, %v12732_v39  ;;  %v13079_v39 = vld [vmem:[%s18835_s9 + $0x10] sm:$0xff] }
0x4d6f   :  { %v16268_v53 = vpop.eup %16267 }
0x4d70   :  { %15642 = vmatprep.mubr.msk.f32.mxu1 %vm185_vm0, %v12742_v46  ;;  %v12733_v16 = vmul.f32 %v16268_v53, %v18768_v30  ;;  %v13078_v46 = vld [vmem:[%s18835_s9 + $0x8] sm:$0xff]  ;;  %v13077_v53 = vld [vmem:[%s18835_s9] sm:$0xff] }
0x4d72   :  { %v12743_v12 = vmul.f32 %v13847_v17, %v12733_v16  ;;  %v13084_v17 = vld [vmem:[%s18835_s9 + $0x38] sm:$0xff] }
0x4d73   :  { %v13181_v16 = vld [vmem:[%s18863_s10 + $0x78] sm:$0xff] }
0x4d74   :  { %15643 = vmatmul.mubr.msk.f32.gmra.mxu1 %vm185_vm0, %v12743_v12 }
0x4d75   :  { %15691 = vmatprep.mubr.msk.f32.mxu1 %vm16361_vm4, %v16334_v20 }
0x4e27   :  { %v15641_v10 = vpop.f32.mrf.mxu1 }
0x4e28   :  { %v12868_v25 = vmax.f32 %v15641_v10, 0.0  ;;  %v13178_v10 = vld [vmem:[%s18863_s10 + $0x60] sm:$0xff] }
0x4e29   :  { %v12848_v56 = vpop.f32.mrf.mxu1 }
0x4e2a   :  { %v12867_v13 = vmax.f32 %v12848_v56, 0.0  ;;  %v13177_v56 = vld [vmem:[%s18863_s10 + $0x58] sm:$0xff] }
0x4e2c   :  { %15677 = vmatprep.mubr.f32.mxu0 %v12867_v13  ;;  %v13176_v13 = vld [vmem:[%s18863_s10 + $0x50] sm:$0xff] }
0x4e2d   :  { %15678 = vmatmul.mubr.f32.vlgmr.msra.gmra.mxu0 %v12868_v25  ;;  %v13175_v25 = vld [vmem:[%s18863_s10 + $0x48] sm:$0xff] }
0x4e34   :  { %v15644_v32 = vpop.f32.mrf.mxu1 }
0x4e35   :  { %v12870_v36 = vmax.f32 %v15644_v32, 0.0  ;;  %v13174_v32 = vld [vmem:[%s18863_s10 + $0x40] sm:$0xff] }
0x4e36   :  { %v12858_v29 = vpop.f32.mrf.mxu1 }
0x4e37   :  { %v12869_v2 = vmax.f32 %v12858_v29, 0.0  ;;  %v13173_v29 = vld [vmem:[%s18863_s10 + $0x38] sm:$0xff] }
0x4e39   :  { %15680 = vmatprep.mubr.f32.mxu0 %v12869_v2  ;;  %v13172_v2 = vld [vmem:[%s18863_s10 + $0x30] sm:$0xff] }
0x4e3a   :  { %15681 = vmatmul.mubr.f32.gmra.mxu0 %v12870_v36  ;;  %v13171_v36 = vld [vmem:[%s18863_s10 + $0x28] sm:$0xff] }
0x4e3b   :  { %15756 = vmatprep.mubr.msk.f32.mxu0 %vm16361_vm4, %v16334_v20 }
0x4eed   :  { %v15679_v8 = vpop.f32.mrf.mxu0 }
0x4eee   :  { %v12957_v19 = vadd.f32 %v15679_v8, %v18756_v31  ;;  %v13170_v8 = vld [vmem:[%s18863_s10 + $0x20] sm:$0xff] }
0x4eef   :  { %v12937_v27 = vpop.f32.mrf.mxu0 }
0x4ef0   :  { %v12956_v45 = vadd.f32 %v12937_v27, %v18759_v9  ;;  %v12962_v47 = vmul.f32 %v12957_v19, %v12957_v19  ;;  %v13169_v27 = vld [vmem:[%s18863_s10 + $0x18] sm:$0xff] }
0x4ef2   :  { %v12961_v3 = vmul.f32 %v12956_v45, %v12956_v45  ;;  %v12968_v6 = vsel %vm185_vm0, %v12962_v47, 0.0 }
0x4ef4   :  { %v12965_v31 = vsel %vm185_vm0, %v12961_v3, 0.0  ;;  %v13261_v3 = vld [vmem:[%s13377_s16 + $0x8] sm:$0xff] }
0x4efa   :  { %v15682_v41 = vpop.f32.mrf.mxu0 }
0x4efb   :  { %v12959_v52 = vadd.f32 %v15682_v41, %v18768_v30  ;;  %v13168_v41 = vld [vmem:[%s18863_s10 + $0x10] sm:$0xff] }
0x4efc   :  { %v12947_v60 = vpop.f32.mrf.mxu0 }
0x4efd   :  { %v12964_v0 = vmul.f32 %v12959_v52, %v12959_v52  ;;  %v12958_v1 = vadd.f32 %v12947_v60, %v18771_v14  ;;  %v13263_v60 = vld [vmem:[%s13377_s16 + $0x18] sm:$0xff] }
0x4efe   :  { %15749 = vmatpush3.msra.mxu0 %v13263_v60 }
0x4eff   :  { %v12963_v43 = vmul.f32 %v12958_v1, %v12958_v1  ;;  %v12974_v51 = vsel %vm185_vm0, %v12964_v0, 0.0  ;;  %15750 = vmatprep.subr.mxu0 %v16334_v20 }
0x4f00   :  { %12975 = vadd.xlane.f32.xlu0 %v12974_v51  ;;  %v13262_v51 = vld [vmem:[%s13377_s16 + $0x10] sm:$0xff] }
0x4f01   :  { %v12971_v49 = vsel %vm185_vm0, %v12963_v43, 0.0  ;;  %15751 = vmatpush3.msra.mxu0 %v13262_v51 }
0x4f02   :  { %12972 = vadd.xlane.f32.xlu1 %v12971_v49  ;;  %15752 = vmatprep.subr.mxu0 %v16334_v20  ;;  %v13260_v49 = vld [vmem:[%s13377_s16] sm:$0xff] }
0x4f03   :  { %15753 = vmatpush3.msra.mxu0 %v13261_v3 }
0x4f04   :  { %12969 = vadd.xlane.f32.xlu0 %v12968_v6  ;;  %15754 = vmatprep.subr.mxu0 %v16334_v20  ;;  %v66_v6 = vstv %s13378_s4 }
0x4f05   :  { %15755 = vmatpush3.msra.mxu0 %v13260_v49  ;;  %67 = vst [vmem:[#allocation2] sm:$0x1] %v66_v6 }
0x4f06   :  { %12966 = vadd.xlane.f32.xlu1 %v12965_v31  ;;  %v13880_v31 = vld [vmem:[%s13376_s19] ss:$0 sm:$0xff] }
0x4f89   :  { %v12976_v9 = vpop.xlane.xlu0 %12975 }
0x4f8a   :  { %v12980_v30 = vmul.f32 0.015625, %v12976_v9 }
0x4f8b   :  { %v12973_v14 = vpop.xlane.xlu1 %12972 }
0x4f8c   :  { %v12984_v28 = vadd.f32 1e-06, %v12980_v30  ;;  %v12979_v33 = vmul.f32 0.015625, %v12973_v14 }
0x4f8d   :  { %v12970_v54 = vpop.xlane.xlu0 %12969 }
0x4f8e   :  { %16269 = vrsqrt.f32 %v12984_v28  ;;  %v12983_v18 = vadd.f32 1e-06, %v12979_v33  ;;  %v12978_v5 = vmul.f32 0.015625, %v12970_v54 }
0x4f8f   :  { %v12967_v4 = vpop.xlane.xlu1 %12966 }
0x4f90   :  { %16271 = vrsqrt.f32 %v12983_v18  ;;  %v12982_v50 = vadd.f32 1e-06, %v12978_v5  ;;  %v12977_v40 = vmul.f32 0.015625, %v12967_v4 }
0x4f92   :  { %16273 = vrsqrt.f32 %v12982_v50  ;;  %v12981_v7 = vadd.f32 1e-06, %v12977_v40 }
0x4f94   :  { %16275 = vrsqrt.f32 %v12981_v7 }
0x4f9b   :  { %v16270_v34 = vpop.eup %16269 }
0x4f9c   :  { %v12992_v62 = vmul.f32 %v16270_v34, %v12959_v52  ;;  %v13166_v52 = vld [vmem:[%s18863_s10] sm:$0xff] }
0x4f9d   :  { %v16272_v22 = vpop.eup %16271 }
0x4f9e   :  { %v13002_v57 = vmul.f32 %v13876_v35, %v12992_v62  ;;  %v12991_v44 = vmul.f32 %v16272_v22, %v12958_v1 }
0x4f9f   :  { %v16274_v37 = vpop.eup %16273 }
0x4fa0   :  { %15684 = vmatpush3.msra.mxu1 %v13002_v57  ;;  %v13001_v21 = vmul.f32 %v13876_v35, %v12991_v44  ;;  %v12990_v23 = vmul.f32 %v16274_v37, %v12957_v19  ;;  %v13167_v19 = vld [vmem:[%s18863_s10 + $0x8] sm:$0xff] }
0x4fa1   :  { %v16276_v15 = vpop.eup %16275  ;;  %15685 = vmatprep.subr.mxu1 %v16334_v20 }
0x4fa2   :  { %15686 = vmatpush3.msra.mxu1 %v13001_v21  ;;  %v13000_v11 = vmul.f32 %v13876_v35, %v12990_v23  ;;  %v12989_v55 = vmul.f32 %v16276_v15, %v12956_v45  ;;  %v13878_v45 = vld [vmem:[%s13374_s27] ss:$0 sm:$0xff] }
0x4fa3   :  { %15687 = vmatprep.subr.mxu1 %v16334_v20 }
0x4fa4   :  { %15688 = vmatpush3.msra.mxu1 %v13000_v11  ;;  %v12999_v42 = vmul.f32 %v13876_v35, %v12989_v55 }
0x4fa5   :  { %15689 = vmatprep.subr.mxu1 %v16334_v20 }
0x4fa6   :  { %15690 = vmatpush3.msra.mxu1 %v12999_v42 }
0x4fa7   :  { %15692 = vmatmul.mubr.msk.f32.vlgmr.msra.gmra.mxu1 %vm1991_vm2, %v13003_v59  ;;  %15694 = vmatprep.subr.mxu1 %v16334_v20 }
0x4fa8   :  { %15695 = vmatpush3.msra.mxu1 %v13084_v17  ;;  %15710 = vmatprep.mubr.msk.f32.mxu1 %vm16361_vm4, %v16334_v20 }
0x4fa9   :  { %15696 = vmatprep.subr.mxu1 %v16334_v20 }
0x4faa   :  { %15697 = vmatpush3.msra.mxu1 %v13083_v26 }
0x4fab   :  { %15698 = vmatprep.subr.mxu1 %v16334_v20 }
0x4fac   :  { %15699 = vmatpush3.msra.mxu1 %v13082_v24 }
0x4fad   :  { %15700 = vmatprep.subr.mxu1 %v16334_v20 }
0x4fae   :  { %15701 = vmatpush3.msra.mxu1 %v13081_v61 }
0x4faf   :  { %15702 = vmatprep.subr.mxu1 %v16334_v20 }
0x4fb0   :  { %15703 = vmatpush3.msra.mxu1 %v13080_v38 }
0x4fb1   :  { %15704 = vmatprep.subr.mxu1 %v16334_v20 }
0x4fb2   :  { %15705 = vmatpush3.msra.mxu1 %v13079_v39 }
0x4fb3   :  { %15706 = vmatprep.subr.mxu1 %v16334_v20 }
0x4fb4   :  { %15707 = vmatpush3.msra.mxu1 %v13078_v46 }
0x4fb5   :  { %15708 = vmatprep.subr.mxu1 %v16334_v20 }
0x4fb6   :  { %15709 = vmatpush3.msra.mxu1 %v13077_v53 }
0x4fb7   :  { %15713 = vmatprep.subr.mxu1 %v16334_v20 }
0x5067   :  { %v13073_v12 = vpop.f32.mrf.mxu1 }
0x5068   :  { %15711 = vmatmul.mubr.msk.f32.vlgmr.msra.gmra.mxu1 %vm185_vm0, %v13073_v12 }
0x5069   :  { %v15693_v58 = vpop.f32.mrf.mxu1  ;;  %15714 = vmatpush3.msra.mxu1 %v13181_v16  ;;  %15745 = vmatprep.mubr.msk.f32.mxu1 %vm16361_vm4, %v16334_v20 }
0x506a   :  { %15715 = vmatprep.subr.mxu1 %v16334_v20 }
0x506b   :  { %15716 = vmatpush3.msra.mxu1 %v13180_v63 }
0x506c   :  { %15717 = vmatprep.subr.mxu1 %v16334_v20 }
0x506d   :  { %15718 = vmatpush3.msra.mxu1 %v13179_v48 }
0x506e   :  { %15719 = vmatprep.subr.mxu1 %v16334_v20 }
0x506f   :  { %15720 = vmatpush3.msra.mxu1 %v13178_v10 }
0x5070   :  { %15721 = vmatprep.subr.mxu1 %v16334_v20 }
0x5071   :  { %15722 = vmatpush3.msra.mxu1 %v13177_v56 }
0x5072   :  { %15723 = vmatprep.subr.mxu1 %v16334_v20 }
0x5073   :  { %15724 = vmatpush3.msra.mxu1 %v13176_v13 }
0x5074   :  { %15725 = vmatprep.subr.mxu1 %v16334_v20 }
0x5075   :  { %15726 = vmatpush3.msra.mxu1 %v13175_v25 }
0x5076   :  { %15727 = vmatprep.subr.mxu1 %v16334_v20 }
0x5077   :  { %15728 = vmatpush3.msra.mxu1 %v13174_v32 }
0x5078   :  { %15729 = vmatprep.subr.mxu1 %v16334_v20 }
0x5079   :  { %15730 = vmatpush3.msra.mxu1 %v13173_v29 }
0x507a   :  { %15731 = vmatprep.subr.mxu1 %v16334_v20 }
0x507b   :  { %15732 = vmatpush3.msra.mxu1 %v13172_v2 }
0x507c   :  { %15733 = vmatprep.subr.mxu1 %v16334_v20 }
0x507d   :  { %15734 = vmatpush3.msra.mxu1 %v13171_v36 }
0x507e   :  { %15735 = vmatprep.subr.mxu1 %v16334_v20 }
0x507f   :  { %15736 = vmatpush3.msra.mxu1 %v13170_v8 }
0x5080   :  { %15737 = vmatprep.subr.mxu1 %v16334_v20 }
0x5081   :  { %15738 = vmatpush3.msra.mxu1 %v13169_v27 }
0x5082   :  { %15739 = vmatprep.subr.mxu1 %v16334_v20 }
0x5083   :  { %15740 = vmatpush3.msra.mxu1 %v13168_v41 }
0x5084   :  { %15741 = vmatprep.subr.mxu1 %v16334_v20 }
0x5085   :  { %15742 = vmatpush3.msra.mxu1 %v13167_v19 }
0x5086   :  { %15743 = vmatprep.subr.mxu1 %v16334_v20  ;;  %v13881_v20 = vld [vmem:[#allocation2] ss:$0 sm:$0xff] }
0x5087   :  { %15744 = vmatpush3.msra.mxu1 %v13166_v52 }
0x5128   :  { %v13161_v0 = vpop.f32.mrf.mxu1 }
0x5129   :  { %v13162_v1 = vadd.f32 %v13878_v45, %v13161_v0 }
0x512a   :  { %v15712_v47 = vpop.f32.mrf.mxu1 }
0x512b   :  { %v13165_v43 = vmax.f32 %v13162_v1, 0.0 }
0x512d   :  { %15746 = vmatmul.mubr.f32.vlgmr.msra.gmra.mxu1 %v13165_v43 }
0x51ed   :  { %v13255_v9 = vpop.f32.mrf.mxu1 }
0x51ee   :  { %v13256_v30 = vadd.f32 %v13880_v31, %v13255_v9 }
0x51ef   :  { %v15747_v14 = vpop.f32.mrf.mxu1 }
0x51f0   :  { %v13259_v28 = vmax.f32 %v13256_v30, 0.0 }
0x51f2   :  { %15757 = vmatmul.mubr.msk.f32.vlgmr.msra.gmra.mxu0 %vm1991_vm2, %v13259_v28 }
0x52b2   :  { %v13340_v33 = vpop.f32.mrf.mxu0 }
0x52b3   :  { %v13341_v54 = vadd.f32 %v13881_v20, %v13340_v33 }
0x52b4   :  { %v15758_v18 = vpop.f32.mrf.mxu0 }
0x52b5   :  { %13345 = vst.msk [vmem:[%s13379_s23] sm:$0x3] %vm13344_vm5, %v13341_v54 }

</bundles_post_ra>
